<compile_context>
chip_gen: v5e
topology: v5e:2x2
jax: 0.10.0
libtpu: 0.0.40
codegen_flags: <defaults>
</compile_context>

<pallas_src>
import functools

import jax
import jax.numpy as jnp
from jax.experimental import pallas as pl
from jax.experimental.pallas import tpu as pltpu


# ----------------------------------------------------------------------------
# Model dimensions
# ----------------------------------------------------------------------------
PATCH = 16          # encoder patch size (16x16 patch-embed of the 256x256 image)
C_FEAT = 32         # feature-map channels
N_JOINTS = 16       # heatmap channels
HIDDEN = 64         # decoder hidden width
N_VERTS = 32        # synthetic hand vertices

# Packed encoder-head column layout (second matmul, width padded to 128 lanes).
H_HMS = (0, 16)
H_DP = (16, 19)
H_MASK = (19, 20)
H_HMSF = (20, 52)
H_DPF = (52, 84)
H_MID = (84, 116)
HEADS_PAD = 128

# Lane-dense encoder output slab layout (width 128).
SLAB_HMS = (0, 16)
SLAB_DP = (16, 19)
SLAB_MASK = (19, 20)
SLAB_FM = (20, 52)

# Packed decoder output layout (width padded to 256 lanes).
D_POSE = (0, 48)
D_SHAPE = (48, 58)
D_CAM = (58, 61)
D_VERTS = (61, 157)
DEC_PAD = 256


# ----------------------------------------------------------------------------
# Kernel 1: fused encoder + mid_model (one launch, lane-dense 128-wide output)
# ----------------------------------------------------------------------------
def _encoder_kernel(patches_ref, wpe_ref, bpe_ref, wh_ref, bh_ref,
                    wf2_ref, wf3_ref, slab_ref):
    # patch-embed: (tm, 768)bf16 @ (768, 32)bf16 -> f32, bias+relu in f32.
    x = patches_ref[...]
    img_f = jnp.dot(x, wpe_ref[...], preferred_element_type=jnp.float32)
    img_f = jnp.maximum(img_f + bpe_ref[...], 0.0)                  # (tm, 32) f32

    # All six heads + the img-part of mid_fuse in a single 128-wide MXU pass,
    # operating on the VMEM-resident img_f (never written to HBM).
    y = jnp.dot(img_f.astype(jnp.bfloat16), wh_ref[...],
                preferred_element_type=jnp.float32) + bh_ref[...]   # (tm, 128) f32

    mask = jax.nn.sigmoid(y[:, H_MASK[0]:H_MASK[1]])
    hms_fm = jnp.maximum(y[:, H_HMSF[0]:H_HMSF[1]], 0.0)
    dp_fm = jnp.maximum(y[:, H_DPF[0]:H_DPF[1]], 0.0)

    # mid_model fuse: split (96,32) weight into three (32,32) pieces so the
    # channel concat never exists; fuse bias is folded into bh.
    fm = y[:, H_MID[0]:H_MID[1]]
    fm = fm + jnp.dot(hms_fm.astype(jnp.bfloat16), wf2_ref[...],
                      preferred_element_type=jnp.float32)
    fm = fm + jnp.dot(dp_fm.astype(jnp.bfloat16), wf3_ref[...],
                      preferred_element_type=jnp.float32)
    fm = jnp.maximum(fm, 0.0)                                       # (tm, 32) f32

    # Single lane-dense output slab: [hms | dp | mask | fmaps | zero-pad].
    slab_ref[...] = jnp.zeros_like(slab_ref)
    slab_ref[:, SLAB_HMS[0]:SLAB_DP[1]] = y[:, H_HMS[0]:H_DP[1]].astype(slab_ref.dtype)
    slab_ref[:, SLAB_MASK[0]:SLAB_MASK[1]] = mask.astype(slab_ref.dtype)
    slab_ref[:, SLAB_FM[0]:SLAB_FM[1]] = fm.astype(slab_ref.dtype)


def _pick_tile(m):
    for tm in (1024, 512, 256):
        if m >= tm and m % tm == 0:
            return tm
    return m


def fused_encoder(patches, packed):
    M, K = patches.shape
    tm = _pick_tile(M)
    return pl.pallas_call(
        _encoder_kernel,
        out_shape=jax.ShapeDtypeStruct((M, HEADS_PAD), jnp.float32),
        grid_spec=pltpu.PrefetchScalarGridSpec(
            num_scalar_prefetch=0,
            grid=(M // tm,),
            in_specs=[
                pl.BlockSpec((tm, K), lambda i: (i, 0)),
                pl.BlockSpec((K, C_FEAT), lambda i: (0, 0)),
                pl.BlockSpec((1, C_FEAT), lambda i: (0, 0)),
                pl.BlockSpec((C_FEAT, HEADS_PAD), lambda i: (0, 0)),
                pl.BlockSpec((1, HEADS_PAD), lambda i: (0, 0)),
                pl.BlockSpec((C_FEAT, C_FEAT), lambda i: (0, 0)),
                pl.BlockSpec((C_FEAT, C_FEAT), lambda i: (0, 0)),
            ],
            out_specs=pl.BlockSpec((tm, HEADS_PAD), lambda i: (i, 0)),
        ),
        compiler_params=pltpu.CompilerParams(
            dimension_semantics=("parallel",)),
    )(patches, packed["w_pe"], packed["b_pe"], packed["w_heads"],
      packed["b_heads"], packed["w_f2"], packed["w_f3"])


# ----------------------------------------------------------------------------
# Kernel 2: fused global-average-pool + decoder MLP (one launch, 256-wide out)
# ----------------------------------------------------------------------------
def _decoder_kernel(fm_ref, wh_ref, bh_ref, wd_ref, bd_ref, o_ref):
    gap = jnp.mean(fm_ref[...], axis=1)                             # (B, C) f32
    h = jnp.dot(gap.astype(jnp.bfloat16), wh_ref[...],
                preferred_element_type=jnp.float32) + bh_ref[...]
    h = jnp.maximum(h, 0.0)                                         # (B, HIDDEN) f32
    out = jnp.dot(h.astype(jnp.bfloat16), wd_ref[...],
                  preferred_element_type=jnp.float32) + bd_ref[...]
    o_ref[...] = out.astype(o_ref.dtype)                            # (B, 256)


def fused_decoder(fmaps_bhwc, packed):
    B, hw, C = fmaps_bhwc.shape
    return pl.pallas_call(
        _decoder_kernel,
        out_shape=jax.ShapeDtypeStruct((B, DEC_PAD), jnp.float32),
        grid_spec=pltpu.PrefetchScalarGridSpec(
            num_scalar_prefetch=0,
            grid=(1,),
            in_specs=[
                pl.BlockSpec((B, hw, C), lambda i: (0, 0, 0)),
                pl.BlockSpec((C_FEAT, HIDDEN), lambda i: (0, 0)),
                pl.BlockSpec((1, HIDDEN), lambda i: (0, 0)),
                pl.BlockSpec((HIDDEN, DEC_PAD), lambda i: (0, 0)),
                pl.BlockSpec((1, DEC_PAD), lambda i: (0, 0)),
            ],
            out_specs=pl.BlockSpec((B, DEC_PAD), lambda i: (0, 0)),
        ),
    )(fmaps_bhwc, packed["w_hid"], packed["b_hid"],
      packed["w_dec"], packed["b_dec"])


# ----------------------------------------------------------------------------
# Deterministic parameter construction + packing into fused-kernel weights
# ----------------------------------------------------------------------------
def _lin_init(key, k_in, k_out):
    kw, kb = jax.random.split(key)
    scale = 1.0 / jnp.sqrt(jnp.float32(k_in))
    w = jax.random.uniform(kw, (k_in, k_out), jnp.float32, -scale, scale)
    b = jax.random.uniform(kb, (k_out,), jnp.float32, -scale, scale)
    return w, b


def init_params(key):
    keys = jax.random.split(key, 12)
    p = {}
    patch_dim = PATCH * PATCH * 3
    p["patch_embed"] = _lin_init(keys[0], patch_dim, C_FEAT)       # encoder stem
    p["hms_head"] = _lin_init(keys[1], C_FEAT, N_JOINTS)           # heatmaps
    p["hms_fmap"] = _lin_init(keys[2], C_FEAT, C_FEAT)
    p["dp_head"] = _lin_init(keys[3], C_FEAT, 3)                   # densepose-ish
    p["dp_fmap"] = _lin_init(keys[4], C_FEAT, C_FEAT)
    p["mask_head"] = _lin_init(keys[5], C_FEAT, 1)                 # segmentation mask
    p["mid_fuse"] = _lin_init(keys[6], 3 * C_FEAT, C_FEAT)         # mid_model fuse
    p["dec_hidden"] = _lin_init(keys[7], C_FEAT, HIDDEN)           # decoder MLP
    p["dec_pose"] = _lin_init(keys[8], HIDDEN, N_JOINTS * 3)
    p["dec_shape"] = _lin_init(keys[9], HIDDEN, 10)
    p["dec_cam"] = _lin_init(keys[10], HIDDEN, 3)
    p["dec_verts"] = _lin_init(keys[11], HIDDEN, N_VERTS * 3)
    return p


def pack_params(p):
    bf16, f32 = jnp.bfloat16, jnp.float32

    w_pe, b_pe = p["patch_embed"]
    w_hms, b_hms = p["hms_head"]
    w_dp, b_dp = p["dp_head"]
    w_mask, b_mask = p["mask_head"]
    w_hmsf, b_hmsf = p["hms_fmap"]
    w_dpf, b_dpf = p["dp_fmap"]
    w_fuse, b_fuse = p["mid_fuse"]
    w_f1 = w_fuse[0:C_FEAT]                 # img_fmaps contribution
    w_f2 = w_fuse[C_FEAT:2 * C_FEAT]        # hms_fmaps contribution
    w_f3 = w_fuse[2 * C_FEAT:3 * C_FEAT]    # dp_fmaps contribution

    # One (32, 128) weight covering all heads + fuse-img part (lane-dense MXU pass).
    w_heads = jnp.concatenate([w_hms, w_dp, w_mask, w_hmsf, w_dpf, w_f1], axis=1)
    w_heads = jnp.pad(w_heads, ((0, 0), (0, HEADS_PAD - w_heads.shape[1])))
    b_heads = jnp.concatenate([b_hms, b_dp, b_mask, b_hmsf, b_dpf, b_fuse])
    b_heads = jnp.pad(b_heads, (0, HEADS_PAD - b_heads.shape[0])).reshape(1, -1)

    # Decoder heads packed into one (64, 256) weight.
    w_hid, b_hid = p["dec_hidden"]
    w_pose, b_pose = p["dec_pose"]
    w_shape, b_shape = p["dec_shape"]
    w_cam, b_cam = p["dec_cam"]
    w_verts, b_verts = p["dec_verts"]
    w_dec = jnp.concatenate([w_pose, w_shape, w_cam, w_verts], axis=1)
    w_dec = jnp.pad(w_dec, ((0, 0), (0, DEC_PAD - w_dec.shape[1])))
    b_dec = jnp.concatenate([b_pose, b_shape, b_cam, b_verts])
    b_dec = jnp.pad(b_dec, (0, DEC_PAD - b_dec.shape[0])).reshape(1, -1)

    return {
        "w_pe": w_pe.astype(bf16), "b_pe": b_pe.reshape(1, -1).astype(f32),
        "w_heads": w_heads.astype(bf16), "b_heads": b_heads.astype(f32),
        "w_f2": w_f2.astype(bf16), "w_f3": w_f3.astype(bf16),
        "w_hid": w_hid.astype(bf16), "b_hid": b_hid.reshape(1, -1).astype(f32),
        "w_dec": w_dec.astype(bf16), "b_dec": b_dec.astype(f32),
    }


# ----------------------------------------------------------------------------
# IntagNet forward (matches the PyTorch wrapper's control flow)
# ----------------------------------------------------------------------------
def intagnet_forward(packed, img_nchw):
    B, Cin, H, W = img_nchw.shape
    assert Cin == 3

    # transforms.Resize(256): shorter side -> 256, bilinear.
    # TODO(synk): resize is plain-JAX glue (jax.image.resize), not a kernel.
    scale = 256.0 / min(H, W)
    new_h, new_w = int(round(H * scale)), int(round(W * scale))
    img = jax.image.resize(img_nchw, (B, 3, new_h, new_w), method="bilinear")

    gh, gw = new_h // PATCH, new_w // PATCH
    hw = gh * gw

    # NCHW -> NHWC -> (B*gh*gw, 768) im2col, in bf16 (halves the HBM traffic
    # for the dominant transfer and feeds the MXU's native bf16 path).
    # TODO(synk): im2col stays XLA glue; could be folded into the kernel DMA.
    x = jnp.transpose(img, (0, 2, 3, 1)).astype(jnp.bfloat16)
    patches = (
        x.reshape(B, gh, PATCH, gw, PATCH, 3)
        .transpose(0, 1, 3, 2, 4, 5)
        .reshape(B * hw, PATCH * PATCH * 3))

    # -------- fused encoder + mid_model (single pallas_call) --------
    slab = fused_encoder(patches, packed)                 # (B*hw, 128) f32

    hms_flat = slab[:, SLAB_HMS[0]:SLAB_HMS[1]]
    dp_flat = slab[:, SLAB_DP[0]:SLAB_DP[1]]
    mask_flat = slab[:, SLAB_MASK[0]:SLAB_MASK[1]]
    fmaps_flat = slab[:, SLAB_FM[0]:SLAB_FM[1]]

    def to_nchw(flat, c):
        return flat.reshape(B, gh, gw, c).transpose(0, 3, 1, 2)

    hms = to_nchw(hms_flat, N_JOINTS)                     # (B, 16, gh, gw)
    mask = to_nchw(mask_flat, 1)                          # (B, 1, gh, gw)
    dp = to_nchw(dp_flat, 3)                              # (B, 3, gh, gw)
    fmaps = to_nchw(fmaps_flat, C_FEAT)                   # (B, C, gh, gw)

    # -------- fused GAP + decoder (single pallas_call) --------
    dec = fused_decoder(fmaps_flat.reshape(B, hw, C_FEAT), packed)   # (B, 256)

    pose = dec[:, D_POSE[0]:D_POSE[1]]
    shape_p = dec[:, D_SHAPE[0]:D_SHAPE[1]]
    cam = dec[:, D_CAM[0]:D_CAM[1]]
    verts = dec[:, D_VERTS[0]:D_VERTS[1]].reshape(B, N_VERTS, 3)
    result = dec[:, D_POSE[0]:D_CAM[1]]   # == concat([pose, shape, cam])

    paramsDict = {"pose": pose, "shape": shape_p, "cam": cam}
    handDictList = [{"verts3d": verts}]
    otherInfo = {"fmaps": fmaps}

    # Wrapper semantics of IntagNet.forward:
    if hms is not None:
        otherInfo["hms"] = hms
    if mask is not None:
        otherInfo["mask"] = mask
    if dp is not None:
        otherInfo["dense"] = dp
    return result, paramsDict, handDictList, otherInfo


# ----------------------------------------------------------------------------
if __name__ == "__main__":
    key = jax.random.PRNGKey(0)
    k_param, k_img = jax.random.split(key)
    params = init_params(k_param)
    packed = pack_params(params)

    # Small input, NCHW like the PyTorch module expects.
    img = jax.random.normal(k_img, (2, 3, 64, 64), jnp.float32)

    fwd = jax.jit(intagnet_forward)
    result, paramsDict, handDictList, otherInfo = fwd(packed, img)

    jax.block_until_ready(result)
    jax.block_until_ready(otherInfo["hms"])
    jax.block_until_ready(otherInfo["mask"])
    jax.block_until_ready(otherInfo["dense"])
    jax.block_until_ready(otherInfo["fmaps"])
    jax.block_until_ready(handDictList[0]["verts3d"])

    assert result.shape == (2, N_JOINTS * 3 + 10 + 3)
    assert otherInfo["hms"].shape == (2, N_JOINTS, 16, 16)
    assert otherInfo["mask"].shape == (2, 1, 16, 16)
    assert otherInfo["dense"].shape == (2, 3, 16, 16)
    assert otherInfo["fmaps"].shape == (2, C_FEAT, 16, 16)
    assert handDictList[0]["verts3d"].shape == (2, N_VERTS, 3)
    assert jnp.all(jnp.isfinite(result))

    print("KERNEL_OK")
</pallas_src>

<mosaic_0001>
module attributes {stable_mosaic.version = 11 : i64} {
  func.func @_encoder_kernel(%arg0: i32, %arg1: memref<512x768xbf16, #tpu.memory_space<vmem>>, %arg2: memref<768x32xbf16, #tpu.memory_space<vmem>>, %arg3: memref<1x32xf32, #tpu.memory_space<vmem>>, %arg4: memref<32x128xbf16, #tpu.memory_space<vmem>>, %arg5: memref<1x128xf32, #tpu.memory_space<vmem>>, %arg6: memref<32x32xbf16, #tpu.memory_space<vmem>>, %arg7: memref<32x32xbf16, #tpu.memory_space<vmem>>, %arg8: memref<512x128xf32, #tpu.memory_space<vmem>>) attributes {dimension_semantics = [#tpu.dimension_semantics<parallel>], iteration_bounds = array<i64: 1>, scalar_prefetch = 0 : i64, scratch_operands = 0 : i64, tpu.core_type = #tpu.core_type<tc>, window_params = [{transform_indices = @transform_0, window_bounds = array<i64: 512, 768>}, {pipeline_mode = #tpu.pipeline_mode<synchronous>, transform_indices = @transform_1, window_bounds = array<i64: 768, 32>}, {pipeline_mode = #tpu.pipeline_mode<synchronous>, transform_indices = @transform_2, window_bounds = array<i64: 1, 32>}, {pipeline_mode = #tpu.pipeline_mode<synchronous>, transform_indices = @transform_3, window_bounds = array<i64: 32, 128>}, {pipeline_mode = #tpu.pipeline_mode<synchronous>, transform_indices = @transform_4, window_bounds = array<i64: 1, 128>}, {pipeline_mode = #tpu.pipeline_mode<synchronous>, transform_indices = @transform_5, window_bounds = array<i64: 32, 32>}, {pipeline_mode = #tpu.pipeline_mode<synchronous>, transform_indices = @transform_6, window_bounds = array<i64: 32, 32>}, {transform_indices = @transform_7, window_bounds = array<i64: 512, 128>}]} {
    %c0 = arith.constant 0 : index
    %c0_0 = arith.constant 0 : index
    %0 = vector.load %arg1[%c0, %c0_0] : memref<512x768xbf16, #tpu.memory_space<vmem>>, vector<512x768xbf16>
    %c0_1 = arith.constant 0 : index
    %c0_2 = arith.constant 0 : index
    %1 = vector.load %arg2[%c0_1, %c0_2] : memref<768x32xbf16, #tpu.memory_space<vmem>>, vector<768x32xbf16>
    %cst = arith.constant dense<0.000000e+00> : vector<512x32xf32>
    %2 = tpu.matmul %0, %1, %cst {dimension_numbers = #tpu.dot_dimension_numbers<[1], [0], [0], [1], [0, 0, 1, 1], [], []>} : vector<512x768xbf16>, vector<768x32xbf16>, vector<512x32xf32> -> vector<512x32xf32>
    %c0_3 = arith.constant 0 : index
    %c0_4 = arith.constant 0 : index
    %3 = vector.load %arg3[%c0_3, %c0_4] : memref<1x32xf32, #tpu.memory_space<vmem>>, vector<1x32xf32>
    %4 = vector.broadcast %3 : vector<1x32xf32> to vector<512x32xf32>
    %5 = arith.addf %2, %4 : vector<512x32xf32>
    %cst_5 = arith.constant 0.000000e+00 : f32
    %6 = vector.broadcast %cst_5 : f32 to vector<512x32xf32>
    %7 = arith.maximumf %5, %6 : vector<512x32xf32>
    %8 = arith.truncf %7 : vector<512x32xf32> to vector<512x32xbf16>
    %c0_6 = arith.constant 0 : index
    %c0_7 = arith.constant 0 : index
    %9 = vector.load %arg4[%c0_6, %c0_7] : memref<32x128xbf16, #tpu.memory_space<vmem>>, vector<32x128xbf16>
    %cst_8 = arith.constant dense<0.000000e+00> : vector<512x128xf32>
    %10 = tpu.matmul %8, %9, %cst_8 {dimension_numbers = #tpu.dot_dimension_numbers<[1], [0], [0], [1], [0, 0, 1, 1], [], []>} : vector<512x32xbf16>, vector<32x128xbf16>, vector<512x128xf32> -> vector<512x128xf32>
    %c0_9 = arith.constant 0 : index
    %c0_10 = arith.constant 0 : index
    %11 = vector.load %arg5[%c0_9, %c0_10] : memref<1x128xf32, #tpu.memory_space<vmem>>, vector<1x128xf32>
    %12 = vector.broadcast %11 : vector<1x128xf32> to vector<512x128xf32>
    %13 = arith.addf %10, %12 : vector<512x128xf32>
    %14 = vector.extract_strided_slice %13 {offsets = [0, 19], sizes = [512, 1], strides = [1, 1]} : vector<512x128xf32> to vector<512x1xf32>
    %15 = arith.negf %14 : vector<512x1xf32>
    %16 = math.exp %15 : vector<512x1xf32>
    %cst_11 = arith.constant 1.000000e+00 : f32
    %17 = vector.broadcast %cst_11 : f32 to vector<512x1xf32>
    %18 = arith.addf %17, %16 : vector<512x1xf32>
    %19 = arith.divf %17, %18 : vector<512x1xf32>
    %20 = vector.extract_strided_slice %13 {offsets = [0, 20], sizes = [512, 32], strides = [1, 1]} : vector<512x128xf32> to vector<512x32xf32>
    %cst_12 = arith.constant 0.000000e+00 : f32
    %21 = vector.broadcast %cst_12 : f32 to vector<512x32xf32>
    %22 = arith.maximumf %20, %21 : vector<512x32xf32>
    %23 = vector.extract_strided_slice %13 {offsets = [0, 52], sizes = [512, 32], strides = [1, 1]} : vector<512x128xf32> to vector<512x32xf32>
    %cst_13 = arith.constant 0.000000e+00 : f32
    %24 = vector.broadcast %cst_13 : f32 to vector<512x32xf32>
    %25 = arith.maximumf %23, %24 : vector<512x32xf32>
    %26 = vector.extract_strided_slice %13 {offsets = [0, 84], sizes = [512, 32], strides = [1, 1]} : vector<512x128xf32> to vector<512x32xf32>
    %27 = arith.truncf %22 : vector<512x32xf32> to vector<512x32xbf16>
    %c0_14 = arith.constant 0 : index
    %c0_15 = arith.constant 0 : index
    %28 = vector.load %arg6[%c0_14, %c0_15] : memref<32x32xbf16, #tpu.memory_space<vmem>>, vector<32x32xbf16>
    %cst_16 = arith.constant dense<0.000000e+00> : vector<512x32xf32>
    %29 = tpu.matmul %27, %28, %cst_16 {dimension_numbers = #tpu.dot_dimension_numbers<[1], [0], [0], [1], [0, 0, 1, 1], [], []>} : vector<512x32xbf16>, vector<32x32xbf16>, vector<512x32xf32> -> vector<512x32xf32>
    %30 = arith.addf %26, %29 : vector<512x32xf32>
    %31 = arith.truncf %25 : vector<512x32xf32> to vector<512x32xbf16>
    %c0_17 = arith.constant 0 : index
    %c0_18 = arith.constant 0 : index
    %32 = vector.load %arg7[%c0_17, %c0_18] : memref<32x32xbf16, #tpu.memory_space<vmem>>, vector<32x32xbf16>
    %cst_19 = arith.constant dense<0.000000e+00> : vector<512x32xf32>
    %33 = tpu.matmul %31, %32, %cst_19 {dimension_numbers = #tpu.dot_dimension_numbers<[1], [0], [0], [1], [0, 0, 1, 1], [], []>} : vector<512x32xbf16>, vector<32x32xbf16>, vector<512x32xf32> -> vector<512x32xf32>
    %34 = arith.addf %30, %33 : vector<512x32xf32>
    %cst_20 = arith.constant 0.000000e+00 : f32
    %35 = vector.broadcast %cst_20 : f32 to vector<512x32xf32>
    %36 = arith.maximumf %34, %35 : vector<512x32xf32>
    %cst_21 = arith.constant 0.000000e+00 : f32
    %37 = vector.broadcast %cst_21 : f32 to vector<512x128xf32>
    %c0_22 = arith.constant 0 : index
    %c0_23 = arith.constant 0 : index
    %38 = vector.load %arg8[%c0_22, %c0_23] : memref<512x128xf32, #tpu.memory_space<vmem>>, vector<512x128xf32>
    tpu.vector_store %arg8[%c0_22, %c0_23], %37 {strides = array<i32>} : memref<512x128xf32, #tpu.memory_space<vmem>>, vector<512x128xf32>,
    %39 = vector.extract_strided_slice %13 {offsets = [0, 0], sizes = [512, 19], strides = [1, 1]} : vector<512x128xf32> to vector<512x19xf32>
    %c0_24 = arith.constant 0 : index
    %c0_25 = arith.constant 0 : index
    %40 = vector.load %arg8[%c0_24, %c0_25] : memref<512x128xf32, #tpu.memory_space<vmem>>, vector<512x19xf32>
    tpu.vector_store %arg8[%c0_24, %c0_25], %39 {strides = array<i32>} : memref<512x128xf32, #tpu.memory_space<vmem>>, vector<512x19xf32>,
    %c0_26 = arith.constant 0 : index
    %c19 = arith.constant 19 : index
    %41 = vector.load %arg8[%c0_26, %c19] : memref<512x128xf32, #tpu.memory_space<vmem>>, vector<512x1xf32>
    tpu.vector_store %arg8[%c0_26, %c19], %19 {strides = array<i32>} : memref<512x128xf32, #tpu.memory_space<vmem>>, vector<512x1xf32>,
    %c0_27 = arith.constant 0 : index
    %c20 = arith.constant 20 : index
    %42 = vector.load %arg8[%c0_27, %c20] : memref<512x128xf32, #tpu.memory_space<vmem>>, vector<512x32xf32>
    tpu.vector_store %arg8[%c0_27, %c20], %36 {strides = array<i32>} : memref<512x128xf32, #tpu.memory_space<vmem>>, vector<512x32xf32>,
    return
  }
  func.func @transform_0(%arg0: i32) -> (i32, i32) {
    %c0_i32 = arith.constant 0 : i32
    %c0_i32_0 = arith.constant 0 : i32
    return %arg0, %c0_i32 : i32, i32
  }
  func.func @transform_1(%arg0: i32) -> (i32, i32) {
    %c0_i32 = arith.constant 0 : i32
    %c0_i32_0 = arith.constant 0 : i32
    %c0_i32_1 = arith.constant 0 : i32
    return %c0_i32, %c0_i32_0 : i32, i32
  }
  func.func @transform_2(%arg0: i32) -> (i32, i32) {
    %c0_i32 = arith.constant 0 : i32
    %c0_i32_0 = arith.constant 0 : i32
    %c0_i32_1 = arith.constant 0 : i32
    return %c0_i32, %c0_i32_0 : i32, i32
  }
  func.func @transform_3(%arg0: i32) -> (i32, i32) {
    %c0_i32 = arith.constant 0 : i32
    %c0_i32_0 = arith.constant 0 : i32
    %c0_i32_1 = arith.constant 0 : i32
    return %c0_i32, %c0_i32_0 : i32, i32
  }
  func.func @transform_4(%arg0: i32) -> (i32, i32) {
    %c0_i32 = arith.constant 0 : i32
    %c0_i32_0 = arith.constant 0 : i32
    %c0_i32_1 = arith.constant 0 : i32
    return %c0_i32, %c0_i32_0 : i32, i32
  }
  func.func @transform_5(%arg0: i32) -> (i32, i32) {
    %c0_i32 = arith.constant 0 : i32
    %c0_i32_0 = arith.constant 0 : i32
    %c0_i32_1 = arith.constant 0 : i32
    return %c0_i32, %c0_i32_0 : i32, i32
  }
  func.func @transform_6(%arg0: i32) -> (i32, i32) {
    %c0_i32 = arith.constant 0 : i32
    %c0_i32_0 = arith.constant 0 : i32
    %c0_i32_1 = arith.constant 0 : i32
    return %c0_i32, %c0_i32_0 : i32, i32
  }
  func.func @transform_7(%arg0: i32) -> (i32, i32) {
    %c0_i32 = arith.constant 0 : i32
    %c0_i32_0 = arith.constant 0 : i32
    return %arg0, %c0_i32 : i32, i32
  }
}

module attributes {stable_mosaic.version = 11 : i64} {
  func.func @_decoder_kernel(%arg0: i32, %arg1: memref<2x256x32xf32, #tpu.memory_space<vmem>>, %arg2: memref<32x64xbf16, #tpu.memory_space<vmem>>, %arg3: memref<1x64xf32, #tpu.memory_space<vmem>>, %arg4: memref<64x256xbf16, #tpu.memory_space<vmem>>, %arg5: memref<1x256xf32, #tpu.memory_space<vmem>>, %arg6: memref<2x256xf32, #tpu.memory_space<vmem>>) attributes {dimension_semantics = [#tpu.dimension_semantics<arbitrary>], iteration_bounds = array<i64: 1>, scalar_prefetch = 0 : i64, scratch_operands = 0 : i64, tpu.core_type = #tpu.core_type<tc>, window_params = [{pipeline_mode = #tpu.pipeline_mode<synchronous>, transform_indices = @transform_0, window_bounds = array<i64: 2, 256, 32>}, {pipeline_mode = #tpu.pipeline_mode<synchronous>, transform_indices = @transform_1, window_bounds = array<i64: 32, 64>}, {pipeline_mode = #tpu.pipeline_mode<synchronous>, transform_indices = @transform_2, window_bounds = array<i64: 1, 64>}, {pipeline_mode = #tpu.pipeline_mode<synchronous>, transform_indices = @transform_3, window_bounds = array<i64: 64, 256>}, {pipeline_mode = #tpu.pipeline_mode<synchronous>, transform_indices = @transform_4, window_bounds = array<i64: 1, 256>}, {pipeline_mode = #tpu.pipeline_mode<synchronous>, transform_indices = @transform_5, window_bounds = array<i64: 2, 256>}]} {
    %c0 = arith.constant 0 : index
    %c0_0 = arith.constant 0 : index
    %c0_1 = arith.constant 0 : index
    %0 = vector.load %arg1[%c0, %c0_0, %c0_1] : memref<2x256x32xf32, #tpu.memory_space<vmem>>, vector<2x256x32xf32>
    %cst = arith.constant dense<0.000000e+00> : vector<2x32xf32>
    %1 = vector.multi_reduction <add>, %0, %cst [1] : vector<2x256x32xf32> to vector<2x32xf32>
    %cst_2 = arith.constant 2.560000e+02 : f32
    %2 = vector.broadcast %cst_2 : f32 to vector<2x32xf32>
    %3 = arith.divf %1, %2 : vector<2x32xf32>
    %4 = arith.truncf %3 : vector<2x32xf32> to vector<2x32xbf16>
    %c0_3 = arith.constant 0 : index
    %c0_4 = arith.constant 0 : index
    %5 = vector.load %arg2[%c0_3, %c0_4] : memref<32x64xbf16, #tpu.memory_space<vmem>>, vector<32x64xbf16>
    %cst_5 = arith.constant dense<0.000000e+00> : vector<2x64xf32>
    %6 = tpu.matmul %4, %5, %cst_5 {dimension_numbers = #tpu.dot_dimension_numbers<[1], [0], [0], [1], [0, 0, 1, 1], [], []>} : vector<2x32xbf16>, vector<32x64xbf16>, vector<2x64xf32> -> vector<2x64xf32>
    %c0_6 = arith.constant 0 : index
    %c0_7 = arith.constant 0 : index
    %7 = vector.load %arg3[%c0_6, %c0_7] : memref<1x64xf32, #tpu.memory_space<vmem>>, vector<1x64xf32>
    %8 = vector.broadcast %7 : vector<1x64xf32> to vector<2x64xf32>
    %9 = arith.addf %6, %8 : vector<2x64xf32>
    %cst_8 = arith.constant 0.000000e+00 : f32
    %10 = vector.broadcast %cst_8 : f32 to vector<2x64xf32>
    %11 = arith.maximumf %9, %10 : vector<2x64xf32>
    %12 = arith.truncf %11 : vector<2x64xf32> to vector<2x64xbf16>
    %c0_9 = arith.constant 0 : index
    %c0_10 = arith.constant 0 : index
    %13 = vector.load %arg4[%c0_9, %c0_10] : memref<64x256xbf16, #tpu.memory_space<vmem>>, vector<64x256xbf16>
    %cst_11 = arith.constant dense<0.000000e+00> : vector<2x256xf32>
    %14 = tpu.matmul %12, %13, %cst_11 {dimension_numbers = #tpu.dot_dimension_numbers<[1], [0], [0], [1], [0, 0, 1, 1], [], []>} : vector<2x64xbf16>, vector<64x256xbf16>, vector<2x256xf32> -> vector<2x256xf32>
    %c0_12 = arith.constant 0 : index
    %c0_13 = arith.constant 0 : index
    %15 = vector.load %arg5[%c0_12, %c0_13] : memref<1x256xf32, #tpu.memory_space<vmem>>, vector<1x256xf32>
    %16 = vector.broadcast %15 : vector<1x256xf32> to vector<2x256xf32>
    %17 = arith.addf %14, %16 : vector<2x256xf32>
    %c0_14 = arith.constant 0 : index
    %c0_15 = arith.constant 0 : index
    %18 = vector.load %arg6[%c0_14, %c0_15] : memref<2x256xf32, #tpu.memory_space<vmem>>, vector<2x256xf32>
    tpu.vector_store %arg6[%c0_14, %c0_15], %17 {strides = array<i32>} : memref<2x256xf32, #tpu.memory_space<vmem>>, vector<2x256xf32>,
    return
  }
  func.func @transform_0(%arg0: i32) -> (i32, i32, i32) {
    %c0_i32 = arith.constant 0 : i32
    %c0_i32_0 = arith.constant 0 : i32
    %c0_i32_1 = arith.constant 0 : i32
    %c0_i32_2 = arith.constant 0 : i32
    return %c0_i32, %c0_i32_0, %c0_i32_1 : i32, i32, i32
  }
  func.func @transform_1(%arg0: i32) -> (i32, i32) {
    %c0_i32 = arith.constant 0 : i32
    %c0_i32_0 = arith.constant 0 : i32
    %c0_i32_1 = arith.constant 0 : i32
    return %c0_i32, %c0_i32_0 : i32, i32
  }
  func.func @transform_2(%arg0: i32) -> (i32, i32) {
    %c0_i32 = arith.constant 0 : i32
    %c0_i32_0 = arith.constant 0 : i32
    %c0_i32_1 = arith.constant 0 : i32
    return %c0_i32, %c0_i32_0 : i32, i32
  }
  func.func @transform_3(%arg0: i32) -> (i32, i32) {
    %c0_i32 = arith.constant 0 : i32
    %c0_i32_0 = arith.constant 0 : i32
    %c0_i32_1 = arith.constant 0 : i32
    return %c0_i32, %c0_i32_0 : i32, i32
  }
  func.func @transform_4(%arg0: i32) -> (i32, i32) {
    %c0_i32 = arith.constant 0 : i32
    %c0_i32_0 = arith.constant 0 : i32
    %c0_i32_1 = arith.constant 0 : i32
    return %c0_i32, %c0_i32_0 : i32, i32
  }
  func.func @transform_5(%arg0: i32) -> (i32, i32) {
    %c0_i32 = arith.constant 0 : i32
    %c0_i32_0 = arith.constant 0 : i32
    %c0_i32_1 = arith.constant 0 : i32
    return %c0_i32, %c0_i32_0 : i32, i32
  }
}

</mosaic_0001>

<bundles_post_ra>
// kernel: intagnet_forward.3
= control target key start
LH: loop header
LB: loop body
LE: loop exit
PB: predicated region body
PF: predicated region fallthrough
CT: control target
= control target key end

     0   :  { %vm85_vm0 = vcmask 261120   ;;  %vm247_vm2 = vcmask 1041409   ;;  %vm334_vm3 = vcmask 523264   ;;  %vm367_vm4 = vcmask 1041408   ;;  %s783_s1 = inlined_call_operand.vmem [shape: bf16[32,64], index: 1, kind: input, shape index: {}]   ;;  %s784_s0 = inlined_call_operand.vmem [shape: f32[2,256,32], index: 0, kind: input, shape index: {}]   ;;  %s785_s2 = inlined_call_operand.vmem [shape: f32[1,64], index: 2, kind: input, shape index: {}]   ;;  %s786_s3 = inlined_call_operand.vmem [shape: bf16[64,256], index: 3, kind: input, shape index: {}]   ;;  %s787_s4 = inlined_call_operand.vmem [shape: f32[1,256], index: 4, kind: input, shape index: {}]   ;;  %s788_s5 = inlined_call_operand.vmem [shape: f32[2,256], index: 5, kind: output, shape index: {}]  }
   0x1   :  { %v419_v0 = vld [vmem:[%s783_s1 + $0x8] sm:$0xff]  ;;  %v21_v1 = vld [vmem:[%s784_s0] sm:$0xff]  ;;  %v23_v3 = vld [vmem:[%s784_s0 + $0x10] sm:$0xff] }
   0x2   :  { %v22_v2 = vld [vmem:[%s784_s0 + $0x8] sm:$0xff]  ;;  %v24_v4 = vld [vmem:[%s784_s0 + $0x18] sm:$0xff]  ;;  %v86_v5 = vsel %vm85_vm0, %v21_v1, 0.0  ;;  %271 = vmatpush.bf16.msra.mxu0 %v419_v0  ;;  %v418_v6 = vld [vmem:[%s783_s1] sm:$0xff]  ;;  %v89_v8 = vsel %vm85_vm0, %v23_v3, 0.0 }
   0x3   :  { %v87_v7 = vsel %vm85_vm0, %v22_v2, 0.0  ;;  %v25_v9 = vld [vmem:[%s784_s0 + $0x20] sm:$0xff]  ;;  %v91_v11 = vsel %vm85_vm0, %v24_v4, 0.0  ;;  %v26_v12 = vld [vmem:[%s784_s0 + $0x28] sm:$0xff]  ;;  %v27_v15 = vld [vmem:[%s784_s0 + $0x30] sm:$0xff] }
   0x4   :  { %v88_v10 = vadd.f32 %v87_v7, %v86_v5  ;;  %v93_v14 = vsel %vm85_vm0, %v25_v9, 0.0  ;;  %v95_v17 = vsel %vm85_vm0, %v26_v12, 0.0  ;;  %v28_v18 = vld [vmem:[%s784_s0 + $0x38] sm:$0xff]  ;;  %v97_v20 = vsel %vm85_vm0, %v27_v15, 0.0  ;;  %v29_v21 = vld [vmem:[%s784_s0 + $0x40] sm:$0xff]  ;;  %v54_v23 = vld [vmem:[%s784_s0 + $0x108] sm:$0xff] }
   0x5   :  { %v53_v22 = vld [vmem:[%s784_s0 + $0x100] sm:$0xff]  ;;  %v55_v25 = vld [vmem:[%s784_s0 + $0x110] sm:$0xff]  ;;  %v56_v26 = vld [vmem:[%s784_s0 + $0x118] sm:$0xff]  ;;  %v99_v27 = vsel %vm85_vm0, %v28_v18, 0.0  ;;  %v156_v29 = vsel %vm85_vm0, %v54_v23, 0.0  ;;  %v101_v35 = vsel %vm85_vm0, %v29_v21, 0.0 }
   0x6   :  { %v90_v13 = vadd.f32 %v89_v8, %v88_v10  ;;  %272 = vmatpush.bf16.msra.mxu0 %v418_v6  ;;  %v155_v28 = vsel %vm85_vm0, %v53_v22, 0.0  ;;  %v30_v30 = vld [vmem:[%s784_s0 + $0x48] sm:$0xff]  ;;  %v57_v31 = vld [vmem:[%s784_s0 + $0x120] sm:$0xff]  ;;  %v158_v34 = vsel %vm85_vm0, %v55_v25, 0.0  ;;  %v160_v36 = vsel %vm85_vm0, %v56_v26, 0.0  ;;  %v31_v37 = vld [vmem:[%s784_s0 + $0x50] sm:$0xff] }
   0x7   :  { %v157_v33 = vadd.f32 %v156_v29, %v155_v28  ;;  %v58_v38 = vld [vmem:[%s784_s0 + $0x128] sm:$0xff]  ;;  %v103_v41 = vsel %vm85_vm0, %v30_v30, 0.0  ;;  %v162_v42 = vsel %vm85_vm0, %v57_v31, 0.0  ;;  %v32_v43 = vld [vmem:[%s784_s0 + $0x58] sm:$0xff]  ;;  %v59_v44 = vld [vmem:[%s784_s0 + $0x130] sm:$0xff]  ;;  %v105_v47 = vsel %vm85_vm0, %v31_v37, 0.0 }
   0x8   :  { %v92_v16 = vadd.f32 %v91_v11, %v90_v13  ;;  %v164_v48 = vsel %vm85_vm0, %v58_v38, 0.0  ;;  %v33_v49 = vld [vmem:[%s784_s0 + $0x60] sm:$0xff]  ;;  %v60_v50 = vld [vmem:[%s784_s0 + $0x138] sm:$0xff]  ;;  %v107_v53 = vsel %vm85_vm0, %v32_v43, 0.0  ;;  %v166_v54 = vsel %vm85_vm0, %v59_v44, 0.0  ;;  %v34_v55 = vld [vmem:[%s784_s0 + $0x68] sm:$0xff] }
   0x9   :  { %v159_v40 = vadd.f32 %v158_v34, %v157_v33  ;;  %v61_v56 = vld [vmem:[%s784_s0 + $0x140] sm:$0xff]  ;;  %v109_v59 = vsel %vm85_vm0, %v33_v49, 0.0  ;;  %v168_v60 = vsel %vm85_vm0, %v60_v50, 0.0  ;;  %v35_v61 = vld [vmem:[%s784_s0 + $0x70] sm:$0xff]  ;;  %v62_v62 = vld [vmem:[%s784_s0 + $0x148] sm:$0xff]  ;;  %v111_v1 = vsel %vm85_vm0, %v34_v55, 0.0 }
   0xa   :  { %v94_v19 = vadd.f32 %v93_v14, %v92_v16  ;;  %v170_v2 = vsel %vm85_vm0, %v61_v56, 0.0  ;;  %v36_v3 = vld [vmem:[%s784_s0 + $0x78] sm:$0xff]  ;;  %v63_v4 = vld [vmem:[%s784_s0 + $0x150] sm:$0xff]  ;;  %v113_v7 = vsel %vm85_vm0, %v35_v61, 0.0  ;;  %v172_v8 = vsel %vm85_vm0, %v62_v62, 0.0  ;;  %v37_v9 = vld [vmem:[%s784_s0 + $0x80] sm:$0xff] }
   0xb   :  { %v161_v46 = vadd.f32 %v160_v36, %v159_v40  ;;  %v64_v10 = vld [vmem:[%s784_s0 + $0x158] sm:$0xff]  ;;  %v115_v13 = vsel %vm85_vm0, %v36_v3, 0.0  ;;  %v174_v14 = vsel %vm85_vm0, %v63_v4, 0.0  ;;  %v38_v15 = vld [vmem:[%s784_s0 + $0x88] sm:$0xff]  ;;  %v65_v16 = vld [vmem:[%s784_s0 + $0x160] sm:$0xff] }
   0xc   :  { %v96_v24 = vadd.f32 %v95_v17, %v94_v19  ;;  %v117_v19 = vsel %vm85_vm0, %v37_v9, 0.0  ;;  %v39_v21 = vld [vmem:[%s784_s0 + $0x90] sm:$0xff]  ;;  %v66_v22 = vld [vmem:[%s784_s0 + $0x168] sm:$0xff]  ;;  %v119_v25 = vsel %vm85_vm0, %v38_v15, 0.0  ;;  %v178_v26 = vsel %vm85_vm0, %v65_v16, 0.0  ;;  %v41_v33 = vld [vmem:[%s784_s0 + $0xa0] sm:$0xff] }
   0xd   :  { %v163_v52 = vadd.f32 %v162_v42, %v161_v46  ;;  %v67_v28 = vld [vmem:[%s784_s0 + $0x170] sm:$0xff]  ;;  %v121_v31 = vsel %vm85_vm0, %v39_v21, 0.0  ;;  %v68_v34 = vld [vmem:[%s784_s0 + $0x178] sm:$0xff]  ;;  %v69_v40 = vld [vmem:[%s784_s0 + $0x180] sm:$0xff]  ;;  %v125_v43 = vsel %vm85_vm0, %v41_v33, 0.0 }
   0xe   :  { %v98_v32 = vadd.f32 %v97_v20, %v96_v24  ;;  %v176_v20 = vsel %vm85_vm0, %v64_v10, 0.0  ;;  %v182_v38 = vsel %vm85_vm0, %v67_v28, 0.0  ;;  %v184_v44 = vsel %vm85_vm0, %v68_v34, 0.0  ;;  %v70_v46 = vld [vmem:[%s784_s0 + $0x188] sm:$0xff] }
   0xf   :  { %v165_v58 = vadd.f32 %v164_v48, %v163_v52  ;;  %v186_v50 = vsel %vm85_vm0, %v69_v40, 0.0  ;;  %v71_v52 = vld [vmem:[%s784_s0 + $0x190] sm:$0xff]  ;;  %v188_v56 = vsel %vm85_vm0, %v70_v46, 0.0  ;;  %v81_v46 = vld [vmem:[%s784_s0 + $0x1e0] sm:$0xff] }
  0x10   :  { %v100_v39 = vadd.f32 %v99_v27, %v98_v32  ;;  %v40_v27 = vld [vmem:[%s784_s0 + $0x98] sm:$0xff]  ;;  %v180_v32 = vsel %vm85_vm0, %v66_v22, 0.0  ;;  %v190_v62 = vsel %vm85_vm0, %v71_v52, 0.0 }
  0x11   :  { %v167_v0 = vadd.f32 %v166_v54, %v165_v58  ;;  %v123_v37 = vsel %vm85_vm0, %v40_v27, 0.0  ;;  %v72_v58 = vld [vmem:[%s784_s0 + $0x198] sm:$0xff] }
  0x12   :  { %v102_v45 = vadd.f32 %v101_v35, %v100_v39  ;;  %v42_v39 = vld [vmem:[%s784_s0 + $0xa8] sm:$0xff]  ;;  %v192_v4 = vsel %vm85_vm0, %v72_v58, 0.0 }
  0x13   :  { %v169_v6 = vadd.f32 %v168_v60, %v167_v0  ;;  %v127_v49 = vsel %vm85_vm0, %v42_v39, 0.0  ;;  %v73_v0 = vld [vmem:[%s784_s0 + $0x1a0] sm:$0xff] }
  0x14   :  { %v104_v51 = vadd.f32 %v103_v41, %v102_v45  ;;  %v43_v45 = vld [vmem:[%s784_s0 + $0xb0] sm:$0xff]  ;;  %v194_v10 = vsel %vm85_vm0, %v73_v0, 0.0 }
  0x15   :  { %v171_v12 = vadd.f32 %v170_v2, %v169_v6  ;;  %v129_v55 = vsel %vm85_vm0, %v43_v45, 0.0  ;;  %v74_v6 = vld [vmem:[%s784_s0 + $0x1a8] sm:$0xff] }
  0x16   :  { %v106_v57 = vadd.f32 %v105_v47, %v104_v51  ;;  %v44_v51 = vld [vmem:[%s784_s0 + $0xb8] sm:$0xff]  ;;  %v196_v16 = vsel %vm85_vm0, %v74_v6, 0.0  ;;  %v424_v6 = vld [vmem:[%s786_s3 + $0x24] sm:$0xf] }
  0x17   :  { %v173_v18 = vadd.f32 %v172_v8, %v171_v12  ;;  %v131_v61 = vsel %vm85_vm0, %v44_v51, 0.0  ;;  %v75_v12 = vld [vmem:[%s784_s0 + $0x1b0] sm:$0xff] }
  0x18   :  { %v108_v63 = vadd.f32 %v107_v53, %v106_v57  ;;  %v45_v57 = vld [vmem:[%s784_s0 + $0xc0] sm:$0xff]  ;;  %v198_v22 = vsel %vm85_vm0, %v75_v12, 0.0 }
  0x19   :  { %v175_v24 = vadd.f32 %v174_v14, %v173_v18  ;;  %v133_v3 = vsel %vm85_vm0, %v45_v57, 0.0  ;;  %v76_v18 = vld [vmem:[%s784_s0 + $0x1b8] sm:$0xff]  ;;  %v210_v57 = vsel %vm85_vm0, %v81_v46, 0.0  ;;  %v421_v46 = vld [vmem:[%s786_s3 + $0x4] sm:$0xf0] }
  0x1a   :  { %v110_v5 = vadd.f32 %v109_v59, %v108_v63  ;;  %v46_v63 = vld [vmem:[%s784_s0 + $0xc8] sm:$0xff] }
  0x1b   :  { %v177_v30 = vadd.f32 %v176_v20, %v175_v24  ;;  %v135_v9 = vsel %vm85_vm0, %v46_v63, 0.0  ;;  %v50_v24 = vld [vmem:[%s784_s0 + $0xe8] sm:$0xff] }
  0x1c   :  { %v112_v11 = vadd.f32 %v111_v1, %v110_v5  ;;  %v47_v5 = vld [vmem:[%s784_s0 + $0xd0] sm:$0xff]  ;;  %v143_v34 = vsel %vm85_vm0, %v50_v24, 0.0 }
  0x1d   :  { %v179_v36 = vadd.f32 %v178_v26, %v177_v30  ;;  %v137_v15 = vsel %vm85_vm0, %v47_v5, 0.0  ;;  %v51_v30 = vld [vmem:[%s784_s0 + $0xf0] sm:$0xff]  ;;  %v425_v5 = vld [vmem:[%s786_s3 + $0x24] sm:$0xf0] }
  0x1e   :  { %v114_v17 = vadd.f32 %v113_v7, %v112_v11  ;;  %v48_v11 = vld [vmem:[%s784_s0 + $0xd8] sm:$0xff] }
  0x1f   :  { %v181_v42 = vadd.f32 %v180_v32, %v179_v36  ;;  %v139_v21 = vsel %vm85_vm0, %v48_v11, 0.0  ;;  %v52_v36 = vld [vmem:[%s784_s0 + $0xf8] sm:$0xff] }
  0x20   :  { %v116_v23 = vadd.f32 %v115_v13, %v114_v17  ;;  %v49_v17 = vld [vmem:[%s784_s0 + $0xe0] sm:$0xff] }
  0x21   :  { %v183_v48 = vadd.f32 %v182_v38, %v181_v42  ;;  %v141_v28 = vsel %vm85_vm0, %v49_v17, 0.0 }
  0x22   :  { %v118_v29 = vadd.f32 %v117_v19, %v116_v23  ;;  %v432_v23 = vmov 256.0  }
  0x23   :  { %v185_v54 = vadd.f32 %v184_v44, %v183_v48  ;;  %430 = vrcp.f32 %v432_v23  ;;  %v147_v48 = vsel %vm85_vm0, %v52_v36, 0.0 }
  0x24   :  { %v120_v35 = vadd.f32 %v119_v25, %v118_v29  ;;  %v77_v25 = vld [vmem:[%s784_s0 + $0x1c0] sm:$0xff]  ;;  %v200_v29 = vsel %vm85_vm0, %v76_v18, 0.0 }
  0x25   :  { %v187_v60 = vadd.f32 %v186_v50, %v185_v54  ;;  %v83_v54 = vld [vmem:[%s784_s0 + $0x1f0] sm:$0xff] }
  0x26   :  { %v122_v41 = vadd.f32 %v121_v31, %v120_v35  ;;  %v78_v31 = vld [vmem:[%s784_s0 + $0x1c8] sm:$0xff]  ;;  %v202_v35 = vsel %vm85_vm0, %v77_v25, 0.0  ;;  %v214_v12 = vsel %vm85_vm0, %v83_v54, 0.0 }
  0x27   :  { %v189_v2 = vadd.f32 %v188_v56, %v187_v60  ;;  %v204_v42 = vsel %vm85_vm0, %v78_v31, 0.0  ;;  %v427_v60 = vld [vmem:[%s786_s3 + $0x34] sm:$0xf0] }
  0x28   :  { %v124_v47 = vadd.f32 %v123_v37, %v122_v41  ;;  %v79_v37 = vld [vmem:[%s784_s0 + $0x1d0] sm:$0xff]  ;;  %v145_v41 = vsel %vm85_vm0, %v51_v30, 0.0 }
  0x29   :  { %v191_v8 = vadd.f32 %v190_v62, %v189_v2  ;;  %v431_v40 = vpop.eup %430  ;;  %v412_v2 = vld [vmem:[%s786_s3 + $0x38] sm:$0xf0] }
  0x2a   :  { %v126_v53 = vadd.f32 %v125_v43, %v124_v47  ;;  %v80_v43 = vld [vmem:[%s784_s0 + $0x1d8] sm:$0xff]  ;;  %v82_v47 = vld [vmem:[%s784_s0 + $0x1e8] sm:$0xff]  ;;  %v225_v52 = vmul.f32 256.0, %v431_v40  ;;  %vm229_vm1 = vweird.f32 %v431_v40 }
  0x2b   :  { %v193_v14 = vadd.f32 %v192_v4, %v191_v8  ;;  %v212_v58 = vsel %vm85_vm0, %v82_v47, 0.0  ;;  %v84_v8 = vld [vmem:[%s784_s0 + $0x1f8] sm:$0xff]  ;;  %v420_v47 = vld [vmem:[%s786_s3 + $0x4] sm:$0xf] }
  0x2c   :  { %v128_v59 = vadd.f32 %v127_v49, %v126_v53  ;;  %v206_v49 = vsel %vm85_vm0, %v79_v37, 0.0  ;;  %v208_v53 = vsel %vm85_vm0, %v80_v43, 0.0  ;;  %v226_v0 = vsub.f32 1.0, %v225_v52  ;;  %v396_v43 = vld [vmem:[%s786_s3 + $0x18] sm:$0xf0] }
  0x2d   :  { %v195_v20 = vadd.f32 %v194_v10, %v193_v14 }
  0x2e   :  { %v130_v1 = vadd.f32 %v129_v55, %v128_v59  ;;  %v410_v59 = vld [vmem:[%s786_s3 + $0x30] sm:$0xf]  ;;  %v227_v17 = vmul.f32 %v431_v40, %v226_v0 }
  0x2f   :  { %v197_v27 = vadd.f32 %v196_v16, %v195_v20  ;;  %v216_v16 = vsel %vm85_vm0, %v84_v8, 0.0 }
  0x30   :  { %v132_v7 = vadd.f32 %v131_v61, %v130_v1  ;;  %v426_v61 = vld [vmem:[%s786_s3 + $0x34] sm:$0xf]  ;;  %v411_v1 = vor.u32 %v427_v60, %v410_v59 }
  0x31   :  { %v199_v33 = vadd.f32 %v198_v22, %v197_v27  ;;  %v415_v4 = vor.u32 %v426_v61, %v412_v2  ;;  %v228_v22 = vadd.f32 %v431_v40, %v227_v17 }
  0x32   :  { %v134_v13 = vadd.f32 %v133_v3, %v132_v7  ;;  %v402_v3 = vld [vmem:[%s786_s3 + $0x20] sm:$0xf]  ;;  %v404_v7 = vld [vmem:[%s786_s3 + $0x28] sm:$0xf0]  ;;  %342 = vmatpush.bf16.msra.mxu1 %v411_v1 }
  0x33   :  { %v201_v39 = vadd.f32 %v200_v29, %v199_v33  ;;  %v403_v11 = vor.u32 %v425_v5, %v402_v3  ;;  %355 = vmatpush.bf16.msra.mxu2 %v415_v4 }
  0x34   :  { %v136_v19 = vadd.f32 %v135_v9, %v134_v13  ;;  %v407_v13 = vor.u32 %v424_v6, %v404_v7 }
  0x35   :  { %v203_v45 = vadd.f32 %v202_v35, %v201_v39  ;;  %v394_v39 = vld [vmem:[%s786_s3 + $0x10] sm:$0xf] }
  0x36   :  { %v138_v26 = vadd.f32 %v137_v15, %v136_v19  ;;  %343 = vmatpush.bf16.msra.mxu1 %v403_v11 }
  0x37   :  { %v205_v51 = vadd.f32 %v204_v42, %v203_v45  ;;  %356 = vmatpush.bf16.msra.mxu2 %v407_v13  ;;  %v386_v45 = vld [vmem:[%s786_s3] sm:$0xf] }
  0x38   :  { %v140_v32 = vadd.f32 %v139_v21, %v138_v26  ;;  %v230_v26 = vsel %vm229_vm1, %v431_v40, %v228_v22  ;;  %v423_v40 = vld [vmem:[%s786_s3 + $0x14] sm:$0xf0] }
  0x39   :  { %v207_v56 = vadd.f32 %v206_v49, %v205_v51  ;;  %v395_v42 = vor.u32 %v423_v40, %v394_v39  ;;  %v388_v49 = vld [vmem:[%s786_s3 + $0x8] sm:$0xf0]  ;;  %v429_v51 = vld [vmem:[%s785_s2] ss:$0 sm:$0xff] }
  0x3a   :  { %v142_v38 = vadd.f32 %v141_v28, %v140_v32 }
  0x3b   :  { %v209_v63 = vadd.f32 %v208_v53, %v207_v56  ;;  %344 = vmatpush.bf16.msra.mxu1 %v395_v42 }
  0x3c   :  { %v144_v44 = vadd.f32 %v143_v34, %v142_v38 }
  0x3d   :  { %v211_v10 = vadd.f32 %v210_v57, %v209_v63 }
  0x3e   :  { %v146_v50 = vadd.f32 %v145_v41, %v144_v44  ;;  %v422_v41 = vld [vmem:[%s786_s3 + $0x14] sm:$0xf] }
  0x3f   :  { %v213_v15 = vadd.f32 %v212_v58, %v211_v10  ;;  %v399_v44 = vor.u32 %v422_v41, %v396_v43  ;;  %v288_v58 = vld [vmem:[%s787_s4] sm:$0x3] }
  0x40   :  { %v148_v55 = vadd.f32 %v147_v48, %v146_v50  ;;  %v387_v48 = vor.u32 %v421_v46, %v386_v45  ;;  %v391_v50 = vor.u32 %v420_v47, %v388_v49  ;;  %v291_v59 = vperm.slane %v288_v58, 1 }
  0x41   :  { %v215_v19 = vadd.f32 %v214_v12, %v213_v15  ;;  %357 = vmatpush.bf16.msra.mxu2 %v399_v44  ;;  %v290_v60 = vperm.slane %v288_v58, 0 }
  0x42   :  { %v149_v62 = vrot.slane %v148_v55, 4  ;;  %345 = vmatpush.bf16.msra.mxu1 %v387_v48 }
  0x43   :  { %v217_v21 = vadd.f32 %v216_v16, %v215_v19 }
  0x44   :  { %v150_v9 = vadd.f32 %v149_v62, %v148_v55 }
  0x45   :  { %v218_v23 = vrot.slane %v217_v21, 4  ;;  %358 = vmatpush.bf16.msra.mxu2 %v391_v50 }
  0x46   :  { %v151_v14 = vrot.slane %v150_v9, 2 }
  0x47   :  { %v219_v25 = vadd.f32 %v218_v23, %v217_v21 }
  0x48   :  { %v152_v18 = vadd.f32 %v151_v14, %v150_v9 }
  0x49   :  { %v220_v27 = vrot.slane %v219_v25, 2 }
  0x4a   :  { %v153_v20 = vrot.slane %v152_v18, 1 }
  0x4b   :  { %v221_v28 = vadd.f32 %v220_v27, %v219_v25 }
  0x4c   :  { %v154_v24 = vadd.f32 %v153_v20, %v152_v18 }
  0x4d   :  { %v222_v30 = vrot.slane %v221_v28, 1 }
  0x4e   :  { %v231_v29 = vmul.f32 %v230_v26, %v154_v24 }
  0x4f   :  { %v223_v31 = vadd.f32 %v222_v30, %v221_v28 }
  0x50   :  { %v233_v32 = vpack.c.bf16 %v231_v29, %v231_v29 }
  0x51   :  { %v232_v33 = vmul.f32 %v230_v26, %v223_v31 }
  0x52   :  { %v245_v35 = vunpack.c.l.b16 %v233_v32 }
  0x53   :  { %v234_v34 = vpack.c.bf16 %v232_v33, %v232_v33 }
  0x55   :  { %v246_v36 = vunpack.c.l.b16 %v234_v34 }
  0x57   :  { %v248_v37 = vsel %vm247_vm2, %v246_v36, %v245_v35 }
  0x58   :  { %v249_v38 = vpack.c.b16 %v248_v37, %v248_v37 }
  0x5a   :  { %383 = vmatmul.msk.bf16.vlgmr.msra.gmra.mxu0 %vm85_vm0, %v249_v38 }
  0xd7   :  { %v274_v52 = vpop.f32.mrf.mxu0 }
  0xd8   :  { %v275_v53 = vadd.f32 %v429_v51, %v274_v52 }
  0xda   :  { %v278_v54 = vmax.f32 %v275_v53, 0.0 }
  0xdc   :  { %v279_v55 = vpack.c.bf16 %v278_v54, %v278_v54 }
  0xde   :  { %416 = vmatmul.msk.bf16.vlgmr.msra.gmra.mxu1 %vm334_vm3, %v279_v55  ;;  %417 = vmatmul.msk.bf16.vlgmr.msra.gmra.mxu2 %vm334_vm3, %v279_v55 }
  0xdf   :  { %v276_v56 = vpop.f32.mrf.mxu0 }
 0x15b   :  { %v347_v57 = vpop.f32.mrf.mxu1 }
 0x15c   :  { %v348_v0 = vadd.f32 %v347_v57, %v290_v60 }
 0x161   :  { %v360_v61 = vpop.f32.mrf.mxu2 }
 0x162   :  { %v361_v62 = vadd.f32 %v360_v61, %v291_v59 }
 0x163   :  { %v349_v63 = vpop.f32.mrf.mxu1 }
 0x164   :  { %v366_v1 = vrot.slane %v361_v62, 6 }
 0x166   :  { %v368_v2 = vsel %vm367_vm4, %v348_v0, %v366_v1 }
 0x167   :  { %370 = vst [vmem:[%s788_s5] sm:$0xf] %v368_v2 }
 0x169   :  { %v362_v3 = vpop.f32.mrf.mxu2 }

// kernel: intagnet_forward.2
= control target key start
LH: loop header
LB: loop body
LE: loop exit
PB: predicated region body
PF: predicated region fallthrough
CT: control target
= control target key end

     0   :  { %vm2697_vm0 = vcmask 261120   ;;  %vm5765_vm1 = vcmask 154624   ;;  %s7903_s28 = smov 108   ;;  %s7904_s15 = smov 76   ;;  %vm5830_vm7 = vcmask 162968   ;;  %s12455_s1 = inlined_call_operand.vmem [shape: bf16[768,32], index: 1, kind: input, shape index: {}]   ;;  %s12456_s2 = inlined_call_operand.vmem [shape: f32[1,32], index: 2, kind: input, shape index: {}]   ;;  %s12457_s0 = inlined_call_operand.vmem [shape: bf16[512,768], index: 0, kind: input, shape index: {}]   ;;  %s12458_s3 = inlined_call_operand.vmem [shape: bf16[32,128], index: 3, kind: input, shape index: {}]   ;;  %s12459_s6 = inlined_call_operand.vmem [shape: bf16[32,32], index: 6, kind: input, shape index: {}]   ;;  %s12460_s5 = inlined_call_operand.vmem [shape: bf16[32,32], index: 5, kind: input, shape index: {}]   ;;  %s12461_s4 = inlined_call_operand.vmem [shape: f32[1,128], index: 4, kind: input, shape index: {}]   ;;  %s12462_s7 = inlined_call_operand.vmem [shape: f32[512,128], index: 7, kind: output, shape index: {}]  }
   0x1   :  { %v7563_v0 = vld [vmem:[%s12455_s1 + $0x38] sm:$0xff]  ;;  %v7562_v1 = vld [vmem:[%s12455_s1 + $0x30] sm:$0xff]  ;;  %v7561_v2 = vld [vmem:[%s12455_s1 + $0x28] sm:$0xff]  ;;  %s7905_s12 = smov 84   ;;  %s7906_s10 = smov 64  }
   0x2   :  { %7610 = vmatpush.bf16.msra.mxu1 %v7563_v0  ;;  %7611 = vmatpush.bf16.msra.mxu2 %v7563_v0  ;;  %v7560_v3 = vld [vmem:[%s12455_s1 + $0x20] sm:$0xff]  ;;  %v7559_v4 = vld [vmem:[%s12455_s1 + $0x18] sm:$0xff]  ;;  %v7558_v5 = vld [vmem:[%s12455_s1 + $0x10] sm:$0xff] }
   0x3   :  { %7612 = vmatpush.bf16.msra.mxu3 %v7563_v0  ;;  %1567 = vmatpush.bf16.msra.mxu0 %v7563_v0  ;;  %v7557_v6 = vld [vmem:[%s12455_s1 + $0x8] sm:$0xff]  ;;  %v7556_v7 = vld [vmem:[%s12455_s1] sm:$0xff]  ;;  %v7415_v9 = vld [vmem:[%s12457_s0 + $0x194] sm:$0xf0] }
   0x4   :  { %v6414_v8 = vld [vmem:[%s12457_s0 + $0x180] sm:$0xf]  ;;  %v7463_v11 = vld [vmem:[%s12457_s0 + $0x314] sm:$0xf0]  ;;  %v7570_v21 = vld [vmem:[%s12455_s1 + $0x70] sm:$0xff] }
   0x5   :  { %v6606_v10 = vld [vmem:[%s12457_s0 + $0x300] sm:$0xf]  ;;  %v7571_v12 = vld [vmem:[%s12455_s1 + $0x78] sm:$0xff]  ;;  %v6415_v17 = vor.u32 %v7415_v9, %v6414_v8  ;;  %v7569_v22 = vld [vmem:[%s12455_s1 + $0x68] sm:$0xff] }
   0x6   :  { %7613 = vmatpush.bf16.msra.mxu1 %v7562_v1  ;;  %7614 = vmatpush.bf16.msra.mxu2 %v7562_v1  ;;  %v6798_v13 = vld [vmem:[%s12457_s0 + $0x480] sm:$0xf]  ;;  %v7511_v14 = vld [vmem:[%s12457_s0 + $0x494] sm:$0xf0]  ;;  %v6607_v18 = vor.u32 %v7463_v11, %v6606_v10  ;;  %v6438_v23 = vld [vmem:[%s12457_s0 + $0x1b0] sm:$0xf] }
   0x7   :  { %7615 = vmatpush.bf16.msra.mxu3 %v7562_v1  ;;  %1568 = vmatpush.bf16.msra.mxu0 %v7562_v1  ;;  %v6222_v15 = vld [vmem:[%s12457_s0] sm:$0xf]  ;;  %v7367_v16 = vld [vmem:[%s12457_s0 + $0x14] sm:$0xf0]  ;;  %v6799_v19 = vor.u32 %v7511_v14, %v6798_v13  ;;  %v7421_v24 = vld [vmem:[%s12457_s0 + $0x1c4] sm:$0xf0] }
   0x8   :  { %v6223_v20 = vor.u32 %v7367_v16, %v6222_v15  ;;  %v6630_v25 = vld [vmem:[%s12457_s0 + $0x330] sm:$0xf]  ;;  %v7469_v26 = vld [vmem:[%s12457_s0 + $0x344] sm:$0xf0]  ;;  %v6439_v31 = vor.u32 %v7421_v24, %v6438_v23  ;;  %v7568_v35 = vld [vmem:[%s12455_s1 + $0x60] sm:$0xff] }
   0x9   :  { %v6822_v27 = vld [vmem:[%s12457_s0 + $0x4b0] sm:$0xf]  ;;  %v7517_v28 = vld [vmem:[%s12457_s0 + $0x4c4] sm:$0xf0]  ;;  %v6631_v32 = vor.u32 %v7469_v26, %v6630_v25  ;;  %v6462_v36 = vld [vmem:[%s12457_s0 + $0x1e0] sm:$0xf] }
   0xa   :  { %7616 = vmatpush.bf16.msra.mxu1 %v7561_v2  ;;  %7617 = vmatpush.bf16.msra.mxu2 %v7561_v2  ;;  %v6246_v29 = vld [vmem:[%s12457_s0 + $0x30] sm:$0xf]  ;;  %v7373_v30 = vld [vmem:[%s12457_s0 + $0x44] sm:$0xf0]  ;;  %v6823_v33 = vor.u32 %v7517_v28, %v6822_v27  ;;  %v7427_v37 = vld [vmem:[%s12457_s0 + $0x1f4] sm:$0xf0] }
   0xb   :  { %7618 = vmatpush.bf16.msra.mxu3 %v7561_v2  ;;  %1569 = vmatpush.bf16.msra.mxu0 %v7561_v2  ;;  %v6247_v34 = vor.u32 %v7373_v30, %v6246_v29  ;;  %v6654_v38 = vld [vmem:[%s12457_s0 + $0x360] sm:$0xf]  ;;  %v7475_v39 = vld [vmem:[%s12457_s0 + $0x374] sm:$0xf0]  ;;  %v6463_v44 = vor.u32 %v7427_v37, %v6462_v36  ;;  %v6486_v49 = vld [vmem:[%s12457_s0 + $0x210] sm:$0xf] }
   0xc   :  { %v6846_v40 = vld [vmem:[%s12457_s0 + $0x4e0] sm:$0xf]  ;;  %v7523_v41 = vld [vmem:[%s12457_s0 + $0x4f4] sm:$0xf0]  ;;  %v6655_v45 = vor.u32 %v7475_v39, %v6654_v38  ;;  %v7433_v50 = vld [vmem:[%s12457_s0 + $0x224] sm:$0xf0] }
   0xd   :  { %v6270_v42 = vld [vmem:[%s12457_s0 + $0x60] sm:$0xf]  ;;  %v7379_v43 = vld [vmem:[%s12457_s0 + $0x74] sm:$0xf0]  ;;  %v6847_v46 = vor.u32 %v7523_v41, %v6846_v40  ;;  %v6678_v51 = vld [vmem:[%s12457_s0 + $0x390] sm:$0xf]  ;;  %v6487_v57 = vor.u32 %v7433_v50, %v6486_v49 }
   0xe   :  { %7619 = vmatpush.bf16.msra.mxu1 %v7560_v3  ;;  %7620 = vmatpush.bf16.msra.mxu2 %v7560_v3  ;;  %v6271_v47 = vor.u32 %v7379_v43, %v6270_v42  ;;  %v7567_v48 = vld [vmem:[%s12455_s1 + $0x58] sm:$0xff]  ;;  %v7481_v52 = vld [vmem:[%s12457_s0 + $0x3a4] sm:$0xf0]  ;;  %v6870_v53 = vld [vmem:[%s12457_s0 + $0x510] sm:$0xf] }
   0xf   :  { %7621 = vmatpush.bf16.msra.mxu3 %v7560_v3  ;;  %1570 = vmatpush.bf16.msra.mxu0 %v7560_v3  ;;  %v7529_v54 = vld [vmem:[%s12457_s0 + $0x524] sm:$0xf0]  ;;  %v6294_v55 = vld [vmem:[%s12457_s0 + $0x90] sm:$0xf]  ;;  %v6679_v58 = vor.u32 %v7481_v52, %v6678_v51  ;;  %v6510_v62 = vld [vmem:[%s12457_s0 + $0x240] sm:$0xf] }
  0x10   :  { %v7385_v56 = vld [vmem:[%s12457_s0 + $0xa4] sm:$0xf0]  ;;  %v6871_v59 = vor.u32 %v7529_v54, %v6870_v53  ;;  %v7566_v61 = vld [vmem:[%s12455_s1 + $0x50] sm:$0xff]  ;;  %v7439_v63 = vld [vmem:[%s12457_s0 + $0x254] sm:$0xf0] }
  0x11   :  { %v6295_v60 = vor.u32 %v7385_v56, %v6294_v55  ;;  %v6702_v0 = vld [vmem:[%s12457_s0 + $0x3c0] sm:$0xf]  ;;  %v7487_v1 = vld [vmem:[%s12457_s0 + $0x3d4] sm:$0xf0]  ;;  %v7565_v11 = vld [vmem:[%s12455_s1 + $0x48] sm:$0xff] }
  0x12   :  { %7622 = vmatpush.bf16.msra.mxu1 %v7559_v4  ;;  %7623 = vmatpush.bf16.msra.mxu2 %v7559_v4  ;;  %v6894_v2 = vld [vmem:[%s12457_s0 + $0x540] sm:$0xf]  ;;  %v7535_v3 = vld [vmem:[%s12457_s0 + $0x554] sm:$0xf0]  ;;  %v7578_v13 = vld [vmem:[%s12455_s1 + $0xb0] sm:$0xff] }
  0x13   :  { %7624 = vmatpush.bf16.msra.mxu3 %v7559_v4  ;;  %1571 = vmatpush.bf16.msra.mxu0 %v7559_v4  ;;  %v6318_v4 = vld [vmem:[%s12457_s0 + $0xc0] sm:$0xf]  ;;  %v6895_v8 = vor.u32 %v7535_v3, %v6894_v2  ;;  %v7579_v10 = vld [vmem:[%s12455_s1 + $0xb8] sm:$0xff]  ;;  %v7586_v14 = vld [vmem:[%s12455_s1 + $0xf0] sm:$0xff] }
  0x14   :  { %v7595_v15 = vld [vmem:[%s12455_s1 + $0x138] sm:$0xff]  ;;  %v7577_v16 = vld [vmem:[%s12455_s1 + $0xa8] sm:$0xff]  ;;  %v7576_v23 = vld [vmem:[%s12455_s1 + $0xa0] sm:$0xff] }
  0x15   :  { %v6918_v24 = vld [vmem:[%s12457_s0 + $0x570] sm:$0xf]  ;;  %v7541_v25 = vld [vmem:[%s12457_s0 + $0x584] sm:$0xf0]  ;;  %v7584_v28 = vld [vmem:[%s12455_s1 + $0xe0] sm:$0xff] }
  0x16   :  { %7625 = vmatpush.bf16.msra.mxu1 %v7558_v5  ;;  %7626 = vmatpush.bf16.msra.mxu2 %v7558_v5  ;;  %v6342_v26 = vld [vmem:[%s12457_s0 + $0xf0] sm:$0xf]  ;;  %v7397_v27 = vld [vmem:[%s12457_s0 + $0x104] sm:$0xf0]  ;;  %v7592_v39 = vld [vmem:[%s12455_s1 + $0x120] sm:$0xff] }
  0x17   :  { %7627 = vmatpush.bf16.msra.mxu3 %v7558_v5  ;;  %1572 = vmatpush.bf16.msra.mxu0 %v7558_v5  ;;  %v7391_v5 = vld [vmem:[%s12457_s0 + $0xd4] sm:$0xf0]  ;;  %v7593_v36 = vld [vmem:[%s12455_s1 + $0x128] sm:$0xff]  ;;  %v7574_v37 = vld [vmem:[%s12455_s1 + $0x90] sm:$0xff] }
  0x18   :  { %v6319_v9 = vor.u32 %v7391_v5, %v6318_v4  ;;  %v7582_v38 = vld [vmem:[%s12455_s1 + $0xd0] sm:$0xff]  ;;  %v7573_v40 = vld [vmem:[%s12455_s1 + $0x88] sm:$0xff]  ;;  %v7591_v42 = vld [vmem:[%s12455_s1 + $0x118] sm:$0xff] }
  0x19   :  { %v7581_v41 = vld [vmem:[%s12455_s1 + $0xc8] sm:$0xff]  ;;  %v6558_v43 = vld [vmem:[%s12457_s0 + $0x2a0] sm:$0xf]  ;;  %v7403_v50 = vld [vmem:[%s12457_s0 + $0x134] sm:$0xf0] }
  0x1a   :  { %7628 = vmatpush.bf16.msra.mxu1 %v7557_v6  ;;  %7629 = vmatpush.bf16.msra.mxu2 %v7557_v6  ;;  %v6366_v49 = vld [vmem:[%s12457_s0 + $0x120] sm:$0xf]  ;;  %v7590_v56 = vld [vmem:[%s12455_s1 + $0x110] sm:$0xff]  ;;  %v7553_v2 = vld [vmem:[%s12457_s0 + $0x5e4] sm:$0xf0] }
  0x1b   :  { %7630 = vmatpush.bf16.msra.mxu3 %v7557_v6  ;;  %1573 = vmatpush.bf16.msra.mxu0 %v7557_v6  ;;  %v6511_v6 = vor.u32 %v7439_v63, %v6510_v62  ;;  %v7572_v51 = vld [vmem:[%s12455_s1 + $0x80] sm:$0xff]  ;;  %v7457_v62 = vld [vmem:[%s12457_s0 + $0x2e4] sm:$0xf0]  ;;  %v6774_v63 = vld [vmem:[%s12457_s0 + $0x450] sm:$0xf] }
  0x1c   :  { %v7580_v55 = vld [vmem:[%s12455_s1 + $0xc0] sm:$0xff]  ;;  %v6390_v3 = vld [vmem:[%s12457_s0 + $0x150] sm:$0xf]  ;;  %v7409_v4 = vld [vmem:[%s12457_s0 + $0x164] sm:$0xf0] }
  0x1e   :  { %7631 = vmatpush.bf16.msra.mxu1 %v7556_v7  ;;  %7632 = vmatpush.bf16.msra.mxu2 %v7556_v7 }
  0x1f   :  { %7633 = vmatpush.bf16.msra.mxu3 %v7556_v7  ;;  %1574 = vmatpush.bf16.msra.mxu0 %v7556_v7  ;;  %v6703_v7 = vor.u32 %v7487_v1, %v6702_v0  ;;  %v7505_v0 = vld [vmem:[%s12457_s0 + $0x464] sm:$0xf0]  ;;  %v6966_v1 = vld [vmem:[%s12457_s0 + $0x5d0] sm:$0xf] }
  0x21   :  { %1615 = vmatmul.bf16.vlgmr.msra.gmra.mxu1 %v6415_v17  ;;  %1655 = vmatmul.bf16.vlgmr.msra.gmra.mxu2 %v6607_v18  ;;  %v7594_v17 = vld [vmem:[%s12455_s1 + $0x130] sm:$0xff]  ;;  %v7585_v18 = vld [vmem:[%s12455_s1 + $0xe8] sm:$0xff] }
  0x22   :  { %1736 = vmatpush.bf16.msrb.mxu1 %v7571_v12  ;;  %1695 = vmatmul.bf16.vlgmr.msra.gmra.mxu3 %v6799_v19  ;;  %v7587_v12 = vld [vmem:[%s12455_s1 + $0xf8] sm:$0xff]  ;;  %v6534_v19 = vld [vmem:[%s12457_s0 + $0x270] sm:$0xf] }
  0x23   :  { %1575 = vmatmul.bf16.vlgmr.msra.gmra.mxu0 %v6223_v20  ;;  %1905 = vmatpush.bf16.msrb.mxu2 %v7579_v10  ;;  %v7445_v20 = vld [vmem:[%s12457_s0 + $0x284] sm:$0xf0]  ;;  %v6224_v10 = vld [vmem:[%s12457_s0 + $0x18] sm:$0xf0] }
  0x24   :  { %2074 = vmatpush.bf16.msrb.mxu3 %v7587_v12  ;;  %2243 = vmatpush.bf16.msrb.mxu0 %v7595_v15  ;;  %v6535_v29 = vor.u32 %v7445_v20, %v6534_v19  ;;  %v7368_v12 = vld [vmem:[%s12457_s0 + $0x1c] sm:$0xf0]  ;;  %v6238_v15 = vld [vmem:[%s12457_s0 + $0x10] sm:$0xf] }
  0x26   :  { %1737 = vmatpush.bf16.msrb.mxu1 %v7570_v21  ;;  %v6726_v21 = vld [vmem:[%s12457_s0 + $0x3f0] sm:$0xf] }
  0x27   :  { %1906 = vmatpush.bf16.msrb.mxu2 %v7578_v13  ;;  %v7365_v13 = vld [vmem:[%s12457_s0 + $0xc] sm:$0xf] }
  0x28   :  { %2075 = vmatpush.bf16.msrb.mxu3 %v7586_v14  ;;  %2244 = vmatpush.bf16.msrb.mxu0 %v7594_v17  ;;  %v6232_v14 = vld [vmem:[%s12457_s0 + $0x20] sm:$0xf0] }
  0x29   :  { %v6235_v20 = vor.u32 %v7365_v13, %v6232_v14 }
  0x2a   :  { %1738 = vmatpush.bf16.msrb.mxu1 %v7569_v22  ;;  %v7493_v22 = vld [vmem:[%s12457_s0 + $0x404] sm:$0xf0] }
  0x2b   :  { %1907 = vmatpush.bf16.msrb.mxu2 %v7577_v16  ;;  %v6727_v30 = vor.u32 %v7493_v22, %v6726_v21  ;;  %v7369_v16 = vld [vmem:[%s12457_s0 + $0x24] sm:$0xf0] }
  0x2c   :  { %2076 = vmatpush.bf16.msrb.mxu3 %v7585_v18  ;;  %2245 = vmatpush.bf16.msrb.mxu0 %v7593_v36  ;;  %v6239_v21 = vor.u32 %v7369_v16, %v6238_v15 }
  0x2e   :  { %1739 = vmatpush.bf16.msrb.mxu1 %v7568_v35  ;;  %v7583_v35 = vld [vmem:[%s12455_s1 + $0xd8] sm:$0xff] }
  0x2f   :  { %1908 = vmatpush.bf16.msrb.mxu2 %v7576_v23 }
  0x30   :  { %2077 = vmatpush.bf16.msrb.mxu3 %v7584_v28  ;;  %2246 = vmatpush.bf16.msrb.mxu0 %v7592_v39  ;;  %v6248_v28 = vld [vmem:[%s12457_s0 + $0x48] sm:$0xf0] }
  0x31   :  { %1620 = vmatmul.bf16.gmra.mxu1 %v6439_v31  ;;  %1660 = vmatmul.bf16.gmra.mxu2 %v6631_v32  ;;  %v6919_v31 = vor.u32 %v7541_v25, %v6918_v24  ;;  %v6343_v32 = vor.u32 %v7397_v27, %v6342_v26  ;;  %v7370_v27 = vld [vmem:[%s12457_s0 + $0x34] sm:$0xf] }
  0x32   :  { %1700 = vmatmul.bf16.gmra.mxu3 %v6823_v33  ;;  %1740 = vmatpush.bf16.msrb.mxu1 %v7567_v48  ;;  %v7575_v33 = vld [vmem:[%s12455_s1 + $0x98] sm:$0xff] }
  0x33   :  { %1580 = vmatmul.bf16.gmra.mxu0 %v6247_v34  ;;  %v7564_v34 = vld [vmem:[%s12455_s1 + $0x40] sm:$0xff]  ;;  %1909 = vmatpush.bf16.msrb.mxu2 %v7575_v33  ;;  %v7547_v48 = vld [vmem:[%s12457_s0 + $0x5b4] sm:$0xf0] }
  0x34   :  { %2078 = vmatpush.bf16.msrb.mxu3 %v7583_v35  ;;  %2247 = vmatpush.bf16.msrb.mxu0 %v7591_v42  ;;  %v7375_v35 = vld [vmem:[%s12457_s0 + $0x54] sm:$0xf0] }
  0x36   :  { %1741 = vmatpush.bf16.msrb.mxu1 %v7566_v61  ;;  %v6582_v61 = vld [vmem:[%s12457_s0 + $0x2d0] sm:$0xf] }
  0x37   :  { %1910 = vmatpush.bf16.msrb.mxu2 %v7574_v37  ;;  %v6583_v5 = vor.u32 %v7457_v62, %v6582_v61  ;;  %v6251_v37 = vor.u32 %v7370_v27, %v6248_v28 }
  0x38   :  { %2079 = vmatpush.bf16.msrb.mxu3 %v7582_v38  ;;  %2248 = vmatpush.bf16.msrb.mxu0 %v7590_v56 }
  0x3a   :  { %1742 = vmatpush.bf16.msrb.mxu1 %v7565_v11  ;;  %v6230_v11 = vld [vmem:[%s12457_s0 + $0x8] sm:$0xf] }
  0x3b   :  { %1911 = vmatpush.bf16.msrb.mxu2 %v7573_v40  ;;  %v6231_v18 = vor.u32 %v7368_v12, %v6230_v11  ;;  %v6310_v11 = vld [vmem:[%s12457_s0 + $0xa0] sm:$0xf]  ;;  %v7387_v12 = vld [vmem:[%s12457_s0 + $0xb4] sm:$0xf0] }
  0x3c   :  { %2080 = vmatpush.bf16.msrb.mxu3 %v7581_v41 }
  0x3e   :  { %1743 = vmatpush.bf16.msrb.mxu1 %v7564_v34  ;;  %v6262_v34 = vld [vmem:[%s12457_s0 + $0x40] sm:$0xf] }
  0x3f   :  { %1912 = vmatpush.bf16.msrb.mxu2 %v7572_v51  ;;  %v6263_v41 = vor.u32 %v7375_v35, %v6262_v34  ;;  %v7377_v51 = vld [vmem:[%s12457_s0 + $0x6c] sm:$0xf]  ;;  %v7392_v34 = vld [vmem:[%s12457_s0 + $0xdc] sm:$0xf0] }
  0x40   :  { %2081 = vmatpush.bf16.msrb.mxu3 %v7580_v55  ;;  %v7381_v55 = vld [vmem:[%s12457_s0 + $0x84] sm:$0xf0]  ;;  %v7389_v35 = vld [vmem:[%s12457_s0 + $0xcc] sm:$0xf] }
  0x41   :  { %1625 = vmatmul.bf16.gmra.mxu1 %v6463_v44  ;;  %1665 = vmatmul.bf16.gmra.mxu2 %v6655_v45  ;;  %v7451_v44 = vld [vmem:[%s12457_s0 + $0x2b4] sm:$0xf0]  ;;  %v6750_v45 = vld [vmem:[%s12457_s0 + $0x420] sm:$0xf] }
  0x42   :  { %1705 = vmatmul.bf16.gmra.mxu3 %v6847_v46  ;;  %v7499_v46 = vld [vmem:[%s12457_s0 + $0x434] sm:$0xf0]  ;;  %v6559_v52 = vor.u32 %v7451_v44, %v6558_v43 }
  0x43   :  { %1585 = vmatmul.bf16.gmra.mxu0 %v6271_v47  ;;  %v6942_v47 = vld [vmem:[%s12457_s0 + $0x5a0] sm:$0xf]  ;;  %v6751_v53 = vor.u32 %v7499_v46, %v6750_v45 }
  0x44   :  { %v6943_v54 = vor.u32 %v7547_v48, %v6942_v47  ;;  %v7376_v47 = vld [vmem:[%s12457_s0 + $0x64] sm:$0xf]  ;;  %v6272_v48 = vld [vmem:[%s12457_s0 + $0x78] sm:$0xf0] }
  0x51   :  { %1630 = vmatmul.bf16.gmra.mxu1 %v6487_v57  ;;  %1670 = vmatmul.bf16.gmra.mxu2 %v6679_v58  ;;  %v6367_v57 = vor.u32 %v7403_v50, %v6366_v49  ;;  %v7603_v58 = vld [vmem:[%s12455_s1 + $0x178] sm:$0xff]  ;;  %v6278_v49 = vld [vmem:[%s12457_s0 + $0x68] sm:$0xf]  ;;  %v7380_v50 = vld [vmem:[%s12457_s0 + $0x7c] sm:$0xf0] }
  0x52   :  { %1710 = vmatmul.bf16.gmra.mxu3 %v6871_v59  ;;  %v7589_v59 = vld [vmem:[%s12455_s1 + $0x108] sm:$0xff]  ;;  %2412 = vmatpush.bf16.msra.mxu1 %v7603_v58  ;;  %v6279_v58 = vor.u32 %v7380_v50, %v6278_v49 }
  0x53   :  { %1590 = vmatmul.bf16.gmra.mxu0 %v6295_v60  ;;  %v7588_v60 = vld [vmem:[%s12455_s1 + $0x100] sm:$0xff] }
  0x54   :  { %2249 = vmatpush.bf16.msrb.mxu0 %v7589_v59 }
  0x58   :  { %2250 = vmatpush.bf16.msrb.mxu0 %v7588_v60 }
  0x61   :  { %1635 = vmatmul.bf16.gmra.mxu1 %v6511_v6  ;;  %1675 = vmatmul.bf16.gmra.mxu2 %v6703_v7  ;;  %v6775_v6 = vor.u32 %v7505_v0, %v6774_v63  ;;  %v6967_v7 = vor.u32 %v7553_v2, %v6966_v1  ;;  %v7602_v63 = vld [vmem:[%s12455_s1 + $0x170] sm:$0xff] }
  0x62   :  { %1715 = vmatmul.bf16.gmra.mxu3 %v6895_v8  ;;  %v6391_v8 = vor.u32 %v7409_v4, %v6390_v3  ;;  %2413 = vmatpush.bf16.msra.mxu1 %v7602_v63  ;;  %v7382_v4 = vld [vmem:[%s12457_s0 + $0x94] sm:$0xf]  ;;  %v6344_v63 = vld [vmem:[%s12457_s0 + $0x108] sm:$0xf0] }
  0x63   :  { %1595 = vmatmul.bf16.gmra.mxu0 %v6319_v9  ;;  %v7364_v9 = vld [vmem:[%s12457_s0 + $0x4] sm:$0xf] }
  0x64   :  { %v6227_v17 = vor.u32 %v7364_v9, %v6224_v10  ;;  %v6304_v9 = vld [vmem:[%s12457_s0 + $0xb0] sm:$0xf0] }
  0x71   :  { %1640 = vmatmul.bf16.gmra.mxu1 %v6535_v29  ;;  %1680 = vmatmul.bf16.gmra.mxu2 %v6727_v30  ;;  %v6254_v29 = vld [vmem:[%s12457_s0 + $0x38] sm:$0xf]  ;;  %v7374_v30 = vld [vmem:[%s12457_s0 + $0x4c] sm:$0xf0] }
  0x72   :  { %1720 = vmatmul.bf16.gmra.mxu3 %v6919_v31  ;;  %v7371_v31 = vld [vmem:[%s12457_s0 + $0x3c] sm:$0xf]  ;;  %v6255_v38 = vor.u32 %v7374_v30, %v6254_v29  ;;  %v7388_v30 = vld [vmem:[%s12457_s0 + $0xc4] sm:$0xf] }
  0x73   :  { %1600 = vmatmul.bf16.gmra.mxu0 %v6343_v32  ;;  %v6256_v32 = vld [vmem:[%s12457_s0 + $0x50] sm:$0xf0] }
  0x74   :  { %v6259_v40 = vor.u32 %v7371_v31, %v6256_v32  ;;  %v6320_v31 = vld [vmem:[%s12457_s0 + $0xd8] sm:$0xf0]  ;;  %v6326_v32 = vld [vmem:[%s12457_s0 + $0xc8] sm:$0xf] }
  0x75   :  { %v6327_v49 = vor.u32 %v7392_v34, %v6326_v32 }
  0x81   :  { %1645 = vmatmul.bf16.gmra.mxu1 %v6559_v52  ;;  %1685 = vmatmul.bf16.gmra.mxu2 %v6751_v53  ;;  %v6280_v52 = vld [vmem:[%s12457_s0 + $0x80] sm:$0xf0] }
  0x82   :  { %1725 = vmatmul.bf16.gmra.mxu3 %v6943_v54  ;;  %v6286_v54 = vld [vmem:[%s12457_s0 + $0x70] sm:$0xf]  ;;  %v6283_v60 = vor.u32 %v7377_v51, %v6280_v52 }
  0x83   :  { %1605 = vmatmul.bf16.gmra.mxu0 %v6367_v57  ;;  %v6275_v57 = vor.u32 %v7376_v47, %v6272_v48  ;;  %v6287_v61 = vor.u32 %v7381_v55, %v6286_v54  ;;  %v6323_v48 = vor.u32 %v7388_v30, %v6320_v31 }
  0x91   :  { %1650 = vmatmul.bf16.gmra.mxu1 %v6583_v5  ;;  %1690 = vmatmul.bf16.gmra.mxu2 %v6775_v6  ;;  %v6296_v5 = vld [vmem:[%s12457_s0 + $0xa8] sm:$0xf0]  ;;  %v6302_v6 = vld [vmem:[%s12457_s0 + $0x98] sm:$0xf] }
  0x92   :  { %1730 = vmatmul.bf16.gmra.mxu3 %v6967_v7  ;;  %v7386_v7 = vld [vmem:[%s12457_s0 + $0xac] sm:$0xf0]  ;;  %v6299_v14 = vor.u32 %v7382_v4, %v6296_v5  ;;  %v6350_v4 = vld [vmem:[%s12457_s0 + $0xf8] sm:$0xf] }
  0x93   :  { %1610 = vmatmul.bf16.gmra.mxu0 %v6391_v8  ;;  %v7383_v8 = vld [vmem:[%s12457_s0 + $0x9c] sm:$0xf]  ;;  %v6303_v15 = vor.u32 %v7386_v7, %v6302_v6  ;;  %v7398_v5 = vld [vmem:[%s12457_s0 + $0x10c] sm:$0xf0]  ;;  %v6352_v7 = vld [vmem:[%s12457_s0 + $0x110] sm:$0xf0] }
  0x94   :  { %v7395_v6 = vld [vmem:[%s12457_s0 + $0xfc] sm:$0xf] }
  0x9e   :  { %v8286_v19 = vpop.f32.mrf.mxu1 }
  0xa0   :  { %v8288_v22 = vpop.f32.mrf.mxu0 }
  0xa1   :  { %1744 = vmatmul.bf16.vlgmr.msrb.gmra.mxu1 %v6227_v17  ;;  %1913 = vmatmul.bf16.vlgmr.msrb.gmra.mxu2 %v6231_v18  ;;  %v6307_v17 = vor.u32 %v7383_v8, %v6304_v9  ;;  %v6311_v18 = vor.u32 %v7387_v12, %v6310_v11  ;;  %v6358_v9 = vld [vmem:[%s12457_s0 + $0x100] sm:$0xf]  ;;  %v7399_v11 = vld [vmem:[%s12457_s0 + $0x114] sm:$0xf0] }
  0xa2   :  { %2082 = vmatmul.bf16.vlgmr.msrb.gmra.mxu3 %v6235_v20  ;;  %v6359_v30 = vor.u32 %v7399_v11, %v6358_v9 }
  0xa3   :  { %2251 = vmatmul.bf16.vlgmr.msrb.gmra.mxu0 %v6239_v21 }
  0xa4   :  { %v8290_v23 = vpop.f32.mrf.mxu2 }
  0xa5   :  { %v8292_v24 = vpop.f32.mrf.mxu3 }
  0xa6   :  { %12491 = vst [vmem:[#allocation2_spill] sm:$0xff] %v8292_v24  ;;  %v8294_v25 = vpop.f32.mrf.mxu1 }
  0xa8   :  { %v8296_v26 = vpop.f32.mrf.mxu0 }
  0xac   :  { %v8316_v33 = vpop.f32.mrf.mxu2 }
  0xad   :  { %v8324_v36 = vpop.f32.mrf.mxu3 }
  0xae   :  { %12492 = vst [vmem:[#allocation3_spill] sm:$0xff] %v8324_v36  ;;  %v8326_v39 = vpop.f32.mrf.mxu1 }
  0xb0   :  { %v8328_v42 = vpop.f32.mrf.mxu0 }
  0xb1   :  { %1749 = vmatmul.bf16.gmra.mxu1 %v6251_v37  ;;  %1918 = vmatmul.bf16.gmra.mxu2 %v6255_v38  ;;  %v6328_v37 = vld [vmem:[%s12457_s0 + $0xe0] sm:$0xf0] }
  0xb2   :  { %2087 = vmatmul.bf16.gmra.mxu3 %v6259_v40  ;;  %v6334_v40 = vld [vmem:[%s12457_s0 + $0xd0] sm:$0xf]  ;;  %v6331_v51 = vor.u32 %v7389_v35, %v6328_v37 }
  0xb3   :  { %2256 = vmatmul.bf16.gmra.mxu0 %v6263_v41  ;;  %v7393_v41 = vld [vmem:[%s12457_s0 + $0xe4] sm:$0xf0] }
  0xb4   :  { %v8330_v43 = vpop.f32.mrf.mxu2  ;;  %v6335_v52 = vor.u32 %v7393_v41, %v6334_v40  ;;  %v7400_v40 = vld [vmem:[%s12457_s0 + $0x124] sm:$0xf]  ;;  %v6368_v41 = vld [vmem:[%s12457_s0 + $0x138] sm:$0xf0] }
  0xb5   :  { %v8332_v44 = vpop.f32.mrf.mxu3 }
  0xb6   :  { %12493 = vst [vmem:[#allocation4_spill] sm:$0xff] %v8332_v44  ;;  %v8334_v45 = vpop.f32.mrf.mxu1 }
  0xb8   :  { %v8336_v46 = vpop.f32.mrf.mxu0 }
  0xbc   :  { %v8356_v53 = vpop.f32.mrf.mxu2 }
  0xbd   :  { %v8364_v56 = vpop.f32.mrf.mxu3 }
  0xbe   :  { %12494 = vst [vmem:[#allocation5_spill] sm:$0xff] %v8364_v56  ;;  %v8366_v59 = vpop.f32.mrf.mxu1 }
  0xc0   :  { %v8368_v62 = vpop.f32.mrf.mxu0 }
  0xc1   :  { %1754 = vmatmul.bf16.gmra.mxu1 %v6275_v57  ;;  %1923 = vmatmul.bf16.gmra.mxu2 %v6279_v58 }
  0xc2   :  { %2092 = vmatmul.bf16.gmra.mxu3 %v6283_v60 }
  0xc3   :  { %2261 = vmatmul.bf16.gmra.mxu0 %v6287_v61  ;;  %v7394_v61 = vld [vmem:[%s12457_s0 + $0xf4] sm:$0xf] }
  0xc4   :  { %v8373_v0 = vpop.f32.mrf.mxu2 }
  0xc5   :  { %v8375_v1 = vpop.f32.mrf.mxu3 }
  0xc6   :  { %12495 = vst [vmem:[#allocation6_spill] sm:$0xff] %v8375_v1  ;;  %v8377_v2 = vpop.f32.mrf.mxu1 }
  0xc8   :  { %v8379_v3 = vpop.f32.mrf.mxu0 }
  0xcc   :  { %v8399_v10 = vpop.f32.mrf.mxu2 }
  0xcd   :  { %v8407_v13 = vpop.f32.mrf.mxu3 }
  0xce   :  { %12496 = vst [vmem:[#allocation7_spill] sm:$0xff] %v8407_v13  ;;  %v8409_v16 = vpop.f32.mrf.mxu1 }
  0xd0   :  { %v8411_v20 = vpop.f32.mrf.mxu0 }
  0xd1   :  { %1759 = vmatmul.bf16.gmra.mxu1 %v6299_v14  ;;  %1928 = vmatmul.bf16.gmra.mxu2 %v6303_v15  ;;  %v6347_v14 = vor.u32 %v7394_v61, %v6344_v63  ;;  %v6351_v15 = vor.u32 %v7398_v5, %v6350_v4  ;;  %v6382_v63 = vld [vmem:[%s12457_s0 + $0x130] sm:$0xf]  ;;  %v7405_v4 = vld [vmem:[%s12457_s0 + $0x144] sm:$0xf0] }
  0xd2   :  { %2097 = vmatmul.bf16.gmra.mxu3 %v6307_v17 }
  0xd3   :  { %2266 = vmatmul.bf16.gmra.mxu0 %v6311_v18  ;;  %v6355_v18 = vor.u32 %v7395_v6, %v6352_v7  ;;  %v6371_v6 = vor.u32 %v7400_v40, %v6368_v41 }
  0xd4   :  { %v8413_v21 = vpop.f32.mrf.mxu2 }
  0xd5   :  { %v8415_v27 = vpop.f32.mrf.mxu3 }
  0xd6   :  { %12497 = vst [vmem:[#allocation8_spill] sm:$0xff] %v8415_v27  ;;  %v8417_v28 = vpop.f32.mrf.mxu1 }
  0xd8   :  { %v8419_v29 = vpop.f32.mrf.mxu0 }
  0xdc   :  { %v8439_v38 = vpop.f32.mrf.mxu2 }
  0xdd   :  { %v8447_v47 = vpop.f32.mrf.mxu3 }
  0xde   :  { %12498 = vst [vmem:[#allocation9_spill] sm:$0xff] %v8447_v47  ;;  %v8449_v50 = vpop.f32.mrf.mxu1 }
  0xe0   :  { %v8451_v54 = vpop.f32.mrf.mxu0 }
  0xe1   :  { %1764 = vmatmul.bf16.gmra.mxu1 %v6323_v48  ;;  %1933 = vmatmul.bf16.gmra.mxu2 %v6327_v49  ;;  %v6374_v48 = vld [vmem:[%s12457_s0 + $0x128] sm:$0xf]  ;;  %v7404_v49 = vld [vmem:[%s12457_s0 + $0x13c] sm:$0xf0] }
  0xe2   :  { %2102 = vmatmul.bf16.gmra.mxu3 %v6331_v51  ;;  %v7401_v51 = vld [vmem:[%s12457_s0 + $0x12c] sm:$0xf]  ;;  %v6375_v7 = vor.u32 %v7404_v49, %v6374_v48  ;;  %v7406_v48 = vld [vmem:[%s12457_s0 + $0x154] sm:$0xf] }
  0xe3   :  { %2271 = vmatmul.bf16.gmra.mxu0 %v6335_v52  ;;  %v6376_v52 = vld [vmem:[%s12457_s0 + $0x140] sm:$0xf0]  ;;  %v6392_v49 = vld [vmem:[%s12457_s0 + $0x168] sm:$0xf0] }
  0xe4   :  { %v8453_v55 = vpop.f32.mrf.mxu2  ;;  %v6379_v11 = vor.u32 %v7401_v51, %v6376_v52  ;;  %v6398_v51 = vld [vmem:[%s12457_s0 + $0x158] sm:$0xf]  ;;  %v7410_v52 = vld [vmem:[%s12457_s0 + $0x16c] sm:$0xf0] }
  0xe5   :  { %v8455_v57 = vpop.f32.mrf.mxu3 }
  0xe6   :  { %12499 = vst [vmem:[#allocation10_spill] sm:$0xff] %v8455_v57  ;;  %v8457_v58 = vpop.f32.mrf.mxu1 }
  0xe8   :  { %v8459_v60 = vpop.f32.mrf.mxu0 }
  0xec   :  { %v8479_v8 = vpop.f32.mrf.mxu2 }
  0xed   :  { %12500 = vst [vmem:[#allocation11_spill] sm:$0xff] %v8479_v8  ;;  %v8487_v12 = vpop.f32.mrf.mxu3 }
  0xee   :  { %12501 = vst [vmem:[#allocation12_spill] sm:$0xff] %v8487_v12  ;;  %v8489_v17 = vpop.f32.mrf.mxu1 }
  0xf0   :  { %v8491_v31 = vpop.f32.mrf.mxu0 }
  0xf1   :  { %1769 = vmatmul.bf16.gmra.mxu1 %v6347_v14  ;;  %1938 = vmatmul.bf16.gmra.mxu2 %v6351_v15  ;;  %v6383_v14 = vor.u32 %v7405_v4, %v6382_v63  ;;  %v7407_v63 = vld [vmem:[%s12457_s0 + $0x15c] sm:$0xf]  ;;  %v6400_v4 = vld [vmem:[%s12457_s0 + $0x170] sm:$0xf0] }
  0xf2   :  { %2107 = vmatmul.bf16.gmra.mxu3 %v6355_v18  ;;  %v7601_v18 = vld [vmem:[%s12455_s1 + $0x168] sm:$0xff]  ;;  %v6403_v57 = vor.u32 %v7407_v63, %v6400_v4  ;;  %v6424_v4 = vld [vmem:[%s12457_s0 + $0x1a0] sm:$0xf0] }
  0xf3   :  { %2276 = vmatmul.bf16.gmra.mxu0 %v6359_v30  ;;  %2414 = vmatpush.bf16.msra.mxu1 %v7601_v18  ;;  %v6395_v18 = vor.u32 %v7406_v48, %v6392_v49  ;;  %v7413_v63 = vld [vmem:[%s12457_s0 + $0x18c] sm:$0xf] }
  0xf4   :  { %v8493_v32 = vpop.f32.mrf.mxu2  ;;  %v6427_v44 = vor.u32 %v7413_v63, %v6424_v4 }
  0xf5   :  { %12502 = vst [vmem:[#allocation13_spill] sm:$0xff] %v8493_v32  ;;  %v8495_v34 = vpop.f32.mrf.mxu3 }
  0xf6   :  { %12503 = vst [vmem:[#allocation14_spill] sm:$0xff] %v8495_v34  ;;  %v8497_v35 = vpop.f32.mrf.mxu1  ;;  %v7605_v34 = vld [vmem:[%s12458_s3 + $0x8] sm:$0xff] }
  0xf7   :  { %2800 = vmatpush.bf16.msra.mxu2 %v7605_v34  ;;  %v7412_v34 = vld [vmem:[%s12457_s0 + $0x184] sm:$0xf] }
  0xf8   :  { %v8499_v37 = vpop.f32.mrf.mxu0 }
  0xfc   :  { %v8519_v61 = vpop.f32.mrf.mxu2 }
  0xfd   :  { %12504 = vst [vmem:[#allocation15_spill] sm:$0xff] %v8519_v61  ;;  %v8527_v5 = vpop.f32.mrf.mxu3 }
  0xfe   :  { %12505 = vst [vmem:[#allocation16_spill] sm:$0xff] %v8527_v5  ;;  %v8529_v9 = vpop.f32.mrf.mxu1 }
 0x100   :  { %v8531_v15 = vpop.f32.mrf.mxu0 }
 0x101   :  { %1774 = vmatmul.bf16.gmra.mxu1 %v6371_v6  ;;  %1943 = vmatmul.bf16.gmra.mxu2 %v6375_v7  ;;  %v6406_v7 = vld [vmem:[%s12457_s0 + $0x160] sm:$0xf] }
 0x102   :  { %2112 = vmatmul.bf16.gmra.mxu3 %v6379_v11  ;;  %v7411_v11 = vld [vmem:[%s12457_s0 + $0x174] sm:$0xf0] }
 0x103   :  { %2281 = vmatmul.bf16.gmra.mxu0 %v6383_v14  ;;  %v6407_v47 = vor.u32 %v7411_v11, %v6406_v7  ;;  %v6430_v11 = vld [vmem:[%s12457_s0 + $0x190] sm:$0xf] }
 0x104   :  { %v8536_v30 = vpop.f32.mrf.mxu2 }
 0x105   :  { %12506 = vst [vmem:[#allocation17_spill] sm:$0xff] %v8536_v30  ;;  %v8538_v5 = vpop.f32.mrf.mxu3 }
 0x106   :  { %12507 = vst [vmem:[#allocation18_spill] sm:$0xff] %v8538_v5  ;;  %v8540_v40 = vpop.f32.mrf.mxu1  ;;  %v6399_v5 = vor.u32 %v7410_v52, %v6398_v51  ;;  %v8590_v51 = vld [vmem:[%s12456_s2] ss:$0 sm:$0xff] }
 0x107   :  { %v1577_v52 = vadd.f32 %v8590_v51, %v8288_v22 }
 0x108   :  { %v8542_v41 = vpop.f32.mrf.mxu0 }
 0x10c   :  { %v8562_v6 = vpop.f32.mrf.mxu2 }
 0x10d   :  { %12508 = vst [vmem:[#allocation19_spill] sm:$0xff] %v8562_v6  ;;  %v8570_v14 = vpop.f32.mrf.mxu3 }
 0x10e   :  { %12509 = vst [vmem:[#allocation20_spill] sm:$0xff] %v8570_v14  ;;  %v8575_v12 = vpop.f32.mrf.mxu1 }
 0x110   :  { %v8577_v27 = vpop.f32.mrf.mxu0 }
 0x111   :  { %1779 = vmatmul.bf16.gmra.mxu1 %v6395_v18  ;;  %1948 = vmatmul.bf16.gmra.mxu2 %v6399_v5  ;;  %v7416_v5 = vld [vmem:[%s12457_s0 + $0x19c] sm:$0xf0]  ;;  %v7417_v18 = vld [vmem:[%s12457_s0 + $0x1a4] sm:$0xf0] }
 0x112   :  { %2117 = vmatmul.bf16.gmra.mxu3 %v6403_v57  ;;  %v6422_v57 = vld [vmem:[%s12457_s0 + $0x188] sm:$0xf]  ;;  %v6431_v24 = vor.u32 %v7417_v18, %v6430_v11 }
 0x113   :  { %2286 = vmatmul.bf16.gmra.mxu0 %v6407_v47  ;;  %v6416_v47 = vld [vmem:[%s12457_s0 + $0x198] sm:$0xf0]  ;;  %v6423_v1 = vor.u32 %v7416_v5, %v6422_v57 }
 0x114   :  { %v8579_v13 = vpop.f32.mrf.mxu2  ;;  %v6419_v22 = vor.u32 %v7412_v34, %v6416_v47 }
 0x115   :  { %12510 = vst [vmem:[#allocation21_spill] sm:$0xff] %v8579_v13  ;;  %v8581_v14 = vpop.f32.mrf.mxu3 }
 0x116   :  { %12511 = vst [vmem:[#allocation22_spill] sm:$0xff] %v8581_v14  ;;  %v8583_v48 = vpop.f32.mrf.mxu1 }
 0x118   :  { %v8585_v49 = vpop.f32.mrf.mxu0 }
 0x11c   :  { %v8612_v7 = vpop.f32.mrf.mxu2 }
 0x11d   :  { %12512 = vst [vmem:[#allocation23_spill] sm:$0xff] %v8612_v7  ;;  %v8620_v14 = vpop.f32.mrf.mxu3  ;;  %v1579_v7 = vadd.f32 %v8590_v51, %v8296_v26  ;;  %v7422_v26 = vld [vmem:[%s12457_s0 + $0x1cc] sm:$0xf0] }
 0x11e   :  { %12513 = vst [vmem:[#allocation24_spill] sm:$0xff] %v8620_v14  ;;  %v1745_v56 = vpop.f32.mrf.mxu1 }
 0x11f   :  { %v1746_v36 = vadd.f32 %v1745_v56, %v1577_v52  ;;  %v7418_v56 = vld [vmem:[%s12457_s0 + $0x1b4] sm:$0xf] }
 0x120   :  { %v2252_v13 = vpop.f32.mrf.mxu0 }
 0x121   :  { %1784 = vmatmul.bf16.gmra.mxu1 %v6419_v22  ;;  %1953 = vmatmul.bf16.gmra.mxu2 %v6423_v1  ;;  %v7419_v1 = vld [vmem:[%s12457_s0 + $0x1bc] sm:$0xf]  ;;  %v1584_v22 = vadd.f32 %v8590_v51, %v8336_v46  ;;  %v6470_v46 = vld [vmem:[%s12457_s0 + $0x1e8] sm:$0xf] }
 0x122   :  { %2122 = vmatmul.bf16.gmra.mxu3 %v6427_v44  ;;  %v6440_v44 = vld [vmem:[%s12457_s0 + $0x1c8] sm:$0xf0] }
 0x123   :  { %2291 = vmatmul.bf16.gmra.mxu0 %v6431_v24  ;;  %v6446_v24 = vld [vmem:[%s12457_s0 + $0x1b8] sm:$0xf] }
 0x124   :  { %v1914_v6 = vpop.f32.mrf.mxu2  ;;  %v6447_v57 = vor.u32 %v7422_v26, %v6446_v24 }
 0x125   :  { %v1915_v30 = vadd.f32 %v1914_v6, %v1746_v36  ;;  %v2083_v61 = vpop.f32.mrf.mxu3  ;;  %v1582_v36 = vadd.f32 %v8590_v51, %v8328_v42  ;;  %v6443_v42 = vor.u32 %v7418_v56, %v6440_v44 }
 0x126   :  { %v1747_v32 = vpop.f32.mrf.mxu1 }
 0x127   :  { %v1748_v8 = vadd.f32 %v1747_v32, %v1579_v7  ;;  %v2084_v14 = vadd.f32 %v2083_v61, %v1915_v30  ;;  %v6454_v61 = vld [vmem:[%s12457_s0 + $0x1c0] sm:$0xf]  ;;  %v7423_v30 = vld [vmem:[%s12457_s0 + $0x1d4] sm:$0xf0] }
 0x128   :  { %v2254_v34 = vpop.f32.mrf.mxu0  ;;  %v6455_v7 = vor.u32 %v7423_v30, %v6454_v61  ;;  %v7425_v61 = vld [vmem:[%s12457_s0 + $0x1ec] sm:$0xf]  ;;  %v6472_v30 = vld [vmem:[%s12457_s0 + $0x200] sm:$0xf0] }
 0x129   :  { %v8624_v47 = vadd.f32 %v2252_v13, %v2084_v14  ;;  %v6448_v13 = vld [vmem:[%s12457_s0 + $0x1d0] sm:$0xf0] }
 0x12a   :  { %v6451_v52 = vor.u32 %v7419_v1, %v6448_v13  ;;  %v6464_v1 = vld [vmem:[%s12457_s0 + $0x1f8] sm:$0xf0]  ;;  %v1587_v13 = vadd.f32 %v8590_v51, %v8368_v62 }
 0x12b   :  { %12514 = vst [vmem:[#allocation25_spill] sm:$0xff] %v8624_v47 }
 0x12c   :  { %v1916_v32 = vpop.f32.mrf.mxu2 }
 0x12d   :  { %v1917_v6 = vadd.f32 %v1916_v32, %v1748_v8  ;;  %v2085_v14 = vpop.f32.mrf.mxu3 }
 0x12e   :  { %v1750_v5 = vpop.f32.mrf.mxu1 }
 0x12f   :  { %v1751_v63 = vadd.f32 %v1750_v5, %v1582_v36  ;;  %v2086_v4 = vadd.f32 %v2085_v14, %v1917_v6  ;;  %v6478_v14 = vld [vmem:[%s12457_s0 + $0x1f0] sm:$0xf] }
 0x130   :  { %v2257_v11 = vpop.f32.mrf.mxu0 }
 0x131   :  { %v8652_v18 = vadd.f32 %v2254_v34, %v2086_v4  ;;  %1789 = vmatmul.bf16.gmra.mxu1 %v6443_v42  ;;  %1958 = vmatmul.bf16.gmra.mxu2 %v6447_v57  ;;  %v7424_v34 = vld [vmem:[%s12457_s0 + $0x1e4] sm:$0xf]  ;;  %v7429_v42 = vld [vmem:[%s12457_s0 + $0x204] sm:$0xf0]  ;;  %v6475_v4 = vor.u32 %v7425_v61, %v6472_v30  ;;  %v7430_v30 = vld [vmem:[%s12457_s0 + $0x214] sm:$0xf] }
 0x132   :  { %2127 = vmatmul.bf16.gmra.mxu3 %v6451_v52  ;;  %v6467_v62 = vor.u32 %v7424_v34, %v6464_v1 }
 0x133   :  { %2296 = vmatmul.bf16.gmra.mxu0 %v6455_v7 }
 0x134   :  { %v1919_v47 = vpop.f32.mrf.mxu2 }
 0x135   :  { %v1920_v8 = vadd.f32 %v1919_v47, %v1751_v63  ;;  %v2088_v32 = vpop.f32.mrf.mxu3  ;;  %v7428_v47 = vld [vmem:[%s12457_s0 + $0x1fc] sm:$0xf0] }
 0x136   :  { %v1752_v56 = vpop.f32.mrf.mxu1  ;;  %v6471_v52 = vor.u32 %v7428_v47, %v6470_v46 }
 0x137   :  { %v1753_v44 = vadd.f32 %v1752_v56, %v1584_v22  ;;  %v2089_v24 = vadd.f32 %v2088_v32, %v1920_v8  ;;  %v6479_v22 = vor.u32 %v7429_v42, %v6478_v14  ;;  %v7600_v56 = vld [vmem:[%s12455_s1 + $0x160] sm:$0xff]  ;;  %v7434_v14 = vld [vmem:[%s12457_s0 + $0x22c] sm:$0xf0]  ;;  %v1592_v42 = vadd.f32 %v8590_v51, %v8411_v20 }
 0x138   :  { %v2259_v26 = vpop.f32.mrf.mxu0  ;;  %2415 = vmatpush.bf16.msra.mxu1 %v7600_v56 }
 0x139   :  { %v8656_v36 = vadd.f32 %v2257_v11, %v2089_v24 }
 0x13c   :  { %v1921_v6 = vpop.f32.mrf.mxu2 }
 0x13d   :  { %v1922_v57 = vadd.f32 %v1921_v6, %v1753_v44  ;;  %v2090_v5 = vpop.f32.mrf.mxu3  ;;  %v1589_v44 = vadd.f32 %v8590_v51, %v8379_v3  ;;  %v6488_v6 = vld [vmem:[%s12457_s0 + $0x228] sm:$0xf0]  ;;  %v6494_v3 = vld [vmem:[%s12457_s0 + $0x218] sm:$0xf] }
 0x13e   :  { %v1755_v63 = vpop.f32.mrf.mxu1  ;;  %v6491_v20 = vor.u32 %v7430_v30, %v6488_v6 }
 0x13f   :  { %v1756_v7 = vadd.f32 %v1755_v63, %v1587_v13  ;;  %v2091_v11 = vadd.f32 %v2090_v5, %v1922_v57  ;;  %v7431_v57 = vld [vmem:[%s12457_s0 + $0x21c] sm:$0xf]  ;;  %v6496_v5 = vld [vmem:[%s12457_s0 + $0x230] sm:$0xf0]  ;;  %v7435_v63 = vld [vmem:[%s12457_s0 + $0x234] sm:$0xf0] }
 0x140   :  { %v2262_v8 = vpop.f32.mrf.mxu0 }
 0x141   :  { %v8684_v32 = vadd.f32 %v2259_v26, %v2091_v11  ;;  %1794 = vmatmul.bf16.gmra.mxu1 %v6467_v62  ;;  %1963 = vmatmul.bf16.gmra.mxu2 %v6471_v52  ;;  %v6502_v52 = vld [vmem:[%s12457_s0 + $0x220] sm:$0xf]  ;;  %v6495_v11 = vor.u32 %v7434_v14, %v6494_v3 }
 0x142   :  { %2132 = vmatmul.bf16.gmra.mxu3 %v6475_v4 }
 0x143   :  { %2301 = vmatmul.bf16.gmra.mxu0 %v6479_v22 }
 0x144   :  { %v1924_v24 = vpop.f32.mrf.mxu2 }
 0x145   :  { %v1925_v34 = vadd.f32 %v1924_v24, %v1756_v7  ;;  %v2093_v1 = vpop.f32.mrf.mxu3  ;;  %v6503_v24 = vor.u32 %v7435_v63, %v6502_v52  ;;  %v1597_v52 = vadd.f32 %v8590_v51, %v8451_v54  ;;  %v7437_v63 = vld [vmem:[%s12457_s0 + $0x24c] sm:$0xf] }
 0x146   :  { %v1757_v46 = vpop.f32.mrf.mxu1 }
 0x147   :  { %v1758_v47 = vadd.f32 %v1757_v46, %v1589_v44  ;;  %v2094_v13 = vadd.f32 %v2093_v1, %v1925_v34  ;;  %v1594_v46 = vadd.f32 %v8590_v51, %v8419_v29  ;;  %v6518_v29 = vld [vmem:[%s12457_s0 + $0x248] sm:$0xf] }
 0x148   :  { %v2264_v26 = vpop.f32.mrf.mxu0 }
 0x149   :  { %v8691_v61 = vadd.f32 %v2262_v8, %v2094_v13  ;;  %v6499_v8 = vor.u32 %v7431_v57, %v6496_v5  ;;  %v6512_v57 = vld [vmem:[%s12457_s0 + $0x258] sm:$0xf0]  ;;  %v7440_v5 = vld [vmem:[%s12457_s0 + $0x25c] sm:$0xf0] }
 0x14c   :  { %v1926_v62 = vpop.f32.mrf.mxu2 }
 0x14d   :  { %v1927_v4 = vadd.f32 %v1926_v62, %v1758_v47  ;;  %v2095_v7 = vpop.f32.mrf.mxu3 }
 0x14e   :  { %v1760_v22 = vpop.f32.mrf.mxu1 }
 0x14f   :  { %v1761_v56 = vadd.f32 %v1760_v22, %v1592_v42  ;;  %v2096_v44 = vadd.f32 %v2095_v7, %v1927_v4  ;;  %v6520_v4 = vld [vmem:[%s12457_s0 + $0x260] sm:$0xf0] }
 0x150   :  { %v2267_v34 = vpop.f32.mrf.mxu0 }
 0x151   :  { %v8719_v1 = vadd.f32 %v2264_v26, %v2096_v44  ;;  %1799 = vmatmul.bf16.gmra.mxu1 %v6491_v20  ;;  %1968 = vmatmul.bf16.gmra.mxu2 %v6495_v11  ;;  %v7436_v26 = vld [vmem:[%s12457_s0 + $0x244] sm:$0xf]  ;;  %v6526_v20 = vld [vmem:[%s12457_s0 + $0x250] sm:$0xf]  ;;  %v7441_v11 = vld [vmem:[%s12457_s0 + $0x264] sm:$0xf0] }
 0x152   :  { %2137 = vmatmul.bf16.gmra.mxu3 %v6499_v8  ;;  %v6515_v54 = vor.u32 %v7436_v26, %v6512_v57 }
 0x153   :  { %2306 = vmatmul.bf16.gmra.mxu0 %v6503_v24  ;;  %v6523_v24 = vor.u32 %v7437_v63, %v6520_v4  ;;  %v6536_v63 = vld [vmem:[%s12457_s0 + $0x288] sm:$0xf0]  ;;  %v7446_v4 = vld [vmem:[%s12457_s0 + $0x28c] sm:$0xf0] }
 0x154   :  { %v1929_v13 = vpop.f32.mrf.mxu2 }
 0x155   :  { %v1930_v47 = vadd.f32 %v1929_v13, %v1761_v56  ;;  %v2098_v62 = vpop.f32.mrf.mxu3  ;;  %v6519_v56 = vor.u32 %v7440_v5, %v6518_v29  ;;  %v6527_v13 = vor.u32 %v7441_v11, %v6526_v20  ;;  %v1602_v20 = vadd.f32 %v8590_v51, %v8491_v31  ;;  %v7443_v11 = vld [vmem:[%s12457_s0 + $0x27c] sm:$0xf] }
 0x156   :  { %v1762_v30 = vpop.f32.mrf.mxu1 }
 0x157   :  { %v1763_v6 = vadd.f32 %v1762_v30, %v1594_v46  ;;  %v2099_v3 = vadd.f32 %v2098_v62, %v1930_v47  ;;  %v1599_v30 = vadd.f32 %v8590_v51, %v8459_v60  ;;  %v6542_v60 = vld [vmem:[%s12457_s0 + $0x278] sm:$0xf] }
 0x158   :  { %v2269_v14 = vpop.f32.mrf.mxu0 }
 0x159   :  { %v8723_v42 = vadd.f32 %v2267_v34, %v2099_v3 }
 0x15c   :  { %v1931_v7 = vpop.f32.mrf.mxu2 }
 0x15d   :  { %v1932_v22 = vadd.f32 %v1931_v7, %v1763_v6  ;;  %v2100_v8 = vpop.f32.mrf.mxu3 }
 0x15e   :  { %v1765_v44 = vpop.f32.mrf.mxu1 }
 0x15f   :  { %v1766_v34 = vadd.f32 %v1765_v44, %v1597_v52  ;;  %v2101_v46 = vadd.f32 %v2100_v8, %v1932_v22  ;;  %v6544_v22 = vld [vmem:[%s12457_s0 + $0x290] sm:$0xf0] }
 0x160   :  { %v2272_v47 = vpop.f32.mrf.mxu0 }
 0x161   :  { %v8751_v62 = vadd.f32 %v2269_v14, %v2101_v46  ;;  %1804 = vmatmul.bf16.gmra.mxu1 %v6515_v54  ;;  %1973 = vmatmul.bf16.gmra.mxu2 %v6519_v56  ;;  %v7442_v14 = vld [vmem:[%s12457_s0 + $0x274] sm:$0xf]  ;;  %v6550_v54 = vld [vmem:[%s12457_s0 + $0x280] sm:$0xf]  ;;  %v7447_v56 = vld [vmem:[%s12457_s0 + $0x294] sm:$0xf0] }
 0x162   :  { %2142 = vmatmul.bf16.gmra.mxu3 %v6523_v24  ;;  %v6539_v31 = vor.u32 %v7442_v14, %v6536_v63 }
 0x163   :  { %2311 = vmatmul.bf16.gmra.mxu0 %v6527_v13  ;;  %v6547_v13 = vor.u32 %v7443_v11, %v6544_v22  ;;  %v6560_v11 = vld [vmem:[%s12457_s0 + $0x2b8] sm:$0xf0]  ;;  %v7452_v22 = vld [vmem:[%s12457_s0 + $0x2bc] sm:$0xf0] }
 0x164   :  { %v1934_v3 = vpop.f32.mrf.mxu2 }
 0x165   :  { %v1935_v6 = vadd.f32 %v1934_v3, %v1766_v34  ;;  %v2103_v7 = vpop.f32.mrf.mxu3  ;;  %v6543_v34 = vor.u32 %v7446_v4, %v6542_v60  ;;  %v6551_v3 = vor.u32 %v7447_v56, %v6550_v54  ;;  %v1607_v54 = vadd.f32 %v8590_v51, %v8531_v15  ;;  %v7449_v56 = vld [vmem:[%s12457_s0 + $0x2ac] sm:$0xf] }
 0x166   :  { %v1767_v26 = vpop.f32.mrf.mxu1 }
 0x167   :  { %v1768_v57 = vadd.f32 %v1767_v26, %v1599_v30  ;;  %v2104_v29 = vadd.f32 %v2103_v7, %v1935_v6  ;;  %v1604_v26 = vadd.f32 %v8590_v51, %v8499_v37  ;;  %v6566_v37 = vld [vmem:[%s12457_s0 + $0x2a8] sm:$0xf] }
 0x168   :  { %v2274_v5 = vpop.f32.mrf.mxu0 }
 0x169   :  { %v8755_v52 = vadd.f32 %v2272_v47, %v2104_v29 }
 0x16c   :  { %v1936_v8 = vpop.f32.mrf.mxu2 }
 0x16d   :  { %v1937_v44 = vadd.f32 %v1936_v8, %v1768_v57  ;;  %v2105_v24 = vpop.f32.mrf.mxu3 }
 0x16e   :  { %v1770_v46 = vpop.f32.mrf.mxu1 }
 0x16f   :  { %v1771_v47 = vadd.f32 %v1770_v46, %v1602_v20  ;;  %v2106_v30 = vadd.f32 %v2105_v24, %v1937_v44  ;;  %v6568_v44 = vld [vmem:[%s12457_s0 + $0x2c0] sm:$0xf0] }
 0x170   :  { %v2277_v6 = vpop.f32.mrf.mxu0 }
 0x171   :  { %v8783_v7 = vadd.f32 %v2274_v5, %v2106_v30  ;;  %1809 = vmatmul.bf16.gmra.mxu1 %v6539_v31  ;;  %1978 = vmatmul.bf16.gmra.mxu2 %v6543_v34  ;;  %v7448_v5 = vld [vmem:[%s12457_s0 + $0x2a4] sm:$0xf]  ;;  %v6574_v31 = vld [vmem:[%s12457_s0 + $0x2b0] sm:$0xf]  ;;  %v7453_v34 = vld [vmem:[%s12457_s0 + $0x2c4] sm:$0xf0] }
 0x172   :  { %2147 = vmatmul.bf16.gmra.mxu3 %v6547_v13  ;;  %v6563_v15 = vor.u32 %v7448_v5, %v6560_v11 }
 0x173   :  { %2316 = vmatmul.bf16.gmra.mxu0 %v6551_v3  ;;  %v6571_v3 = vor.u32 %v7449_v56, %v6568_v44  ;;  %v7454_v44 = vld [vmem:[%s12457_s0 + $0x2d4] sm:$0xf] }
 0x174   :  { %v1939_v29 = vpop.f32.mrf.mxu2 }
 0x175   :  { %v1940_v57 = vadd.f32 %v1939_v29, %v1771_v47  ;;  %v2108_v8 = vpop.f32.mrf.mxu3  ;;  %v6567_v47 = vor.u32 %v7452_v22, %v6566_v37  ;;  %v6575_v29 = vor.u32 %v7453_v34, %v6574_v31  ;;  %v7458_v31 = vld [vmem:[%s12457_s0 + $0x2ec] sm:$0xf0]  ;;  %v1612_v34 = vadd.f32 %v8590_v51, %v8577_v27 }
 0x176   :  { %v1772_v14 = vpop.f32.mrf.mxu1 }
 0x177   :  { %v1773_v63 = vadd.f32 %v1772_v14, %v1604_v26  ;;  %v2109_v60 = vadd.f32 %v2108_v8, %v1940_v57  ;;  %v7599_v14 = vld [vmem:[%s12455_s1 + $0x158] sm:$0xff] }
 0x178   :  { %v2279_v4 = vpop.f32.mrf.mxu0  ;;  %2416 = vmatpush.bf16.msra.mxu1 %v7599_v14 }
 0x179   :  { %v8787_v20 = vadd.f32 %v2277_v6, %v2109_v60 }
 0x17c   :  { %v1941_v24 = vpop.f32.mrf.mxu2 }
 0x17d   :  { %v1942_v46 = vadd.f32 %v1941_v24, %v1773_v63  ;;  %v2110_v13 = vpop.f32.mrf.mxu3  ;;  %v1609_v63 = vadd.f32 %v8590_v51, %v8542_v41  ;;  %v6584_v24 = vld [vmem:[%s12457_s0 + $0x2e8] sm:$0xf0]  ;;  %v6590_v41 = vld [vmem:[%s12457_s0 + $0x2d8] sm:$0xf] }
 0x17e   :  { %v1775_v30 = vpop.f32.mrf.mxu1  ;;  %v6587_v27 = vor.u32 %v7454_v44, %v6584_v24 }
 0x17f   :  { %v1776_v6 = vadd.f32 %v1775_v30, %v1607_v54  ;;  %v2111_v26 = vadd.f32 %v2110_v13, %v1942_v46  ;;  %v7455_v46 = vld [vmem:[%s12457_s0 + $0x2dc] sm:$0xf]  ;;  %v6592_v13 = vld [vmem:[%s12457_s0 + $0x2f0] sm:$0xf0]  ;;  %v7459_v30 = vld [vmem:[%s12457_s0 + $0x2f4] sm:$0xf0] }
 0x180   :  { %v2282_v57 = vpop.f32.mrf.mxu0 }
 0x181   :  { %v8815_v8 = vadd.f32 %v2279_v4, %v2111_v26  ;;  %1814 = vmatmul.bf16.gmra.mxu1 %v6563_v15  ;;  %1983 = vmatmul.bf16.gmra.mxu2 %v6567_v47  ;;  %v6598_v47 = vld [vmem:[%s12457_s0 + $0x2e0] sm:$0xf]  ;;  %v6591_v26 = vor.u32 %v7458_v31, %v6590_v41 }
 0x182   :  { %2152 = vmatmul.bf16.gmra.mxu3 %v6571_v3 }
 0x183   :  { %2321 = vmatmul.bf16.gmra.mxu0 %v6575_v29 }
 0x184   :  { %v1944_v60 = vpop.f32.mrf.mxu2 }
 0x185   :  { %v1945_v5 = vadd.f32 %v1944_v60, %v1776_v6  ;;  %v2113_v11 = vpop.f32.mrf.mxu3  ;;  %v6599_v60 = vor.u32 %v7459_v30, %v6598_v47  ;;  %v7461_v47 = vld [vmem:[%s12457_s0 + $0x30c] sm:$0xf]  ;;  %v6616_v30 = vld [vmem:[%s12457_s0 + $0x320] sm:$0xf0] }
 0x186   :  { %v1777_v37 = vpop.f32.mrf.mxu1 }
 0x187   :  { %v1778_v22 = vadd.f32 %v1777_v37, %v1609_v63  ;;  %v2114_v54 = vadd.f32 %v2113_v11, %v1945_v5  ;;  %v1614_v37 = vadd.f32 %v8590_v51, %v8585_v49  ;;  %v6614_v49 = vld [vmem:[%s12457_s0 + $0x308] sm:$0xf] }
 0x188   :  { %v2284_v4 = vpop.f32.mrf.mxu0 }
 0x189   :  { %v8822_v56 = vadd.f32 %v2282_v57, %v2114_v54  ;;  %v6595_v57 = vor.u32 %v7455_v46, %v6592_v13  ;;  %v6608_v46 = vld [vmem:[%s12457_s0 + $0x318] sm:$0xf0]  ;;  %v7464_v13 = vld [vmem:[%s12457_s0 + $0x31c] sm:$0xf0] }
 0x18c   :  { %v1946_v15 = vpop.f32.mrf.mxu2 }
 0x18d   :  { %v1947_v3 = vadd.f32 %v1946_v15, %v1778_v22  ;;  %v2115_v6 = vpop.f32.mrf.mxu3 }
 0x18e   :  { %v1780_v29 = vpop.f32.mrf.mxu1 }
 0x18f   :  { %v1781_v14 = vadd.f32 %v1780_v29, %v1612_v34  ;;  %v2116_v63 = vadd.f32 %v2115_v6, %v1947_v3  ;;  %v6622_v6 = vld [vmem:[%s12457_s0 + $0x310] sm:$0xf] }
 0x190   :  { %v2287_v5 = vpop.f32.mrf.mxu0 }
 0x191   :  { %v8850_v11 = vadd.f32 %v2284_v4, %v2116_v63  ;;  %1819 = vmatmul.bf16.gmra.mxu1 %v6587_v27  ;;  %1988 = vmatmul.bf16.gmra.mxu2 %v6591_v26  ;;  %v7460_v4 = vld [vmem:[%s12457_s0 + $0x304] sm:$0xf]  ;;  %v7465_v27 = vld [vmem:[%s12457_s0 + $0x324] sm:$0xf0]  ;;  %v1617_v26 = vadd.f32 %v8590_v51, %v8286_v19  ;;  %v6615_v63 = vor.u32 %v7464_v13, %v6614_v49 }
 0x192   :  { %2157 = vmatmul.bf16.gmra.mxu3 %v6595_v57  ;;  %v1619_v19 = vadd.f32 %v8590_v51, %v8294_v25  ;;  %v6638_v25 = vld [vmem:[%s12457_s0 + $0x338] sm:$0xf] }
 0x193   :  { %2326 = vmatmul.bf16.gmra.mxu0 %v6599_v60 }
 0x194   :  { %v1949_v54 = vpop.f32.mrf.mxu2 }
 0x195   :  { %v1950_v22 = vadd.f32 %v1949_v54, %v1781_v14  ;;  %v2118_v15 = vpop.f32.mrf.mxu3  ;;  %v6611_v14 = vor.u32 %v7460_v4, %v6608_v46 }
 0x196   :  { %v1782_v44 = vpop.f32.mrf.mxu1 }
 0x197   :  { %v1783_v24 = vadd.f32 %v1782_v44, %v1614_v37  ;;  %v2119_v41 = vadd.f32 %v2118_v15, %v1950_v22  ;;  %v6623_v22 = vor.u32 %v7465_v27, %v6622_v6  ;;  %v7470_v6 = vld [vmem:[%s12457_s0 + $0x34c] sm:$0xf0]  ;;  %v7467_v27 = vld [vmem:[%s12457_s0 + $0x33c] sm:$0xf] }
 0x198   :  { %v2289_v31 = vpop.f32.mrf.mxu0 }
 0x199   :  { %v8854_v34 = vadd.f32 %v2287_v5, %v2119_v41  ;;  %v6619_v5 = vor.u32 %v7461_v47, %v6616_v30  ;;  %v6632_v30 = vld [vmem:[%s12457_s0 + $0x348] sm:$0xf0] }
 0x19c   :  { %v1951_v3 = vpop.f32.mrf.mxu2 }
 0x19d   :  { %v1952_v29 = vadd.f32 %v1951_v3, %v1783_v24  ;;  %v2120_v57 = vpop.f32.mrf.mxu3 }
 0x19e   :  { %v1785_v60 = vpop.f32.mrf.mxu1 }
 0x19f   :  { %v1786_v37 = vadd.f32 %v1785_v60, %v1617_v26  ;;  %v2121_v54 = vadd.f32 %v2120_v57, %v1952_v29  ;;  %v6640_v26 = vld [vmem:[%s12457_s0 + $0x350] sm:$0xf0]  ;;  %v6646_v57 = vld [vmem:[%s12457_s0 + $0x340] sm:$0xf] }
 0x1a0   :  { %v2292_v15 = vpop.f32.mrf.mxu0 }
 0x1a1   :  { %v8882_v44 = vadd.f32 %v2289_v31, %v2121_v54  ;;  %1824 = vmatmul.bf16.gmra.mxu1 %v6611_v14  ;;  %1993 = vmatmul.bf16.gmra.mxu2 %v6615_v63  ;;  %v7466_v31 = vld [vmem:[%s12457_s0 + $0x334] sm:$0xf]  ;;  %v7471_v14 = vld [vmem:[%s12457_s0 + $0x354] sm:$0xf0]  ;;  %v1622_v63 = vadd.f32 %v8590_v51, %v8326_v39  ;;  %v6639_v54 = vor.u32 %v7470_v6, %v6638_v25 }
 0x1a2   :  { %2162 = vmatmul.bf16.gmra.mxu3 %v6619_v5  ;;  %v1624_v39 = vadd.f32 %v8590_v51, %v8334_v45  ;;  %v6662_v45 = vld [vmem:[%s12457_s0 + $0x368] sm:$0xf] }
 0x1a3   :  { %2331 = vmatmul.bf16.gmra.mxu0 %v6623_v22 }
 0x1a4   :  { %v1954_v41 = vpop.f32.mrf.mxu2 }
 0x1a5   :  { %v1955_v24 = vadd.f32 %v1954_v41, %v1786_v37  ;;  %v2123_v3 = vpop.f32.mrf.mxu3  ;;  %v6635_v37 = vor.u32 %v7466_v31, %v6632_v30 }
 0x1a6   :  { %v1787_v4 = vpop.f32.mrf.mxu1 }
 0x1a7   :  { %v1788_v46 = vadd.f32 %v1787_v4, %v1619_v19  ;;  %v2124_v49 = vadd.f32 %v2123_v3, %v1955_v24  ;;  %v6647_v24 = vor.u32 %v7471_v14, %v6646_v57  ;;  %v7476_v57 = vld [vmem:[%s12457_s0 + $0x37c] sm:$0xf0]  ;;  %v7473_v14 = vld [vmem:[%s12457_s0 + $0x36c] sm:$0xf] }
 0x1a8   :  { %v2294_v13 = vpop.f32.mrf.mxu0 }
 0x1a9   :  { %v8886_v47 = vadd.f32 %v2292_v15, %v2124_v49  ;;  %v6643_v15 = vor.u32 %v7467_v27, %v6640_v26  ;;  %v6656_v26 = vld [vmem:[%s12457_s0 + $0x378] sm:$0xf0] }
 0x1ac   :  { %v1956_v29 = vpop.f32.mrf.mxu2 }
 0x1ad   :  { %v1957_v60 = vadd.f32 %v1956_v29, %v1788_v46  ;;  %v2125_v5 = vpop.f32.mrf.mxu3 }
 0x1ae   :  { %v1790_v22 = vpop.f32.mrf.mxu1 }
 0x1af   :  { %v1791_v41 = vadd.f32 %v1790_v22, %v1622_v63  ;;  %v2126_v19 = vadd.f32 %v2125_v5, %v1957_v60  ;;  %v6664_v63 = vld [vmem:[%s12457_s0 + $0x380] sm:$0xf0]  ;;  %v6670_v5 = vld [vmem:[%s12457_s0 + $0x370] sm:$0xf] }
 0x1b0   :  { %v2297_v3 = vpop.f32.mrf.mxu0 }
 0x1b1   :  { %v8914_v4 = vadd.f32 %v2294_v13, %v2126_v19  ;;  %1829 = vmatmul.bf16.gmra.mxu1 %v6635_v37  ;;  %1998 = vmatmul.bf16.gmra.mxu2 %v6639_v54  ;;  %v7472_v13 = vld [vmem:[%s12457_s0 + $0x364] sm:$0xf]  ;;  %v7477_v37 = vld [vmem:[%s12457_s0 + $0x384] sm:$0xf0]  ;;  %v1627_v54 = vadd.f32 %v8590_v51, %v8366_v59  ;;  %v6663_v19 = vor.u32 %v7476_v57, %v6662_v45 }
 0x1b2   :  { %2167 = vmatmul.bf16.gmra.mxu3 %v6643_v15 }
 0x1b3   :  { %2336 = vmatmul.bf16.gmra.mxu0 %v6647_v24 }
 0x1b4   :  { %v1959_v49 = vpop.f32.mrf.mxu2 }
 0x1b5   :  { %v1960_v46 = vadd.f32 %v1959_v49, %v1791_v41  ;;  %v2128_v29 = vpop.f32.mrf.mxu3  ;;  %v6659_v41 = vor.u32 %v7472_v13, %v6656_v26 }
 0x1b6   :  { %v1792_v31 = vpop.f32.mrf.mxu1 }
 0x1b7   :  { %v1793_v30 = vadd.f32 %v1792_v31, %v1624_v39  ;;  %v2129_v25 = vadd.f32 %v2128_v29, %v1960_v46  ;;  %v6671_v46 = vor.u32 %v7477_v37, %v6670_v5  ;;  %v6680_v5 = vld [vmem:[%s12457_s0 + $0x3a8] sm:$0xf0]  ;;  %v7482_v37 = vld [vmem:[%s12457_s0 + $0x3ac] sm:$0xf0] }
 0x1b8   :  { %v2299_v6 = vpop.f32.mrf.mxu0 }
 0x1b9   :  { %v8918_v27 = vadd.f32 %v2297_v3, %v2129_v25  ;;  %v6667_v3 = vor.u32 %v7473_v14, %v6664_v63  ;;  %v7598_v25 = vld [vmem:[%s12455_s1 + $0x150] sm:$0xff] }
 0x1ba   :  { %2417 = vmatpush.bf16.msra.mxu1 %v7598_v25 }
 0x1bc   :  { %v1961_v60 = vpop.f32.mrf.mxu2 }
 0x1bd   :  { %v1962_v22 = vadd.f32 %v1961_v60, %v1793_v30  ;;  %v2130_v15 = vpop.f32.mrf.mxu3  ;;  %v1629_v30 = vadd.f32 %v8590_v51, %v8377_v2  ;;  %v7478_v60 = vld [vmem:[%s12457_s0 + $0x394] sm:$0xf]  ;;  %v6686_v2 = vld [vmem:[%s12457_s0 + $0x398] sm:$0xf] }
 0x1be   :  { %v1795_v24 = vpop.f32.mrf.mxu1 }
 0x1bf   :  { %v1796_v49 = vadd.f32 %v1795_v24, %v1627_v54  ;;  %v2131_v39 = vadd.f32 %v2130_v15, %v1962_v22  ;;  %v7479_v54 = vld [vmem:[%s12457_s0 + $0x39c] sm:$0xf]  ;;  %v6688_v22 = vld [vmem:[%s12457_s0 + $0x3b0] sm:$0xf0]  ;;  %v1632_v24 = vadd.f32 %v8590_v51, %v8409_v16  ;;  %v1634_v16 = vadd.f32 %v8590_v51, %v8417_v28  ;;  %v6710_v28 = vld [vmem:[%s12457_s0 + $0x3c8] sm:$0xf] }
 0x1c0   :  { %v2302_v29 = vpop.f32.mrf.mxu0  ;;  %v6691_v25 = vor.u32 %v7479_v54, %v6688_v22  ;;  %v6704_v22 = vld [vmem:[%s12457_s0 + $0x3d8] sm:$0xf0] }
 0x1c1   :  { %v8946_v31 = vadd.f32 %v2299_v6, %v2131_v39  ;;  %1834 = vmatmul.bf16.gmra.mxu1 %v6659_v41  ;;  %2003 = vmatmul.bf16.gmra.mxu2 %v6663_v19  ;;  %v6694_v41 = vld [vmem:[%s12457_s0 + $0x3a0] sm:$0xf]  ;;  %v7483_v19 = vld [vmem:[%s12457_s0 + $0x3b4] sm:$0xf0]  ;;  %v6683_v39 = vor.u32 %v7478_v60, %v6680_v5 }
 0x1c2   :  { %2172 = vmatmul.bf16.gmra.mxu3 %v6667_v3 }
 0x1c3   :  { %2341 = vmatmul.bf16.gmra.mxu0 %v6671_v46  ;;  %v6687_v46 = vor.u32 %v7482_v37, %v6686_v2 }
 0x1c4   :  { %v1964_v59 = vpop.f32.mrf.mxu2 }
 0x1c5   :  { %v1965_v13 = vadd.f32 %v1964_v59, %v1796_v49  ;;  %v2133_v26 = vpop.f32.mrf.mxu3 }
 0x1c6   :  { %v1797_v45 = vpop.f32.mrf.mxu1 }
 0x1c7   :  { %v1798_v57 = vadd.f32 %v1797_v45, %v1629_v30  ;;  %v2134_v14 = vadd.f32 %v2133_v26, %v1965_v13  ;;  %v6695_v13 = vor.u32 %v7483_v19, %v6694_v41  ;;  %v7488_v41 = vld [vmem:[%s12457_s0 + $0x3dc] sm:$0xf0]  ;;  %v7485_v19 = vld [vmem:[%s12457_s0 + $0x3cc] sm:$0xf] }
 0x1c8   :  { %v2304_v6 = vpop.f32.mrf.mxu0 }
 0x1c9   :  { %v8953_v63 = vadd.f32 %v2302_v29, %v2134_v14 }
 0x1cc   :  { %v1966_v15 = vpop.f32.mrf.mxu2 }
 0x1cd   :  { %v1967_v3 = vadd.f32 %v1966_v15, %v1798_v57  ;;  %v2135_v49 = vpop.f32.mrf.mxu3 }
 0x1ce   :  { %v1800_v29 = vpop.f32.mrf.mxu1 }
 0x1cf   :  { %v1801_v59 = vadd.f32 %v1800_v29, %v1632_v24  ;;  %v2136_v30 = vadd.f32 %v2135_v49, %v1967_v3  ;;  %v6712_v24 = vld [vmem:[%s12457_s0 + $0x3e0] sm:$0xf0]  ;;  %v6718_v49 = vld [vmem:[%s12457_s0 + $0x3d0] sm:$0xf] }
 0x1d0   :  { %v2307_v26 = vpop.f32.mrf.mxu0 }
 0x1d1   :  { %v8981_v45 = vadd.f32 %v2304_v6, %v2136_v30  ;;  %1839 = vmatmul.bf16.gmra.mxu1 %v6683_v39  ;;  %2008 = vmatmul.bf16.gmra.mxu2 %v6687_v46  ;;  %v7484_v6 = vld [vmem:[%s12457_s0 + $0x3c4] sm:$0xf]  ;;  %v7489_v39 = vld [vmem:[%s12457_s0 + $0x3e4] sm:$0xf0]  ;;  %v1637_v46 = vadd.f32 %v8590_v51, %v8449_v50  ;;  %v6711_v30 = vor.u32 %v7488_v41, %v6710_v28 }
 0x1d2   :  { %2177 = vmatmul.bf16.gmra.mxu3 %v6691_v25  ;;  %v1639_v50 = vadd.f32 %v8590_v51, %v8457_v58  ;;  %v6734_v58 = vld [vmem:[%s12457_s0 + $0x3f8] sm:$0xf] }
 0x1d3   :  { %2346 = vmatmul.bf16.gmra.mxu0 %v6695_v13 }
 0x1d4   :  { %v1969_v14 = vpop.f32.mrf.mxu2 }
 0x1d5   :  { %v1970_v57 = vadd.f32 %v1969_v14, %v1801_v59  ;;  %v2138_v15 = vpop.f32.mrf.mxu3  ;;  %v6707_v59 = vor.u32 %v7484_v6, %v6704_v22 }
 0x1d6   :  { %v1802_v60 = vpop.f32.mrf.mxu1 }
 0x1d7   :  { %v1803_v5 = vadd.f32 %v1802_v60, %v1634_v16  ;;  %v2139_v2 = vadd.f32 %v2138_v15, %v1970_v57  ;;  %v6719_v57 = vor.u32 %v7489_v39, %v6718_v49  ;;  %v7494_v49 = vld [vmem:[%s12457_s0 + $0x40c] sm:$0xf0]  ;;  %v7491_v39 = vld [vmem:[%s12457_s0 + $0x3fc] sm:$0xf] }
 0x1d8   :  { %v2309_v37 = vpop.f32.mrf.mxu0 }
 0x1d9   :  { %v8985_v54 = vadd.f32 %v2307_v26, %v2139_v2  ;;  %v6715_v26 = vor.u32 %v7485_v19, %v6712_v24  ;;  %v6728_v24 = vld [vmem:[%s12457_s0 + $0x408] sm:$0xf0] }
 0x1dc   :  { %v1971_v3 = vpop.f32.mrf.mxu2 }
 0x1dd   :  { %v1972_v29 = vadd.f32 %v1971_v3, %v1803_v5  ;;  %v2140_v25 = vpop.f32.mrf.mxu3 }
 0x1de   :  { %v1805_v13 = vpop.f32.mrf.mxu1 }
 0x1df   :  { %v1806_v14 = vadd.f32 %v1805_v13, %v1637_v46  ;;  %v2141_v16 = vadd.f32 %v2140_v25, %v1972_v29  ;;  %v6736_v46 = vld [vmem:[%s12457_s0 + $0x410] sm:$0xf0]  ;;  %v6742_v25 = vld [vmem:[%s12457_s0 + $0x400] sm:$0xf] }
 0x1e0   :  { %v2312_v15 = vpop.f32.mrf.mxu0 }
 0x1e1   :  { %v9013_v60 = vadd.f32 %v2309_v37, %v2141_v16  ;;  %1844 = vmatmul.bf16.gmra.mxu1 %v6707_v59  ;;  %2013 = vmatmul.bf16.gmra.mxu2 %v6711_v30  ;;  %v7490_v37 = vld [vmem:[%s12457_s0 + $0x3f4] sm:$0xf]  ;;  %v7495_v59 = vld [vmem:[%s12457_s0 + $0x414] sm:$0xf0]  ;;  %v1642_v30 = vadd.f32 %v8590_v51, %v8489_v17  ;;  %v6735_v16 = vor.u32 %v7494_v49, %v6734_v58 }
 0x1e2   :  { %2182 = vmatmul.bf16.gmra.mxu3 %v6715_v26  ;;  %v1644_v17 = vadd.f32 %v8590_v51, %v8497_v35  ;;  %v6758_v35 = vld [vmem:[%s12457_s0 + $0x428] sm:$0xf] }
 0x1e3   :  { %2351 = vmatmul.bf16.gmra.mxu0 %v6719_v57 }
 0x1e4   :  { %v1974_v2 = vpop.f32.mrf.mxu2 }
 0x1e5   :  { %v1975_v5 = vadd.f32 %v1974_v2, %v1806_v14  ;;  %v2143_v3 = vpop.f32.mrf.mxu3  ;;  %v6731_v14 = vor.u32 %v7490_v37, %v6728_v24 }
 0x1e6   :  { %v1807_v6 = vpop.f32.mrf.mxu1 }
 0x1e7   :  { %v1808_v22 = vadd.f32 %v1807_v6, %v1639_v50  ;;  %v2144_v28 = vadd.f32 %v2143_v3, %v1975_v5  ;;  %v6743_v5 = vor.u32 %v7495_v59, %v6742_v25  ;;  %v7500_v25 = vld [vmem:[%s12457_s0 + $0x43c] sm:$0xf0]  ;;  %v7497_v59 = vld [vmem:[%s12457_s0 + $0x42c] sm:$0xf] }
 0x1e8   :  { %v2314_v41 = vpop.f32.mrf.mxu0 }
 0x1e9   :  { %v9017_v19 = vadd.f32 %v2312_v15, %v2144_v28  ;;  %v6739_v15 = vor.u32 %v7491_v39, %v6736_v46  ;;  %v6752_v46 = vld [vmem:[%s12457_s0 + $0x438] sm:$0xf0] }
 0x1ec   :  { %v1976_v29 = vpop.f32.mrf.mxu2 }
 0x1ed   :  { %v1977_v13 = vadd.f32 %v1976_v29, %v1808_v22  ;;  %v2145_v26 = vpop.f32.mrf.mxu3 }
 0x1ee   :  { %v1810_v57 = vpop.f32.mrf.mxu1 }
 0x1ef   :  { %v1811_v2 = vadd.f32 %v1810_v57, %v1642_v30  ;;  %v2146_v50 = vadd.f32 %v2145_v26, %v1977_v13  ;;  %v6760_v30 = vld [vmem:[%s12457_s0 + $0x440] sm:$0xf0]  ;;  %v6766_v26 = vld [vmem:[%s12457_s0 + $0x430] sm:$0xf] }
 0x1f0   :  { %v2317_v3 = vpop.f32.mrf.mxu0 }
 0x1f1   :  { %v9045_v6 = vadd.f32 %v2314_v41, %v2146_v50  ;;  %1849 = vmatmul.bf16.gmra.mxu1 %v6731_v14  ;;  %2018 = vmatmul.bf16.gmra.mxu2 %v6735_v16  ;;  %v7496_v41 = vld [vmem:[%s12457_s0 + $0x424] sm:$0xf]  ;;  %v7501_v14 = vld [vmem:[%s12457_s0 + $0x444] sm:$0xf0]  ;;  %v1647_v16 = vadd.f32 %v8590_v51, %v8529_v9  ;;  %v6759_v50 = vor.u32 %v7500_v25, %v6758_v35 }
 0x1f2   :  { %2187 = vmatmul.bf16.gmra.mxu3 %v6739_v15 }
 0x1f3   :  { %2356 = vmatmul.bf16.gmra.mxu0 %v6743_v5 }
 0x1f4   :  { %v1979_v28 = vpop.f32.mrf.mxu2 }
 0x1f5   :  { %v1980_v22 = vadd.f32 %v1979_v28, %v1811_v2  ;;  %v2148_v29 = vpop.f32.mrf.mxu3  ;;  %v6755_v2 = vor.u32 %v7496_v41, %v6752_v46 }
 0x1f6   :  { %v1812_v37 = vpop.f32.mrf.mxu1 }
 0x1f7   :  { %v1813_v24 = vadd.f32 %v1812_v37, %v1644_v17  ;;  %v2149_v58 = vadd.f32 %v2148_v29, %v1980_v22  ;;  %v6767_v22 = vor.u32 %v7501_v14, %v6766_v26  ;;  %v6776_v26 = vld [vmem:[%s12457_s0 + $0x468] sm:$0xf0]  ;;  %v7503_v14 = vld [vmem:[%s12457_s0 + $0x45c] sm:$0xf] }
 0x1f8   :  { %v2319_v49 = vpop.f32.mrf.mxu0 }
 0x1f9   :  { %v9049_v39 = vadd.f32 %v2317_v3, %v2149_v58  ;;  %v6763_v3 = vor.u32 %v7497_v59, %v6760_v30  ;;  %v7597_v58 = vld [vmem:[%s12455_s1 + $0x148] sm:$0xff] }
 0x1fa   :  { %2418 = vmatpush.bf16.msra.mxu1 %v7597_v58 }
 0x1fc   :  { %v1981_v13 = vpop.f32.mrf.mxu2 }
 0x1fd   :  { %v1982_v57 = vadd.f32 %v1981_v13, %v1813_v24  ;;  %v2150_v15 = vpop.f32.mrf.mxu3  ;;  %v1649_v24 = vadd.f32 %v8590_v51, %v8540_v40  ;;  %v7502_v13 = vld [vmem:[%s12457_s0 + $0x454] sm:$0xf]  ;;  %v6782_v40 = vld [vmem:[%s12457_s0 + $0x458] sm:$0xf]  ;;  %v7506_v51 = vld [vmem:[%s12457_s0 + $0x46c] sm:$0xf0] }
 0x1fe   :  { %v1815_v5 = vpop.f32.mrf.mxu1 }
 0x1ff   :  { %v1816_v28 = vadd.f32 %v1815_v5, %v1647_v16  ;;  %v2151_v17 = vadd.f32 %v2150_v15, %v1982_v57  ;;  %v6784_v16 = vld [vmem:[%s12457_s0 + $0x470] sm:$0xf0]  ;;  %v6790_v15 = vld [vmem:[%s12457_s0 + $0x460] sm:$0xf] }
 0x200   :  { %v2322_v29 = vpop.f32.mrf.mxu0 }
 0x201   :  { %v9077_v37 = vadd.f32 %v2319_v49, %v2151_v17  ;;  %1854 = vmatmul.bf16.gmra.mxu1 %v6755_v2  ;;  %2023 = vmatmul.bf16.gmra.mxu2 %v6759_v50  ;;  %v7507_v2 = vld [vmem:[%s12457_s0 + $0x474] sm:$0xf0]  ;;  %v9113_v50 = vld [vmem:[%s12456_s2] ss:$0 sm:$0xff]  ;;  %v6779_v17 = vor.u32 %v7502_v13, %v6776_v26 }
 0x202   :  { %2192 = vmatmul.bf16.gmra.mxu3 %v6763_v3  ;;  %v1652_v5 = vadd.f32 %v9113_v50, %v8575_v12 }
 0x203   :  { %2361 = vmatmul.bf16.gmra.mxu0 %v6767_v22  ;;  %v6783_v22 = vor.u32 %v7506_v51, %v6782_v40 }
 0x204   :  { %v1984_v9 = vpop.f32.mrf.mxu2 }
 0x205   :  { %v1985_v41 = vadd.f32 %v1984_v9, %v1816_v28  ;;  %v2153_v46 = vpop.f32.mrf.mxu3  ;;  %v6787_v9 = vor.u32 %v7503_v14, %v6784_v16 }
 0x206   :  { %v1817_v35 = vpop.f32.mrf.mxu1 }
 0x207   :  { %v1818_v25 = vadd.f32 %v1817_v35, %v1649_v24  ;;  %v2154_v59 = vadd.f32 %v2153_v46, %v1985_v41  ;;  %v6791_v46 = vor.u32 %v7507_v2, %v6790_v15  ;;  %v6800_v15 = vld [vmem:[%s12457_s0 + $0x498] sm:$0xf0]  ;;  %v7512_v2 = vld [vmem:[%s12457_s0 + $0x49c] sm:$0xf0] }
 0x208   :  { %v2324_v49 = vpop.f32.mrf.mxu0 }
 0x209   :  { %v9084_v30 = vadd.f32 %v2322_v29, %v2154_v59  ;;  %v7604_v29 = vld [vmem:[%s12458_s3] sm:$0xff] }
 0x20a   :  { %2801 = vmatpush.bf16.msra.mxu2 %v7604_v29  ;;  %v1657_v29 = vadd.f32 %v9113_v50, %v8290_v23  ;;  %v1659_v23 = vadd.f32 %v9113_v50, %v8316_v33  ;;  %v6824_v33 = vld [vmem:[%s12457_s0 + $0x4c8] sm:$0xf0] }
 0x20c   :  { %v1986_v57 = vpop.f32.mrf.mxu2 }
 0x20d   :  { %v1987_v3 = vadd.f32 %v1986_v57, %v1818_v25  ;;  %v2155_v28 = vpop.f32.mrf.mxu3  ;;  %v1654_v25 = vadd.f32 %v9113_v50, %v8583_v48  ;;  %v6806_v48 = vld [vmem:[%s12457_s0 + $0x488] sm:$0xf] }
 0x20e   :  { %v1820_v58 = vpop.f32.mrf.mxu1 }
 0x20f   :  { %v1821_v24 = vadd.f32 %v1820_v58, %v1652_v5  ;;  %v2156_v41 = vadd.f32 %v2155_v28, %v1987_v3  ;;  %v7509_v5 = vld [vmem:[%s12457_s0 + $0x48c] sm:$0xf]  ;;  %v6808_v3 = vld [vmem:[%s12457_s0 + $0x4a0] sm:$0xf0] }
 0x210   :  { %v2327_v35 = vpop.f32.mrf.mxu0 }
 0x211   :  { %v9120_v59 = vadd.f32 %v2324_v49, %v2156_v41  ;;  %1859 = vmatmul.bf16.gmra.mxu1 %v6779_v17  ;;  %2028 = vmatmul.bf16.gmra.mxu2 %v6783_v22  ;;  %v7508_v49 = vld [vmem:[%s12457_s0 + $0x484] sm:$0xf]  ;;  %v6814_v17 = vld [vmem:[%s12457_s0 + $0x490] sm:$0xf]  ;;  %v7513_v22 = vld [vmem:[%s12457_s0 + $0x4a4] sm:$0xf0]  ;;  %v6807_v41 = vor.u32 %v7512_v2, %v6806_v48 }
 0x212   :  { %2197 = vmatmul.bf16.gmra.mxu3 %v6787_v9 }
 0x213   :  { %2366 = vmatmul.bf16.gmra.mxu0 %v6791_v46 }
 0x214   :  { %v1989_v12 = vpop.f32.mrf.mxu2 }
 0x215   :  { %v1990_v13 = vadd.f32 %v1989_v12, %v1821_v24  ;;  %v2158_v26 = vpop.f32.mrf.mxu3  ;;  %v6803_v24 = vor.u32 %v7508_v49, %v6800_v15 }
 0x216   :  { %v1822_v40 = vpop.f32.mrf.mxu1 }
 0x217   :  { %v1823_v51 = vadd.f32 %v1822_v40, %v1654_v25  ;;  %v2159_v14 = vadd.f32 %v2158_v26, %v1990_v13  ;;  %v6815_v13 = vor.u32 %v7513_v22, %v6814_v17  ;;  %v6830_v17 = vld [vmem:[%s12457_s0 + $0x4b8] sm:$0xf]  ;;  %v7518_v22 = vld [vmem:[%s12457_s0 + $0x4cc] sm:$0xf0] }
 0x218   :  { %v2329_v16 = vpop.f32.mrf.mxu0 }
 0x219   :  { %v9124_v57 = vadd.f32 %v2327_v35, %v2159_v14  ;;  %v6811_v35 = vor.u32 %v7509_v5, %v6808_v3  ;;  %v7609_v3 = vld [vmem:[%s12459_s6 + $0x8] sm:$0xff] }
 0x21a   :  { %5154 = vmatpush.bf16.msra.mxu0 %v7609_v3 }
 0x21c   :  { %v1991_v28 = vpop.f32.mrf.mxu2 }
 0x21d   :  { %v1992_v58 = vadd.f32 %v1991_v28, %v1823_v51  ;;  %v2160_v9 = vpop.f32.mrf.mxu3 }
 0x21e   :  { %v1825_v46 = vpop.f32.mrf.mxu1 }
 0x21f   :  { %v1826_v12 = vadd.f32 %v1825_v46, %v1657_v29  ;;  %v2161_v25 = vadd.f32 %v2160_v9, %v1992_v58  ;;  %v7515_v29 = vld [vmem:[%s12457_s0 + $0x4bc] sm:$0xf]  ;;  %v6832_v58 = vld [vmem:[%s12457_s0 + $0x4d0] sm:$0xf0]  ;;  %v1662_v46 = vadd.f32 %v9113_v50, %v8330_v43 }
 0x220   :  { %v2332_v26 = vpop.f32.mrf.mxu0 }
 0x221   :  { %v9152_v40 = vadd.f32 %v2329_v16, %v2161_v25  ;;  %1864 = vmatmul.bf16.gmra.mxu1 %v6803_v24  ;;  %2033 = vmatmul.bf16.gmra.mxu2 %v6807_v41  ;;  %v7514_v16 = vld [vmem:[%s12457_s0 + $0x4b4] sm:$0xf]  ;;  %v6838_v24 = vld [vmem:[%s12457_s0 + $0x4c0] sm:$0xf]  ;;  %v7519_v41 = vld [vmem:[%s12457_s0 + $0x4d4] sm:$0xf0] }
 0x222   :  { %2202 = vmatmul.bf16.gmra.mxu3 %v6811_v35  ;;  %v6827_v25 = vor.u32 %v7514_v16, %v6824_v33 }
 0x223   :  { %2371 = vmatmul.bf16.gmra.mxu0 %v6815_v13  ;;  %v6831_v13 = vor.u32 %v7518_v22, %v6830_v17 }
 0x224   :  { %v1994_v14 = vpop.f32.mrf.mxu2 }
 0x225   :  { %v1995_v51 = vadd.f32 %v1994_v14, %v1826_v12  ;;  %v2163_v28 = vpop.f32.mrf.mxu3 }
 0x226   :  { %v1827_v49 = vpop.f32.mrf.mxu1 }
 0x227   :  { %v1828_v15 = vadd.f32 %v1827_v49, %v1659_v23  ;;  %v2164_v48 = vadd.f32 %v2163_v28, %v1995_v51  ;;  %v6835_v23 = vor.u32 %v7515_v29, %v6832_v58  ;;  %v6839_v49 = vor.u32 %v7519_v41, %v6838_v24  ;;  %v6848_v24 = vld [vmem:[%s12457_s0 + $0x4f8] sm:$0xf0]  ;;  %v7524_v41 = vld [vmem:[%s12457_s0 + $0x4fc] sm:$0xf0] }
 0x228   :  { %v2334_v2 = vpop.f32.mrf.mxu0 }
 0x229   :  { %v9156_v5 = vadd.f32 %v2332_v26, %v2164_v48  ;;  %v7607_v26 = vld [vmem:[%s12460_s5 + $0x8] sm:$0xff] }
 0x22a   :  { %4489 = vmatpush.bf16.msra.mxu3 %v7607_v26  ;;  %v1667_v26 = vadd.f32 %v9113_v50, %v8373_v0 }
 0x22c   :  { %v1996_v9 = vpop.f32.mrf.mxu2 }
 0x22d   :  { %v1997_v35 = vadd.f32 %v1996_v9, %v1828_v15  ;;  %v2165_v12 = vpop.f32.mrf.mxu3  ;;  %v1664_v15 = vadd.f32 %v9113_v50, %v8356_v53  ;;  %v6854_v53 = vld [vmem:[%s12457_s0 + $0x4e8] sm:$0xf] }
 0x22e   :  { %v1830_v14 = vpop.f32.mrf.mxu1 }
 0x22f   :  { %v1831_v51 = vadd.f32 %v1830_v14, %v1662_v46  ;;  %v2166_v28 = vadd.f32 %v2165_v12, %v1997_v35  ;;  %v7521_v46 = vld [vmem:[%s12457_s0 + $0x4ec] sm:$0xf]  ;;  %v6856_v35 = vld [vmem:[%s12457_s0 + $0x500] sm:$0xf0] }
 0x230   :  { %v2337_v48 = vpop.f32.mrf.mxu0 }
 0x231   :  { %v9190_v3 = vadd.f32 %v2334_v2, %v2166_v28  ;;  %1869 = vmatmul.bf16.gmra.mxu1 %v6827_v25  ;;  %2038 = vmatmul.bf16.gmra.mxu2 %v6831_v13  ;;  %v7520_v2 = vld [vmem:[%s12457_s0 + $0x4e4] sm:$0xf]  ;;  %v6862_v25 = vld [vmem:[%s12457_s0 + $0x4f0] sm:$0xf]  ;;  %v7525_v13 = vld [vmem:[%s12457_s0 + $0x504] sm:$0xf0]  ;;  %v6855_v28 = vor.u32 %v7524_v41, %v6854_v53 }
 0x232   :  { %2207 = vmatmul.bf16.gmra.mxu3 %v6835_v23 }
 0x233   :  { %2376 = vmatmul.bf16.gmra.mxu0 %v6839_v49 }
 0x234   :  { %v1999_v43 = vpop.f32.mrf.mxu2 }
 0x235   :  { %v2000_v16 = vadd.f32 %v1999_v43, %v1831_v51  ;;  %v2168_v33 = vpop.f32.mrf.mxu3  ;;  %v6851_v51 = vor.u32 %v7520_v2, %v6848_v24 }
 0x236   :  { %v1832_v17 = vpop.f32.mrf.mxu1 }
 0x237   :  { %v1833_v22 = vadd.f32 %v1832_v17, %v1664_v15  ;;  %v2169_v29 = vadd.f32 %v2168_v33, %v2000_v16  ;;  %v6863_v16 = vor.u32 %v7525_v13, %v6862_v25  ;;  %v6872_v25 = vld [vmem:[%s12457_s0 + $0x528] sm:$0xf0]  ;;  %v7530_v13 = vld [vmem:[%s12457_s0 + $0x52c] sm:$0xf0] }
 0x238   :  { %v2339_v58 = vpop.f32.mrf.mxu0 }
 0x239   :  { %v9194_v9 = vadd.f32 %v2337_v48, %v2169_v29  ;;  %v6859_v48 = vor.u32 %v7521_v46, %v6856_v35  ;;  %v7596_v29 = vld [vmem:[%s12455_s1 + $0x140] sm:$0xff] }
 0x23a   :  { %2419 = vmatpush.bf16.msra.mxu1 %v7596_v29 }
 0x23c   :  { %v2001_v12 = vpop.f32.mrf.mxu2 }
 0x23d   :  { %v2002_v14 = vadd.f32 %v2001_v12, %v1833_v22  ;;  %v2170_v23 = vpop.f32.mrf.mxu3  ;;  %v1669_v22 = vadd.f32 %v9113_v50, %v8399_v10  ;;  %v7526_v12 = vld [vmem:[%s12457_s0 + $0x514] sm:$0xf]  ;;  %v6878_v10 = vld [vmem:[%s12457_s0 + $0x518] sm:$0xf] }
 0x23e   :  { %v1835_v49 = vpop.f32.mrf.mxu1 }
 0x23f   :  { %v1836_v43 = vadd.f32 %v1835_v49, %v1667_v26  ;;  %v2171_v15 = vadd.f32 %v2170_v23, %v2002_v14  ;;  %v7527_v26 = vld [vmem:[%s12457_s0 + $0x51c] sm:$0xf]  ;;  %v6880_v14 = vld [vmem:[%s12457_s0 + $0x530] sm:$0xf0]  ;;  %v1672_v49 = vadd.f32 %v9113_v50, %v8413_v21  ;;  %v1674_v21 = vadd.f32 %v9113_v50, %v8439_v38  ;;  %v6902_v38 = vld [vmem:[%s12457_s0 + $0x548] sm:$0xf] }
 0x240   :  { %v2342_v33 = vpop.f32.mrf.mxu0  ;;  %v6883_v29 = vor.u32 %v7527_v26, %v6880_v14  ;;  %v6896_v14 = vld [vmem:[%s12457_s0 + $0x558] sm:$0xf0] }
 0x241   :  { %v9222_v17 = vadd.f32 %v2339_v58, %v2171_v15  ;;  %1874 = vmatmul.bf16.gmra.mxu1 %v6851_v51  ;;  %2043 = vmatmul.bf16.gmra.mxu2 %v6855_v28  ;;  %v6886_v51 = vld [vmem:[%s12457_s0 + $0x520] sm:$0xf]  ;;  %v7531_v28 = vld [vmem:[%s12457_s0 + $0x534] sm:$0xf0]  ;;  %v6875_v15 = vor.u32 %v7526_v12, %v6872_v25 }
 0x242   :  { %2212 = vmatmul.bf16.gmra.mxu3 %v6859_v48 }
 0x243   :  { %2381 = vmatmul.bf16.gmra.mxu0 %v6863_v16  ;;  %v6879_v16 = vor.u32 %v7530_v13, %v6878_v10 }
 0x244   :  { %v2004_v0 = vpop.f32.mrf.mxu2 }
 0x245   :  { %v2005_v2 = vadd.f32 %v2004_v0, %v1836_v43  ;;  %v2173_v24 = vpop.f32.mrf.mxu3 }
 0x246   :  { %v1837_v53 = vpop.f32.mrf.mxu1 }
 0x247   :  { %v1838_v41 = vadd.f32 %v1837_v53, %v1669_v22  ;;  %v2174_v46 = vadd.f32 %v2173_v24, %v2005_v2  ;;  %v6887_v2 = vor.u32 %v7531_v28, %v6886_v51  ;;  %v7536_v51 = vld [vmem:[%s12457_s0 + $0x55c] sm:$0xf0]  ;;  %v7533_v28 = vld [vmem:[%s12457_s0 + $0x54c] sm:$0xf] }
 0x248   :  { %v2344_v58 = vpop.f32.mrf.mxu0 }
 0x249   :  { %v9229_v35 = vadd.f32 %v2342_v33, %v2174_v46 }
 0x24c   :  { %v2006_v23 = vpop.f32.mrf.mxu2 }
 0x24d   :  { %v2007_v48 = vadd.f32 %v2006_v23, %v1838_v41  ;;  %v2175_v43 = vpop.f32.mrf.mxu3 }
 0x24e   :  { %v1840_v33 = vpop.f32.mrf.mxu1 }
 0x24f   :  { %v1841_v0 = vadd.f32 %v1840_v33, %v1672_v49  ;;  %v2176_v22 = vadd.f32 %v2175_v43, %v2007_v48  ;;  %v6904_v49 = vld [vmem:[%s12457_s0 + $0x560] sm:$0xf0]  ;;  %v6910_v43 = vld [vmem:[%s12457_s0 + $0x550] sm:$0xf] }
 0x250   :  { %v2347_v24 = vpop.f32.mrf.mxu0 }
 0x251   :  { %v9257_v53 = vadd.f32 %v2344_v58, %v2176_v22  ;;  %1879 = vmatmul.bf16.gmra.mxu1 %v6875_v15  ;;  %2048 = vmatmul.bf16.gmra.mxu2 %v6879_v16  ;;  %v7532_v58 = vld [vmem:[%s12457_s0 + $0x544] sm:$0xf]  ;;  %v7537_v15 = vld [vmem:[%s12457_s0 + $0x564] sm:$0xf0]  ;;  %v1677_v16 = vadd.f32 %v9113_v50, %v8453_v55  ;;  %v6903_v22 = vor.u32 %v7536_v51, %v6902_v38 }
 0x252   :  { %2217 = vmatmul.bf16.gmra.mxu3 %v6883_v29 }
 0x253   :  { %2386 = vmatmul.bf16.gmra.mxu0 %v6887_v2 }
 0x254   :  { %v2009_v46 = vpop.f32.mrf.mxu2 }
 0x255   :  { %v2010_v41 = vadd.f32 %v2009_v46, %v1841_v0  ;;  %v2178_v23 = vpop.f32.mrf.mxu3  ;;  %v6899_v0 = vor.u32 %v7532_v58, %v6896_v14 }
 0x256   :  { %v1842_v12 = vpop.f32.mrf.mxu1 }
 0x257   :  { %v1843_v25 = vadd.f32 %v1842_v12, %v1674_v21  ;;  %v2179_v10 = vadd.f32 %v2178_v23, %v2010_v41  ;;  %v6911_v41 = vor.u32 %v7537_v15, %v6910_v43  ;;  %v7542_v43 = vld [vmem:[%s12457_s0 + $0x58c] sm:$0xf0]  ;;  %v7539_v15 = vld [vmem:[%s12457_s0 + $0x57c] sm:$0xf] }
 0x258   :  { %v2349_v13 = vpop.f32.mrf.mxu0 }
 0x259   :  { %v9261_v26 = vadd.f32 %v2347_v24, %v2179_v10  ;;  %v6907_v24 = vor.u32 %v7533_v28, %v6904_v49  ;;  %v6920_v49 = vld [vmem:[%s12457_s0 + $0x588] sm:$0xf0] }
 0x25b   :  { %12515 = vst [vmem:[#allocation26_spill] sm:$0xff] %v9261_v26  ;;  %v12516_v26 = vld [vmem:[#allocation11_spill] sm:$0xff] }
 0x25c   :  { %v2011_v48 = vpop.f32.mrf.mxu2  ;;  %v1679_v55 = vadd.f32 %v9113_v50, %v12516_v26  ;;  %v6926_v26 = vld [vmem:[%s12457_s0 + $0x578] sm:$0xf] }
 0x25d   :  { %v2012_v33 = vadd.f32 %v2011_v48, %v1843_v25  ;;  %v2180_v29 = vpop.f32.mrf.mxu3 }
 0x25e   :  { %v1845_v2 = vpop.f32.mrf.mxu1 }
 0x25f   :  { %v1846_v46 = vadd.f32 %v1845_v2, %v1677_v16  ;;  %v2181_v21 = vadd.f32 %v2180_v29, %v2012_v33  ;;  %v6928_v16 = vld [vmem:[%s12457_s0 + $0x590] sm:$0xf0]  ;;  %v6934_v29 = vld [vmem:[%s12457_s0 + $0x580] sm:$0xf] }
 0x260   :  { %v2352_v23 = vpop.f32.mrf.mxu0 }
 0x261   :  { %v9289_v12 = vadd.f32 %v2349_v13, %v2181_v21  ;;  %1884 = vmatmul.bf16.gmra.mxu1 %v6899_v0  ;;  %2053 = vmatmul.bf16.gmra.mxu2 %v6903_v22  ;;  %v7538_v13 = vld [vmem:[%s12457_s0 + $0x574] sm:$0xf]  ;;  %v7543_v0 = vld [vmem:[%s12457_s0 + $0x594] sm:$0xf0]  ;;  %v6927_v21 = vor.u32 %v7542_v43, %v6926_v26  ;;  %v7544_v43 = vld [vmem:[%s12457_s0 + $0x5a4] sm:$0xf] }
 0x262   :  { %2222 = vmatmul.bf16.gmra.mxu3 %v6907_v24  ;;  %v12520_v22 = vld [vmem:[#allocation13_spill] sm:$0xff] }
 0x263   :  { %2391 = vmatmul.bf16.gmra.mxu0 %v6911_v41  ;;  %v1682_v2 = vadd.f32 %v9113_v50, %v12520_v22 }
 0x264   :  { %v2014_v10 = vpop.f32.mrf.mxu2 }
 0x265   :  { %v2015_v25 = vadd.f32 %v2014_v10, %v1846_v46  ;;  %v2183_v48 = vpop.f32.mrf.mxu3  ;;  %v6923_v46 = vor.u32 %v7538_v13, %v6920_v49 }
 0x266   :  { %v1847_v58 = vpop.f32.mrf.mxu1 }
 0x267   :  { %v9293_v14 = vadd.f32 %v1847_v58, %v1679_v55  ;;  %v2184_v38 = vadd.f32 %v2183_v48, %v2015_v25  ;;  %v6935_v55 = vor.u32 %v7543_v0, %v6934_v29  ;;  %v12522_v58 = vld [vmem:[#allocation15_spill] sm:$0xff]  ;;  %v6952_v29 = vld [vmem:[%s12457_s0 + $0x5c0] sm:$0xf0] }
 0x268   :  { %v9295_v51 = vpop.f32.mrf.mxu0 }
 0x269   :  { %12517 = vst [vmem:[#allocation11_spill] sm:$0xff] %v9295_v51  ;;  %v9297_v28 = vadd.f32 %v2352_v23, %v2184_v38  ;;  %v6931_v23 = vor.u32 %v7539_v15, %v6928_v16  ;;  %v1684_v38 = vadd.f32 %v9113_v50, %v12522_v58  ;;  %v6944_v15 = vld [vmem:[%s12457_s0 + $0x5b8] sm:$0xf0]  ;;  %v6950_v16 = vld [vmem:[%s12457_s0 + $0x5a8] sm:$0xf] }
 0x26b   :  { %12518 = vst [vmem:[#allocation27_spill] sm:$0xff] %v9297_v28 }
 0x26c   :  { %v9317_v33 = vpop.f32.mrf.mxu2 }
 0x26d   :  { %12519 = vst [vmem:[#allocation28_spill] sm:$0xff] %v9317_v33  ;;  %v9327_v24 = vpop.f32.mrf.mxu3 }
 0x26e   :  { %12521 = vst [vmem:[#allocation13_spill] sm:$0xff] %v9327_v24  ;;  %v1850_v41 = vpop.f32.mrf.mxu1 }
 0x26f   :  { %v1851_v10 = vadd.f32 %v1850_v41, %v1682_v2  ;;  %v6958_v2 = vld [vmem:[%s12457_s0 + $0x5b0] sm:$0xf] }
 0x270   :  { %v2357_v25 = vpop.f32.mrf.mxu0 }
 0x271   :  { %1889 = vmatmul.bf16.gmra.mxu1 %v6923_v46  ;;  %2058 = vmatmul.bf16.gmra.mxu2 %v6927_v21  ;;  %v7549_v46 = vld [vmem:[%s12457_s0 + $0x5c4] sm:$0xf0]  ;;  %v12527_v21 = vld [vmem:[#allocation17_spill] sm:$0xff] }
 0x272   :  { %2227 = vmatmul.bf16.gmra.mxu3 %v6931_v23  ;;  %v1687_v41 = vadd.f32 %v9113_v50, %v12527_v21 }
 0x273   :  { %2396 = vmatmul.bf16.gmra.mxu0 %v6935_v55 }
 0x274   :  { %v2019_v48 = vpop.f32.mrf.mxu2 }
 0x275   :  { %v2020_v28 = vadd.f32 %v2019_v48, %v1851_v10  ;;  %v2188_v51 = vpop.f32.mrf.mxu3  ;;  %v6947_v10 = vor.u32 %v7544_v43, %v6944_v15 }
 0x276   :  { %v1852_v22 = vpop.f32.mrf.mxu1 }
 0x277   :  { %v9331_v33 = vadd.f32 %v1852_v22, %v1684_v38  ;;  %v2189_v13 = vadd.f32 %v2188_v51, %v2020_v28  ;;  %v7548_v51 = vld [vmem:[%s12457_s0 + $0x5bc] sm:$0xf0]  ;;  %v7545_v28 = vld [vmem:[%s12457_s0 + $0x5ac] sm:$0xf]  ;;  %v6959_v38 = vor.u32 %v7549_v46, %v6958_v2  ;;  %v7555_v46 = vld [vmem:[%s12457_s0 + $0x5f4] sm:$0xf0] }
 0x278   :  { %v9333_v49 = vpop.f32.mrf.mxu0  ;;  %v6951_v55 = vor.u32 %v7548_v51, %v6950_v16  ;;  %v6955_v48 = vor.u32 %v7545_v28, %v6952_v29  ;;  %v7550_v51 = vld [vmem:[%s12457_s0 + $0x5d4] sm:$0xf]  ;;  %v6968_v28 = vld [vmem:[%s12457_s0 + $0x5e8] sm:$0xf0]  ;;  %v6982_v2 = vld [vmem:[%s12457_s0 + $0x5e0] sm:$0xf] }
 0x279   :  { %12523 = vst [vmem:[#allocation15_spill] sm:$0xff] %v9331_v33  ;;  %v9335_v26 = vadd.f32 %v2357_v25, %v2189_v13  ;;  %v6976_v29 = vld [vmem:[%s12457_s0 + $0x5f0] sm:$0xf0] }
 0x27a   :  { %12524 = vst [vmem:[#allocation29_spill] sm:$0xff] %v9333_v49 }
 0x27b   :  { %12525 = vst [vmem:[#allocation30_spill] sm:$0xff] %v9335_v26  ;;  %v12529_v26 = vld [vmem:[#allocation19_spill] sm:$0xff] }
 0x27c   :  { %v9355_v0 = vpop.f32.mrf.mxu2  ;;  %v1689_v49 = vadd.f32 %v9113_v50, %v12529_v26  ;;  %v6974_v26 = vld [vmem:[%s12457_s0 + $0x5d8] sm:$0xf] }
 0x27d   :  { %12526 = vst [vmem:[#allocation31_spill] sm:$0xff] %v9355_v0  ;;  %v9365_v23 = vpop.f32.mrf.mxu3 }
 0x27e   :  { %12528 = vst [vmem:[#allocation17_spill] sm:$0xff] %v9365_v23  ;;  %v1855_v25 = vpop.f32.mrf.mxu1 }
 0x27f   :  { %v1856_v58 = vadd.f32 %v1855_v25, %v1687_v41  ;;  %v12534_v41 = vld [vmem:[#allocation21_spill] sm:$0xff]  ;;  %v6971_v25 = vor.u32 %v7550_v51, %v6968_v28 }
 0x280   :  { %v2362_v22 = vpop.f32.mrf.mxu0 }
 0x281   :  { %1894 = vmatmul.bf16.gmra.mxu1 %v6947_v10  ;;  %2063 = vmatmul.bf16.gmra.mxu2 %v6951_v55  ;;  %v1692_v10 = vadd.f32 %v9113_v50, %v12534_v41 }
 0x282   :  { %2232 = vmatmul.bf16.gmra.mxu3 %v6955_v48 }
 0x283   :  { %2401 = vmatmul.bf16.gmra.mxu0 %v6959_v38 }
 0x284   :  { %v2024_v13 = vpop.f32.mrf.mxu2 }
 0x285   :  { %v2025_v0 = vadd.f32 %v2024_v13, %v1856_v58  ;;  %v2193_v33 = vpop.f32.mrf.mxu3  ;;  %v6983_v13 = vor.u32 %v7555_v46, %v6982_v2 }
 0x286   :  { %v1857_v21 = vpop.f32.mrf.mxu1 }
 0x287   :  { %v9369_v24 = vadd.f32 %v1857_v21, %v1689_v49  ;;  %v2194_v43 = vadd.f32 %v2193_v33, %v2025_v0  ;;  %v7554_v33 = vld [vmem:[%s12457_s0 + $0x5ec] sm:$0xf0]  ;;  %v7551_v49 = vld [vmem:[%s12457_s0 + $0x5dc] sm:$0xf] }
 0x288   :  { %v9371_v15 = vpop.f32.mrf.mxu0  ;;  %v6975_v48 = vor.u32 %v7554_v33, %v6974_v26  ;;  %v6979_v38 = vor.u32 %v7551_v49, %v6976_v29  ;;  %v7366_v33 = vld [vmem:[%s12457_s0 + $0x14] sm:$0xf]  ;;  %v6240_v49 = vld [vmem:[%s12457_s0 + $0x28] sm:$0xf0] }
 0x289   :  { %12530 = vst [vmem:[#allocation19_spill] sm:$0xff] %v9369_v24  ;;  %v9373_v16 = vadd.f32 %v2362_v22, %v2194_v43 }
 0x28a   :  { %12531 = vst [vmem:[#allocation32_spill] sm:$0xff] %v9371_v15 }
 0x28b   :  { %12532 = vst [vmem:[#allocation33_spill] sm:$0xff] %v9373_v16  ;;  %v12535_v16 = vld [vmem:[#allocation23_spill] sm:$0xff] }
 0x28c   :  { %v9393_v0 = vpop.f32.mrf.mxu2  ;;  %v1694_v15 = vadd.f32 %v9113_v50, %v12535_v16  ;;  %v12536_v16 = vld [vmem:[#allocation2_spill] sm:$0xff] }
 0x28d   :  { %12533 = vst [vmem:[#allocation34_spill] sm:$0xff] %v9393_v0  ;;  %v9403_v55 = vpop.f32.mrf.mxu3  ;;  %v1697_v2 = vadd.f32 %v9113_v50, %v12536_v16 }
 0x28e   :  { %v1860_v58 = vpop.f32.mrf.mxu1 }
 0x28f   :  { %v1861_v22 = vadd.f32 %v1860_v58, %v1692_v10 }
 0x290   :  { %v2367_v21 = vpop.f32.mrf.mxu0 }
 0x291   :  { %1899 = vmatmul.bf16.gmra.mxu1 %v6971_v25  ;;  %2068 = vmatmul.bf16.gmra.mxu2 %v6975_v48  ;;  %v12537_v48 = vld [vmem:[#allocation3_spill] sm:$0xff] }
 0x292   :  { %2237 = vmatmul.bf16.gmra.mxu3 %v6979_v38  ;;  %v1699_v58 = vadd.f32 %v9113_v50, %v12537_v48 }
 0x293   :  { %2406 = vmatmul.bf16.gmra.mxu0 %v6983_v13 }
 0x294   :  { %v2029_v43 = vpop.f32.mrf.mxu2 }
 0x295   :  { %v2030_v0 = vadd.f32 %v2029_v43, %v1861_v22  ;;  %v2198_v24 = vpop.f32.mrf.mxu3 }
 0x296   :  { %v1862_v41 = vpop.f32.mrf.mxu1 }
 0x297   :  { %v9407_v23 = vadd.f32 %v1862_v41, %v1694_v15  ;;  %v2199_v51 = vadd.f32 %v2198_v24, %v2030_v0  ;;  %v6243_v24 = vor.u32 %v7366_v33, %v6240_v49  ;;  %v7372_v33 = vld [vmem:[%s12457_s0 + $0x44] sm:$0xf]  ;;  %v6264_v49 = vld [vmem:[%s12457_s0 + $0x58] sm:$0xf0] }
 0x298   :  { %v9409_v28 = vpop.f32.mrf.mxu0 }
 0x299   :  { %v9411_v26 = vadd.f32 %v2367_v21, %v2199_v51 }
 0x29c   :  { %v9419_v29 = vpop.f32.mrf.mxu2 }
 0x29d   :  { %v9423_v15 = vpop.f32.mrf.mxu3 }
 0x29e   :  { %v1865_v0 = vpop.f32.mrf.mxu1 }
 0x29f   :  { %v1866_v46 = vadd.f32 %v1865_v0, %v1697_v2  ;;  %v12542_v2 = vld [vmem:[#allocation4_spill] sm:$0xff] }
 0x2a0   :  { %v2372_v10 = vpop.f32.mrf.mxu0 }
 0x2a1   :  { %2420 = vmatmul.bf16.vlgmr.msra.gmra.mxu1 %v6243_v24  ;;  %v1702_v24 = vadd.f32 %v9113_v50, %v12542_v2 }
 0x2a4   :  { %v2034_v25 = vpop.f32.mrf.mxu2 }
 0x2a5   :  { %v2035_v38 = vadd.f32 %v2034_v25, %v1866_v46  ;;  %v2203_v22 = vpop.f32.mrf.mxu3  ;;  %v6267_v46 = vor.u32 %v7372_v33, %v6264_v49  ;;  %v7378_v33 = vld [vmem:[%s12457_s0 + $0x74] sm:$0xf]  ;;  %v6288_v49 = vld [vmem:[%s12457_s0 + $0x88] sm:$0xf0] }
 0x2a6   :  { %v1867_v13 = vpop.f32.mrf.mxu1 }
 0x2a7   :  { %v9427_v21 = vadd.f32 %v1867_v13, %v1699_v58  ;;  %v2204_v43 = vadd.f32 %v2203_v22, %v2035_v38  ;;  %v12544_v38 = vld [vmem:[#allocation5_spill] sm:$0xff] }
 0x2a8   :  { %v9429_v41 = vpop.f32.mrf.mxu0  ;;  %v1704_v22 = vadd.f32 %v9113_v50, %v12544_v38 }
 0x2a9   :  { %12538 = vst [vmem:[#allocation21_spill] sm:$0xff] %v9427_v21  ;;  %v9431_v51 = vadd.f32 %v2372_v10, %v2204_v43 }
 0x2aa   :  { %12539 = vst [vmem:[#allocation23_spill] sm:$0xff] %v9429_v41 }
 0x2ab   :  { %12540 = vst [vmem:[#allocation2_spill] sm:$0xff] %v9431_v51 }
 0x2ac   :  { %v9439_v16 = vpop.f32.mrf.mxu2 }
 0x2ad   :  { %12541 = vst [vmem:[#allocation3_spill] sm:$0xff] %v9439_v16  ;;  %v9443_v0 = vpop.f32.mrf.mxu3 }
 0x2ae   :  { %12543 = vst [vmem:[#allocation4_spill] sm:$0xff] %v9443_v0  ;;  %v1870_v25 = vpop.f32.mrf.mxu1 }
 0x2af   :  { %v1871_v48 = vadd.f32 %v1870_v25, %v1702_v24 }
 0x2b0   :  { %v2377_v10 = vpop.f32.mrf.mxu0 }
 0x2b1   :  { %2425 = vmatmul.bf16.gmra.mxu1 %v6267_v46  ;;  %v12549_v46 = vld [vmem:[#allocation6_spill] sm:$0xff] }
 0x2b2   :  { %v1707_v25 = vadd.f32 %v9113_v50, %v12549_v46 }
 0x2b4   :  { %v2039_v58 = vpop.f32.mrf.mxu2 }
 0x2b5   :  { %v2040_v13 = vadd.f32 %v2039_v58, %v1871_v48  ;;  %v2208_v43 = vpop.f32.mrf.mxu3  ;;  %v6291_v48 = vor.u32 %v7378_v33, %v6288_v49  ;;  %v7384_v33 = vld [vmem:[%s12457_s0 + $0xa4] sm:$0xf]  ;;  %v6312_v49 = vld [vmem:[%s12457_s0 + $0xb8] sm:$0xf0] }
 0x2b6   :  { %v1872_v51 = vpop.f32.mrf.mxu1 }
 0x2b7   :  { %v9447_v41 = vadd.f32 %v1872_v51, %v1704_v22  ;;  %v2209_v16 = vadd.f32 %v2208_v43, %v2040_v13  ;;  %v12551_v22 = vld [vmem:[#allocation7_spill] sm:$0xff] }
 0x2b8   :  { %v9449_v21 = vpop.f32.mrf.mxu0  ;;  %v1709_v13 = vadd.f32 %v9113_v50, %v12551_v22  ;;  %v12558_v22 = vld [vmem:[#allocation9_spill] sm:$0xff] }
 0x2b9   :  { %12545 = vst [vmem:[#allocation5_spill] sm:$0xff] %v9447_v41  ;;  %v9451_v2 = vadd.f32 %v2377_v10, %v2209_v16 }
 0x2ba   :  { %12546 = vst [vmem:[#allocation35_spill] sm:$0xff] %v9449_v21 }
 0x2bb   :  { %12547 = vst [vmem:[#allocation36_spill] sm:$0xff] %v9451_v2 }
 0x2bc   :  { %v9459_v24 = vpop.f32.mrf.mxu2 }
 0x2bd   :  { %12548 = vst [vmem:[#allocation37_spill] sm:$0xff] %v9459_v24  ;;  %v9463_v51 = vpop.f32.mrf.mxu3 }
 0x2be   :  { %12550 = vst [vmem:[#allocation6_spill] sm:$0xff] %v9463_v51  ;;  %v1875_v58 = vpop.f32.mrf.mxu1 }
 0x2bf   :  { %v1876_v38 = vadd.f32 %v1875_v58, %v1707_v25 }
 0x2c0   :  { %v2382_v16 = vpop.f32.mrf.mxu0 }
 0x2c1   :  { %2430 = vmatmul.bf16.gmra.mxu1 %v6291_v48  ;;  %v12556_v48 = vld [vmem:[#allocation8_spill] sm:$0xff] }
 0x2c2   :  { %v1712_v58 = vadd.f32 %v9113_v50, %v12556_v48 }
 0x2c4   :  { %v2044_v10 = vpop.f32.mrf.mxu2 }
 0x2c5   :  { %v2045_v43 = vadd.f32 %v2044_v10, %v1876_v38  ;;  %v2213_v2 = vpop.f32.mrf.mxu3 }
 0x2c6   :  { %v1877_v21 = vpop.f32.mrf.mxu1 }
 0x2c7   :  { %v9467_v41 = vadd.f32 %v1877_v21, %v1709_v13  ;;  %v2214_v24 = vadd.f32 %v2213_v2, %v2045_v43  ;;  %v6315_v2 = vor.u32 %v7384_v33, %v6312_v49  ;;  %v1714_v13 = vadd.f32 %v9113_v50, %v12558_v22  ;;  %v7390_v33 = vld [vmem:[%s12457_s0 + $0xd4] sm:$0xf]  ;;  %v6336_v49 = vld [vmem:[%s12457_s0 + $0xe8] sm:$0xf0] }
 0x2c8   :  { %v9469_v0 = vpop.f32.mrf.mxu0  ;;  %v12565_v22 = vld [vmem:[#allocation12_spill] sm:$0xff] }
 0x2c9   :  { %12552 = vst [vmem:[#allocation7_spill] sm:$0xff] %v9467_v41  ;;  %v9471_v46 = vadd.f32 %v2382_v16, %v2214_v24 }
 0x2ca   :  { %12553 = vst [vmem:[#allocation38_spill] sm:$0xff] %v9469_v0 }
 0x2cb   :  { %12554 = vst [vmem:[#allocation39_spill] sm:$0xff] %v9471_v46 }
 0x2cc   :  { %v9479_v25 = vpop.f32.mrf.mxu2 }
 0x2cd   :  { %12555 = vst [vmem:[#allocation40_spill] sm:$0xff] %v9479_v25  ;;  %v9483_v21 = vpop.f32.mrf.mxu3 }
 0x2ce   :  { %12557 = vst [vmem:[#allocation8_spill] sm:$0xff] %v9483_v21  ;;  %v1880_v38 = vpop.f32.mrf.mxu1 }
 0x2cf   :  { %v1881_v10 = vadd.f32 %v1880_v38, %v1712_v58 }
 0x2d0   :  { %v2387_v24 = vpop.f32.mrf.mxu0 }
 0x2d1   :  { %2435 = vmatmul.bf16.gmra.mxu1 %v6315_v2  ;;  %v12563_v2 = vld [vmem:[#allocation10_spill] sm:$0xff] }
 0x2d2   :  { %v1717_v38 = vadd.f32 %v9113_v50, %v12563_v2 }
 0x2d4   :  { %v2049_v16 = vpop.f32.mrf.mxu2 }
 0x2d5   :  { %v2050_v43 = vadd.f32 %v2049_v16, %v1881_v10  ;;  %v2218_v46 = vpop.f32.mrf.mxu3 }
 0x2d6   :  { %v1882_v0 = vpop.f32.mrf.mxu1 }
 0x2d7   :  { %v9487_v41 = vadd.f32 %v1882_v0, %v1714_v13  ;;  %v2219_v25 = vadd.f32 %v2218_v46, %v2050_v43  ;;  %v6339_v46 = vor.u32 %v7390_v33, %v6336_v49  ;;  %v1719_v13 = vadd.f32 %v9113_v50, %v12565_v22  ;;  %v7396_v33 = vld [vmem:[%s12457_s0 + $0x104] sm:$0xf]  ;;  %v6360_v49 = vld [vmem:[%s12457_s0 + $0x118] sm:$0xf0]  ;;  %v12572_v22 = vld [vmem:[#allocation16_spill] sm:$0xff] }
 0x2d8   :  { %v9489_v51 = vpop.f32.mrf.mxu0 }
 0x2d9   :  { %12559 = vst [vmem:[#allocation9_spill] sm:$0xff] %v9487_v41  ;;  %v9491_v48 = vadd.f32 %v2387_v24, %v2219_v25 }
 0x2da   :  { %12560 = vst [vmem:[#allocation41_spill] sm:$0xff] %v9489_v51 }
 0x2db   :  { %12561 = vst [vmem:[#allocation42_spill] sm:$0xff] %v9491_v48 }
 0x2dc   :  { %v9499_v58 = vpop.f32.mrf.mxu2 }
 0x2dd   :  { %12562 = vst [vmem:[#allocation43_spill] sm:$0xff] %v9499_v58  ;;  %v9503_v0 = vpop.f32.mrf.mxu3 }
 0x2de   :  { %12564 = vst [vmem:[#allocation10_spill] sm:$0xff] %v9503_v0  ;;  %v1885_v10 = vpop.f32.mrf.mxu1 }
 0x2df   :  { %v1886_v16 = vadd.f32 %v1885_v10, %v1717_v38 }
 0x2e0   :  { %v2392_v25 = vpop.f32.mrf.mxu0 }
 0x2e1   :  { %2440 = vmatmul.bf16.gmra.mxu1 %v6339_v46  ;;  %v12570_v46 = vld [vmem:[#allocation14_spill] sm:$0xff] }
 0x2e2   :  { %v1722_v10 = vadd.f32 %v9113_v50, %v12570_v46 }
 0x2e4   :  { %v2054_v24 = vpop.f32.mrf.mxu2 }
 0x2e5   :  { %v2055_v43 = vadd.f32 %v2054_v24, %v1886_v16  ;;  %v2223_v48 = vpop.f32.mrf.mxu3 }
 0x2e6   :  { %v1887_v51 = vpop.f32.mrf.mxu1 }
 0x2e7   :  { %v9507_v41 = vadd.f32 %v1887_v51, %v1719_v13  ;;  %v2224_v58 = vadd.f32 %v2223_v48, %v2055_v43  ;;  %v6363_v48 = vor.u32 %v7396_v33, %v6360_v49  ;;  %v1724_v13 = vadd.f32 %v9113_v50, %v12572_v22  ;;  %v7402_v33 = vld [vmem:[%s12457_s0 + $0x134] sm:$0xf]  ;;  %v6384_v49 = vld [vmem:[%s12457_s0 + $0x148] sm:$0xf0] }
 0x2e8   :  { %v9509_v21 = vpop.f32.mrf.mxu0  ;;  %v12579_v22 = vld [vmem:[#allocation20_spill] sm:$0xff] }
 0x2e9   :  { %12566 = vst [vmem:[#allocation12_spill] sm:$0xff] %v9507_v41  ;;  %v9511_v2 = vadd.f32 %v2392_v25, %v2224_v58 }
 0x2ea   :  { %12567 = vst [vmem:[#allocation44_spill] sm:$0xff] %v9509_v21 }
 0x2eb   :  { %12568 = vst [vmem:[#allocation45_spill] sm:$0xff] %v9511_v2 }
 0x2ec   :  { %v9519_v38 = vpop.f32.mrf.mxu2 }
 0x2ed   :  { %12569 = vst [vmem:[#allocation46_spill] sm:$0xff] %v9519_v38  ;;  %v9523_v51 = vpop.f32.mrf.mxu3 }
 0x2ee   :  { %12571 = vst [vmem:[#allocation14_spill] sm:$0xff] %v9523_v51  ;;  %v1890_v16 = vpop.f32.mrf.mxu1 }
 0x2ef   :  { %v1891_v24 = vadd.f32 %v1890_v16, %v1722_v10 }
 0x2f0   :  { %v2397_v58 = vpop.f32.mrf.mxu0 }
 0x2f1   :  { %2445 = vmatmul.bf16.gmra.mxu1 %v6363_v48  ;;  %v12577_v48 = vld [vmem:[#allocation18_spill] sm:$0xff] }
 0x2f2   :  { %v1727_v16 = vadd.f32 %v9113_v50, %v12577_v48 }
 0x2f4   :  { %v2059_v25 = vpop.f32.mrf.mxu2 }
 0x2f5   :  { %v2060_v43 = vadd.f32 %v2059_v25, %v1891_v24  ;;  %v2228_v2 = vpop.f32.mrf.mxu3 }
 0x2f6   :  { %v1892_v21 = vpop.f32.mrf.mxu1 }
 0x2f7   :  { %v9527_v41 = vadd.f32 %v1892_v21, %v1724_v13  ;;  %v2229_v38 = vadd.f32 %v2228_v2, %v2060_v43  ;;  %v6387_v2 = vor.u32 %v7402_v33, %v6384_v49  ;;  %v1729_v13 = vadd.f32 %v9113_v50, %v12579_v22  ;;  %v7408_v33 = vld [vmem:[%s12457_s0 + $0x164] sm:$0xf]  ;;  %v6408_v49 = vld [vmem:[%s12457_s0 + $0x178] sm:$0xf0] }
 0x2f8   :  { %v9529_v0 = vpop.f32.mrf.mxu0 }
 0x2f9   :  { %12573 = vst [vmem:[#allocation16_spill] sm:$0xff] %v9527_v41  ;;  %v9531_v46 = vadd.f32 %v2397_v58, %v2229_v38 }
 0x2fa   :  { %12574 = vst [vmem:[#allocation47_spill] sm:$0xff] %v9529_v0 }
 0x2fb   :  { %12575 = vst [vmem:[#allocation48_spill] sm:$0xff] %v9531_v46 }
 0x2fc   :  { %v9539_v10 = vpop.f32.mrf.mxu2 }
 0x2fd   :  { %12576 = vst [vmem:[#allocation49_spill] sm:$0xff] %v9539_v10  ;;  %v9543_v21 = vpop.f32.mrf.mxu3 }
 0x2fe   :  { %12578 = vst [vmem:[#allocation18_spill] sm:$0xff] %v9543_v21  ;;  %v1895_v24 = vpop.f32.mrf.mxu1 }
 0x2ff   :  { %v1896_v25 = vadd.f32 %v1895_v24, %v1727_v16 }
 0x300   :  { %v2402_v38 = vpop.f32.mrf.mxu0 }
 0x301   :  { %2450 = vmatmul.bf16.gmra.mxu1 %v6387_v2  ;;  %v12584_v2 = vld [vmem:[#allocation22_spill] sm:$0xff] }
 0x302   :  { %v1732_v24 = vadd.f32 %v9113_v50, %v12584_v2 }
 0x304   :  { %v2064_v58 = vpop.f32.mrf.mxu2 }
 0x305   :  { %v2065_v43 = vadd.f32 %v2064_v58, %v1896_v25  ;;  %v2233_v46 = vpop.f32.mrf.mxu3  ;;  %v12585_v58 = vld [vmem:[#allocation24_spill] sm:$0xff] }
 0x306   :  { %v1897_v0 = vpop.f32.mrf.mxu1  ;;  %v1734_v22 = vadd.f32 %v9113_v50, %v12585_v58  ;;  %v12586_v50 = vld [vmem:[#allocation25_spill] sm:$0xff] }
 0x307   :  { %v9547_v41 = vadd.f32 %v1897_v0, %v1729_v13  ;;  %v2234_v10 = vadd.f32 %v2233_v46, %v2065_v43  ;;  %v6411_v46 = vor.u32 %v7408_v33, %v6408_v49  ;;  %v7414_v33 = vld [vmem:[%s12457_s0 + $0x194] sm:$0xf]  ;;  %v6432_v49 = vld [vmem:[%s12457_s0 + $0x1a8] sm:$0xf0] }
 0x308   :  { %v9559_v16 = vpop.f32.mrf.mxu0  ;;  %v6435_v2 = vor.u32 %v7414_v33, %v6432_v49 }
 0x309   :  { %12580 = vst [vmem:[#allocation20_spill] sm:$0xff] %v9547_v41  ;;  %v9549_v51 = vadd.f32 %v2402_v38, %v2234_v10 }
 0x30a   :  { %12583 = vst [vmem:[#allocation52_spill] sm:$0xff] %v9559_v16 }
 0x30b   :  { %12581 = vst [vmem:[#allocation50_spill] sm:$0xff] %v9549_v51 }
 0x30c   :  { %v9557_v48 = vpop.f32.mrf.mxu2 }
 0x30d   :  { %12582 = vst [vmem:[#allocation51_spill] sm:$0xff] %v9557_v48  ;;  %v9563_v0 = vpop.f32.mrf.mxu3 }
 0x30e   :  { %v1900_v10 = vpop.f32.mrf.mxu1 }
 0x30f   :  { %v1901_v25 = vadd.f32 %v1900_v10, %v1732_v24 }
 0x310   :  { %v2407_v41 = vpop.f32.mrf.mxu0 }
 0x311   :  { %2455 = vmatmul.bf16.gmra.mxu1 %v6411_v46 }
 0x314   :  { %v2069_v38 = vpop.f32.mrf.mxu2 }
 0x315   :  { %v2070_v13 = vadd.f32 %v2069_v38, %v1901_v25  ;;  %v2238_v43 = vpop.f32.mrf.mxu3 }
 0x316   :  { %v1902_v51 = vpop.f32.mrf.mxu1 }
 0x317   :  { %v9567_v48 = vadd.f32 %v1902_v51, %v1734_v22  ;;  %v2239_v16 = vadd.f32 %v2238_v43, %v2070_v13  ;;  %v7608_v22 = vld [vmem:[%s12459_s6] sm:$0xff] }
 0x318   :  { %5155 = vmatpush.bf16.msra.mxu0 %v7608_v22  ;;  %v7432_v22 = vld [vmem:[%s12457_s0 + $0x224] sm:$0xf] }
 0x319   :  { %v9569_v21 = vadd.f32 %v2407_v41, %v2239_v16  ;;  %v7420_v41 = vld [vmem:[%s12457_s0 + $0x1c4] sm:$0xf]  ;;  %v6456_v16 = vld [vmem:[%s12457_s0 + $0x1d8] sm:$0xf0] }
 0x31a   :  { %v6459_v13 = vor.u32 %v7420_v41, %v6456_v16 }
 0x31e   :  { %v2421_v24 = vpop.f32.mrf.mxu1 }
 0x31f   :  { %v2422_v46 = vadd.f32 %v2421_v24, %v12586_v50 }
 0x321   :  { %2460 = vmatmul.bf16.gmra.mxu1 %v6435_v2  ;;  %v2581_v25 = vmax.f32 %v2422_v46, 0.0  ;;  %v7426_v46 = vld [vmem:[%s12457_s0 + $0x1f4] sm:$0xf] }
 0x326   :  { %v2423_v10 = vpop.f32.mrf.mxu1 }
 0x327   :  { %v2424_v51 = vadd.f32 %v2423_v10, %v8652_v18  ;;  %v7606_v18 = vld [vmem:[%s12460_s5] sm:$0xff]  ;;  %v6480_v10 = vld [vmem:[%s12457_s0 + $0x208] sm:$0xf0] }
 0x328   :  { %4490 = vmatpush.bf16.msra.mxu3 %v7606_v18  ;;  %v6504_v18 = vld [vmem:[%s12457_s0 + $0x238] sm:$0xf0] }
 0x329   :  { %v2582_v38 = vmax.f32 %v2424_v51, 0.0 }
 0x32b   :  { %v2645_v58 = vpack.c.bf16 %v2582_v38, %v2581_v25  ;;  %v6483_v25 = vor.u32 %v7426_v46, %v6480_v10  ;;  %v6528_v46 = vld [vmem:[%s12457_s0 + $0x268] sm:$0xf0] }
 0x32d   :  { %7188 = vmatmul.msk.bf16.vlgmr.msra.gmra.mxu2 %vm2697_vm0, %v2645_v58 }
 0x32e   :  { %v2426_v43 = vpop.f32.mrf.mxu1 }
 0x32f   :  { %v2427_v33 = vadd.f32 %v2426_v43, %v8656_v36  ;;  %v6507_v43 = vor.u32 %v7432_v22, %v6504_v18 }
 0x331   :  { %2465 = vmatmul.bf16.gmra.mxu1 %v6459_v13  ;;  %v2583_v24 = vmax.f32 %v2427_v33, 0.0 }
 0x336   :  { %v2428_v49 = vpop.f32.mrf.mxu1 }
 0x337   :  { %v2429_v2 = vadd.f32 %v2428_v49, %v8684_v32 }
 0x339   :  { %v2584_v50 = vmax.f32 %v2429_v2, 0.0 }
 0x33b   :  { %v2646_v51 = vpack.c.bf16 %v2584_v50, %v2583_v24  ;;  %v7438_v50 = vld [vmem:[%s12457_s0 + $0x254] sm:$0xf] }
 0x33d   :  { %7189 = vmatmul.msk.bf16.gmra.mxu2 %vm2697_vm0, %v2646_v51  ;;  %v6531_v51 = vor.u32 %v7438_v50, %v6528_v46 }
 0x33e   :  { %v2431_v38 = vpop.f32.mrf.mxu1 }
 0x33f   :  { %v2432_v36 = vadd.f32 %v2431_v38, %v8691_v61 }
 0x341   :  { %2470 = vmatmul.bf16.gmra.mxu1 %v6483_v25  ;;  %v2585_v16 = vmax.f32 %v2432_v36, 0.0 }
 0x346   :  { %v2433_v41 = vpop.f32.mrf.mxu1 }
 0x347   :  { %v2434_v32 = vadd.f32 %v2433_v41, %v8719_v1 }
 0x349   :  { %v2586_v58 = vmax.f32 %v2434_v32, 0.0  ;;  %v7444_v32 = vld [vmem:[%s12457_s0 + $0x284] sm:$0xf] }
 0x34b   :  { %v2647_v13 = vpack.c.bf16 %v2586_v58, %v2585_v16  ;;  %v6552_v16 = vld [vmem:[%s12457_s0 + $0x298] sm:$0xf0] }
 0x34c   :  { %v6555_v22 = vor.u32 %v7444_v32, %v6552_v16  ;;  %v6624_v16 = vld [vmem:[%s12457_s0 + $0x328] sm:$0xf0] }
 0x34d   :  { %7190 = vmatmul.msk.bf16.gmra.mxu2 %vm2697_vm0, %v2647_v13 }
 0x34e   :  { %v2436_v33 = vpop.f32.mrf.mxu1 }
 0x34f   :  { %v2437_v61 = vadd.f32 %v2436_v33, %v8723_v42 }
 0x351   :  { %2475 = vmatmul.bf16.gmra.mxu1 %v6507_v43  ;;  %v2587_v2 = vmax.f32 %v2437_v61, 0.0  ;;  %v7450_v61 = vld [vmem:[%s12457_s0 + $0x2b4] sm:$0xf] }
 0x356   :  { %v2438_v49 = vpop.f32.mrf.mxu1 }
 0x357   :  { %v2439_v1 = vadd.f32 %v2438_v49, %v8751_v62  ;;  %v6576_v49 = vld [vmem:[%s12457_s0 + $0x2c8] sm:$0xf0] }
 0x359   :  { %v2588_v24 = vmax.f32 %v2439_v1, 0.0 }
 0x35b   :  { %v2648_v10 = vpack.c.bf16 %v2588_v24, %v2587_v2  ;;  %v6579_v2 = vor.u32 %v7450_v61, %v6576_v49  ;;  %v6648_v61 = vld [vmem:[%s12457_s0 + $0x358] sm:$0xf0] }
 0x35d   :  { %7191 = vmatmul.msk.bf16.gmra.mxu2 %vm2697_vm0, %v2648_v10 }
 0x35e   :  { %v2441_v25 = vpop.f32.mrf.mxu1 }
 0x35f   :  { %v2442_v42 = vadd.f32 %v2441_v25, %v8755_v52  ;;  %v6600_v25 = vld [vmem:[%s12457_s0 + $0x2f8] sm:$0xf0] }
 0x361   :  { %2480 = vmatmul.bf16.gmra.mxu1 %v6531_v51  ;;  %v2589_v36 = vmax.f32 %v2442_v42, 0.0  ;;  %v7456_v51 = vld [vmem:[%s12457_s0 + $0x2e4] sm:$0xf] }
 0x366   :  { %v2443_v38 = vpop.f32.mrf.mxu1 }
 0x367   :  { %v2444_v62 = vadd.f32 %v2443_v38, %v8783_v7  ;;  %v6603_v38 = vor.u32 %v7456_v51, %v6600_v25 }
 0x369   :  { %v2590_v41 = vmax.f32 %v2444_v62, 0.0 }
 0x36b   :  { %v2649_v58 = vpack.c.bf16 %v2590_v41, %v2589_v36 }
 0x36d   :  { %7192 = vmatmul.msk.bf16.gmra.mxu2 %vm2697_vm0, %v2649_v58 }
 0x36e   :  { %v2446_v18 = vpop.f32.mrf.mxu1 }
 0x36f   :  { %v2447_v52 = vadd.f32 %v2446_v18, %v8787_v20 }
 0x371   :  { %2485 = vmatmul.bf16.gmra.mxu1 %v6555_v22  ;;  %v2591_v43 = vmax.f32 %v2447_v52, 0.0 }
 0x376   :  { %v2448_v13 = vpop.f32.mrf.mxu1 }
 0x377   :  { %v2449_v7 = vadd.f32 %v2448_v13, %v8815_v8 }
 0x379   :  { %v2592_v33 = vmax.f32 %v2449_v7, 0.0 }
 0x37b   :  { %v2650_v1 = vpack.c.bf16 %v2592_v33, %v2591_v43  ;;  %v9745_v43 = vpop.f32.mrf.mxu2 }
 0x37d   :  { %7193 = vmatmul.msk.bf16.gmra.mxu2 %vm2697_vm0, %v2650_v1  ;;  %v9777_v1 = vld [vmem:[%s12461_s4] ss:$0 sm:$0xff] }
 0x37e   :  { %v2451_v24 = vpop.f32.mrf.mxu1 }
 0x37f   :  { %v2452_v20 = vadd.f32 %v2451_v24, %v8822_v56  ;;  %v7902_v56 = vmov 0.0  }
 0x380   :  { %5701 = vst [vmem:[%s12462_s7] sm:$0xff] %v7902_v56 }
 0x381   :  { %2490 = vmatmul.bf16.gmra.mxu1 %v6579_v2  ;;  %v2593_v46 = vmax.f32 %v2452_v20, 0.0  ;;  %5702 = vst [vmem:[%s12462_s7 + $0x8] sm:$0xff] %v7902_v56 }
 0x382   :  { %5703 = vst [vmem:[%s12462_s7 + $0x10] sm:$0xff] %v7902_v56 }
 0x383   :  { %5704 = vst [vmem:[%s12462_s7 + $0x18] sm:$0xff] %v7902_v56 }
 0x384   :  { %5705 = vst [vmem:[%s12462_s7 + $0x20] sm:$0xff] %v7902_v56 }
 0x385   :  { %5706 = vst [vmem:[%s12462_s7 + $0x28] sm:$0xff] %v7902_v56 }
 0x386   :  { %v2453_v50 = vpop.f32.mrf.mxu1  ;;  %5707 = vst [vmem:[%s12462_s7 + $0x30] sm:$0xff] %v7902_v56 }
 0x387   :  { %v2454_v8 = vadd.f32 %v2453_v50, %v8850_v11  ;;  %5708 = vst [vmem:[%s12462_s7 + $0x38] sm:$0xff] %v7902_v56 }
 0x388   :  { %5709 = vst [vmem:[%s12462_s7 + $0x40] sm:$0xff] %v7902_v56 }
 0x389   :  { %v2594_v10 = vmax.f32 %v2454_v8, 0.0  ;;  %5710 = vst [vmem:[%s12462_s7 + $0x48] sm:$0xff] %v7902_v56 }
 0x38a   :  { %5711 = vst [vmem:[%s12462_s7 + $0x50] sm:$0xff] %v7902_v56 }
 0x38b   :  { %v2651_v42 = vpack.c.bf16 %v2594_v10, %v2593_v46  ;;  %5712 = vst [vmem:[%s12462_s7 + $0x58] sm:$0xff] %v7902_v56 }
 0x38c   :  { %5713 = vst [vmem:[%s12462_s7 + $0x60] sm:$0xff] %v7902_v56 }
 0x38d   :  { %7194 = vmatmul.msk.bf16.gmra.mxu2 %vm2697_vm0, %v2651_v42  ;;  %5714 = vst [vmem:[%s12462_s7 + $0x68] sm:$0xff] %v7902_v56 }
 0x38e   :  { %v2456_v62 = vpop.f32.mrf.mxu1  ;;  %5715 = vst [vmem:[%s12462_s7 + $0x70] sm:$0xff] %v7902_v56 }
 0x38f   :  { %v2457_v11 = vadd.f32 %v2456_v62, %v8854_v34  ;;  %5716 = vst [vmem:[%s12462_s7 + $0x78] sm:$0xff] %v7902_v56  ;;  %v6672_v62 = vld [vmem:[%s12457_s0 + $0x388] sm:$0xf0] }
 0x390   :  { %5717 = vst [vmem:[%s12462_s7 + $0x80] sm:$0xff] %v7902_v56 }
 0x391   :  { %2495 = vmatmul.bf16.gmra.mxu1 %v6603_v38  ;;  %v2595_v34 = vmax.f32 %v2457_v11, 0.0  ;;  %5718 = vst [vmem:[%s12462_s7 + $0x88] sm:$0xff] %v7902_v56 }
 0x392   :  { %5719 = vst [vmem:[%s12462_s7 + $0x90] sm:$0xff] %v7902_v56 }
 0x393   :  { %5720 = vst [vmem:[%s12462_s7 + $0x98] sm:$0xff] %v7902_v56 }
 0x394   :  { %5721 = vst [vmem:[%s12462_s7 + $0xa0] sm:$0xff] %v7902_v56 }
 0x395   :  { %5722 = vst [vmem:[%s12462_s7 + $0xa8] sm:$0xff] %v7902_v56 }
 0x396   :  { %v2458_v36 = vpop.f32.mrf.mxu1  ;;  %5723 = vst [vmem:[%s12462_s7 + $0xb0] sm:$0xff] %v7902_v56 }
 0x397   :  { %v2459_v41 = vadd.f32 %v2458_v36, %v8882_v44  ;;  %v7462_v44 = vld [vmem:[%s12457_s0 + $0x314] sm:$0xf]  ;;  %5724 = vst [vmem:[%s12462_s7 + $0xb8] sm:$0xff] %v7902_v56 }
 0x398   :  { %v6627_v22 = vor.u32 %v7462_v44, %v6624_v16  ;;  %5725 = vst [vmem:[%s12462_s7 + $0xc0] sm:$0xff] %v7902_v56 }
 0x399   :  { %v2596_v32 = vmax.f32 %v2459_v41, 0.0  ;;  %5726 = vst [vmem:[%s12462_s7 + $0xc8] sm:$0xff] %v7902_v56 }
 0x39a   :  { %5727 = vst [vmem:[%s12462_s7 + $0xd0] sm:$0xff] %v7902_v56 }
 0x39b   :  { %v2652_v58 = vpack.c.bf16 %v2596_v32, %v2595_v34  ;;  %5728 = vst [vmem:[%s12462_s7 + $0xd8] sm:$0xff] %v7902_v56 }
 0x39c   :  { %5729 = vst [vmem:[%s12462_s7 + $0xe0] sm:$0xff] %v7902_v56 }
 0x39d   :  { %7195 = vmatmul.msk.bf16.gmra.mxu2 %vm2697_vm0, %v2652_v58  ;;  %5730 = vst [vmem:[%s12462_s7 + $0xe8] sm:$0xff] %v7902_v56 }
 0x39e   :  { %v2461_v18 = vpop.f32.mrf.mxu1  ;;  %5731 = vst [vmem:[%s12462_s7 + $0xf0] sm:$0xff] %v7902_v56 }
 0x39f   :  { %v2462_v52 = vadd.f32 %v2461_v18, %v8886_v47  ;;  %5732 = vst [vmem:[%s12462_s7 + $0xf8] sm:$0xff] %v7902_v56 }
 0x3a0   :  { %5733 = vst [vmem:[%s12462_s7 + $0x100] sm:$0xff] %v7902_v56 }
 0x3a1   :  { %2500 = vmatmul.bf16.gmra.mxu1 %v6627_v22  ;;  %v2597_v47 = vmax.f32 %v2462_v52, 0.0  ;;  %5734 = vst [vmem:[%s12462_s7 + $0x108] sm:$0xff] %v7902_v56 }
 0x3a2   :  { %5735 = vst [vmem:[%s12462_s7 + $0x110] sm:$0xff] %v7902_v56 }
 0x3a3   :  { %5736 = vst [vmem:[%s12462_s7 + $0x118] sm:$0xff] %v7902_v56 }
 0x3a4   :  { %5737 = vst [vmem:[%s12462_s7 + $0x120] sm:$0xff] %v7902_v56 }
 0x3a5   :  { %5738 = vst [vmem:[%s12462_s7 + $0x128] sm:$0xff] %v7902_v56 }
 0x3a6   :  { %v2463_v13 = vpop.f32.mrf.mxu1  ;;  %5739 = vst [vmem:[%s12462_s7 + $0x130] sm:$0xff] %v7902_v56 }
 0x3a7   :  { %v2464_v7 = vadd.f32 %v2463_v13, %v8914_v4  ;;  %v7468_v4 = vld [vmem:[%s12457_s0 + $0x344] sm:$0xf]  ;;  %5740 = vst [vmem:[%s12462_s7 + $0x138] sm:$0xff] %v7902_v56 }
 0x3a8   :  { %v6651_v2 = vor.u32 %v7468_v4, %v6648_v61  ;;  %5741 = vst [vmem:[%s12462_s7 + $0x140] sm:$0xff] %v7902_v56 }
 0x3a9   :  { %v2598_v33 = vmax.f32 %v2464_v7, 0.0  ;;  %5742 = vst [vmem:[%s12462_s7 + $0x148] sm:$0xff] %v7902_v56 }
 0x3aa   :  { %5743 = vst [vmem:[%s12462_s7 + $0x150] sm:$0xff] %v7902_v56 }
 0x3ab   :  { %v2653_v49 = vpack.c.bf16 %v2598_v33, %v2597_v47  ;;  %5744 = vst [vmem:[%s12462_s7 + $0x158] sm:$0xff] %v7902_v56 }
 0x3ac   :  { %5745 = vst [vmem:[%s12462_s7 + $0x160] sm:$0xff] %v7902_v56 }
 0x3ad   :  { %7196 = vmatmul.msk.bf16.gmra.mxu2 %vm2697_vm0, %v2653_v49  ;;  %5746 = vst [vmem:[%s12462_s7 + $0x168] sm:$0xff] %v7902_v56 }
 0x3ae   :  { %v2466_v24 = vpop.f32.mrf.mxu1  ;;  %5747 = vst [vmem:[%s12462_s7 + $0x170] sm:$0xff] %v7902_v56 }
 0x3af   :  { %v2467_v46 = vadd.f32 %v2466_v24, %v8918_v27  ;;  %5748 = vst [vmem:[%s12462_s7 + $0x178] sm:$0xff] %v7902_v56 }
 0x3b0   :  { %v2803_v20 = vpop.f32.mrf.mxu2  ;;  %5749 = vst [vmem:[%s12462_s7 + $0x180] sm:$0xff] %v7902_v56 }
 0x3b1   :  { %v9796_v50 = vadd.f32 %v9777_v1, %v2803_v20  ;;  %2505 = vmatmul.bf16.gmra.mxu1 %v6651_v2  ;;  %v2599_v25 = vmax.f32 %v2467_v46, 0.0  ;;  %5750 = vst [vmem:[%s12462_s7 + $0x188] sm:$0xff] %v7902_v56  ;;  %v7480_v20 = vld [vmem:[%s12457_s0 + $0x3a4] sm:$0xf] }
 0x3b2   :  { %5751 = vst [vmem:[%s12462_s7 + $0x190] sm:$0xff] %v7902_v56 }
 0x3b3   :  { %v7220_v8 = vmul.f32 -1.442695, %v9796_v50  ;;  %5766 = vst.msk [vmem:[%s12462_s7] sm:$0xff] %vm5765_vm1, %v9796_v50  ;;  %v4179_v34 = vmax.f32 %v9796_v50, 0.0 }
 0x3b4   :  { %5752 = vst [vmem:[%s12462_s7 + $0x198] sm:$0xff] %v7902_v56 }
 0x3b5   :  { %7641 = vpow2.f32 %v7220_v8  ;;  %5753 = vst [vmem:[%s12462_s7 + $0x1a0] sm:$0xff] %v7902_v56 }
 0x3b6   :  { %v2468_v10 = vpop.f32.mrf.mxu1  ;;  %5754 = vst [vmem:[%s12462_s7 + $0x1a8] sm:$0xff] %v7902_v56 }
 0x3b7   :  { %v2469_v51 = vadd.f32 %v2468_v10, %v8946_v31  ;;  %v7474_v31 = vld [vmem:[%s12457_s0 + $0x374] sm:$0xf]  ;;  %5755 = vst [vmem:[%s12462_s7 + $0x1b0] sm:$0xff] %v7902_v56  ;;  %v6696_v10 = vld [vmem:[%s12457_s0 + $0x3b8] sm:$0xf0] }
 0x3b8   :  { %v2805_v27 = vpop.f32.mrf.mxu2  ;;  %v6675_v58 = vor.u32 %v7474_v31, %v6672_v62  ;;  %5756 = vst [vmem:[%s12462_s7 + $0x1b8] sm:$0xff] %v7902_v56 }
 0x3b9   :  { %v2600_v42 = vmax.f32 %v2469_v51, 0.0  ;;  %v9839_v38 = vadd.f32 %v9777_v1, %v2805_v27  ;;  %5757 = vst [vmem:[%s12462_s7 + $0x1c0] sm:$0xff] %v7902_v56 }
 0x3ba   :  { %5758 = vst [vmem:[%s12462_s7 + $0x1c8] sm:$0xff] %v7902_v56 }
 0x3bb   :  { %v7642_v11 = vpop.eup %7641  ;;  %v2654_v36 = vpack.c.bf16 %v2600_v42, %v2599_v25  ;;  %v7221_v41 = vmul.f32 -1.442695, %v9839_v38  ;;  %v4180_v32 = vmax.f32 %v9839_v38, 0.0  ;;  %5759 = vst [vmem:[%s12462_s7 + $0x1d0] sm:$0xff] %v7902_v56 }
 0x3bc   :  { %v9858_v44 = vadd.f32 1.0, %v7642_v11  ;;  %5760 = vst [vmem:[%s12462_s7 + $0x1d8] sm:$0xff] %v7902_v56 }
 0x3bd   :  { %7643 = vpow2.f32 %v7221_v41  ;;  %7197 = vmatmul.msk.bf16.gmra.mxu2 %vm2697_vm0, %v2654_v36  ;;  %v9869_v16 = vpack.c.bf16 %v4180_v32, %v4179_v34  ;;  %v6699_v41 = vor.u32 %v7480_v20, %v6696_v10  ;;  %5761 = vst [vmem:[%s12462_s7 + $0x1e0] sm:$0xff] %v7902_v56 }
 0x3be   :  { %7645 = vrcp.f32 %v9858_v44  ;;  %v2471_v22 = vpop.f32.mrf.mxu1  ;;  %vm3224_vm3 = vweird.f32 %v9858_v44  ;;  %5762 = vst [vmem:[%s12462_s7 + $0x1e8] sm:$0xff] %v7902_v56 }
 0x3bf   :  { %4311 = vrot.lane.b32.xlu0 %v9869_v16, %s7903_s28  ;;  %v2472_v4 = vadd.f32 %v2471_v22, %v8953_v63  ;;  %5763 = vst [vmem:[%s12462_s7 + $0x1f0] sm:$0xff] %v7902_v56 }
 0x3c0   :  { %v2808_v18 = vpop.f32.mrf.mxu2  ;;  %5764 = vst [vmem:[%s12462_s7 + $0x1f8] sm:$0xff] %v7902_v56 }
 0x3c1   :  { %v9891_v52 = vadd.f32 %v9777_v1, %v2808_v18  ;;  %2510 = vmatmul.bf16.gmra.mxu1 %v6675_v58  ;;  %v2601_v8 = vmax.f32 %v2472_v4, 0.0  ;;  %v3228_v18 = vand.u32 2147483647, %v9858_v44  ;;  %5767 = vst.msk [vmem:[%s12462_s7 + $0x8] sm:$0xff] %vm5765_vm1, %v9839_v38 }
 0x3c3   :  { %v7644_v13 = vpop.eup %7643  ;;  %v7222_v7 = vmul.f32 -1.442695, %v9891_v52  ;;  %v4181_v31 = vmax.f32 %v9891_v52, 0.0  ;;  %vm3229_vm6 = vcmp.eq.f32.partialorder %v3228_v18, 8.507059e+37  ;;  %5768 = vst.msk [vmem:[%s12462_s7 + $0x10] sm:$0xff] %vm5765_vm1, %v9891_v52 }
 0x3c4   :  { %v9902_v47 = vpop.eup %7645  ;;  %v9908_v33 = vadd.f32 1.0, %v7644_v13  ;;  %v3230_v13 = vand.u32 2147483648, %v9858_v44  ;;  %v6720_v18 = vld [vmem:[%s12457_s0 + $0x3e8] sm:$0xf0] }
 0x3c5   :  { %7647 = vpow2.f32 %v7222_v7  ;;  %v3220_v61 = vmul.f32 %v9902_v47, %v9858_v44  ;;  %vm3225_vm2 = vweird.f32 %v9902_v47 }
 0x3c6   :  { %7649 = vrcp.f32 %v9908_v33  ;;  %v2473_v49 = vpop.f32.mrf.mxu1  ;;  %vm9990_vm4 = vmor %vm3224_vm3, %vm3225_vm2  ;;  %v3231_v20 = vor.u32 1.1754944e-38, %v3230_v13  ;;  %vm3239_vm8 = vweird.f32 %v9908_v33 }
 0x3c7   :  { %v2474_v2 = vadd.f32 %v2473_v49, %v8981_v45  ;;  %v3221_v63 = vsub.f32 1.0, %v3220_v61  ;;  %v3243_v49 = vand.u32 2147483647, %v9908_v33 }
 0x3c8   :  { %v2810_v24 = vpop.f32.mrf.mxu2 }
 0x3c9   :  { %v2602_v46 = vmax.f32 %v2474_v2, 0.0  ;;  %v9939_v45 = vadd.f32 %v9777_v1, %v2810_v24  ;;  %v3222_v51 = vmul.f32 %v9902_v47, %v3221_v63  ;;  %v3245_v2 = vand.u32 2147483648, %v9908_v33 }
 0x3ca   :  { %vm3244_vm10 = vcmp.eq.f32.partialorder %v3243_v49, 8.507059e+37 }
 0x3cb   :  { %v7648_v27 = vpop.eup %7647  ;;  %v2655_v25 = vpack.c.bf16 %v2602_v46, %v2601_v8  ;;  %v7223_v42 = vmul.f32 -1.442695, %v9939_v45  ;;  %v4182_v62 = vmax.f32 %v9939_v45, 0.0  ;;  %v3223_v32 = vadd.f32 %v9902_v47, %v3222_v51  ;;  %5769 = vst.msk [vmem:[%s12462_s7 + $0x18] sm:$0xff] %vm5765_vm1, %v9939_v45 }
 0x3cc   :  { %v7650_v11 = vpop.eup %7649  ;;  %v9960_v36 = vadd.f32 1.0, %v7648_v27 }
 0x3cd   :  { %7651 = vpow2.f32 %v7223_v42  ;;  %7198 = vmatmul.msk.bf16.gmra.mxu2 %vm2697_vm0, %v2655_v25  ;;  %v4244_v34 = vpack.c.bf16 %v4182_v62, %v4181_v31  ;;  %v3235_v58 = vmul.f32 %v7650_v11, %v9908_v33  ;;  %v3227_v63 = vsel %vm9990_vm4, %v9902_v47, %v3223_v32 }
 0x3ce   :  { %7653 = vrcp.f32 %v9960_v36  ;;  %v2476_v22 = vpop.f32.mrf.mxu1  ;;  %vm3240_vm5 = vweird.f32 %v7650_v11  ;;  %v3232_v27 = vsel %vm3229_vm6, %v3231_v20, %v3227_v63  ;;  %v3246_v25 = vor.u32 1.1754944e-38, %v3245_v2 }
 0x3cf   :  { %4978 = vrot.lane.b32.xlu2 %v4244_v34, %s7904_s15  ;;  %4313 = vrot.lane.b32.xlu0 %v4244_v34, %s7903_s28  ;;  %v3236_v7 = vsub.f32 1.0, %v3235_v58  ;;  %v2477_v51 = vadd.f32 %v2476_v22, %v8985_v54  ;;  %vm3241_vm9 = vmor %vm3239_vm8, %vm3240_vm5  ;;  %5831 = vst.msk [vmem:[%s12462_s7] sm:$0xff] %vm5830_vm7, %v3232_v27  ;;  %v3258_v32 = vand.u32 2147483647, %v9960_v36  ;;  %v3260_v58 = vand.u32 2147483648, %v9960_v36 }
 0x3d0   :  { %v2813_v4 = vpop.f32.mrf.mxu2  ;;  %v7486_v22 = vld [vmem:[%s12457_s0 + $0x3d4] sm:$0xf]  ;;  %vm3254_vm12 = vweird.f32 %v9960_v36 }
 0x3d1   :  { %v10001_v44 = vadd.f32 %v9777_v1, %v2813_v4  ;;  %2515 = vmatmul.bf16.gmra.mxu1 %v6699_v41  ;;  %v3237_v24 = vmul.f32 %v7650_v11, %v3236_v7  ;;  %v2603_v41 = vmax.f32 %v2477_v51, 0.0  ;;  %vm3259_vm14 = vcmp.eq.f32.partialorder %v3258_v32, 8.507059e+37 }
 0x3d3   :  { %v7652_v8 = vpop.eup %7651  ;;  %v7224_v46 = vmul.f32 -1.442695, %v10001_v44  ;;  %v3238_v47 = vadd.f32 %v7650_v11, %v3237_v24  ;;  %5770 = vst.msk [vmem:[%s12462_s7 + $0x20] sm:$0xff] %vm5765_vm1, %v10001_v44  ;;  %v4183_v7 = vmax.f32 %v10001_v44, 0.0 }
 0x3d4   :  { %v7654_v10 = vpop.eup %7653  ;;  %v10022_v56 = vadd.f32 1.0, %v7652_v8  ;;  %v6723_v8 = vor.u32 %v7486_v22, %v6720_v18 }
 0x3d5   :  { %7655 = vpow2.f32 %v7224_v46  ;;  %v3250_v33 = vmul.f32 %v7654_v10, %v9960_v36  ;;  %v3242_v42 = vsel %vm3241_vm9, %v7650_v11, %v3238_v47  ;;  %vm3255_vm11 = vweird.f32 %v7654_v10 }
 0x3d6   :  { %7657 = vrcp.f32 %v10022_v56  ;;  %v2478_v54 = vpop.f32.mrf.mxu1  ;;  %v3247_v31 = vsel %vm3244_vm10, %v3246_v25, %v3242_v42  ;;  %vm3256_vm13 = vmor %vm3254_vm12, %vm3255_vm11  ;;  %v3261_v36 = vor.u32 1.1754944e-38, %v3260_v58  ;;  %vm3269_vm2 = vweird.f32 %v10022_v56 }
 0x3d7   :  { %v2479_v62 = vadd.f32 %v2478_v54, %v9013_v60  ;;  %4976 = vrot.lane.b32.xlu0 %v9869_v16, %s7904_s15  ;;  %v3251_v11 = vsub.f32 1.0, %v3250_v33  ;;  %5832 = vst.msk [vmem:[%s12462_s7 + $0x8] sm:$0xff] %vm5830_vm7, %v3247_v31  ;;  %v3275_v54 = vand.u32 2147483648, %v10022_v56 }
 0x3d8   :  { %v2815_v34 = vpop.f32.mrf.mxu2 }
 0x3d9   :  { %v2604_v60 = vmax.f32 %v2479_v62, 0.0  ;;  %v10052_v16 = vadd.f32 %v9777_v1, %v2815_v34  ;;  %v3252_v13 = vmul.f32 %v7654_v10, %v3251_v11  ;;  %v3273_v62 = vand.u32 2147483647, %v10022_v56 }
 0x3db   :  { %v7656_v4 = vpop.eup %7655  ;;  %v2656_v61 = vpack.c.bf16 %v2604_v60, %v2603_v41  ;;  %v7225_v49 = vmul.f32 -1.442695, %v10052_v16  ;;  %5771 = vst.msk [vmem:[%s12462_s7 + $0x28] sm:$0xff] %vm5765_vm1, %v10052_v16  ;;  %v4184_v2 = vmax.f32 %v10052_v16, 0.0  ;;  %v3253_v63 = vadd.f32 %v7654_v10, %v3252_v13 }
 0x3dc   :  { %v7658_v24 = vpop.eup %7657  ;;  %v10069_v20 = vadd.f32 1.0, %v7656_v4  ;;  %v3276_v60 = vor.u32 1.1754944e-38, %v3275_v54  ;;  %vm3274_vm4 = vcmp.eq.f32.partialorder %v3273_v62, 8.507059e+37 }
 0x3dd   :  { %7659 = vpow2.f32 %v7225_v49  ;;  %7199 = vmatmul.msk.bf16.gmra.mxu2 %vm2697_vm0, %v2656_v61  ;;  %v4245_v46 = vpack.c.bf16 %v4184_v2, %v4183_v7  ;;  %v3257_v47 = vsel %vm3256_vm13, %v7654_v10, %v3253_v63  ;;  %v3265_v51 = vmul.f32 %v7658_v24, %v10022_v56 }
 0x3de   :  { %7661 = vrcp.f32 %v10069_v20  ;;  %v2481_v27 = vpop.f32.mrf.mxu1  ;;  %v3262_v25 = vsel %vm3259_vm14, %v3261_v36, %v3257_v47  ;;  %vm3270_vm15 = vweird.f32 %v7658_v24  ;;  %v3288_v47 = vand.u32 2147483647, %v10069_v20 }
 0x3df   :  { %4315 = vrot.lane.b32.xlu1 %v4245_v46, %s7903_s28  ;;  %4980 = vrot.lane.b32.xlu2 %v4245_v46, %s7904_s15  ;;  %5833 = vst.msk [vmem:[%s12462_s7 + $0x10] sm:$0xff] %vm5830_vm7, %v3262_v25  ;;  %v3266_v33 = vsub.f32 1.0, %v3265_v51  ;;  %vm3271_vm3 = vmor %vm3269_vm2, %vm3270_vm15  ;;  %v2482_v22 = vadd.f32 %v2481_v27, %v9017_v19  ;;  %v3290_v19 = vand.u32 2147483648, %v10069_v20  ;;  %vm3284_vm6 = vweird.f32 %v10069_v20 }
 0x3e0   :  { %v2818_v42 = vpop.f32.mrf.mxu2  ;;  %vm3289_vm9 = vcmp.eq.f32.partialorder %v3288_v47, 8.507059e+37 }
 0x3e1   :  { %v10082_v10 = vadd.f32 %v9777_v1, %v2818_v42  ;;  %2520 = vmatmul.bf16.gmra.mxu1 %v6723_v8  ;;  %v3267_v31 = vmul.f32 %v7658_v24, %v3266_v33  ;;  %v2605_v2 = vmax.f32 %v2482_v22, 0.0  ;;  %v7492_v8 = vld [vmem:[%s12457_s0 + $0x404] sm:$0xf] }
 0x3e3   :  { %v7660_v11 = vpop.eup %7659  ;;  %v7226_v41 = vmul.f32 -1.442695, %v10082_v10  ;;  %5772 = vst.msk [vmem:[%s12462_s7 + $0x30] sm:$0xff] %vm5765_vm1, %v10082_v10  ;;  %v3268_v34 = vadd.f32 %v7658_v24, %v3267_v31  ;;  %v4185_v46 = vmax.f32 %v10082_v10, 0.0 }
 0x3e4   :  { %v7662_v32 = vpop.eup %7661  ;;  %v10092_v58 = vadd.f32 1.0, %v7660_v11 }
 0x3e5   :  { %7663 = vpow2.f32 %v7226_v41  ;;  %v3272_v18 = vsel %vm3271_vm3, %v7658_v24, %v3268_v34  ;;  %v3280_v13 = vmul.f32 %v7662_v32, %v10069_v20  ;;  %vm3285_vm5 = vweird.f32 %v7662_v32 }
 0x3e6   :  { %7665 = vrcp.f32 %v10092_v58  ;;  %v2483_v7 = vpop.f32.mrf.mxu1  ;;  %v3277_v61 = vsel %vm3274_vm4, %v3276_v60, %v3272_v18  ;;  %vm3286_vm8 = vmor %vm3284_vm6, %vm3285_vm5  ;;  %v3291_v34 = vor.u32 1.1754944e-38, %v3290_v19  ;;  %v3305_v20 = vand.u32 2147483648, %v10092_v58 }
 0x3e7   :  { %v2484_v4 = vadd.f32 %v2483_v7, %v9045_v6  ;;  %v3281_v49 = vsub.f32 1.0, %v3280_v13  ;;  %5834 = vst.msk [vmem:[%s12462_s7 + $0x18] sm:$0xff] %vm5830_vm7, %v3277_v61  ;;  %v6744_v6 = vld [vmem:[%s12457_s0 + $0x418] sm:$0xf0]  ;;  %vm3299_vm11 = vweird.f32 %v10092_v58 }
 0x3e8   :  { %v2820_v56 = vpop.f32.mrf.mxu2  ;;  %v6747_v62 = vor.u32 %v7492_v8, %v6744_v6  ;;  %v3306_v6 = vor.u32 1.1754944e-38, %v3305_v20 }
 0x3e9   :  { %v2606_v63 = vmax.f32 %v2484_v4, 0.0  ;;  %v10104_v24 = vadd.f32 %v9777_v1, %v2820_v56  ;;  %v3282_v36 = vmul.f32 %v7662_v32, %v3281_v49 }
 0x3eb   :  { %v7664_v51 = vpop.eup %7663  ;;  %v2657_v27 = vpack.c.bf16 %v2606_v63, %v2605_v2  ;;  %v7227_v25 = vmul.f32 -1.442695, %v10104_v24  ;;  %5773 = vst.msk [vmem:[%s12462_s7 + $0x38] sm:$0xff] %vm5765_vm1, %v10104_v24  ;;  %v4186_v33 = vmax.f32 %v10104_v24, 0.0  ;;  %v3283_v42 = vadd.f32 %v7662_v32, %v3282_v36 }
 0x3ec   :  { %v7666_v54 = vpop.eup %7665  ;;  %v10121_v31 = vadd.f32 1.0, %v7664_v51 }
 0x3ed   :  { %7667 = vpow2.f32 %v7227_v25  ;;  %7200 = vmatmul.msk.bf16.gmra.mxu2 %vm2697_vm0, %v2657_v27  ;;  %v4246_v11 = vpack.c.bf16 %v4186_v33, %v4185_v46  ;;  %v3295_v41 = vmul.f32 %v7666_v54, %v10092_v58  ;;  %v3287_v22 = vsel %vm3286_vm8, %v7662_v32, %v3283_v42 }
 0x3ee   :  { %7669 = vrcp.f32 %v10121_v31  ;;  %v2486_v60 = vpop.f32.mrf.mxu1  ;;  %v3292_v13 = vsel %vm3289_vm9, %v3291_v34, %v3287_v22  ;;  %vm3300_vm10 = vweird.f32 %v7666_v54  ;;  %v3303_v32 = vand.u32 2147483647, %v10092_v58 }
 0x3ef   :  { %4317 = vrot.lane.b32.xlu1 %v4246_v11, %s7903_s28  ;;  %v3296_v18 = vsub.f32 1.0, %v3295_v41  ;;  %5835 = vst.msk [vmem:[%s12462_s7 + $0x20] sm:$0xff] %vm5830_vm7, %v3292_v13  ;;  %v2487_v8 = vadd.f32 %v2486_v60, %v9049_v39  ;;  %vm3301_vm12 = vmor %vm3299_vm11, %vm3300_vm10  ;;  %v3318_v33 = vand.u32 2147483647, %v10121_v31  ;;  %v3320_v42 = vand.u32 2147483648, %v10121_v31 }
 0x3f0   :  { %v2823_v7 = vpop.f32.mrf.mxu2  ;;  %vm3304_vm13 = vcmp.eq.f32.partialorder %v3303_v32, 8.507059e+37  ;;  %vm3314_vm15 = vweird.f32 %v10121_v31 }
 0x3f1   :  { %v10135_v4 = vadd.f32 %v9777_v1, %v2823_v7  ;;  %2525 = vmatmul.bf16.gmra.mxu1 %v6747_v62  ;;  %v3297_v61 = vmul.f32 %v7666_v54, %v3296_v18  ;;  %v2607_v58 = vmax.f32 %v2487_v8, 0.0  ;;  %vm3319_vm3 = vcmp.eq.f32.partialorder %v3318_v33, 8.507059e+37 }
 0x3f3   :  { %v7668_v49 = vpop.eup %7667  ;;  %v7228_v56 = vmul.f32 -1.442695, %v10135_v4  ;;  %5774 = vst.msk [vmem:[%s12462_s7 + $0x40] sm:$0xff] %vm5765_vm1, %v10135_v4  ;;  %v3298_v19 = vadd.f32 %v7666_v54, %v3297_v61  ;;  %v4187_v34 = vmax.f32 %v10135_v4, 0.0 }
 0x3f4   :  { %v7670_v2 = vpop.eup %7669  ;;  %v10145_v63 = vadd.f32 1.0, %v7668_v49 }
 0x3f5   :  { %7671 = vpow2.f32 %v7228_v56  ;;  %v3302_v36 = vsel %vm3301_vm12, %v7666_v54, %v3298_v19  ;;  %v3310_v46 = vmul.f32 %v7670_v2, %v10121_v31  ;;  %vm3315_vm14 = vweird.f32 %v7670_v2 }
 0x3f6   :  { %7673 = vrcp.f32 %v10145_v63  ;;  %v2488_v47 = vpop.f32.mrf.mxu1  ;;  %v3307_v51 = vsel %vm3304_vm13, %v3306_v6, %v3302_v36  ;;  %vm3316_vm2 = vmor %vm3314_vm15, %vm3315_vm14  ;;  %v3321_v31 = vor.u32 1.1754944e-38, %v3320_v42  ;;  %vm3329_vm5 = vweird.f32 %v10145_v63 }
 0x3f7   :  { %v2489_v27 = vadd.f32 %v2488_v47, %v9077_v37  ;;  %4982 = vrot.lane.b32.xlu1 %v4246_v11, %s7904_s15  ;;  %5836 = vst.msk [vmem:[%s12462_s7 + $0x28] sm:$0xff] %vm5830_vm7, %v3307_v51  ;;  %v3311_v39 = vsub.f32 1.0, %v3310_v46  ;;  %v7498_v37 = vld [vmem:[%s12457_s0 + $0x434] sm:$0xf]  ;;  %v6768_v11 = vld [vmem:[%s12457_s0 + $0x448] sm:$0xf0] }
 0x3f8   :  { %v2825_v25 = vpop.f32.mrf.mxu2  ;;  %v6771_v32 = vor.u32 %v7498_v37, %v6768_v11  ;;  %v3335_v47 = vand.u32 2147483648, %v10145_v63 }
 0x3f9   :  { %v2608_v54 = vmax.f32 %v2489_v27, 0.0  ;;  %v10159_v62 = vadd.f32 %v9777_v1, %v2825_v25  ;;  %v3312_v41 = vmul.f32 %v7670_v2, %v3311_v39  ;;  %v3333_v27 = vand.u32 2147483647, %v10145_v63 }
 0x3fa   :  { %v3336_v37 = vor.u32 1.1754944e-38, %v3335_v47 }
 0x3fb   :  { %v7672_v60 = vpop.eup %7671  ;;  %v2658_v22 = vpack.c.bf16 %v2608_v54, %v2607_v58  ;;  %v7229_v18 = vmul.f32 -1.442695, %v10159_v62  ;;  %5775 = vst.msk [vmem:[%s12462_s7 + $0x48] sm:$0xff] %vm5765_vm1, %v10159_v62  ;;  %v4188_v13 = vmax.f32 %v10159_v62, 0.0  ;;  %v3313_v7 = vadd.f32 %v7670_v2, %v3312_v41 }
 0x3fc   :  { %v7674_v20 = vpop.eup %7673  ;;  %v10176_v61 = vadd.f32 1.0, %v7672_v60  ;;  %vm3334_vm8 = vcmp.eq.f32.partialorder %v3333_v27, 8.507059e+37 }
 0x3fd   :  { %7675 = vpow2.f32 %v7229_v18  ;;  %7201 = vmatmul.msk.bf16.gmra.mxu2 %vm2697_vm0, %v2658_v22  ;;  %v4247_v49 = vpack.c.bf16 %v4188_v13, %v4187_v34  ;;  %v3317_v56 = vsel %vm3316_vm2, %v7670_v2, %v3313_v7  ;;  %v3325_v19 = vmul.f32 %v7674_v20, %v10145_v63 }
 0x3fe   :  { %7677 = vrcp.f32 %v10176_v61  ;;  %v2491_v8 = vpop.f32.mrf.mxu1  ;;  %v3322_v6 = vsel %vm3319_vm3, %v3321_v31, %v3317_v56  ;;  %vm3330_vm4 = vweird.f32 %v7674_v20  ;;  %v3348_v13 = vand.u32 2147483647, %v10176_v61  ;;  %v6792_v31 = vld [vmem:[%s12457_s0 + $0x478] sm:$0xf0] }
 0x3ff   :  { %4319 = vrot.lane.b32.xlu2 %v4247_v49, %s7903_s28  ;;  %4984 = vrot.lane.b32.xlu0 %v4247_v49, %s7904_s15  ;;  %5837 = vst.msk [vmem:[%s12462_s7 + $0x30] sm:$0xff] %vm5830_vm7, %v3322_v6  ;;  %v3326_v36 = vsub.f32 1.0, %v3325_v19  ;;  %v2492_v54 = vadd.f32 %v2491_v8, %v9084_v30  ;;  %vm3331_vm6 = vmor %vm3329_vm5, %vm3330_vm4  ;;  %v3350_v7 = vand.u32 2147483648, %v10176_v61  ;;  %vm3344_vm10 = vweird.f32 %v10176_v61 }
 0x400   :  { %v2828_v46 = vpop.f32.mrf.mxu2  ;;  %vm3349_vm12 = vcmp.eq.f32.partialorder %v3348_v13, 8.507059e+37 }
 0x401   :  { %v10189_v2 = vadd.f32 %v9777_v1, %v2828_v46  ;;  %2530 = vmatmul.bf16.gmra.mxu1 %v6771_v32  ;;  %v3327_v51 = vmul.f32 %v7674_v20, %v3326_v36  ;;  %v2609_v30 = vmax.f32 %v2492_v54, 0.0 }
 0x403   :  { %v7676_v39 = vpop.eup %7675  ;;  %v7230_v58 = vmul.f32 -1.442695, %v10189_v2  ;;  %5776 = vst.msk [vmem:[%s12462_s7 + $0x50] sm:$0xff] %vm5765_vm1, %v10189_v2  ;;  %v3328_v25 = vadd.f32 %v7674_v20, %v3327_v51  ;;  %v4189_v56 = vmax.f32 %v10189_v2, 0.0 }
 0x404   :  { %v7678_v33 = vpop.eup %7677  ;;  %v10199_v42 = vadd.f32 1.0, %v7676_v39 }
 0x405   :  { %7679 = vpow2.f32 %v7230_v58  ;;  %v3340_v11 = vmul.f32 %v7678_v33, %v10176_v61  ;;  %v3332_v41 = vsel %vm3331_vm6, %v7674_v20, %v3328_v25  ;;  %vm3345_vm9 = vweird.f32 %v7678_v33 }
 0x406   :  { %7681 = vrcp.f32 %v10199_v42  ;;  %v2493_v34 = vpop.f32.mrf.mxu1  ;;  %v3337_v60 = vsel %vm3334_vm8, %v3336_v37, %v3332_v41  ;;  %vm3346_vm11 = vmor %vm3344_vm10, %vm3345_vm9  ;;  %v3351_v61 = vor.u32 1.1754944e-38, %v3350_v7  ;;  %vm3359_vm14 = vweird.f32 %v10199_v42 }
 0x407   :  { %v2494_v22 = vadd.f32 %v2493_v34, %v9120_v59  ;;  %v3341_v18 = vsub.f32 1.0, %v3340_v11  ;;  %5838 = vst.msk [vmem:[%s12462_s7 + $0x38] sm:$0xff] %vm5830_vm7, %v3337_v60  ;;  %v7504_v59 = vld [vmem:[%s12457_s0 + $0x464] sm:$0xf]  ;;  %v3365_v34 = vand.u32 2147483648, %v10199_v42 }
 0x408   :  { %v2830_v63 = vpop.f32.mrf.mxu2  ;;  %v6795_v27 = vor.u32 %v7504_v59, %v6792_v31 }
 0x409   :  { %v2610_v20 = vmax.f32 %v2494_v22, 0.0  ;;  %v10212_v32 = vadd.f32 %v9777_v1, %v2830_v63  ;;  %v3342_v49 = vmul.f32 %v7678_v33, %v3341_v18  ;;  %v3363_v22 = vand.u32 2147483647, %v10199_v42 }
 0x40b   :  { %v7680_v19 = vpop.eup %7679  ;;  %v2659_v8 = vpack.c.bf16 %v2610_v20, %v2609_v30  ;;  %v7231_v6 = vmul.f32 -1.442695, %v10212_v32  ;;  %5777 = vst.msk [vmem:[%s12462_s7 + $0x58] sm:$0xff] %vm5765_vm1, %v10212_v32  ;;  %v4190_v36 = vmax.f32 %v10212_v32, 0.0  ;;  %v3343_v46 = vadd.f32 %v7678_v33, %v3342_v49 }
 0x40c   :  { %v7682_v47 = vpop.eup %7681  ;;  %v10229_v51 = vadd.f32 1.0, %v7680_v19  ;;  %v3366_v20 = vor.u32 1.1754944e-38, %v3365_v34  ;;  %vm3364_vm2 = vcmp.eq.f32.partialorder %v3363_v22, 8.507059e+37 }
 0x40d   :  { %7683 = vpow2.f32 %v7231_v6  ;;  %7202 = vmatmul.msk.bf16.gmra.mxu2 %vm2697_vm0, %v2659_v8  ;;  %v4248_v39 = vpack.c.bf16 %v4190_v36, %v4189_v56  ;;  %v3347_v58 = vsel %vm3346_vm11, %v7678_v33, %v3343_v46  ;;  %v3355_v25 = vmul.f32 %v7682_v47, %v10199_v42 }
 0x40e   :  { %7685 = vrcp.f32 %v10229_v51  ;;  %v2496_v54 = vpop.f32.mrf.mxu1  ;;  %v3352_v37 = vsel %vm3349_vm12, %v3351_v61, %v3347_v58  ;;  %vm3360_vm13 = vweird.f32 %v7682_v47  ;;  %v3378_v58 = vand.u32 2147483647, %v10229_v51 }
 0x40f   :  { %4321 = vrot.lane.b32.xlu2 %v4248_v39, %s7903_s28  ;;  %4986 = vrot.lane.b32.xlu0 %v4248_v39, %s7904_s15  ;;  %5839 = vst.msk [vmem:[%s12462_s7 + $0x40] sm:$0xff] %vm5830_vm7, %v3352_v37  ;;  %v3356_v11 = vsub.f32 1.0, %v3355_v25  ;;  %vm3361_vm15 = vmor %vm3359_vm14, %vm3360_vm13  ;;  %v2497_v59 = vadd.f32 %v2496_v54, %v9124_v57  ;;  %v3380_v57 = vand.u32 2147483648, %v10229_v51  ;;  %vm3374_vm4 = vweird.f32 %v10229_v51 }
 0x410   :  { %v2833_v41 = vpop.f32.mrf.mxu2  ;;  %vm3379_vm6 = vcmp.eq.f32.partialorder %v3378_v58, 8.507059e+37 }
 0x411   :  { %v10242_v33 = vadd.f32 %v9777_v1, %v2833_v41  ;;  %2535 = vmatmul.bf16.gmra.mxu1 %v6795_v27  ;;  %v3357_v60 = vmul.f32 %v7682_v47, %v3356_v11  ;;  %v2611_v36 = vmax.f32 %v2497_v59, 0.0  ;;  %v7510_v27 = vld [vmem:[%s12457_s0 + $0x494] sm:$0xf] }
 0x413   :  { %v7684_v18 = vpop.eup %7683  ;;  %v7232_v30 = vmul.f32 -1.442695, %v10242_v33  ;;  %5778 = vst.msk [vmem:[%s12462_s7 + $0x60] sm:$0xff] %vm5765_vm1, %v10242_v33  ;;  %v3358_v63 = vadd.f32 %v7682_v47, %v3357_v60  ;;  %v4191_v39 = vmax.f32 %v10242_v33, 0.0 }
 0x414   :  { %v7686_v13 = vpop.eup %7685  ;;  %v10252_v7 = vadd.f32 1.0, %v7684_v18 }
 0x415   :  { %7687 = vpow2.f32 %v7232_v30  ;;  %v3362_v31 = vsel %vm3361_vm15, %v7682_v47, %v3358_v63  ;;  %v3370_v49 = vmul.f32 %v7686_v13, %v10229_v51  ;;  %vm3375_vm3 = vweird.f32 %v7686_v13 }
 0x416   :  { %7689 = vrcp.f32 %v10252_v7  ;;  %v2498_v56 = vpop.f32.mrf.mxu1  ;;  %v3367_v8 = vsel %vm3364_vm2, %v3366_v20, %v3362_v31  ;;  %vm3376_vm5 = vmor %vm3374_vm4, %vm3375_vm3  ;;  %v3381_v63 = vor.u32 1.1754944e-38, %v3380_v57  ;;  %vm3389_vm9 = vweird.f32 %v10252_v7 }
 0x417   :  { %v2499_v19 = vadd.f32 %v2498_v56, %v9152_v40  ;;  %v3371_v6 = vsub.f32 1.0, %v3370_v49  ;;  %5840 = vst.msk [vmem:[%s12462_s7 + $0x48] sm:$0xff] %vm5830_vm7, %v3367_v8  ;;  %v6816_v40 = vld [vmem:[%s12457_s0 + $0x4a8] sm:$0xf0]  ;;  %v3395_v56 = vand.u32 2147483648, %v10252_v7 }
 0x418   :  { %v2835_v42 = vpop.f32.mrf.mxu2  ;;  %v6819_v22 = vor.u32 %v7510_v27, %v6816_v40  ;;  %v3393_v8 = vand.u32 2147483647, %v10252_v7 }
 0x419   :  { %v2612_v46 = vmax.f32 %v2499_v19, 0.0  ;;  %v10264_v47 = vadd.f32 %v9777_v1, %v2835_v42  ;;  %v3372_v61 = vmul.f32 %v7686_v13, %v3371_v6  ;;  %v3396_v40 = vor.u32 1.1754944e-38, %v3395_v56 }
 0x41a   :  { %vm3394_vm11 = vcmp.eq.f32.partialorder %v3393_v8, 8.507059e+37 }
 0x41b   :  { %v7688_v25 = vpop.eup %7687  ;;  %v2660_v54 = vpack.c.bf16 %v2612_v46, %v2611_v36  ;;  %v7233_v37 = vmul.f32 -1.442695, %v10264_v47  ;;  %5779 = vst.msk [vmem:[%s12462_s7 + $0x68] sm:$0xff] %vm5765_vm1, %v10264_v47  ;;  %v4192_v11 = vmax.f32 %v10264_v47, 0.0  ;;  %v3373_v41 = vadd.f32 %v7686_v13, %v3372_v61 }
 0x41c   :  { %v7690_v34 = vpop.eup %7689  ;;  %v10281_v60 = vadd.f32 1.0, %v7688_v25 }
 0x41d   :  { %7691 = vpow2.f32 %v7233_v37  ;;  %7203 = vmatmul.msk.bf16.gmra.mxu2 %vm2697_vm0, %v2660_v54  ;;  %v4249_v18 = vpack.c.bf16 %v4192_v11, %v4191_v39  ;;  %v3385_v30 = vmul.f32 %v7690_v34, %v10252_v7  ;;  %v3377_v59 = vsel %vm3376_vm5, %v7686_v13, %v3373_v41 }
 0x41e   :  { %7693 = vrcp.f32 %v10281_v60  ;;  %v2501_v20 = vpop.f32.mrf.mxu1  ;;  %v3382_v51 = vsel %vm3379_vm6, %v3381_v63, %v3377_v59  ;;  %vm3390_vm8 = vweird.f32 %v7690_v34  ;;  %v3408_v11 = vand.u32 2147483647, %v10281_v60 }
 0x41f   :  { %4323 = vrot.lane.b32.xlu1 %v4249_v18, %s7903_s28  ;;  %4988 = vrot.lane.b32.xlu2 %v4249_v18, %s7904_s15  ;;  %v3386_v31 = vsub.f32 1.0, %v3385_v30  ;;  %5841 = vst.msk [vmem:[%s12462_s7 + $0x50] sm:$0xff] %vm5830_vm7, %v3382_v51  ;;  %v2502_v27 = vadd.f32 %v2501_v20, %v9156_v5  ;;  %vm3391_vm10 = vmor %vm3389_vm9, %vm3390_vm8  ;;  %v3410_v41 = vand.u32 2147483648, %v10281_v60  ;;  %v6840_v18 = vld [vmem:[%s12457_s0 + $0x4d8] sm:$0xf0]  ;;  %vm3404_vm13 = vweird.f32 %v10281_v60 }
 0x420   :  { %v2838_v49 = vpop.f32.mrf.mxu2  ;;  %vm3409_vm15 = vcmp.eq.f32.partialorder %v3408_v11, 8.507059e+37 }
 0x421   :  { %v10296_v19 = vadd.f32 %v9777_v1, %v2838_v49  ;;  %2540 = vmatmul.bf16.gmra.mxu1 %v6819_v22  ;;  %v3387_v13 = vmul.f32 %v7690_v34, %v3386_v31  ;;  %v2613_v5 = vmax.f32 %v2502_v27, 0.0 }
 0x423   :  { %v7692_v6 = vpop.eup %7691  ;;  %v7234_v42 = vmul.f32 -1.442695, %v10296_v19  ;;  %5780 = vst.msk [vmem:[%s12462_s7 + $0x70] sm:$0xff] %vm5765_vm1, %v10296_v19  ;;  %v3388_v57 = vadd.f32 %v7690_v34, %v3387_v13  ;;  %v4193_v63 = vmax.f32 %v10296_v19, 0.0 }
 0x424   :  { %v7694_v36 = vpop.eup %7693  ;;  %v10306_v46 = vadd.f32 1.0, %v7692_v6 }
 0x425   :  { %7695 = vpow2.f32 %v7234_v42  ;;  %v3392_v61 = vsel %vm3391_vm10, %v7690_v34, %v3388_v57  ;;  %v3400_v39 = vmul.f32 %v7694_v36, %v10281_v60  ;;  %vm3405_vm12 = vweird.f32 %v7694_v36 }
 0x426   :  { %7697 = vrcp.f32 %v10306_v46  ;;  %v2503_v58 = vpop.f32.mrf.mxu1  ;;  %v3397_v25 = vsel %vm3394_vm11, %v3396_v40, %v3392_v61  ;;  %vm3406_vm14 = vmor %vm3404_vm13, %vm3405_vm12  ;;  %v3411_v60 = vor.u32 1.1754944e-38, %v3410_v41  ;;  %vm3419_vm3 = vweird.f32 %v10306_v46 }
 0x427   :  { %v2504_v54 = vadd.f32 %v2503_v58, %v9190_v3  ;;  %5842 = vst.msk [vmem:[%s12462_s7 + $0x58] sm:$0xff] %vm5830_vm7, %v3397_v25  ;;  %v3401_v7 = vsub.f32 1.0, %v3400_v39  ;;  %v7516_v3 = vld [vmem:[%s12457_s0 + $0x4c4] sm:$0xf]  ;;  %v3425_v58 = vand.u32 2147483648, %v10306_v46 }
 0x428   :  { %v2840_v37 = vpop.f32.mrf.mxu2  ;;  %v6843_v8 = vor.u32 %v7516_v3, %v6840_v18 }
 0x429   :  { %v2614_v34 = vmax.f32 %v2504_v54, 0.0  ;;  %v10319_v22 = vadd.f32 %v9777_v1, %v2840_v37  ;;  %v3402_v30 = vmul.f32 %v7694_v36, %v3401_v7  ;;  %v3423_v7 = vand.u32 2147483647, %v10306_v46 }
 0x42a   :  { %v3426_v3 = vor.u32 1.1754944e-38, %v3425_v58 }
 0x42b   :  { %v7696_v20 = vpop.eup %7695  ;;  %v2661_v59 = vpack.c.bf16 %v2614_v34, %v2613_v5  ;;  %v7235_v31 = vmul.f32 -1.442695, %v10319_v22  ;;  %5781 = vst.msk [vmem:[%s12462_s7 + $0x78] sm:$0xff] %vm5765_vm1, %v10319_v22  ;;  %v4194_v51 = vmax.f32 %v10319_v22, 0.0  ;;  %v3403_v49 = vadd.f32 %v7694_v36, %v3402_v30 }
 0x42c   :  { %v7698_v56 = vpop.eup %7697  ;;  %v10336_v13 = vadd.f32 1.0, %v7696_v20  ;;  %vm3424_vm5 = vcmp.eq.f32.partialorder %v3423_v7, 8.507059e+37 }
 0x42d   :  { %7699 = vpow2.f32 %v7235_v31  ;;  %7204 = vmatmul.msk.bf16.gmra.mxu2 %vm2697_vm0, %v2661_v59  ;;  %v4250_v6 = vpack.c.bf16 %v4194_v51, %v4193_v63  ;;  %v3407_v42 = vsel %vm3406_vm14, %v7694_v36, %v3403_v49  ;;  %v3415_v57 = vmul.f32 %v7698_v56, %v10306_v46 }
 0x42e   :  { %7701 = vrcp.f32 %v10336_v13  ;;  %v2506_v27 = vpop.f32.mrf.mxu1  ;;  %v3412_v40 = vsel %vm3409_vm15, %v3411_v60, %v3407_v42  ;;  %vm3420_vm2 = vweird.f32 %v7698_v56  ;;  %v3438_v51 = vand.u32 2147483647, %v10336_v13  ;;  %v7522_v60 = vld [vmem:[%s12457_s0 + $0x4f4] sm:$0xf] }
 0x42f   :  { %4990 = vrot.lane.b32.xlu1 %v4250_v6, %s7904_s15  ;;  %4325 = vrot.lane.b32.xlu2 %v4250_v6, %s7903_s28  ;;  %5843 = vst.msk [vmem:[%s12462_s7 + $0x60] sm:$0xff] %vm5830_vm7, %v3412_v40  ;;  %v3416_v61 = vsub.f32 1.0, %v3415_v57  ;;  %v2507_v34 = vadd.f32 %v2506_v27, %v9194_v9  ;;  %vm3421_vm4 = vmor %vm3419_vm3, %vm3420_vm2  ;;  %v3440_v49 = vand.u32 2147483648, %v10336_v13  ;;  %v6864_v6 = vld [vmem:[%s12457_s0 + $0x508] sm:$0xf0]  ;;  %vm3434_vm8 = vweird.f32 %v10336_v13 }
 0x430   :  { %v2843_v39 = vpop.f32.mrf.mxu2  ;;  %v6867_v7 = vor.u32 %v7522_v60, %v6864_v6  ;;  %vm3439_vm10 = vcmp.eq.f32.partialorder %v3438_v51, 8.507059e+37 }
 0x431   :  { %v10349_v36 = vadd.f32 %v9777_v1, %v2843_v39  ;;  %2545 = vmatmul.bf16.gmra.mxu1 %v6843_v8  ;;  %v4312_v25 = vpop.permute.xlu0 %4311  ;;  %v3417_v54 = vmul.f32 %v7698_v56, %v3416_v61  ;;  %v2615_v9 = vmax.f32 %v2507_v34, 0.0  ;;  %v10375_v8 = vld [vmem:[%s12461_s4] ss:$0 sm:$0xff] }
 0x432   :  { %7292 = vmatmul.msk.bf16.vlgmr.msra.gmra.mxu3 %vm2697_vm0, %v4312_v25 }
 0x433   :  { %v7700_v5 = vpop.eup %7699  ;;  %v7236_v37 = vmul.f32 -1.442695, %v10349_v36  ;;  %5782 = vst.msk [vmem:[%s12462_s7 + $0x80] sm:$0xff] %vm5765_vm1, %v10349_v36  ;;  %v3418_v11 = vadd.f32 %v7698_v56, %v3417_v54  ;;  %v4195_v57 = vmax.f32 %v10349_v36, 0.0 }
 0x434   :  { %v7702_v1 = vpop.eup %7701  ;;  %v10360_v41 = vadd.f32 1.0, %v7700_v5 }
 0x435   :  { %7703 = vpow2.f32 %v7236_v37  ;;  %v3430_v18 = vmul.f32 %v7702_v1, %v10336_v13  ;;  %v3422_v30 = vsel %vm3421_vm4, %v7698_v56, %v3418_v11  ;;  %vm3435_vm6 = vweird.f32 %v7702_v1 }
 0x436   :  { %7705 = vrcp.f32 %v10360_v41  ;;  %v2508_v63 = vpop.f32.mrf.mxu1  ;;  %v3427_v20 = vsel %vm3424_vm5, %v3426_v3, %v3422_v30  ;;  %vm3436_vm9 = vmor %vm3434_vm8, %vm3435_vm6  ;;  %v3441_v13 = vor.u32 1.1754944e-38, %v3440_v49  ;;  %vm3449_vm12 = vweird.f32 %v10360_v41 }
 0x437   :  { %v2509_v59 = vadd.f32 %v2508_v63, %v9222_v17  ;;  %v3431_v31 = vsub.f32 1.0, %v3430_v18  ;;  %5844 = vst.msk [vmem:[%s12462_s7 + $0x68] sm:$0xff] %vm5830_vm7, %v3427_v20  ;;  %v3455_v63 = vand.u32 2147483648, %v10360_v41 }
 0x438   :  { %v2845_v46 = vpop.f32.mrf.mxu2 }
 0x439   :  { %v2616_v56 = vmax.f32 %v2509_v59, 0.0  ;;  %v10378_v17 = vadd.f32 %v10375_v8, %v2845_v46  ;;  %v3432_v42 = vmul.f32 %v7702_v1, %v3431_v31  ;;  %v3453_v31 = vand.u32 2147483647, %v10360_v41 }
 0x43a   :  { %v3456_v60 = vor.u32 1.1754944e-38, %v3455_v63 }
 0x43b   :  { %v7704_v27 = vpop.eup %7703  ;;  %v2662_v40 = vpack.c.bf16 %v2616_v56, %v2615_v9  ;;  %v7237_v61 = vmul.f32 -1.442695, %v10378_v17  ;;  %5783 = vst.msk [vmem:[%s12462_s7 + $0x88] sm:$0xff] %vm5765_vm1, %v10378_v17  ;;  %v4196_v39 = vmax.f32 %v10378_v17, 0.0  ;;  %v3433_v58 = vadd.f32 %v7702_v1, %v3432_v42 }
 0x43c   :  { %v7706_v25 = vpop.eup %7705  ;;  %v10395_v54 = vadd.f32 1.0, %v7704_v27  ;;  %vm3454_vm14 = vcmp.eq.f32.partialorder %v3453_v31, 8.507059e+37 }
 0x43d   :  { %7707 = vpow2.f32 %v7237_v61  ;;  %7205 = vmatmul.msk.bf16.gmra.mxu2 %vm2697_vm0, %v2662_v40  ;;  %v4251_v5 = vpack.c.bf16 %v4196_v39, %v4195_v57  ;;  %v3437_v37 = vsel %vm3436_vm9, %v7702_v1, %v3433_v58  ;;  %v3445_v11 = vmul.f32 %v7706_v25, %v10360_v41 }
 0x43e   :  { %7709 = vrcp.f32 %v10395_v54  ;;  %v2511_v34 = vpop.f32.mrf.mxu1  ;;  %v3442_v3 = vsel %vm3439_vm10, %v3441_v13, %v3437_v37  ;;  %vm3450_vm11 = vweird.f32 %v7706_v25  ;;  %v7528_v13 = vld [vmem:[%s12457_s0 + $0x524] sm:$0xf]  ;;  %v6888_v37 = vld [vmem:[%s12457_s0 + $0x538] sm:$0xf0]  ;;  %vm3464_vm2 = vweird.f32 %v10395_v54 }
 0x43f   :  { %4992 = vrot.lane.b32.xlu1 %v4251_v5, %s7904_s15  ;;  %4327 = vrot.lane.b32.xlu0 %v4251_v5, %s7903_s28  ;;  %5845 = vst.msk [vmem:[%s12462_s7 + $0x70] sm:$0xff] %vm5830_vm7, %v3442_v3  ;;  %v3446_v18 = vsub.f32 1.0, %v3445_v11  ;;  %vm3451_vm13 = vmor %vm3449_vm12, %vm3450_vm11  ;;  %v2512_v6 = vadd.f32 %v2511_v34, %v9229_v35  ;;  %v3468_v11 = vand.u32 2147483647, %v10395_v54  ;;  %v3470_v34 = vand.u32 2147483648, %v10395_v54 }
 0x440   :  { %v2848_v30 = vpop.f32.mrf.mxu2 }
 0x441   :  { %v10408_v1 = vadd.f32 %v10375_v8, %v2848_v30  ;;  %2550 = vmatmul.bf16.gmra.mxu1 %v6867_v7  ;;  %v4314_v20 = vpop.permute.xlu0 %4313  ;;  %v3447_v59 = vmul.f32 %v7706_v25, %v3446_v18  ;;  %v2617_v58 = vmax.f32 %v2512_v6, 0.0  ;;  %vm3469_vm4 = vcmp.eq.f32.partialorder %v3468_v11, 8.507059e+37 }
 0x442   :  { %7293 = vmatmul.msk.bf16.gmra.mxu3 %vm2697_vm0, %v4314_v20 }
 0x443   :  { %v7708_v9 = vpop.eup %7707  ;;  %v7238_v46 = vmul.f32 -1.442695, %v10408_v1  ;;  %5784 = vst.msk [vmem:[%s12462_s7 + $0x90] sm:$0xff] %vm5765_vm1, %v10408_v1  ;;  %v3448_v51 = vadd.f32 %v7706_v25, %v3447_v59 }
 0x444   :  { %v7710_v49 = vpop.eup %7709  ;;  %v10419_v56 = vadd.f32 1.0, %v7708_v9 }
 0x445   :  { %7711 = vpow2.f32 %v7238_v46  ;;  %v3452_v42 = vsel %vm3451_vm13, %v7706_v25, %v3448_v51  ;;  %v3460_v57 = vmul.f32 %v7710_v49, %v10395_v54  ;;  %vm3465_vm15 = vweird.f32 %v7710_v49 }
 0x446   :  { %7713 = vrcp.f32 %v10419_v56  ;;  %v2513_v27 = vpop.f32.mrf.mxu1  ;;  %v3457_v61 = vsel %vm3454_vm14, %v3456_v60, %v3452_v42  ;;  %v6891_v46 = vor.u32 %v7528_v13, %v6888_v37  ;;  %vm3466_vm3 = vmor %vm3464_vm2, %vm3465_vm15  ;;  %v3471_v42 = vor.u32 1.1754944e-38, %v3470_v34 }
 0x447   :  { %v2514_v40 = vadd.f32 %v2513_v27, %v9257_v53  ;;  %v3461_v39 = vsub.f32 1.0, %v3460_v57  ;;  %5846 = vst.msk [vmem:[%s12462_s7 + $0x78] sm:$0xff] %vm5830_vm7, %v3457_v61  ;;  %v4197_v53 = vmax.f32 %v10408_v1, 0.0  ;;  %v3485_v27 = vand.u32 2147483648, %v10419_v56 }
 0x448   :  { %v2850_v41 = vpop.f32.mrf.mxu2  ;;  %vm3479_vm6 = vweird.f32 %v10419_v56 }
 0x449   :  { %v2618_v35 = vmax.f32 %v2514_v40, 0.0  ;;  %v10430_v25 = vadd.f32 %v10375_v8, %v2850_v41  ;;  %v4977_v7 = vpop.permute.xlu0 %4976  ;;  %v3462_v5 = vmul.f32 %v7710_v49, %v3461_v39  ;;  %v3486_v11 = vor.u32 1.1754944e-38, %v3485_v27 }
 0x44a   :  { %7332 = vmatmul.msk.bf16.vlgmr.msra.gmra.mxu0 %vm2697_vm0, %v4977_v7 }
 0x44b   :  { %v7712_v3 = vpop.eup %7711  ;;  %v2663_v18 = vpack.c.bf16 %v2618_v35, %v2617_v58  ;;  %v7239_v30 = vmul.f32 -1.442695, %v10430_v25  ;;  %5785 = vst.msk [vmem:[%s12462_s7 + $0x98] sm:$0xff] %vm5765_vm1, %v10430_v25  ;;  %v4198_v63 = vmax.f32 %v10430_v25, 0.0  ;;  %v3463_v20 = vadd.f32 %v7710_v49, %v3462_v5 }
 0x44c   :  { %v7714_v59 = vpop.eup %7713  ;;  %v10449_v31 = vadd.f32 1.0, %v7712_v3 }
 0x44d   :  { %7715 = vpow2.f32 %v7239_v30  ;;  %7206 = vmatmul.msk.bf16.gmra.mxu2 %vm2697_vm0, %v2663_v18  ;;  %v4252_v9 = vpack.c.bf16 %v4198_v63, %v4197_v53  ;;  %v3475_v51 = vmul.f32 %v7714_v59, %v10419_v56  ;;  %v3467_v6 = vsel %vm3466_vm3, %v7710_v49, %v3463_v20  ;;  %v12589_v53 = vld [vmem:[#allocation26_spill] sm:$0xff] }
 0x44e   :  { %7717 = vrcp.f32 %v10449_v31  ;;  %v2516_v60 = vpop.f32.mrf.mxu1  ;;  %v3472_v40 = vsel %vm3469_vm4, %v3471_v42, %v3467_v6  ;;  %vm3480_vm5 = vweird.f32 %v7714_v59  ;;  %v3483_v49 = vand.u32 2147483647, %v10419_v56  ;;  %v6912_v42 = vld [vmem:[%s12457_s0 + $0x568] sm:$0xf0] }
 0x44f   :  { %4329 = vrot.lane.b32.xlu1 %v4252_v9, %s7903_s28  ;;  %4994 = vrot.lane.b32.xlu0 %v4252_v9, %s7904_s15  ;;  %v3476_v57 = vsub.f32 1.0, %v3475_v51  ;;  %5847 = vst.msk [vmem:[%s12462_s7 + $0x80] sm:$0xff] %vm5830_vm7, %v3472_v40  ;;  %v2517_v37 = vadd.f32 %v2516_v60, %v12589_v53  ;;  %vm3481_vm8 = vmor %vm3479_vm6, %vm3480_vm5  ;;  %v4979_v51 = vpop.permute.xlu2 %4978  ;;  %vm3494_vm11 = vweird.f32 %v10449_v31 }
 0x450   :  { %v2853_v54 = vpop.f32.mrf.mxu2  ;;  %vm3484_vm9 = vcmp.eq.f32.partialorder %v3483_v49, 8.507059e+37 }
 0x451   :  { %v10460_v61 = vadd.f32 %v10375_v8, %v2853_v54  ;;  %2555 = vmatmul.bf16.gmra.mxu1 %v6891_v46  ;;  %v4316_v39 = vpop.permute.xlu1 %4315  ;;  %v3477_v41 = vmul.f32 %v7714_v59, %v3476_v57  ;;  %v2619_v20 = vmax.f32 %v2517_v37, 0.0  ;;  %v3498_v46 = vand.u32 2147483647, %v10449_v31  ;;  %v12590_v54 = vld [vmem:[#allocation28_spill] sm:$0xff] }
 0x452   :  { %7294 = vmatmul.msk.bf16.gmra.mxu3 %vm2697_vm0, %v4316_v39  ;;  %v2017_v27 = vadd.f32 %v12590_v54, %v9293_v14  ;;  %v12592_v54 = vld [vmem:[#allocation11_spill] sm:$0xff] }
 0x453   :  { %v7716_v58 = vpop.eup %7715  ;;  %v7240_v35 = vmul.f32 -1.442695, %v10460_v61  ;;  %5786 = vst.msk [vmem:[%s12462_s7 + $0xa0] sm:$0xff] %vm5765_vm1, %v10460_v61  ;;  %v3478_v7 = vadd.f32 %v7714_v59, %v3477_v41  ;;  %v4199_v40 = vmax.f32 %v10460_v61, 0.0  ;;  %vm3499_vm13 = vcmp.eq.f32.partialorder %v3498_v46, 8.507059e+37 }
 0x454   :  { %v7718_v13 = vpop.eup %7717  ;;  %v10475_v5 = vadd.f32 1.0, %v7716_v58 }
 0x455   :  { %7719 = vpow2.f32 %v7240_v35  ;;  %v3482_v34 = vsel %vm3481_vm8, %v7714_v59, %v3478_v7  ;;  %v3490_v3 = vmul.f32 %v7718_v13, %v10449_v31  ;;  %v3500_v59 = vand.u32 2147483648, %v10449_v31 }
 0x456   :  { %7721 = vrcp.f32 %v10475_v5  ;;  %v2518_v18 = vpop.f32.mrf.mxu1  ;;  %v3487_v30 = vsel %vm3484_vm9, %v3486_v11, %v3482_v34  ;;  %vm3495_vm10 = vweird.f32 %v7718_v13  ;;  %vm3509_vm15 = vweird.f32 %v10475_v5 }
 0x457   :  { %v2519_v63 = vadd.f32 %v2518_v18, %v9289_v12  ;;  %5848 = vst.msk [vmem:[%s12462_s7 + $0x88] sm:$0xff] %vm5830_vm7, %v3487_v30  ;;  %v3491_v56 = vsub.f32 1.0, %v3490_v3  ;;  %v7534_v12 = vld [vmem:[%s12457_s0 + $0x554] sm:$0xf]  ;;  %vm3496_vm12 = vmor %vm3494_vm11, %vm3495_vm10  ;;  %v3501_v31 = vor.u32 1.1754944e-38, %v3500_v59  ;;  %v3515_v59 = vand.u32 2147483648, %v10475_v5 }
 0x458   :  { %v2855_v9 = vpop.f32.mrf.mxu2  ;;  %v6915_v53 = vor.u32 %v7534_v12, %v6912_v42 }
 0x459   :  { %v2620_v60 = vmax.f32 %v2519_v63, 0.0  ;;  %v10488_v6 = vadd.f32 %v10375_v8, %v2855_v9  ;;  %v3492_v57 = vmul.f32 %v7718_v13, %v3491_v56  ;;  %v12591_v63 = vld [vmem:[#allocation13_spill] sm:$0xff] }
 0x45a   :  { %7333 = vmatmul.msk.bf16.gmra.mxu0 %vm2697_vm0, %v4979_v51  ;;  %v2186_v56 = vadd.f32 %v12591_v63, %v2017_v27  ;;  %v3513_v51 = vand.u32 2147483647, %v10475_v5 }
 0x45b   :  { %v7720_v39 = vpop.eup %7719  ;;  %v2664_v41 = vpack.c.bf16 %v2620_v60, %v2619_v20  ;;  %v7241_v49 = vmul.f32 -1.442695, %v10488_v6  ;;  %5787 = vst.msk [vmem:[%s12462_s7 + $0xa8] sm:$0xff] %vm5765_vm1, %v10488_v6  ;;  %v4200_v58 = vmax.f32 %v10488_v6, 0.0  ;;  %v3493_v35 = vadd.f32 %v7718_v13, %v3492_v57 }
 0x45c   :  { %v7722_v14 = vpop.eup %7721  ;;  %v10508_v7 = vadd.f32 1.0, %v7720_v39  ;;  %v2355_v27 = vadd.f32 %v12592_v54, %v2186_v56  ;;  %v12593_v39 = vld [vmem:[#allocation27_spill] sm:$0xff]  ;;  %vm3514_vm3 = vcmp.eq.f32.partialorder %v3513_v51, 8.507059e+37  ;;  %v7540_v56 = vld [vmem:[%s12457_s0 + $0x584] sm:$0xf] }
 0x45d   :  { %7723 = vpow2.f32 %v7241_v49  ;;  %7207 = vmatmul.msk.bf16.gmra.mxu2 %vm2697_vm0, %v2664_v41  ;;  %v4253_v37 = vpack.c.bf16 %v4200_v58, %v4199_v40  ;;  %v3497_v11 = vsel %vm3496_vm12, %v7718_v13, %v3493_v35  ;;  %v3505_v34 = vmul.f32 %v7722_v14, %v10475_v5 }
 0x45e   :  { %7725 = vrcp.f32 %v10508_v7  ;;  %v2521_v3 = vpop.f32.mrf.mxu1  ;;  %v3502_v18 = vsel %vm3499_vm13, %v3501_v31, %v3497_v11  ;;  %vm3510_vm14 = vweird.f32 %v7722_v14  ;;  %v3516_v35 = vor.u32 1.1754944e-38, %v3515_v59  ;;  %v12595_v59 = vld [vmem:[#allocation31_spill] sm:$0xff] }
 0x45f   :  { %4996 = vrot.lane.b32.xlu2 %v4253_v37, %s7904_s15  ;;  %4331 = vrot.lane.b32.xlu0 %v4253_v37, %s7903_s28  ;;  %5849 = vst.msk [vmem:[%s12462_s7 + $0x90] sm:$0xff] %vm5830_vm7, %v3502_v18  ;;  %v3506_v30 = vsub.f32 1.0, %v3505_v34  ;;  %v2522_v41 = vadd.f32 %v2521_v3, %v12593_v39  ;;  %vm3511_vm2 = vmor %vm3509_vm15, %vm3510_vm14  ;;  %v3528_v18 = vand.u32 2147483647, %v10508_v7  ;;  %vm3524_vm5 = vweird.f32 %v10508_v7 }
 0x460   :  { %v2858_v20 = vpop.f32.mrf.mxu2 }
 0x461   :  { %v10521_v13 = vadd.f32 %v10375_v8, %v2858_v20  ;;  %2560 = vmatmul.bf16.gmra.mxu1 %v6915_v53  ;;  %v4318_v9 = vpop.permute.xlu1 %4317  ;;  %v3507_v46 = vmul.f32 %v7722_v14, %v3506_v30  ;;  %v2621_v11 = vmax.f32 %v2522_v41, 0.0  ;;  %v3530_v30 = vand.u32 2147483648, %v10508_v7  ;;  %v6936_v20 = vld [vmem:[%s12457_s0 + $0x598] sm:$0xf0] }
 0x462   :  { %7295 = vmatmul.msk.bf16.gmra.mxu3 %vm2697_vm0, %v4318_v9  ;;  %vm3529_vm8 = vcmp.eq.f32.partialorder %v3528_v18, 8.507059e+37 }
 0x463   :  { %v7724_v60 = vpop.eup %7723  ;;  %v7242_v12 = vmul.f32 -1.442695, %v10521_v13  ;;  %5788 = vst.msk [vmem:[%s12462_s7 + $0xb0] sm:$0xff] %vm5765_vm1, %v10521_v13  ;;  %v3508_v42 = vadd.f32 %v7722_v14, %v3507_v46  ;;  %v12594_v46 = vld [vmem:[#allocation15_spill] sm:$0xff] }
 0x464   :  { %v7726_v57 = vpop.eup %7725  ;;  %v10534_v40 = vadd.f32 1.0, %v7724_v60  ;;  %v2022_v51 = vadd.f32 %v12595_v59, %v12594_v46  ;;  %v4201_v60 = vmax.f32 %v10521_v13, 0.0 }
 0x465   :  { %7727 = vpow2.f32 %v7242_v12  ;;  %v3520_v49 = vmul.f32 %v7726_v57, %v10508_v7  ;;  %v3512_v58 = vsel %vm3511_vm2, %v7722_v14, %v3508_v42  ;;  %v4981_v14 = vpop.permute.xlu2 %4980  ;;  %vm3525_vm4 = vweird.f32 %v7726_v57 }
 0x466   :  { %7729 = vrcp.f32 %v10534_v40  ;;  %v2523_v53 = vpop.f32.mrf.mxu1  ;;  %v3517_v5 = vsel %vm3514_vm3, %v3516_v35, %v3512_v58  ;;  %v6939_v58 = vor.u32 %v7540_v56, %v6936_v20  ;;  %vm3526_vm6 = vmor %vm3524_vm5, %vm3525_vm4  ;;  %v3531_v7 = vor.u32 1.1754944e-38, %v3530_v30 }
 0x467   :  { %v2524_v31 = vadd.f32 %v2523_v53, %v2355_v27  ;;  %v3521_v37 = vsub.f32 1.0, %v3520_v49  ;;  %5850 = vst.msk [vmem:[%s12462_s7 + $0x98] sm:$0xff] %vm5830_vm7, %v3517_v5  ;;  %vm3539_vm10 = vweird.f32 %v10534_v40 }
 0x468   :  { %v2860_v34 = vpop.f32.mrf.mxu2 }
 0x469   :  { %v2622_v3 = vmax.f32 %v2524_v31, 0.0  ;;  %v10546_v63 = vadd.f32 %v10375_v8, %v2860_v34  ;;  %v3522_v9 = vmul.f32 %v7726_v57, %v3521_v37  ;;  %v12596_v34 = vld [vmem:[#allocation17_spill] sm:$0xff] }
 0x46a   :  { %7334 = vmatmul.msk.bf16.gmra.mxu0 %vm2697_vm0, %v4981_v14  ;;  %v2191_v18 = vadd.f32 %v12596_v34, %v2022_v51  ;;  %v3545_v14 = vand.u32 2147483648, %v10534_v40 }
 0x46b   :  { %v7728_v12 = vpop.eup %7727  ;;  %v2665_v42 = vpack.c.bf16 %v2622_v3, %v2621_v11  ;;  %v7243_v54 = vmul.f32 -1.442695, %v10546_v63  ;;  %5789 = vst.msk [vmem:[%s12462_s7 + $0xb8] sm:$0xff] %vm5765_vm1, %v10546_v63  ;;  %v4202_v27 = vmax.f32 %v10546_v63, 0.0  ;;  %v3523_v39 = vadd.f32 %v7726_v57, %v3522_v9 }
 0x46c   :  { %v7730_v41 = vpop.eup %7729  ;;  %v10566_v49 = vadd.f32 1.0, %v7728_v12 }
 0x46d   :  { %7731 = vpow2.f32 %v7243_v54  ;;  %7208 = vmatmul.msk.bf16.gmra.mxu2 %vm2697_vm0, %v2665_v42  ;;  %v4254_v35 = vpack.c.bf16 %v4202_v27, %v4201_v60  ;;  %v3527_v53 = vsel %vm3526_vm6, %v7726_v57, %v3523_v39  ;;  %v3535_v31 = vmul.f32 %v7730_v41, %v10534_v40  ;;  %v4320_v3 = vpop.permute.xlu2 %4319  ;;  %v12597_v60 = vld [vmem:[#allocation29_spill] sm:$0xff]  ;;  %v12598_v27 = vld [vmem:[#allocation30_spill] sm:$0xff] }
 0x46e   :  { %7733 = vrcp.f32 %v10566_v49  ;;  %v2526_v37 = vpop.f32.mrf.mxu1  ;;  %v3532_v5 = vsel %vm3529_vm8, %v3531_v7, %v3527_v53  ;;  %v3543_v57 = vand.u32 2147483647, %v10534_v40  ;;  %vm3540_vm9 = vweird.f32 %v7730_v41 }
 0x46f   :  { %4333 = vrot.lane.b32.xlu1 %v4254_v35, %s7903_s28  ;;  %4998 = vrot.lane.b32.xlu2 %v4254_v35, %s7904_s15  ;;  %5851 = vst.msk [vmem:[%s12462_s7 + $0xa0] sm:$0xff] %vm5830_vm7, %v3532_v5  ;;  %v3536_v11 = vsub.f32 1.0, %v3535_v31  ;;  %v2360_v12 = vadd.f32 %v12597_v60, %v2191_v18  ;;  %vm3541_vm11 = vmor %vm3539_vm10, %vm3540_vm9  ;;  %v3546_v54 = vor.u32 1.1754944e-38, %v3545_v14  ;;  %v2527_v39 = vadd.f32 %v2526_v37, %v12598_v27  ;;  %v6960_v14 = vld [vmem:[%s12457_s0 + $0x5c8] sm:$0xf0] }
 0x470   :  { %v2863_v30 = vpop.f32.mrf.mxu2  ;;  %vm3544_vm12 = vcmp.eq.f32.partialorder %v3543_v57, 8.507059e+37  ;;  %v12600_v27 = vld [vmem:[#allocation19_spill] sm:$0xff]  ;;  %vm3554_vm14 = vweird.f32 %v10566_v49 }
 0x471   :  { %v10581_v56 = vadd.f32 %v10375_v8, %v2863_v30  ;;  %2565 = vmatmul.bf16.gmra.mxu1 %v6939_v58  ;;  %v3537_v20 = vmul.f32 %v7730_v41, %v3536_v11  ;;  %v4983_v11 = vpop.permute.xlu1 %4982  ;;  %v2623_v34 = vmax.f32 %v2527_v39, 0.0  ;;  %v12601_v39 = vld [vmem:[#allocation34_spill] sm:$0xff] }
 0x472   :  { %7296 = vmatmul.msk.bf16.gmra.mxu3 %vm2697_vm0, %v4320_v3  ;;  %v3558_v3 = vand.u32 2147483647, %v10566_v49 }
 0x473   :  { %v7732_v9 = vpop.eup %7731  ;;  %v7244_v46 = vmul.f32 -1.442695, %v10581_v56  ;;  %5790 = vst.msk [vmem:[%s12462_s7 + $0xc0] sm:$0xff] %vm5765_vm1, %v10581_v56  ;;  %v3538_v59 = vadd.f32 %v7730_v41, %v3537_v20  ;;  %v4203_v57 = vmax.f32 %v10581_v56, 0.0  ;;  %v3560_v20 = vand.u32 2147483648, %v10566_v49 }
 0x474   :  { %v7734_v51 = vpop.eup %7733  ;;  %v10592_v42 = vadd.f32 1.0, %v7732_v9  ;;  %vm3559_vm2 = vcmp.eq.f32.partialorder %v3558_v3, 8.507059e+37 }
 0x475   :  { %7735 = vpow2.f32 %v7244_v46  ;;  %v3542_v58 = vsel %vm3541_vm11, %v7730_v41, %v3538_v59  ;;  %v3550_v7 = vmul.f32 %v7734_v51, %v10566_v49  ;;  %v7546_v41 = vld [vmem:[%s12457_s0 + $0x5b4] sm:$0xf]  ;;  %vm3555_vm13 = vweird.f32 %v7734_v51 }
 0x476   :  { %7737 = vrcp.f32 %v10592_v42  ;;  %v2528_v35 = vpop.f32.mrf.mxu1  ;;  %v3547_v53 = vsel %vm3544_vm12, %v3546_v54, %v3542_v58  ;;  %v2027_v58 = vadd.f32 %v12601_v39, %v12600_v27  ;;  %vm3556_vm15 = vmor %vm3554_vm14, %vm3555_vm13  ;;  %vm3569_vm4 = vweird.f32 %v10592_v42  ;;  %v12603_v27 = vld [vmem:[#allocation33_spill] sm:$0xff] }
 0x477   :  { %v2529_v31 = vadd.f32 %v2528_v35, %v2360_v12  ;;  %5852 = vst.msk [vmem:[%s12462_s7 + $0xa8] sm:$0xff] %vm5830_vm7, %v3547_v53  ;;  %v3551_v40 = vsub.f32 1.0, %v3550_v7  ;;  %v6963_v53 = vor.u32 %v7546_v41, %v6960_v14  ;;  %v3575_v41 = vand.u32 2147483648, %v10592_v42 }
 0x478   :  { %v2865_v5 = vpop.f32.mrf.mxu2  ;;  %v2196_v49 = vadd.f32 %v9403_v55, %v2027_v58 }
 0x479   :  { %v2624_v18 = vmax.f32 %v2529_v31, 0.0  ;;  %v10602_v37 = vadd.f32 %v10375_v8, %v2865_v5  ;;  %v3552_v30 = vmul.f32 %v7734_v51, %v3551_v40  ;;  %v3576_v58 = vor.u32 1.1754944e-38, %v3575_v41 }
 0x47a   :  { %7335 = vmatmul.msk.bf16.gmra.mxu0 %vm2697_vm0, %v4983_v11  ;;  %v3561_v11 = vor.u32 1.1754944e-38, %v3560_v20 }
 0x47b   :  { %12599 = vst [vmem:[#allocation22_spill] sm:$0xff] %v10602_v37  ;;  %v7736_v9 = vpop.eup %7735  ;;  %v2666_v46 = vpack.c.bf16 %v2624_v18, %v2623_v34  ;;  %v7245_v59 = vmul.f32 -1.442695, %v10602_v37  ;;  %v4204_v60 = vmax.f32 %v10602_v37, 0.0  ;;  %v3553_v12 = vadd.f32 %v7734_v51, %v3552_v30 }
 0x47c   :  { %5791 = vst.msk [vmem:[%s12462_s7 + $0xc8] sm:$0xff] %vm5765_vm1, %v10602_v37  ;;  %v7738_v54 = vpop.eup %7737  ;;  %v10623_v7 = vadd.f32 1.0, %v7736_v9 }
 0x47d   :  { %7739 = vpow2.f32 %v7245_v59  ;;  %7209 = vmatmul.msk.bf16.gmra.mxu2 %vm2697_vm0, %v2666_v46  ;;  %v4255_v35 = vpack.c.bf16 %v4204_v60, %v4203_v57  ;;  %v3565_v31 = vmul.f32 %v7738_v54, %v10592_v42  ;;  %v3557_v5 = vsel %vm3556_vm15, %v7734_v51, %v3553_v12  ;;  %v4322_v57 = vpop.permute.xlu2 %4321  ;;  %v12602_v59 = vld [vmem:[#allocation32_spill] sm:$0xff] }
 0x47e   :  { %7741 = vrcp.f32 %v10623_v7  ;;  %v2531_v40 = vpop.f32.mrf.mxu1  ;;  %v3562_v30 = vsel %vm3559_vm2, %v3561_v11, %v3557_v5  ;;  %vm3570_vm3 = vweird.f32 %v7738_v54  ;;  %v3573_v51 = vand.u32 2147483647, %v10592_v42 }
 0x47f   :  { %5000 = vrot.lane.b32.xlu1 %v4255_v35, %s7904_s15  ;;  %4335 = vrot.lane.b32.xlu2 %v4255_v35, %s7903_s28  ;;  %v3566_v34 = vsub.f32 1.0, %v3565_v31  ;;  %5853 = vst.msk [vmem:[%s12462_s7 + $0xb0] sm:$0xff] %vm5830_vm7, %v3562_v30  ;;  %v2365_v60 = vadd.f32 %v12602_v59, %v2196_v49  ;;  %v2532_v39 = vadd.f32 %v2531_v40, %v12603_v27  ;;  %vm3571_vm5 = vmor %vm3569_vm4, %vm3570_vm3  ;;  %v3590_v49 = vand.u32 2147483648, %v10623_v7  ;;  %v7552_v30 = vld [vmem:[%s12457_s0 + $0x5e4] sm:$0xf] }
 0x480   :  { %v2868_v18 = vpop.f32.mrf.mxu2  ;;  %vm3574_vm6 = vcmp.eq.f32.partialorder %v3573_v51, 8.507059e+37  ;;  %vm3584_vm9 = vweird.f32 %v10623_v7 }
 0x481   :  { %v10635_v14 = vadd.f32 %v10375_v8, %v2868_v18  ;;  %2570 = vmatmul.bf16.gmra.mxu1 %v6963_v53  ;;  %v3567_v9 = vmul.f32 %v7738_v54, %v3566_v34  ;;  %v2625_v34 = vmax.f32 %v2532_v39, 0.0  ;;  %v4985_v18 = vpop.permute.xlu0 %4984 }
 0x482   :  { %7297 = vmatmul.msk.bf16.gmra.mxu3 %vm2697_vm0, %v4322_v57  ;;  %v6984_v57 = vld [vmem:[%s12457_s0 + $0x5f8] sm:$0xf0] }
 0x483   :  { %v7740_v55 = vpop.eup %7739  ;;  %v7246_v3 = vmul.f32 -1.442695, %v10635_v14  ;;  %5792 = vst.msk [vmem:[%s12462_s7 + $0xd0] sm:$0xff] %vm5765_vm1, %v10635_v14  ;;  %v3568_v20 = vadd.f32 %v7738_v54, %v3567_v9  ;;  %v4205_v51 = vmax.f32 %v10635_v14, 0.0 }
 0x484   :  { %v7742_v46 = vpop.eup %7741  ;;  %v10651_v12 = vadd.f32 1.0, %v7740_v55  ;;  %v3588_v55 = vand.u32 2147483647, %v10623_v7 }
 0x485   :  { %7743 = vpow2.f32 %v7246_v3  ;;  %v3572_v35 = vsel %vm3571_vm5, %v7738_v54, %v3568_v20  ;;  %v3580_v53 = vmul.f32 %v7742_v46, %v10623_v7  ;;  %vm3585_vm8 = vweird.f32 %v7742_v46 }
 0x486   :  { %7745 = vrcp.f32 %v10651_v12  ;;  %v2533_v31 = vpop.f32.mrf.mxu1  ;;  %v3577_v5 = vsel %vm3574_vm6, %v3576_v58, %v3572_v35  ;;  %v2032_v58 = vadd.f32 %v9419_v29, %v9407_v23  ;;  %v6987_v7 = vor.u32 %v7552_v30, %v6984_v57  ;;  %vm3586_vm10 = vmor %vm3584_vm9, %vm3585_vm8 }
 0x487   :  { %v2534_v11 = vadd.f32 %v2533_v31, %v2365_v60  ;;  %5854 = vst.msk [vmem:[%s12462_s7 + $0xb8] sm:$0xff] %vm5830_vm7, %v3577_v5  ;;  %v3581_v42 = vsub.f32 1.0, %v3580_v53  ;;  %v3591_v53 = vor.u32 1.1754944e-38, %v3590_v49  ;;  %vm3589_vm11 = vcmp.eq.f32.partialorder %v3588_v55, 8.507059e+37 }
 0x488   :  { %v2870_v40 = vpop.f32.mrf.mxu2  ;;  %v3603_v30 = vand.u32 2147483647, %v10651_v12  ;;  %vm3599_vm13 = vweird.f32 %v10651_v12 }
 0x489   :  { %v2626_v54 = vmax.f32 %v2534_v11, 0.0  ;;  %v10662_v41 = vadd.f32 %v10375_v8, %v2870_v40  ;;  %v3582_v9 = vmul.f32 %v7742_v46, %v3581_v42 }
 0x48a   :  { %7336 = vmatmul.msk.bf16.gmra.mxu0 %vm2697_vm0, %v4985_v18  ;;  %vm3604_vm15 = vcmp.eq.f32.partialorder %v3603_v30, 8.507059e+37 }
 0x48b   :  { %v7744_v3 = vpop.eup %7743  ;;  %v2667_v20 = vpack.c.bf16 %v2626_v54, %v2625_v34  ;;  %v7247_v59 = vmul.f32 -1.442695, %v10662_v41  ;;  %5793 = vst.msk [vmem:[%s12462_s7 + $0xd8] sm:$0xff] %vm5765_vm1, %v10662_v41  ;;  %v4206_v60 = vmax.f32 %v10662_v41, 0.0  ;;  %v3583_v27 = vadd.f32 %v7742_v46, %v3582_v9 }
 0x48c   :  { %v7746_v39 = vpop.eup %7745  ;;  %v10683_v35 = vadd.f32 1.0, %v7744_v3  ;;  %v2201_v34 = vadd.f32 %v9423_v15, %v2032_v58  ;;  %v3605_v54 = vand.u32 2147483648, %v10651_v12 }
 0x48d   :  { %7747 = vpow2.f32 %v7247_v59  ;;  %7210 = vmatmul.msk.bf16.gmra.mxu2 %vm2697_vm0, %v2667_v20  ;;  %v4256_v31 = vpack.c.bf16 %v4206_v60, %v4205_v51  ;;  %v3587_v5 = vsel %vm3586_vm10, %v7742_v46, %v3583_v27  ;;  %v3595_v11 = vmul.f32 %v7746_v39, %v10651_v12 }
 0x48e   :  { %7749 = vrcp.f32 %v10683_v35  ;;  %v2536_v42 = vpop.f32.mrf.mxu1  ;;  %v3592_v23 = vsel %vm3589_vm11, %v3591_v53, %v3587_v5  ;;  %vm3600_vm12 = vweird.f32 %v7746_v39  ;;  %v2370_v55 = vadd.f32 %v9409_v28, %v2201_v34 }
 0x48f   :  { %4337 = vrot.lane.b32.xlu0 %v4256_v31, %s7903_s28  ;;  %v3596_v29 = vsub.f32 1.0, %v3595_v11  ;;  %5855 = vst.msk [vmem:[%s12462_s7 + $0xc0] sm:$0xff] %vm5830_vm7, %v3592_v23  ;;  %v2537_v20 = vadd.f32 %v2536_v42, %v9411_v26  ;;  %vm3601_vm14 = vmor %vm3599_vm13, %vm3600_vm12  ;;  %v3606_v27 = vor.u32 1.1754944e-38, %v3605_v54  ;;  %v3618_v11 = vand.u32 2147483647, %v10683_v35  ;;  %v4987_v42 = vpop.permute.xlu0 %4986 }
 0x490   :  { %v2873_v40 = vpop.f32.mrf.mxu2  ;;  %v3620_v26 = vand.u32 2147483648, %v10683_v35  ;;  %vm3614_vm3 = vweird.f32 %v10683_v35 }
 0x491   :  { %v10696_v46 = vadd.f32 %v10375_v8, %v2873_v40  ;;  %2575 = vmatmul.bf16.gmra.mxu1 %v6987_v7  ;;  %v4324_v49 = vpop.permute.xlu1 %4323  ;;  %v3597_v18 = vmul.f32 %v7746_v39, %v3596_v29  ;;  %v2627_v28 = vmax.f32 %v2537_v20, 0.0  ;;  %vm3619_vm5 = vcmp.eq.f32.partialorder %v3618_v11, 8.507059e+37 }
 0x492   :  { %7298 = vmatmul.msk.bf16.gmra.mxu3 %vm2697_vm0, %v4324_v49 }
 0x493   :  { %12604 = vst [vmem:[#allocation24_spill] sm:$0xff] %v10696_v46  ;;  %v7748_v15 = vpop.eup %7747  ;;  %v7248_v57 = vmul.f32 -1.442695, %v10696_v46  ;;  %v3598_v9 = vadd.f32 %v7746_v39, %v3597_v18  ;;  %v4207_v34 = vmax.f32 %v10696_v46, 0.0 }
 0x494   :  { %5794 = vst.msk [vmem:[%s12462_s7 + $0xe0] sm:$0xff] %vm5765_vm1, %v10696_v46  ;;  %v7750_v51 = vpop.eup %7749  ;;  %v10709_v3 = vadd.f32 1.0, %v7748_v15 }
 0x495   :  { %7751 = vpow2.f32 %v7248_v57  ;;  %v3610_v59 = vmul.f32 %v7750_v51, %v10683_v35  ;;  %v3602_v60 = vsel %vm3601_vm14, %v7746_v39, %v3598_v9  ;;  %v10721_v39 = vpop.permute.xlu2 %4988  ;;  %vm3615_vm2 = vweird.f32 %v7750_v51  ;;  %v12606_v57 = vld [vmem:[#allocation21_spill] sm:$0xff]  ;;  %v12607_v9 = vld [vmem:[#allocation3_spill] sm:$0xff] }
 0x496   :  { %7753 = vrcp.f32 %v10709_v3  ;;  %v2538_v58 = vpop.f32.mrf.mxu1  ;;  %v3607_v53 = vsel %vm3604_vm15, %v3606_v27, %v3602_v60  ;;  %vm3616_vm4 = vmor %vm3614_vm3, %vm3615_vm2  ;;  %v3621_v35 = vor.u32 1.1754944e-38, %v3620_v26  ;;  %vm3629_vm8 = vweird.f32 %v10709_v3 }
 0x497   :  { %v2539_v7 = vadd.f32 %v2538_v58, %v2370_v55  ;;  %5002 = vrot.lane.b32.xlu0 %v4256_v31, %s7904_s15  ;;  %v3611_v12 = vsub.f32 1.0, %v3610_v59  ;;  %5856 = vst.msk [vmem:[%s12462_s7 + $0xc8] sm:$0xff] %vm5830_vm7, %v3607_v53  ;;  %v2037_v55 = vadd.f32 %v12607_v9, %v12606_v57  ;;  %v12608_v53 = vld [vmem:[#allocation4_spill] sm:$0xff]  ;;  %v12611_v9 = vld [vmem:[#allocation2_spill] sm:$0xff] }
 0x498   :  { %v2875_v5 = vpop.f32.mrf.mxu2 }
 0x499   :  { %v2628_v23 = vmax.f32 %v2539_v7, 0.0  ;;  %v10724_v29 = vadd.f32 %v10375_v8, %v2875_v5  ;;  %v3612_v31 = vmul.f32 %v7750_v51, %v3611_v12 }
 0x49a   :  { %7337 = vmatmul.msk.bf16.gmra.mxu0 %vm2697_vm0, %v4987_v42 }
 0x49b   :  { %12605 = vst [vmem:[#allocation25_spill] sm:$0xff] %v10724_v29  ;;  %v7752_v40 = vpop.eup %7751  ;;  %v2668_v49 = vpack.c.bf16 %v2628_v23, %v2627_v28  ;;  %v7249_v18 = vmul.f32 -1.442695, %v10724_v29  ;;  %v4208_v54 = vmax.f32 %v10724_v29, 0.0  ;;  %v3613_v30 = vadd.f32 %v7750_v51, %v3612_v31 }
 0x49c   :  { %5795 = vst.msk [vmem:[%s12462_s7 + $0xe8] sm:$0xff] %vm5765_vm1, %v10724_v29  ;;  %v7754_v15 = vpop.eup %7753  ;;  %v10738_v20 = vadd.f32 1.0, %v7752_v40  ;;  %v2206_v28 = vadd.f32 %v12608_v53, %v2037_v55  ;;  %v3633_v23 = vand.u32 2147483647, %v10709_v3 }
 0x49d   :  { %7755 = vpow2.f32 %v7249_v18  ;;  %7211 = vmatmul.msk.bf16.gmra.mxu2 %vm2697_vm0, %v2668_v49  ;;  %v4257_v59 = vpack.c.bf16 %v4208_v54, %v4207_v34  ;;  %v3617_v60 = vsel %vm3616_vm4, %v7750_v51, %v3613_v30  ;;  %v3625_v27 = vmul.f32 %v7754_v15, %v10709_v3  ;;  %v4326_v11 = vpop.permute.xlu2 %4325  ;;  %v12610_v18 = vld [vmem:[#allocation23_spill] sm:$0xff] }
 0x49e   :  { %7757 = vrcp.f32 %v10738_v20  ;;  %v2541_v58 = vpop.f32.mrf.mxu1  ;;  %v3622_v7 = vsel %vm3619_vm5, %v3621_v35, %v3617_v60  ;;  %v3635_v51 = vand.u32 2147483648, %v10709_v3  ;;  %vm3630_vm6 = vweird.f32 %v7754_v15 }
 0x49f   :  { %4339 = vrot.lane.b32.xlu1 %v4257_v59, %s7903_s28  ;;  %5004 = vrot.lane.b32.xlu0 %v4257_v59, %s7904_s15  ;;  %5857 = vst.msk [vmem:[%s12462_s7 + $0xd0] sm:$0xff] %vm5830_vm7, %v3622_v7  ;;  %v3626_v12 = vsub.f32 1.0, %v3625_v27  ;;  %v2375_v54 = vadd.f32 %v12610_v18, %v2206_v28  ;;  %vm3631_vm9 = vmor %vm3629_vm8, %vm3630_vm6  ;;  %v2542_v55 = vadd.f32 %v2541_v58, %v12611_v9  ;;  %vm3634_vm10 = vcmp.eq.f32.partialorder %v3633_v23, 8.507059e+37  ;;  %v12614_v18 = vld [vmem:[#allocation37_spill] sm:$0xff]  ;;  %v10793_v9 = vpop.f32.mrf.mxu3 }
 0x4a0   :  { %v2878_v5 = vpop.f32.mrf.mxu2  ;;  %v3636_v57 = vor.u32 1.1754944e-38, %v3635_v51  ;;  %v3650_v53 = vand.u32 2147483648, %v10738_v20  ;;  %vm3644_vm12 = vweird.f32 %v10738_v20 }
 0x4a1   :  { %v10752_v26 = vadd.f32 %v10375_v8, %v2878_v5  ;;  %v3627_v42 = vmul.f32 %v7754_v15, %v3626_v12  ;;  %v2629_v58 = vmax.f32 %v2542_v55, 0.0 }
 0x4a2   :  { %7299 = vmatmul.msk.bf16.gmra.mxu3 %vm2697_vm0, %v4326_v11  ;;  %v3648_v11 = vand.u32 2147483647, %v10738_v20 }
 0x4a3   :  { %12609 = vst [vmem:[#allocation26_spill] sm:$0xff] %v10752_v26  ;;  %v7756_v31 = vpop.eup %7755  ;;  %v7250_v34 = vmul.f32 -1.442695, %v10752_v26  ;;  %v3628_v40 = vadd.f32 %v7754_v15, %v3627_v42  ;;  %v4209_v51 = vmax.f32 %v10752_v26, 0.0 }
 0x4a4   :  { %5796 = vst.msk [vmem:[%s12462_s7 + $0xf0] sm:$0xff] %vm5765_vm1, %v10752_v26  ;;  %v7758_v49 = vpop.eup %7757  ;;  %v10764_v30 = vadd.f32 1.0, %v7756_v31  ;;  %vm3649_vm14 = vcmp.eq.f32.partialorder %v3648_v11, 8.507059e+37 }
 0x4a5   :  { %7759 = vpow2.f32 %v7250_v34  ;;  %v3632_v35 = vsel %vm3631_vm9, %v7754_v15, %v3628_v40  ;;  %v3640_v59 = vmul.f32 %v7758_v49, %v10738_v20  ;;  %vm3645_vm11 = vweird.f32 %v7758_v49 }
 0x4a6   :  { %7761 = vrcp.f32 %v10764_v30  ;;  %v2543_v60 = vpop.f32.mrf.mxu1  ;;  %v3637_v7 = vsel %vm3634_vm10, %v3636_v57, %v3632_v35  ;;  %vm3646_vm13 = vmor %vm3644_vm12, %vm3645_vm11  ;;  %vm3659_vm2 = vweird.f32 %v10764_v30 }
 0x4a7   :  { %v2544_v27 = vadd.f32 %v2543_v60, %v2375_v54  ;;  %v3641_v3 = vsub.f32 1.0, %v3640_v59  ;;  %5858 = vst.msk [vmem:[%s12462_s7 + $0xd8] sm:$0xff] %vm5830_vm7, %v3637_v7  ;;  %v3651_v59 = vor.u32 1.1754944e-38, %v3650_v53  ;;  %v4991_v53 = vpop.permute.xlu1 %4990 }
 0x4a8   :  { %v2880_v12 = vpop.f32.mrf.mxu2 }
 0x4a9   :  { %v2630_v28 = vmax.f32 %v2544_v27, 0.0  ;;  %v10775_v15 = vadd.f32 %v10375_v8, %v2880_v12  ;;  %v3642_v5 = vmul.f32 %v7758_v49, %v3641_v3  ;;  %v12615_v3 = vld [vmem:[#allocation6_spill] sm:$0xff] }
 0x4aa   :  { %7338 = vmatmul.msk.bf16.gmra.mxu0 %vm2697_vm0, %v10721_v39  ;;  %v12613_v39 = vld [vmem:[#allocation5_spill] sm:$0xff] }
 0x4ab   :  { %12612 = vst [vmem:[#allocation28_spill] sm:$0xff] %v10775_v15  ;;  %v7760_v42 = vpop.eup %7759  ;;  %v2669_v23 = vpack.c.bf16 %v2630_v28, %v2629_v58  ;;  %v7251_v31 = vmul.f32 -1.442695, %v10775_v15  ;;  %v4210_v8 = vmax.f32 %v10775_v15, 0.0  ;;  %v3643_v34 = vadd.f32 %v7758_v49, %v3642_v5 }
 0x4ac   :  { %5797 = vst.msk [vmem:[%s12462_s7 + $0xf8] sm:$0xff] %vm5765_vm1, %v10775_v15  ;;  %v7762_v40 = vpop.eup %7761  ;;  %v2042_v54 = vadd.f32 %v12614_v18, %v12613_v39  ;;  %v10790_v57 = vadd.f32 1.0, %v7760_v42  ;;  %v3665_v28 = vand.u32 2147483648, %v10764_v30  ;;  %v3663_v42 = vand.u32 2147483647, %v10764_v30  ;;  %v12617_v39 = vld [vmem:[#allocation35_spill] sm:$0xff] }
 0x4ad   :  { %7763 = vpow2.f32 %v7251_v31  ;;  %7212 = vmatmul.msk.bf16.gmra.mxu2 %vm2697_vm0, %v2669_v23  ;;  %v4258_v55 = vpack.c.bf16 %v4210_v8, %v4209_v51  ;;  %v3655_v35 = vmul.f32 %v7762_v40, %v10764_v30  ;;  %v3647_v27 = vsel %vm3646_vm13, %v7758_v49, %v3643_v34  ;;  %v10810_v49 = vld [vmem:[%s12461_s4] ss:$0 sm:$0xff] }
 0x4ae   :  { %7765 = vrcp.f32 %v10790_v57  ;;  %v2546_v60 = vpop.f32.mrf.mxu1  ;;  %v3652_v7 = vsel %vm3649_vm14, %v3651_v59, %v3647_v27  ;;  %v2211_v12 = vadd.f32 %v12615_v3, %v2042_v54  ;;  %vm3660_vm15 = vweird.f32 %v7762_v40 }
 0x4af   :  { %5006 = vrot.lane.b32.xlu2 %v4258_v55, %s7904_s15  ;;  %4341 = vrot.lane.b32.xlu0 %v4258_v55, %s7903_s28  ;;  %v3656_v20 = vsub.f32 1.0, %v3655_v35  ;;  %5859 = vst.msk [vmem:[%s12462_s7 + $0xe0] sm:$0xff] %vm5830_vm7, %v3652_v7  ;;  %v12618_v55 = vld [vmem:[#allocation36_spill] sm:$0xff]  ;;  %vm3661_vm3 = vmor %vm3659_vm2, %vm3660_vm15  ;;  %v3666_v59 = vor.u32 1.1754944e-38, %v3665_v28  ;;  %vm3664_vm4 = vcmp.eq.f32.partialorder %v3663_v42, 8.507059e+37  ;;  %vm3674_vm6 = vweird.f32 %v10790_v57 }
 0x4b0   :  { %v2883_v58 = vpop.f32.mrf.mxu2  ;;  %v2380_v18 = vadd.f32 %v12617_v39, %v2211_v12  ;;  %v2547_v35 = vadd.f32 %v2546_v60, %v12618_v55  ;;  %v12621_v39 = vld [vmem:[#allocation40_spill] sm:$0xff] }
 0x4b1   :  { %v10813_v5 = vadd.f32 %v10810_v49, %v2883_v58  ;;  %v4328_v51 = vpop.permute.xlu0 %4327  ;;  %v3657_v11 = vmul.f32 %v7762_v40, %v3656_v20 }
 0x4b2   :  { %7300 = vmatmul.msk.bf16.gmra.mxu3 %vm2697_vm0, %v4328_v51  ;;  %v2631_v12 = vmax.f32 %v2547_v35, 0.0  ;;  %v3680_v51 = vand.u32 2147483648, %v10790_v57 }
 0x4b3   :  { %12616 = vst [vmem:[#allocation13_spill] sm:$0xff] %v10813_v5  ;;  %v7764_v23 = vpop.eup %7763  ;;  %v7252_v31 = vmul.f32 -1.442695, %v10813_v5  ;;  %v3658_v8 = vadd.f32 %v7762_v40, %v3657_v11  ;;  %v10837_v11 = vpop.permute.xlu1 %4992 }
 0x4b4   :  { %5798 = vst.msk [vmem:[%s12462_s7 + $0x100] sm:$0xff] %vm5765_vm1, %v10813_v5  ;;  %v7766_v34 = vpop.eup %7765  ;;  %v10825_v54 = vadd.f32 1.0, %v7764_v23 }
 0x4b5   :  { %7767 = vpow2.f32 %v7252_v31  ;;  %v4492_v27 = vpop.f32.mrf.mxu3  ;;  %v3662_v20 = vsel %vm3661_vm3, %v7762_v40, %v3658_v8  ;;  %v3670_v7 = vmul.f32 %v7766_v34, %v10790_v57  ;;  %v3678_v40 = vand.u32 2147483647, %v10790_v57  ;;  %v12620_v8 = vld [vmem:[#allocation7_spill] sm:$0xff]  ;;  %v12622_v57 = vld [vmem:[#allocation8_spill] sm:$0xff] }
 0x4b6   :  { %7769 = vrcp.f32 %v10825_v54  ;;  %v2548_v3 = vpop.f32.mrf.mxu1  ;;  %v3667_v58 = vsel %vm3664_vm4, %v3666_v59, %v3662_v20  ;;  %vm3675_vm5 = vweird.f32 %v7766_v34  ;;  %vm3689_vm11 = vweird.f32 %v10825_v54 }
 0x4b7   :  { %v2549_v30 = vadd.f32 %v2548_v3, %v2380_v18  ;;  %4716 = vrot.lane.b32.xlu0 %v4492_v27, %s7905_s12  ;;  %5860 = vst.msk [vmem:[%s12462_s7 + $0xe8] sm:$0xff] %vm5830_vm7, %v3667_v58  ;;  %v3671_v60 = vsub.f32 1.0, %v3670_v7  ;;  %v2047_v18 = vadd.f32 %v12621_v39, %v12620_v8  ;;  %vm3676_vm8 = vmor %vm3674_vm6, %vm3675_vm5  ;;  %v3681_v3 = vor.u32 1.1754944e-38, %v3680_v51 }
 0x4b8   :  { %v2885_v28 = vpop.f32.mrf.mxu2  ;;  %vm3679_vm9 = vcmp.eq.f32.partialorder %v3678_v40, 8.507059e+37 }
 0x4b9   :  { %v2632_v42 = vmax.f32 %v2549_v30, 0.0  ;;  %v10840_v23 = vadd.f32 %v10810_v49, %v2885_v28  ;;  %v3672_v31 = vmul.f32 %v7766_v34, %v3671_v60  ;;  %v2216_v28 = vadd.f32 %v12622_v57, %v2047_v18  ;;  %v12625_v57 = vld [vmem:[#allocation39_spill] sm:$0xff] }
 0x4ba   :  { %7339 = vmatmul.msk.bf16.gmra.mxu0 %vm2697_vm0, %v4991_v53  ;;  %v3693_v18 = vand.u32 2147483647, %v10825_v54 }
 0x4bb   :  { %12619 = vst [vmem:[#allocation11_spill] sm:$0xff] %v10840_v23  ;;  %v7768_v55 = vpop.eup %7767  ;;  %v2670_v35 = vpack.c.bf16 %v2632_v42, %v2631_v12  ;;  %v7253_v59 = vmul.f32 -1.442695, %v10840_v23  ;;  %v3673_v27 = vadd.f32 %v7766_v34, %v3672_v31  ;;  %v10859_v42 = vpop.f32.mrf.mxu0  ;;  %v4212_v40 = vmax.f32 %v10840_v23, 0.0 }
 0x4bc   :  { %5799 = vst.msk [vmem:[%s12462_s7 + $0x108] sm:$0xff] %vm5765_vm1, %v10840_v23  ;;  %v7770_v20 = vpop.eup %7769  ;;  %v10852_v7 = vadd.f32 1.0, %v7768_v55  ;;  %v3695_v31 = vand.u32 2147483648, %v10825_v54  ;;  %vm3694_vm13 = vcmp.eq.f32.partialorder %v3693_v18, 8.507059e+37 }
 0x4bd   :  { %7771 = vpow2.f32 %v7253_v59  ;;  %7213 = vmatmul.msk.bf16.gmra.mxu2 %vm2697_vm0, %v2670_v35  ;;  %v4494_v53 = vpop.f32.mrf.mxu3  ;;  %v3677_v58 = vsel %vm3676_vm8, %v7766_v34, %v3673_v27  ;;  %v3685_v30 = vmul.f32 %v7770_v20, %v10825_v54  ;;  %vm3690_vm10 = vweird.f32 %v7770_v20  ;;  %v12624_v27 = vld [vmem:[#allocation38_spill] sm:$0xff] }
 0x4be   :  { %7773 = vrcp.f32 %v10852_v7  ;;  %v2551_v60 = vpop.f32.mrf.mxu1  ;;  %4718 = vrot.lane.b32.xlu1 %v4494_v53, %s7905_s12  ;;  %v3682_v12 = vsel %vm3679_vm9, %v3681_v3, %v3677_v58  ;;  %v4211_v35 = vmax.f32 %v10813_v5, 0.0  ;;  %v2385_v3 = vadd.f32 %v12624_v27, %v2216_v28  ;;  %vm3691_vm12 = vmor %vm3689_vm11, %vm3690_vm10 }
 0x4bf   :  { %5861 = vst.msk [vmem:[%s12462_s7 + $0xf0] sm:$0xff] %vm5830_vm7, %v3682_v12  ;;  %v3686_v51 = vsub.f32 1.0, %v3685_v30  ;;  %vm3704_vm15 = vweird.f32 %v10852_v7 }
 0x4c0   :  { %v2888_v34 = vpop.f32.mrf.mxu2 }
 0x4c1   :  { %v10868_v8 = vadd.f32 %v10810_v49, %v2888_v34  ;;  %v4330_v39 = vpop.permute.xlu1 %4329  ;;  %v3687_v55 = vmul.f32 %v7770_v20, %v3686_v51  ;;  %v2552_v51 = vadd.f32 %v2551_v60, %v12625_v57  ;;  %v4259_v34 = vpack.c.bf16 %v4212_v40, %v4211_v35  ;;  %v10894_v18 = vpop.permute.xlu0 %4994 }
 0x4c2   :  { %7301 = vmatmul.msk.bf16.gmra.mxu3 %vm2697_vm0, %v4330_v39  ;;  %v3696_v39 = vor.u32 1.1754944e-38, %v3695_v31  ;;  %v3710_v31 = vand.u32 2147483648, %v10852_v7 }
 0x4c3   :  { %12623 = vst [vmem:[#allocation27_spill] sm:$0xff] %v10868_v8  ;;  %v7772_v59 = vpop.eup %7771  ;;  %v7254_v53 = vmul.f32 -1.442695, %v10868_v8  ;;  %v3688_v58 = vadd.f32 %v7770_v20, %v3687_v55  ;;  %v2633_v60 = vmax.f32 %v2552_v51, 0.0 }
 0x4c4   :  { %5800 = vst.msk [vmem:[%s12462_s7 + $0x110] sm:$0xff] %vm5765_vm1, %v10868_v8  ;;  %v7774_v30 = vpop.eup %7773  ;;  %v10881_v12 = vadd.f32 1.0, %v7772_v59 }
 0x4c5   :  { %7775 = vpow2.f32 %v7254_v53  ;;  %v4497_v28 = vpop.f32.mrf.mxu3  ;;  %v3700_v27 = vmul.f32 %v7774_v30, %v10852_v7  ;;  %v3692_v23 = vsel %vm3691_vm12, %v7770_v20, %v3688_v58  ;;  %v3708_v20 = vand.u32 2147483647, %v10852_v7 }
 0x4c6   :  { %7777 = vrcp.f32 %v10881_v12  ;;  %v2553_v5 = vpop.f32.mrf.mxu1  ;;  %4343 = vrot.lane.b32.xlu1 %v4259_v34, %s7903_s28  ;;  %v3697_v54 = vsel %vm3694_vm13, %v3696_v39, %v3692_v23  ;;  %vm3705_vm14 = vweird.f32 %v7774_v30  ;;  %v12627_v39 = vld [vmem:[#allocation9_spill] sm:$0xff]  ;;  %vm3719_vm5 = vweird.f32 %v10881_v12 }
 0x4c7   :  { %v2554_v55 = vadd.f32 %v2553_v5, %v2385_v3  ;;  %v5157_v59 = vpop.f32.mrf.mxu0  ;;  %v3701_v15 = vsub.f32 1.0, %v3700_v27  ;;  %5862 = vst.msk [vmem:[%s12462_s7 + $0xf8] sm:$0xff] %vm5830_vm7, %v3697_v54  ;;  %vm3706_vm2 = vmor %vm3704_vm15, %vm3705_vm14  ;;  %vm3709_vm3 = vcmp.eq.f32.partialorder %v3708_v20, 8.507059e+37 }
 0x4c8   :  { %v2890_v40 = vpop.f32.mrf.mxu2  ;;  %5381 = vrot.lane.b32.xlu2 %v5157_v59, %s7905_s12 }
 0x4c9   :  { %v2634_v35 = vmax.f32 %v2554_v55, 0.0  ;;  %v10897_v5 = vadd.f32 %v10810_v49, %v2890_v40  ;;  %v3702_v23 = vmul.f32 %v7774_v30, %v3701_v15  ;;  %v12628_v15 = vld [vmem:[#allocation43_spill] sm:$0xff] }
 0x4ca   :  { %7340 = vmatmul.msk.bf16.gmra.mxu0 %vm2697_vm0, %v10837_v11  ;;  %v2052_v27 = vadd.f32 %v12628_v15, %v12627_v39  ;;  %v3711_v11 = vor.u32 1.1754944e-38, %v3710_v31 }
 0x4cb   :  { %12626 = vst [vmem:[#allocation15_spill] sm:$0xff] %v10897_v5  ;;  %v7776_v3 = vpop.eup %7775  ;;  %v2671_v53 = vpack.c.bf16 %v2634_v35, %v2633_v60  ;;  %v7255_v58 = vmul.f32 -1.442695, %v10897_v5  ;;  %v3703_v57 = vadd.f32 %v7774_v30, %v3702_v23  ;;  %v12629_v23 = vld [vmem:[#allocation10_spill] sm:$0xff] }
 0x4cc   :  { %5801 = vst.msk [vmem:[%s12462_s7 + $0x118] sm:$0xff] %vm5765_vm1, %v10897_v5  ;;  %v7778_v51 = vpop.eup %7777  ;;  %v10910_v54 = vadd.f32 1.0, %v7776_v3  ;;  %v2221_v3 = vadd.f32 %v12629_v23, %v2052_v27 }
 0x4cd   :  { %7779 = vpow2.f32 %v7255_v58  ;;  %7214 = vmatmul.msk.bf16.gmra.mxu2 %vm2697_vm0, %v2671_v53  ;;  %v4499_v55 = vpop.f32.mrf.mxu3  ;;  %v3707_v59 = vsel %vm3706_vm2, %v7774_v30, %v3703_v57  ;;  %v3715_v60 = vmul.f32 %v7778_v51, %v10881_v12  ;;  %vm3720_vm4 = vweird.f32 %v7778_v51 }
 0x4ce   :  { %7781 = vrcp.f32 %v10910_v54  ;;  %v2556_v40 = vpop.f32.mrf.mxu1  ;;  %5008 = vrot.lane.b32.xlu1 %v4259_v34, %s7904_s15  ;;  %v3712_v7 = vsel %vm3709_vm3, %v3711_v11, %v3707_v59  ;;  %v3725_v58 = vand.u32 2147483648, %v10881_v12  ;;  %v3723_v57 = vand.u32 2147483647, %v10881_v12  ;;  %v12631_v11 = vld [vmem:[#allocation41_spill] sm:$0xff]  ;;  %vm3721_vm6 = vmor %vm3719_vm5, %vm3720_vm4 }
 0x4cf   :  { %v5159_v35 = vpop.f32.mrf.mxu0  ;;  %5863 = vst.msk [vmem:[%s12462_s7 + $0x100] sm:$0xff] %vm5830_vm7, %v3712_v7  ;;  %v3716_v31 = vsub.f32 1.0, %v3715_v60  ;;  %v2390_v59 = vadd.f32 %v12631_v11, %v2221_v3  ;;  %v12632_v7 = vld [vmem:[#allocation42_spill] sm:$0xff]  ;;  %vm3734_vm10 = vweird.f32 %v10910_v54 }
 0x4d0   :  { %v2893_v53 = vpop.f32.mrf.mxu2  ;;  %4720 = vrot.lane.b32.xlu2 %v4497_v28, %s7905_s12  ;;  %5383 = vrot.lane.b32.xlu0 %v5159_v35, %s7905_s12  ;;  %v2557_v35 = vadd.f32 %v2556_v40, %v12632_v7  ;;  %vm3724_vm8 = vcmp.eq.f32.partialorder %v3723_v57, 8.507059e+37  ;;  %v3738_v40 = vand.u32 2147483647, %v10910_v54 }
 0x4d1   :  { %v10924_v30 = vadd.f32 %v10810_v49, %v2893_v53  ;;  %v4332_v20 = vpop.permute.xlu0 %4331  ;;  %v3717_v34 = vmul.f32 %v7778_v51, %v3716_v31 }
 0x4d2   :  { %7302 = vmatmul.msk.bf16.gmra.mxu3 %vm2697_vm0, %v4332_v20  ;;  %v3726_v20 = vor.u32 1.1754944e-38, %v3725_v58  ;;  %vm3739_vm12 = vcmp.eq.f32.partialorder %v3738_v40, 8.507059e+37  ;;  %v4997_v40 = vpop.permute.xlu2 %4996 }
 0x4d3   :  { %12630 = vst [vmem:[#allocation31_spill] sm:$0xff] %v10924_v30  ;;  %v7780_v39 = vpop.eup %7779  ;;  %v7256_v15 = vmul.f32 -1.442695, %v10924_v30  ;;  %v3718_v28 = vadd.f32 %v7778_v51, %v3717_v34 }
 0x4d4   :  { %5802 = vst.msk [vmem:[%s12462_s7 + $0x120] sm:$0xff] %vm5765_vm1, %v10924_v30  ;;  %v7782_v27 = vpop.eup %7781  ;;  %v10937_v60 = vadd.f32 1.0, %v7780_v39  ;;  %v2635_v39 = vmax.f32 %v2557_v35, 0.0  ;;  %v12634_v35 = vld [vmem:[#allocation12_spill] sm:$0xff] }
 0x4d5   :  { %7783 = vpow2.f32 %v7256_v15  ;;  %v10940_v31 = vpop.f32.mrf.mxu3  ;;  %v3730_v23 = vmul.f32 %v7782_v27, %v10910_v54  ;;  %v3722_v53 = vsel %vm3721_vm6, %v7778_v51, %v3718_v28  ;;  %v3740_v15 = vand.u32 2147483648, %v10910_v54 }
 0x4d6   :  { %7785 = vrcp.f32 %v10937_v60  ;;  %v2558_v34 = vpop.f32.mrf.mxu1  ;;  %v3727_v3 = vsel %vm3724_vm8, %v3726_v20, %v3722_v53  ;;  %vm3735_vm9 = vweird.f32 %v7782_v27  ;;  %v4213_v20 = vmax.f32 %v10868_v8, 0.0 }
 0x4d7   :  { %v2559_v12 = vadd.f32 %v2558_v34, %v2390_v59  ;;  %v5162_v26 = vpop.f32.mrf.mxu0  ;;  %v3731_v46 = vsub.f32 1.0, %v3730_v23  ;;  %5864 = vst.msk [vmem:[%s12462_s7 + $0x108] sm:$0xff] %vm5830_vm7, %v3727_v3  ;;  %v12635_v23 = vld [vmem:[#allocation46_spill] sm:$0xff]  ;;  %vm3736_vm11 = vmor %vm3734_vm10, %vm3735_vm9  ;;  %v3741_v34 = vor.u32 1.1754944e-38, %v3740_v15  ;;  %vm3749_vm14 = vweird.f32 %v10937_v60 }
 0x4d8   :  { %v2895_v11 = vpop.f32.mrf.mxu2  ;;  %4722 = vrot.lane.b32.xlu0 %v4499_v55, %s7905_s12  ;;  %5385 = vrot.lane.b32.xlu1 %v5162_v26, %s7905_s12  ;;  %v4214_v26 = vmax.f32 %v10897_v5, 0.0  ;;  %v2057_v53 = vadd.f32 %v12635_v23, %v12634_v35  ;;  %v3753_v23 = vand.u32 2147483647, %v10937_v60 }
 0x4d9   :  { %v2636_v51 = vmax.f32 %v2559_v12, 0.0  ;;  %v10953_v58 = vadd.f32 %v10810_v49, %v2895_v11  ;;  %v3732_v57 = vmul.f32 %v7782_v27, %v3731_v46 }
 0x4da   :  { %7341 = vmatmul.msk.bf16.gmra.mxu0 %vm2697_vm0, %v10894_v18  ;;  %v4260_v11 = vpack.c.bf16 %v4214_v26, %v4213_v20  ;;  %vm3754_vm2 = vcmp.eq.f32.partialorder %v3753_v23, 8.507059e+37 }
 0x4db   :  { %12633 = vst [vmem:[#allocation17_spill] sm:$0xff] %v10953_v58  ;;  %v7784_v55 = vpop.eup %7783  ;;  %v2672_v28 = vpack.c.bf16 %v2636_v51, %v2635_v39  ;;  %v7257_v59 = vmul.f32 -1.442695, %v10953_v58  ;;  %v3733_v7 = vadd.f32 %v7782_v27, %v3732_v57 }
 0x4dc   :  { %5803 = vst.msk [vmem:[%s12462_s7 + $0x128] sm:$0xff] %vm5765_vm1, %v10953_v58  ;;  %v7786_v46 = vpop.eup %7785  ;;  %v10967_v18 = vadd.f32 1.0, %v7784_v55  ;;  %v12636_v55 = vld [vmem:[#allocation14_spill] sm:$0xff] }
 0x4dd   :  { %7787 = vpow2.f32 %v7257_v59  ;;  %7215 = vmatmul.msk.bf16.gmra.mxu2 %vm2697_vm0, %v2672_v28  ;;  %v10971_v12 = vpop.f32.mrf.mxu3  ;;  %v3737_v3 = vsel %vm3736_vm11, %v7782_v27, %v3733_v7  ;;  %v3745_v39 = vmul.f32 %v7786_v46, %v10937_v60  ;;  %v2226_v28 = vadd.f32 %v12636_v55, %v2057_v53 }
 0x4de   :  { %7789 = vrcp.f32 %v10967_v18  ;;  %v2561_v54 = vpop.f32.mrf.mxu1  ;;  %v3742_v51 = vsel %vm3739_vm12, %v3741_v34, %v3737_v3  ;;  %v3755_v27 = vand.u32 2147483648, %v10937_v60  ;;  %vm3750_vm13 = vweird.f32 %v7786_v46 }
 0x4df   :  { %v5164_v57 = vpop.f32.mrf.mxu0  ;;  %5865 = vst.msk [vmem:[%s12462_s7 + $0x110] sm:$0xff] %vm5830_vm7, %v3742_v51  ;;  %v3746_v15 = vsub.f32 1.0, %v3745_v39  ;;  %v12638_v39 = vld [vmem:[#allocation44_spill] sm:$0xff]  ;;  %vm3751_vm15 = vmor %vm3749_vm14, %vm3750_vm13  ;;  %v3770_v23 = vand.u32 2147483648, %v10967_v18  ;;  %vm3764_vm4 = vweird.f32 %v10967_v18 }
 0x4e0   :  { %v2898_v59 = vpop.f32.mrf.mxu2  ;;  %5010 = vrot.lane.b32.xlu1 %v4260_v11, %s7904_s15  ;;  %5387 = vrot.lane.b32.xlu2 %v5164_v57, %s7905_s12  ;;  %v2395_v51 = vadd.f32 %v12638_v39, %v2226_v28  ;;  %v12641_v39 = vld [vmem:[#allocation16_spill] sm:$0xff] }
 0x4e1   :  { %v10984_v26 = vadd.f32 %v10810_v49, %v2898_v59  ;;  %v4334_v7 = vpop.permute.xlu1 %4333  ;;  %v3747_v35 = vmul.f32 %v7786_v46, %v3746_v15  ;;  %v12639_v15 = vld [vmem:[#allocation45_spill] sm:$0xff]  ;;  %v3756_v59 = vor.u32 1.1754944e-38, %v3755_v27 }
 0x4e2   :  { %7303 = vmatmul.msk.bf16.gmra.mxu3 %vm2697_vm0, %v4334_v7  ;;  %v2562_v55 = vadd.f32 %v2561_v54, %v12639_v15 }
 0x4e3   :  { %12637 = vst [vmem:[#allocation29_spill] sm:$0xff] %v10984_v26  ;;  %v7788_v20 = vpop.eup %7787  ;;  %v7258_v53 = vmul.f32 -1.442695, %v10984_v26  ;;  %v3748_v34 = vadd.f32 %v7786_v46, %v3747_v35 }
 0x4e4   :  { %5804 = vst.msk [vmem:[%s12462_s7 + $0x130] sm:$0xff] %vm5765_vm1, %v10984_v26  ;;  %v7790_v3 = vpop.eup %7789  ;;  %v10996_v57 = vadd.f32 1.0, %v7788_v20  ;;  %v2637_v28 = vmax.f32 %v2562_v55, 0.0  ;;  %v11011_v20 = vpop.permute.xlu2 %4998 }
 0x4e5   :  { %7791 = vpow2.f32 %v7258_v53  ;;  %v10999_v7 = vpop.f32.mrf.mxu3  ;;  %v3752_v5 = vsel %vm3751_vm15, %v7786_v46, %v3748_v34  ;;  %v3760_v8 = vmul.f32 %v7790_v3, %v10967_v18  ;;  %v3768_v46 = vand.u32 2147483647, %v10967_v18 }
 0x4e6   :  { %7793 = vrcp.f32 %v10996_v57  ;;  %v2563_v35 = vpop.f32.mrf.mxu1  ;;  %v3757_v60 = vsel %vm3754_vm2, %v3756_v59, %v3752_v5  ;;  %vm3765_vm3 = vweird.f32 %v7790_v3  ;;  %vm3779_vm9 = vweird.f32 %v10996_v57 }
 0x4e7   :  { %v2564_v29 = vadd.f32 %v2563_v35, %v2395_v51  ;;  %v5167_v37 = vpop.f32.mrf.mxu0  ;;  %5866 = vst.msk [vmem:[%s12462_s7 + $0x118] sm:$0xff] %vm5830_vm7, %v3757_v60  ;;  %v3761_v54 = vsub.f32 1.0, %v3760_v8  ;;  %v12642_v8 = vld [vmem:[#allocation49_spill] sm:$0xff]  ;;  %vm3766_vm5 = vmor %vm3764_vm4, %vm3765_vm3  ;;  %v3771_v35 = vor.u32 1.1754944e-38, %v3770_v23  ;;  %vm3769_vm6 = vcmp.eq.f32.partialorder %v3768_v46, 8.507059e+37 }
 0x4e8   :  { %v2900_v27 = vpop.f32.mrf.mxu2  ;;  %4345 = vrot.lane.b32.xlu2 %v4260_v11, %s7903_s28  ;;  %5389 = vrot.lane.b32.xlu0 %v5167_v37, %s7905_s12  ;;  %v2062_v51 = vadd.f32 %v12642_v8, %v12641_v39 }
 0x4e9   :  { %v2638_v5 = vmax.f32 %v2564_v29, 0.0  ;;  %v11014_v53 = vadd.f32 %v10810_v49, %v2900_v27  ;;  %v3762_v34 = vmul.f32 %v7790_v3, %v3761_v54 }
 0x4ea   :  { %7342 = vmatmul.msk.bf16.gmra.mxu0 %vm2697_vm0, %v4997_v40 }
 0x4eb   :  { %12640 = vst [vmem:[#allocation30_spill] sm:$0xff] %v11014_v53  ;;  %v7792_v11 = vpop.eup %7791  ;;  %v2673_v15 = vpack.c.bf16 %v2638_v5, %v2637_v28  ;;  %v7259_v37 = vmul.f32 -1.442695, %v11014_v53  ;;  %v3763_v29 = vadd.f32 %v7790_v3, %v3762_v34  ;;  %v12643_v5 = vld [vmem:[#allocation18_spill] sm:$0xff] }
 0x4ec   :  { %5805 = vst.msk [vmem:[%s12462_s7 + $0x138] sm:$0xff] %vm5765_vm1, %v11014_v53  ;;  %v7794_v55 = vpop.eup %7793  ;;  %v11026_v59 = vadd.f32 1.0, %v7792_v11  ;;  %v2231_v18 = vadd.f32 %v12643_v5, %v2062_v51  ;;  %v4336_v46 = vpop.permute.xlu2 %4335  ;;  %v3783_v11 = vand.u32 2147483647, %v10996_v57 }
 0x4ed   :  { %7795 = vpow2.f32 %v7259_v37  ;;  %7216 = vmatmul.msk.bf16.gmra.mxu2 %vm2697_vm0, %v2673_v15  ;;  %v11029_v40 = vpop.f32.mrf.mxu3  ;;  %v3767_v60 = vsel %vm3766_vm5, %v7790_v3, %v3763_v29  ;;  %v3775_v54 = vmul.f32 %v7794_v55, %v10996_v57  ;;  %v3785_v3 = vand.u32 2147483648, %v10996_v57  ;;  %v12645_v37 = vld [vmem:[#allocation47_spill] sm:$0xff] }
 0x4ee   :  { %7797 = vrcp.f32 %v11026_v59  ;;  %v2566_v28 = vpop.f32.mrf.mxu1  ;;  %v3772_v27 = vsel %vm3769_vm6, %v3771_v35, %v3767_v60  ;;  %vm3780_vm8 = vweird.f32 %v7794_v55  ;;  %v4216_v15 = vmax.f32 %v10953_v58, 0.0 }
 0x4ef   :  { %v5169_v34 = vpop.f32.mrf.mxu0  ;;  %5867 = vst.msk [vmem:[%s12462_s7 + $0x120] sm:$0xff] %vm5830_vm7, %v3772_v27  ;;  %v3776_v23 = vsub.f32 1.0, %v3775_v54  ;;  %v2400_v29 = vadd.f32 %v12645_v37, %v2231_v18  ;;  %v12646_v27 = vld [vmem:[#allocation48_spill] sm:$0xff]  ;;  %vm3781_vm10 = vmor %vm3779_vm9, %vm3780_vm8  ;;  %v3786_v18 = vor.u32 1.1754944e-38, %v3785_v3  ;;  %vm3784_vm11 = vcmp.eq.f32.partialorder %v3783_v11, 8.507059e+37 }
 0x4f0   :  { %v2903_v39 = vpop.f32.mrf.mxu2  ;;  %4724 = vrot.lane.b32.xlu2 %v10940_v31, %s7905_s12  ;;  %4726 = vrot.lane.b32.xlu0 %v10971_v12, %s7905_s12  ;;  %v2567_v5 = vadd.f32 %v2566_v28, %v12646_v27  ;;  %v3800_v11 = vand.u32 2147483648, %v11026_v59  ;;  %vm3794_vm13 = vweird.f32 %v11026_v59 }
 0x4f1   :  { %v11044_v8 = vadd.f32 %v10810_v49, %v2903_v39  ;;  %5391 = vrot.lane.b32.xlu1 %v5169_v34, %s7905_s12  ;;  %v3777_v51 = vmul.f32 %v7794_v55, %v3776_v23  ;;  %v4215_v34 = vmax.f32 %v10924_v30, 0.0 }
 0x4f2   :  { %7304 = vmatmul.msk.bf16.gmra.mxu3 %vm2697_vm0, %v4336_v46  ;;  %v2639_v3 = vmax.f32 %v2567_v5, 0.0 }
 0x4f3   :  { %12644 = vst [vmem:[#allocation19_spill] sm:$0xff] %v11044_v8  ;;  %v7796_v31 = vpop.eup %7795  ;;  %v7260_v12 = vmul.f32 -1.442695, %v11044_v8  ;;  %v3778_v35 = vadd.f32 %v7794_v55, %v3777_v51  ;;  %v4261_v57 = vpack.c.bf16 %v4216_v15, %v4215_v34 }
 0x4f4   :  { %5806 = vst.msk [vmem:[%s12462_s7 + $0x140] sm:$0xff] %vm5765_vm1, %v11044_v8  ;;  %v7798_v60 = vpop.eup %7797  ;;  %v11058_v54 = vadd.f32 1.0, %v7796_v31 }
 0x4f5   :  { %7799 = vpow2.f32 %v7260_v12  ;;  %v11062_v23 = vpop.f32.mrf.mxu3  ;;  %v3782_v39 = vsel %vm3781_vm10, %v7794_v55, %v3778_v35  ;;  %v3790_v46 = vmul.f32 %v7798_v60, %v11026_v59  ;;  %v3798_v55 = vand.u32 2147483647, %v11026_v59 }
 0x4f6   :  { %7801 = vrcp.f32 %v11058_v54  ;;  %v2568_v51 = vpop.f32.mrf.mxu1  ;;  %v3787_v37 = vsel %vm3784_vm11, %v3786_v18, %v3782_v39  ;;  %vm3795_vm12 = vweird.f32 %v7798_v60  ;;  %v12649_v39 = vld [vmem:[#allocation51_spill] sm:$0xff]  ;;  %vm3809_vm3 = vweird.f32 %v11058_v54 }
 0x4f7   :  { %v2569_v31 = vadd.f32 %v2568_v51, %v2400_v29  ;;  %v5172_v58 = vpop.f32.mrf.mxu0  ;;  %5868 = vst.msk [vmem:[%s12462_s7 + $0x128] sm:$0xff] %vm5830_vm7, %v3787_v37  ;;  %v3791_v28 = vsub.f32 1.0, %v3790_v46  ;;  %vm3796_vm14 = vmor %vm3794_vm13, %vm3795_vm12  ;;  %vm3799_vm15 = vcmp.eq.f32.partialorder %v3798_v55, 8.507059e+37 }
 0x4f8   :  { %v2905_v12 = vpop.f32.mrf.mxu2  ;;  %4347 = vrot.lane.b32.xlu0 %v4261_v57, %s7903_s28  ;;  %5393 = vrot.lane.b32.xlu2 %v5172_v58, %s7905_s12 }
 0x4f9   :  { %v2640_v15 = vmax.f32 %v2569_v31, 0.0  ;;  %v11075_v29 = vadd.f32 %v10810_v49, %v2905_v12  ;;  %4728 = vrot.lane.b32.xlu1 %v10999_v7, %s7905_s12  ;;  %v3792_v35 = vmul.f32 %v7798_v60, %v3791_v28  ;;  %v12648_v7 = vld [vmem:[#allocation20_spill] sm:$0xff] }
 0x4fa   :  { %7343 = vmatmul.msk.bf16.gmra.mxu0 %vm2697_vm0, %v11011_v20  ;;  %v2067_v46 = vadd.f32 %v12649_v39, %v12648_v7  ;;  %v3801_v20 = vor.u32 1.1754944e-38, %v3800_v11  ;;  %v12651_v39 = vld [vmem:[#allocation52_spill] sm:$0xff] }
 0x4fb   :  { %12647 = vst [vmem:[#allocation34_spill] sm:$0xff] %v11075_v29  ;;  %v7800_v27 = vpop.eup %7799  ;;  %v2674_v5 = vpack.c.bf16 %v2640_v15, %v2639_v3  ;;  %v7261_v58 = vmul.f32 -1.442695, %v11075_v29  ;;  %v3793_v34 = vadd.f32 %v7798_v60, %v3792_v35 }
 0x4fc   :  { %5807 = vst.msk [vmem:[%s12462_s7 + $0x148] sm:$0xff] %vm5765_vm1, %v11075_v29  ;;  %v7802_v18 = vpop.eup %7801  ;;  %v11090_v51 = vadd.f32 1.0, %v7800_v27  ;;  %v2236_v15 = vadd.f32 %v9563_v0, %v2067_v46  ;;  %v3813_v0 = vand.u32 2147483647, %v11058_v54 }
 0x4fd   :  { %7803 = vpow2.f32 %v7261_v58  ;;  %7217 = vmatmul.msk.bf16.gmra.mxu2 %vm2697_vm0, %v2674_v5  ;;  %v11093_v37 = vpop.f32.mrf.mxu3  ;;  %v3797_v31 = vsel %vm3796_vm14, %v7798_v60, %v3793_v34  ;;  %v3805_v28 = vmul.f32 %v7802_v18, %v11058_v54  ;;  %v3815_v60 = vand.u32 2147483648, %v11058_v54 }
 0x4fe   :  { %7805 = vrcp.f32 %v11090_v51  ;;  %v2571_v59 = vpop.f32.mrf.mxu1  ;;  %v3802_v3 = vsel %vm3799_vm15, %v3801_v20, %v3797_v31  ;;  %vm3810_vm2 = vweird.f32 %v7802_v18  ;;  %v4218_v58 = vmax.f32 %v11014_v53, 0.0 }
 0x4ff   :  { %v5174_v12 = vpop.f32.mrf.mxu0  ;;  %5869 = vst.msk [vmem:[%s12462_s7 + $0x130] sm:$0xff] %vm5830_vm7, %v3802_v3  ;;  %v3806_v11 = vsub.f32 1.0, %v3805_v28  ;;  %v2405_v46 = vadd.f32 %v12651_v39, %v2236_v15  ;;  %v4217_v31 = vmax.f32 %v10984_v26, 0.0  ;;  %vm3811_vm4 = vmor %vm3809_vm3, %vm3810_vm2  ;;  %v3816_v28 = vor.u32 1.1754944e-38, %v3815_v60  ;;  %v12652_v3 = vld [vmem:[#allocation50_spill] sm:$0xff] }
 0x500   :  { %v2908_v35 = vpop.f32.mrf.mxu2  ;;  %5012 = vrot.lane.b32.xlu0 %v4261_v57, %s7904_s15  ;;  %4730 = vrot.lane.b32.xlu2 %v11029_v40, %s7905_s12  ;;  %vm3814_vm5 = vcmp.eq.f32.partialorder %v3813_v0, 8.507059e+37  ;;  %vm3824_vm8 = vweird.f32 %v11090_v51 }
 0x501   :  { %v11107_v55 = vadd.f32 %v10810_v49, %v2908_v35  ;;  %v4338_v27 = vpop.permute.xlu0 %4337  ;;  %v3807_v5 = vmul.f32 %v7802_v18, %v3806_v11  ;;  %v2572_v11 = vadd.f32 %v2571_v59, %v12652_v3  ;;  %v5001_v59 = vpop.permute.xlu1 %5000 }
 0x502   :  { %7305 = vmatmul.msk.bf16.gmra.mxu3 %vm2697_vm0, %v4338_v27 }
 0x503   :  { %12650 = vst [vmem:[#allocation32_spill] sm:$0xff] %v11107_v55  ;;  %v7804_v34 = vpop.eup %7803  ;;  %v7262_v57 = vmul.f32 -1.442695, %v11107_v55  ;;  %v3808_v40 = vadd.f32 %v7802_v18, %v3807_v5  ;;  %v4262_v5 = vpack.c.bf16 %v4218_v58, %v4217_v31  ;;  %v2641_v60 = vmax.f32 %v2572_v11, 0.0 }
 0x504   :  { %5808 = vst.msk [vmem:[%s12462_s7 + $0x150] sm:$0xff] %vm5765_vm1, %v11107_v55  ;;  %v7806_v7 = vpop.eup %7805  ;;  %v11120_v20 = vadd.f32 1.0, %v7804_v34 }
 0x505   :  { %7807 = vpow2.f32 %v7262_v57  ;;  %v11124_v35 = vpop.f32.mrf.mxu3  ;;  %v3812_v27 = vsel %vm3811_vm4, %v7802_v18, %v3808_v40  ;;  %v3820_v53 = vmul.f32 %v7806_v7, %v11090_v51  ;;  %v3830_v18 = vand.u32 2147483648, %v11090_v51 }
 0x506   :  { %7809 = vrcp.f32 %v11120_v20  ;;  %v2573_v54 = vpop.f32.mrf.mxu1  ;;  %v3817_v39 = vsel %vm3814_vm5, %v3816_v28, %v3812_v27  ;;  %vm3825_vm6 = vweird.f32 %v7806_v7  ;;  %v2072_v40 = vadd.f32 %v9745_v43, %v9567_v48 }
 0x507   :  { %v2574_v15 = vadd.f32 %v2573_v54, %v2405_v46  ;;  %v5177_v34 = vpop.f32.mrf.mxu0  ;;  %v3821_v30 = vsub.f32 1.0, %v3820_v53  ;;  %5870 = vst.msk [vmem:[%s12462_s7 + $0x138] sm:$0xff] %vm5830_vm7, %v3817_v39  ;;  %vm3826_vm9 = vmor %vm3824_vm8, %vm3825_vm6  ;;  %v3831_v43 = vor.u32 1.1754944e-38, %v3830_v18  ;;  %vm3839_vm12 = vweird.f32 %v11120_v20 }
 0x508   :  { %v2910_v26 = vpop.f32.mrf.mxu2  ;;  %4349 = vrot.lane.b32.xlu2 %v4262_v5, %s7903_s28  ;;  %5395 = vrot.lane.b32.xlu0 %v5174_v12, %s7905_s12  ;;  %v3828_v12 = vand.u32 2147483647, %v11090_v51  ;;  %v2241_v54 = vadd.f32 %v10793_v9, %v2072_v40 }
 0x509   :  { %v2642_v58 = vmax.f32 %v2574_v15, 0.0  ;;  %v11136_v0 = vadd.f32 %v10810_v49, %v2910_v26  ;;  %5397 = vrot.lane.b32.xlu1 %v5177_v34, %s7905_s12  ;;  %v3822_v53 = vmul.f32 %v7806_v7, %v3821_v30  ;;  %v5003_v15 = vpop.permute.xlu0 %5002 }
 0x50a   :  { %7344 = vmatmul.msk.bf16.gmra.mxu0 %vm2697_vm0, %v5001_v59  ;;  %vm3829_vm10 = vcmp.eq.f32.partialorder %v3828_v12, 8.507059e+37 }
 0x50b   :  { %12653 = vst [vmem:[#allocation33_spill] sm:$0xff] %v11136_v0  ;;  %v7808_v57 = vpop.eup %7807  ;;  %v2675_v46 = vpack.c.bf16 %v2642_v58, %v2641_v60  ;;  %v7263_v31 = vmul.f32 -1.442695, %v11136_v0  ;;  %v3823_v26 = vadd.f32 %v7806_v7, %v3822_v53  ;;  %v3845_v60 = vand.u32 2147483648, %v11120_v20 }
 0x50c   :  { %5809 = vst.msk [vmem:[%s12462_s7 + $0x158] sm:$0xff] %vm5765_vm1, %v11136_v0  ;;  %v7810_v30 = vpop.eup %7809  ;;  %v11149_v28 = vadd.f32 1.0, %v7808_v57  ;;  %v3843_v58 = vand.u32 2147483647, %v11120_v20  ;;  %v2410_v53 = vadd.f32 %v10859_v42, %v2241_v54 }
 0x50d   :  { %7811 = vpow2.f32 %v7263_v31  ;;  %7218 = vmatmul.msk.bf16.gmra.mxu2 %vm2697_vm0, %v2675_v46  ;;  %v11153_v3 = vpop.f32.mrf.mxu3  ;;  %v3835_v48 = vmul.f32 %v7810_v30, %v11120_v20  ;;  %v3827_v27 = vsel %vm3826_vm9, %v7806_v7, %v3823_v26  ;;  %vm3840_vm11 = vweird.f32 %v7810_v30 }
 0x50e   :  { %7813 = vrcp.f32 %v11149_v28  ;;  %v2576_v11 = vpop.f32.mrf.mxu1  ;;  %v3832_v39 = vsel %vm3829_vm10, %v3831_v43, %v3827_v27  ;;  %v4219_v26 = vmax.f32 %v11044_v8, 0.0  ;;  %vm3841_vm13 = vmor %vm3839_vm12, %vm3840_vm11  ;;  %v3846_v42 = vor.u32 1.1754944e-38, %v3845_v60 }
 0x50f   :  { %v5179_v34 = vpop.f32.mrf.mxu0  ;;  %v3836_v51 = vsub.f32 1.0, %v3835_v48  ;;  %5871 = vst.msk [vmem:[%s12462_s7 + $0x140] sm:$0xff] %vm5830_vm7, %v3832_v39  ;;  %v2577_v31 = vadd.f32 %v2576_v11, %v9569_v21  ;;  %vm3844_vm14 = vcmp.eq.f32.partialorder %v3843_v58, 8.507059e+37  ;;  %vm3854_vm2 = vweird.f32 %v11149_v28 }
 0x510   :  { %v2913_v59 = vpop.f32.mrf.mxu2  ;;  %5014 = vrot.lane.b32.xlu2 %v4262_v5, %s7904_s15  ;;  %4732 = vrot.lane.b32.xlu0 %v11062_v23, %s7905_s12  ;;  %v4220_v5 = vmax.f32 %v11075_v29, 0.0 }
 0x511   :  { %v11168_v7 = vadd.f32 %v10810_v49, %v2913_v59  ;;  %v4340_v9 = vpop.permute.xlu1 %4339  ;;  %v3837_v18 = vmul.f32 %v7810_v30, %v3836_v51  ;;  %v2643_v11 = vmax.f32 %v2577_v31, 0.0 }
 0x512   :  { %7306 = vmatmul.msk.bf16.gmra.mxu3 %vm2697_vm0, %v4340_v9  ;;  %v11189_v20 = vpack.c.bf16 %v4220_v5, %v4219_v26  ;;  %v11199_v9 = vpop.permute.xlu0 %5004 }
 0x513   :  { %12654 = vst [vmem:[#allocation21_spill] sm:$0xff] %v11168_v7  ;;  %v7812_v23 = vpop.eup %7811  ;;  %v7264_v12 = vmul.f32 -1.442695, %v11168_v7  ;;  %v3838_v57 = vadd.f32 %v7810_v30, %v3837_v18 }
 0x514   :  { %5810 = vst.msk [vmem:[%s12462_s7 + $0x160] sm:$0xff] %vm5765_vm1, %v11168_v7  ;;  %v7814_v40 = vpop.eup %7813  ;;  %v11181_v46 = vadd.f32 1.0, %v7812_v23  ;;  %v3858_v23 = vand.u32 2147483647, %v11149_v28 }
 0x515   :  { %7815 = vpow2.f32 %v7264_v12  ;;  %v11185_v48 = vpop.f32.mrf.mxu3  ;;  %v3842_v43 = vsel %vm3841_vm13, %v7810_v30, %v3838_v57  ;;  %v3850_v27 = vmul.f32 %v7814_v40, %v11149_v28  ;;  %v3860_v30 = vand.u32 2147483648, %v11149_v28 }
 0x516   :  { %7817 = vrcp.f32 %v11181_v46  ;;  %v2578_v54 = vpop.f32.mrf.mxu1  ;;  %v3847_v51 = vsel %vm3844_vm14, %v3846_v42, %v3842_v43  ;;  %vm3855_vm15 = vweird.f32 %v7814_v40  ;;  %vm3859_vm4 = vcmp.eq.f32.partialorder %v3858_v23, 8.507059e+37 }
 0x517   :  { %v2579_v39 = vadd.f32 %v2578_v54, %v2410_v53  ;;  %v5182_v59 = vpop.f32.mrf.mxu0  ;;  %5872 = vst.msk [vmem:[%s12462_s7 + $0x148] sm:$0xff] %vm5830_vm7, %v3847_v51  ;;  %v3851_v21 = vsub.f32 1.0, %v3850_v27  ;;  %vm3856_vm3 = vmor %vm3854_vm2, %vm3855_vm15  ;;  %v3861_v42 = vor.u32 1.1754944e-38, %v3860_v30  ;;  %v11220_v54 = vpop.permute.xlu2 %5006  ;;  %vm3869_vm6 = vweird.f32 %v11181_v46 }
 0x518   :  { %v2915_v60 = vpop.f32.mrf.mxu2  ;;  %4351 = vrot.lane.b32.xlu0 %v11189_v20, %s7903_s28  ;;  %5399 = vrot.lane.b32.xlu2 %v5179_v34, %s7905_s12 }
 0x519   :  { %v2644_v18 = vmax.f32 %v2579_v39, 0.0  ;;  %v11202_v58 = vadd.f32 %v10810_v49, %v2915_v60  ;;  %v3852_v5 = vmul.f32 %v7814_v40, %v3851_v21 }
 0x51a   :  { %7345 = vmatmul.msk.bf16.gmra.mxu0 %vm2697_vm0, %v5003_v15 }
 0x51b   :  { %12655 = vst [vmem:[#allocation3_spill] sm:$0xff] %v11202_v58  ;;  %v7816_v53 = vpop.eup %7815  ;;  %v2676_v12 = vpack.c.bf16 %v2644_v18, %v2643_v11  ;;  %v7265_v57 = vmul.f32 -1.442695, %v11202_v58  ;;  %v3853_v34 = vadd.f32 %v7814_v40, %v3852_v5  ;;  %v3873_v18 = vand.u32 2147483647, %v11181_v46 }
 0x51c   :  { %5811 = vst.msk [vmem:[%s12462_s7 + $0x168] sm:$0xff] %vm5765_vm1, %v11202_v58  ;;  %v7818_v31 = vpop.eup %7817  ;;  %v11213_v26 = vadd.f32 1.0, %v7816_v53 }
 0x51d   :  { %7819 = vpow2.f32 %v7265_v57  ;;  %7219 = vmatmul.msk.bf16.gmra.mxu2 %vm2697_vm0, %v2676_v12  ;;  %v3857_v15 = vsel %vm3856_vm3, %v7814_v40, %v3853_v34  ;;  %v3865_v43 = vmul.f32 %v7818_v31, %v11181_v46  ;;  %v11218_v27 = vpop.f32.mrf.mxu3  ;;  %v3875_v40 = vand.u32 2147483648, %v11181_v46 }
 0x51e   :  { %7821 = vrcp.f32 %v11213_v26  ;;  %v3862_v28 = vsel %vm3859_vm4, %v3861_v42, %v3857_v15  ;;  %vm3870_vm5 = vweird.f32 %v7818_v31  ;;  %vm3874_vm9 = vcmp.eq.f32.partialorder %v3873_v18, 8.507059e+37 }
 0x51f   :  { %v5184_v51 = vpop.f32.mrf.mxu0  ;;  %v3866_v39 = vsub.f32 1.0, %v3865_v43  ;;  %5873 = vst.msk [vmem:[%s12462_s7 + $0x150] sm:$0xff] %vm5830_vm7, %v3862_v28  ;;  %vm3871_vm8 = vmor %vm3869_vm6, %vm3870_vm5  ;;  %v3876_v53 = vor.u32 1.1754944e-38, %v3875_v40  ;;  %v11263_v28 = vld [vmem:[%s12461_s4] ss:$0 sm:$0xff]  ;;  %vm3884_vm11 = vweird.f32 %v11213_v26 }
 0x520   :  { %v2918_v21 = vpop.f32.mrf.mxu2  ;;  %4734 = vrot.lane.b32.xlu2 %v11093_v37, %s7905_s12  ;;  %5401 = vrot.lane.b32.xlu0 %v5182_v59, %s7905_s12 }
 0x521   :  { %v11231_v11 = vadd.f32 %v10810_v49, %v2918_v21  ;;  %5403 = vrot.lane.b32.xlu1 %v5184_v51, %s7905_s12  ;;  %v4342_v60 = vpop.permute.xlu0 %4341  ;;  %v3867_v30 = vmul.f32 %v7818_v31, %v3866_v39 }
 0x522   :  { %7307 = vmatmul.msk.bf16.gmra.mxu3 %vm2697_vm0, %v4342_v60  ;;  %v11247_v15 = vpop.permute.xlu2 %5381 }
 0x523   :  { %12656 = vst [vmem:[#allocation4_spill] sm:$0xff] %v11231_v11  ;;  %v7820_v37 = vpop.eup %7819  ;;  %v7266_v59 = vmul.f32 -1.442695, %v11231_v11  ;;  %v3868_v49 = vadd.f32 %v7818_v31, %v3867_v30 }
 0x524   :  { %5812 = vst.msk [vmem:[%s12462_s7 + $0x170] sm:$0xff] %vm5765_vm1, %v11231_v11  ;;  %v7822_v5 = vpop.eup %7821  ;;  %v11243_v23 = vadd.f32 1.0, %v7820_v37  ;;  %v4221_v37 = vmax.f32 %v11107_v55, 0.0 }
 0x525   :  { %7823 = vpow2.f32 %v7266_v59  ;;  %v3880_v12 = vmul.f32 %v7822_v5, %v11213_v26  ;;  %v3872_v57 = vsel %vm3871_vm8, %v7818_v31, %v3868_v49  ;;  %v11253_v46 = vpop.f32.mrf.mxu3  ;;  %v3890_v31 = vand.u32 2147483648, %v11213_v26 }
 0x526   :  { %7825 = vrcp.f32 %v11243_v23  ;;  %v3877_v34 = vsel %vm3874_vm9, %v3876_v53, %v3872_v57  ;;  %vm3885_vm10 = vweird.f32 %v7822_v5  ;;  %vm3899_vm15 = vweird.f32 %v11243_v23 }
 0x527   :  { %v5187_v42 = vpop.f32.mrf.mxu0  ;;  %v3881_v43 = vsub.f32 1.0, %v3880_v12  ;;  %5874 = vst.msk [vmem:[%s12462_s7 + $0x158] sm:$0xff] %vm5830_vm7, %v3877_v34  ;;  %vm3886_vm12 = vmor %vm3884_vm11, %vm3885_vm10 }
 0x528   :  { %v2920_v51 = vpop.f32.mrf.mxu2  ;;  %5016 = vrot.lane.b32.xlu2 %v11189_v20, %s7904_s15  ;;  %4736 = vrot.lane.b32.xlu0 %v11124_v35, %s7905_s12  ;;  %v3888_v20 = vand.u32 2147483647, %v11213_v26  ;;  %v4222_v35 = vmax.f32 %v11136_v0, 0.0 }
 0x529   :  { %v11266_v39 = vadd.f32 %v11263_v28, %v2920_v51  ;;  %4738 = vrot.lane.b32.xlu1 %v11153_v3, %s7905_s12  ;;  %v3882_v21 = vmul.f32 %v7822_v5, %v3881_v43 }
 0x52a   :  { %7346 = vmatmul.msk.bf16.gmra.mxu0 %vm2697_vm0, %v11199_v9  ;;  %v3891_v9 = vor.u32 1.1754944e-38, %v3890_v31  ;;  %vm3889_vm13 = vcmp.eq.f32.partialorder %v3888_v20, 8.507059e+37  ;;  %v4264_v53 = vpack.c.bf16 %v4222_v35, %v4221_v37  ;;  %v11300_v20 = vpop.permute.xlu2 %4720 }
 0x52b   :  { %12657 = vst [vmem:[#allocation23_spill] sm:$0xff] %v11266_v39  ;;  %v7824_v40 = vpop.eup %7823  ;;  %v7267_v60 = vmul.f32 -1.442695, %v11266_v39  ;;  %v3883_v30 = vadd.f32 %v7822_v5, %v3882_v21  ;;  %v3903_v21 = vand.u32 2147483647, %v11243_v23 }
 0x52c   :  { %5813 = vst.msk [vmem:[%s12462_s7 + $0x178] sm:$0xff] %vm5765_vm1, %v11266_v39  ;;  %v7826_v3 = vpop.eup %7825  ;;  %v11281_v18 = vadd.f32 1.0, %v7824_v40 }
 0x52d   :  { %7827 = vpow2.f32 %v7267_v60  ;;  %v3887_v59 = vsel %vm3886_vm12, %v7822_v5, %v3883_v30  ;;  %v3895_v49 = vmul.f32 %v7826_v3, %v11243_v23  ;;  %v3905_v5 = vand.u32 2147483648, %v11243_v23  ;;  %v4529_v35 = vpop.f32.mrf.mxu3 }
 0x52e   :  { %7829 = vrcp.f32 %v11281_v18  ;;  %v3892_v12 = vsel %vm3889_vm13, %v3891_v9, %v3887_v59  ;;  %vm3900_vm14 = vweird.f32 %v7826_v3  ;;  %vm3904_vm3 = vcmp.eq.f32.partialorder %v3903_v21, 8.507059e+37 }
 0x52f   :  { %v5189_v57 = vpop.f32.mrf.mxu0  ;;  %5875 = vst.msk [vmem:[%s12462_s7 + $0x160] sm:$0xff] %vm5830_vm7, %v3892_v12  ;;  %v3896_v26 = vsub.f32 1.0, %v3895_v49  ;;  %vm3901_vm2 = vmor %vm3899_vm15, %vm3900_vm14  ;;  %v3906_v9 = vor.u32 1.1754944e-38, %v3905_v5  ;;  %v4224_v5 = vmax.f32 %v11202_v58, 0.0  ;;  %v3920_v21 = vand.u32 2147483648, %v11281_v18 }
 0x530   :  { %v2923_v34 = vpop.f32.mrf.mxu2  ;;  %v11290_v43 = vpop.permute.xlu1 %4718  ;;  %5018 = vrot.lane.b32.xlu0 %v4264_v53, %s7904_s15  ;;  %5405 = vrot.lane.b32.xlu2 %v5187_v42, %s7905_s12  ;;  %vm3914_vm5 = vweird.f32 %v11281_v18 }
 0x531   :  { %v11296_v51 = vadd.f32 %v11263_v28, %v2923_v34  ;;  %4353 = vrot.lane.b32.xlu1 %v4264_v53, %s7903_s28  ;;  %v3897_v31 = vmul.f32 %v7826_v3, %v3896_v26 }
 0x533   :  { %12658 = vst [vmem:[#allocation2_spill] sm:$0xff] %v11296_v51  ;;  %v7828_v40 = vpop.eup %7827  ;;  %v7268_v60 = vmul.f32 -1.442695, %v11296_v51  ;;  %v3898_v42 = vadd.f32 %v7826_v3, %v3897_v31 }
 0x534   :  { %5814 = vst.msk [vmem:[%s12462_s7 + $0x180] sm:$0xff] %vm5765_vm1, %v11296_v51  ;;  %v7830_v30 = vpop.eup %7829  ;;  %v11309_v37 = vadd.f32 1.0, %v7828_v40 }
 0x535   :  { %7831 = vpow2.f32 %v7268_v60  ;;  %v3902_v59 = vsel %vm3901_vm2, %v7826_v3, %v3898_v42  ;;  %v3910_v49 = vmul.f32 %v7830_v30, %v11281_v18  ;;  %vm3915_vm4 = vweird.f32 %v7830_v30  ;;  %v4717_v60 = vpop.permute.xlu0 %4716 }
 0x536   :  { %7833 = vrcp.f32 %v11309_v37  ;;  %v3907_v53 = vsel %vm3904_vm3, %v3906_v9, %v3902_v59  ;;  %vm3916_vm6 = vmor %vm3914_vm5, %vm3915_vm4  ;;  %vm3929_vm10 = vweird.f32 %v11309_v37 }
 0x537   :  { %v11313_v12 = vpop.f32.mrf.mxu0  ;;  %5876 = vst.msk [vmem:[%s12462_s7 + $0x168] sm:$0xff] %vm5830_vm7, %v3907_v53  ;;  %v3911_v23 = vsub.f32 1.0, %v3910_v49 }
 0x538   :  { %v2925_v26 = vpop.f32.mrf.mxu2  ;;  %v4344_v34 = vpop.permute.xlu1 %4343  ;;  %4740 = vrot.lane.b32.xlu2 %v11185_v48, %s7905_s12  ;;  %5407 = vrot.lane.b32.xlu0 %v5189_v57, %s7905_s12  ;;  %v3918_v48 = vand.u32 2147483647, %v11281_v18  ;;  %v3935_v18 = vand.u32 2147483648, %v11309_v37 }
 0x539   :  { %v11323_v3 = vadd.f32 %v11263_v28, %v2925_v26  ;;  %4742 = vrot.lane.b32.xlu1 %v11218_v27, %s7905_s12  ;;  %7308 = vmatmul.msk.bf16.gmra.mxu3 %vm2697_vm0, %v4344_v34  ;;  %v3912_v31 = vmul.f32 %v7830_v30, %v3911_v23  ;;  %v4223_v27 = vmax.f32 %v11168_v7, 0.0  ;;  %v3921_v26 = vor.u32 1.1754944e-38, %v3920_v21 }
 0x53a   :  { %v11330_v40 = vpop.permute.xlu2 %5387  ;;  %7347 = vmatmul.msk.bf16.gmra.mxu0 %vm2697_vm0, %v11220_v54  ;;  %v11344_v54 = vpop.f32.mrf.mxu3  ;;  %v4908_v34 = vadd.f32 %v4717_v60, %v9796_v50  ;;  %vm3919_vm8 = vcmp.eq.f32.partialorder %v3918_v48, 8.507059e+37 }
 0x53b   :  { %12659 = vst [vmem:[#allocation5_spill] sm:$0xff] %v11323_v3  ;;  %v7832_v57 = vpop.eup %7831  ;;  %v7269_v42 = vmul.f32 -1.442695, %v11323_v3  ;;  %v3913_v9 = vadd.f32 %v7830_v30, %v3912_v31  ;;  %v4265_v53 = vpack.c.bf16 %v4224_v5, %v4223_v27 }
 0x53c   :  { %5815 = vst.msk [vmem:[%s12462_s7 + $0x188] sm:$0xff] %vm5765_vm1, %v11323_v3  ;;  %v7834_v59 = vpop.eup %7833  ;;  %v11342_v49 = vadd.f32 1.0, %v7832_v57  ;;  %v5573_v5 = vadd.f32 %v11247_v15, %v4908_v34 }
 0x53d   :  { %7835 = vpow2.f32 %v7269_v42  ;;  %v3925_v23 = vmul.f32 %v7834_v59, %v11309_v37  ;;  %v3917_v58 = vsel %vm3916_vm6, %v7830_v30, %v3913_v9  ;;  %vm3930_vm9 = vweird.f32 %v7834_v59 }
 0x53e   :  { %7837 = vrcp.f32 %v11342_v49  ;;  %v3922_v7 = vsel %vm3919_vm8, %v3921_v26, %v3917_v58  ;;  %v3933_v58 = vand.u32 2147483647, %v11309_v37  ;;  %vm3931_vm11 = vmor %vm3929_vm10, %vm3930_vm9  ;;  %v3936_v42 = vor.u32 1.1754944e-38, %v3935_v18 }
 0x53f   :  { %v11351_v31 = vpop.f32.mrf.mxu0  ;;  %v3926_v57 = vsub.f32 1.0, %v3925_v23  ;;  %5877 = vst.msk [vmem:[%s12462_s7 + $0x170] sm:$0xff] %vm5830_vm7, %v3922_v7  ;;  %vm3944_vm14 = vweird.f32 %v11342_v49 }
 0x540   :  { %v2928_v0 = vpop.f32.mrf.mxu2  ;;  %4355 = vrot.lane.b32.xlu2 %v4265_v53, %s7903_s28  ;;  %4746 = vrot.lane.b32.xlu0 %v4529_v35, %s7905_s12  ;;  %vm3934_vm12 = vcmp.eq.f32.partialorder %v3933_v58, 8.507059e+37  ;;  %v5009_v26 = vpop.permute.xlu1 %5008 }
 0x541   :  { %v11361_v50 = vadd.f32 %v11263_v28, %v2928_v0  ;;  %5020 = vrot.lane.b32.xlu1 %v4265_v53, %s7904_s15  ;;  %v3927_v30 = vmul.f32 %v7834_v59, %v3926_v57  ;;  %v5637_v53 = vmax.f32 %v5573_v5, 0.0  ;;  %v3950_v5 = vand.u32 2147483648, %v11342_v49 }
 0x542   :  { %v4346_v21 = vpop.permute.xlu2 %4345  ;;  %v11377_v9 = vpop.f32.mrf.mxu3 }
 0x543   :  { %v7836_v35 = vpop.eup %7835  ;;  %v7270_v48 = vmul.f32 -1.442695, %v11361_v50  ;;  %5816 = vst.msk [vmem:[%s12462_s7 + $0x190] sm:$0xff] %vm5765_vm1, %v11361_v50  ;;  %v3928_v0 = vadd.f32 %v7834_v59, %v3927_v30  ;;  %v11383_v57 = vpop.permute.xlu0 %5383 }
 0x544   :  { %v7838_v7 = vpop.eup %7837  ;;  %v11373_v60 = vadd.f32 1.0, %v7836_v35 }
 0x545   :  { %7839 = vpow2.f32 %v7270_v48  ;;  %v3932_v15 = vsel %vm3931_vm11, %v7834_v59, %v3928_v0  ;;  %v3940_v27 = vmul.f32 %v7838_v7, %v11342_v49  ;;  %vm3945_vm13 = vweird.f32 %v7838_v7 }
 0x546   :  { %7841 = vrcp.f32 %v11373_v60  ;;  %v3937_v23 = vsel %vm3934_vm12, %v3936_v42, %v3932_v15  ;;  %v4225_v15 = vmax.f32 %v11231_v11, 0.0  ;;  %vm3946_vm15 = vmor %vm3944_vm14, %vm3945_vm13  ;;  %vm3959_vm4 = vweird.f32 %v11373_v60 }
 0x547   :  { %v5197_v34 = vpop.f32.mrf.mxu0  ;;  %5878 = vst.msk [vmem:[%s12462_s7 + $0x178] sm:$0xff] %vm5830_vm7, %v3937_v23  ;;  %v3941_v37 = vsub.f32 1.0, %v3940_v27 }
 0x548   :  { %v2930_v59 = vpop.f32.mrf.mxu2  ;;  %4744 = vrot.lane.b32.xlu2 %v11253_v46, %s7905_s12  ;;  %5959 = vrot.lane.b32.xlu0 %v5637_v53, %s7906_s10  ;;  %v3951_v53 = vor.u32 1.1754944e-38, %v3950_v5 }
 0x549   :  { %v11389_v18 = vadd.f32 %v11263_v28, %v2930_v59  ;;  %5409 = vrot.lane.b32.xlu1 %v11313_v12, %s7905_s12  ;;  %7309 = vmatmul.msk.bf16.gmra.mxu3 %vm2697_vm0, %v4346_v21  ;;  %v3942_v30 = vmul.f32 %v7838_v7, %v3941_v37  ;;  %v4226_v12 = vmax.f32 %v11266_v39, 0.0  ;;  %v3948_v21 = vand.u32 2147483647, %v11342_v49 }
 0x54a   :  { %v11394_v58 = vpop.permute.xlu2 %4724  ;;  %7348 = vmatmul.msk.bf16.gmra.mxu0 %vm2697_vm0, %v5009_v26  ;;  %v11412_v23 = vpop.permute.xlu1 %5385 }
 0x54b   :  { %12660 = vst [vmem:[#allocation37_spill] sm:$0xff] %v11389_v18  ;;  %v7840_v35 = vpop.eup %7839  ;;  %v7271_v46 = vmul.f32 -1.442695, %v11389_v18  ;;  %v3943_v42 = vadd.f32 %v7838_v7, %v3942_v30  ;;  %v4266_v37 = vpack.c.bf16 %v4226_v12, %v4225_v15  ;;  %vm3949_vm2 = vcmp.eq.f32.partialorder %v3948_v21, 8.507059e+37  ;;  %v11420_v39 = vpop.f32.mrf.mxu3 }
 0x54c   :  { %5817 = vst.msk [vmem:[%s12462_s7 + $0x198] sm:$0xff] %vm5765_vm1, %v11389_v18  ;;  %v7842_v48 = vpop.eup %7841  ;;  %v11406_v0 = vadd.f32 1.0, %v7840_v35 }
 0x54d   :  { %7843 = vpow2.f32 %v7271_v46  ;;  %v3955_v27 = vmul.f32 %v7842_v48, %v11373_v60  ;;  %v3947_v59 = vsel %vm3946_vm15, %v7838_v7, %v3943_v42  ;;  %v3965_v46 = vand.u32 2147483648, %v11373_v60 }
 0x54e   :  { %7845 = vrcp.f32 %v11406_v0  ;;  %v3952_v49 = vsel %vm3949_vm2, %v3951_v53, %v3947_v59  ;;  %vm3960_vm3 = vweird.f32 %v7842_v48  ;;  %vm3974_vm9 = vweird.f32 %v11406_v0 }
 0x54f   :  { %v11414_v26 = vpop.f32.mrf.mxu0  ;;  %v3956_v35 = vsub.f32 1.0, %v3955_v27  ;;  %5879 = vst.msk [vmem:[%s12462_s7 + $0x180] sm:$0xff] %vm5830_vm7, %v3952_v49  ;;  %vm3961_vm5 = vmor %vm3959_vm4, %vm3960_vm3  ;;  %v3966_v59 = vor.u32 1.1754944e-38, %v3965_v46 }
 0x550   :  { %v2933_v30 = vpop.f32.mrf.mxu2  ;;  %5411 = vrot.lane.b32.xlu2 %v11351_v31, %s7905_s12  ;;  %5413 = vrot.lane.b32.xlu0 %v5197_v34, %s7905_s12  ;;  %v3963_v31 = vand.u32 2147483647, %v11373_v60  ;;  %v4723_v34 = vpop.permute.xlu0 %4722  ;;  %v4909_v60 = vadd.f32 %v11290_v43, %v9839_v38  ;;  %v3978_v43 = vand.u32 2147483647, %v11406_v0 }
 0x551   :  { %v11423_v5 = vadd.f32 %v11263_v28, %v2933_v30  ;;  %4357 = vrot.lane.b32.xlu1 %v4266_v37, %s7903_s28  ;;  %v3957_v7 = vmul.f32 %v7842_v48, %v3956_v35 }
 0x552   :  { %v11431_v12 = vpop.permute.xlu2 %5393  ;;  %vm3964_vm6 = vcmp.eq.f32.partialorder %v3963_v31, 8.507059e+37  ;;  %v4228_v31 = vmax.f32 %v11323_v3, 0.0  ;;  %vm3979_vm11 = vcmp.eq.f32.partialorder %v3978_v43, 8.507059e+37 }
 0x553   :  { %12661 = vst [vmem:[#allocation6_spill] sm:$0xff] %v11423_v5  ;;  %v7844_v21 = vpop.eup %7843  ;;  %v7272_v42 = vmul.f32 -1.442695, %v11423_v5  ;;  %v3958_v15 = vadd.f32 %v7842_v48, %v3957_v7 }
 0x554   :  { %5818 = vst.msk [vmem:[%s12462_s7 + $0x1a0] sm:$0xff] %vm5765_vm1, %v11423_v5  ;;  %v7846_v27 = vpop.eup %7845  ;;  %v11440_v53 = vadd.f32 1.0, %v7844_v21 }
 0x555   :  { %7847 = vpow2.f32 %v7272_v42  ;;  %v3970_v35 = vmul.f32 %v7846_v27, %v11406_v0  ;;  %v3962_v30 = vsel %vm3961_vm5, %v7842_v48, %v3958_v15  ;;  %v5011_v48 = vpop.permute.xlu1 %5010  ;;  %v3980_v42 = vand.u32 2147483648, %v11406_v0 }
 0x556   :  { %7849 = vrcp.f32 %v11440_v53  ;;  %v3967_v49 = vsel %vm3964_vm6, %v3966_v59, %v3962_v30  ;;  %vm3975_vm8 = vweird.f32 %v7846_v27  ;;  %v11469_v59 = vpop.f32.mrf.mxu3  ;;  %v4910_v0 = vadd.f32 %v11300_v20, %v9891_v52 }
 0x557   :  { %v11444_v11 = vpop.f32.mrf.mxu0  ;;  %v3971_v29 = vsub.f32 1.0, %v3970_v35  ;;  %5880 = vst.msk [vmem:[%s12462_s7 + $0x188] sm:$0xff] %vm5830_vm7, %v3967_v49  ;;  %vm3976_vm10 = vmor %vm3974_vm9, %vm3975_vm8  ;;  %vm3989_vm13 = vweird.f32 %v11440_v53 }
 0x558   :  { %v2935_v46 = vpop.f32.mrf.mxu2  ;;  %5022 = vrot.lane.b32.xlu2 %v4266_v37, %s7904_s15  ;;  %4750 = vrot.lane.b32.xlu0 %v11377_v9, %s7905_s12  ;;  %v5574_v37 = vadd.f32 %v11383_v57, %v4909_v60  ;;  %v3981_v60 = vor.u32 1.1754944e-38, %v3980_v42  ;;  %v5575_v52 = vadd.f32 %v11412_v23, %v4910_v0  ;;  %v3993_v42 = vand.u32 2147483647, %v11440_v53 }
 0x559   :  { %v11456_v7 = vadd.f32 %v11263_v28, %v2935_v46  ;;  %4748 = vrot.lane.b32.xlu1 %v11344_v54, %s7905_s12  ;;  %v3972_v21 = vmul.f32 %v7846_v27, %v3971_v29  ;;  %v4227_v29 = vmax.f32 %v11296_v51, 0.0 }
 0x55a   :  { %v11462_v15 = vpop.permute.xlu2 %4730  ;;  %7349 = vmatmul.msk.bf16.gmra.mxu0 %vm2697_vm0, %v5011_v48  ;;  %v11465_v38 = vpop.permute.xlu0 %5389  ;;  %v4911_v48 = vadd.f32 %v4723_v34, %v9939_v45  ;;  %v5638_v55 = vmax.f32 %v5574_v37, 0.0  ;;  %v3995_v34 = vand.u32 2147483648, %v11440_v53  ;;  %vm3994_vm15 = vcmp.eq.f32.partialorder %v3993_v42, 8.507059e+37 }
 0x55b   :  { %12662 = vst [vmem:[#allocation35_spill] sm:$0xff] %v11456_v7  ;;  %v7848_v9 = vpop.eup %7847  ;;  %v7273_v54 = vmul.f32 -1.442695, %v11456_v7  ;;  %v3973_v49 = vadd.f32 %v7846_v27, %v3972_v21  ;;  %v4267_v57 = vpack.c.bf16 %v4228_v31, %v4227_v29 }
 0x55c   :  { %5819 = vst.msk [vmem:[%s12462_s7 + $0x1a8] sm:$0xff] %vm5765_vm1, %v11456_v7  ;;  %v7850_v35 = vpop.eup %7849  ;;  %v11478_v30 = vadd.f32 1.0, %v7848_v9  ;;  %v5576_v20 = vadd.f32 %v11330_v40, %v4911_v48  ;;  %v3996_v29 = vor.u32 1.1754944e-38, %v3995_v34 }
 0x55d   :  { %7851 = vpow2.f32 %v7273_v54  ;;  %v3985_v46 = vmul.f32 %v7850_v35, %v11440_v53  ;;  %v3977_v3 = vsel %vm3976_vm10, %v7846_v27, %v3973_v49  ;;  %vm3990_vm12 = vweird.f32 %v7850_v35 }
 0x55e   :  { %7853 = vrcp.f32 %v11478_v30  ;;  %v3982_v9 = vsel %vm3979_vm11, %v3981_v60, %v3977_v3  ;;  %vm3991_vm14 = vmor %vm3989_vm13, %vm3990_vm12  ;;  %v11515_v23 = vpop.f32.mrf.mxu3  ;;  %v5640_v60 = vmax.f32 %v5576_v20, 0.0  ;;  %vm4004_vm3 = vweird.f32 %v11478_v30 }
 0x55f   :  { %v11484_v51 = vpop.f32.mrf.mxu0  ;;  %v3986_v8 = vsub.f32 1.0, %v3985_v46  ;;  %5881 = vst.msk [vmem:[%s12462_s7 + $0x190] sm:$0xff] %vm5830_vm7, %v3982_v9 }
 0x560   :  { %v2938_v21 = vpop.f32.mrf.mxu2  ;;  %4359 = vrot.lane.b32.xlu2 %v4267_v57, %s7903_s28  ;;  %5024 = vrot.lane.b32.xlu0 %v4267_v57, %s7904_s15  ;;  %v5639_v57 = vmax.f32 %v5575_v52, 0.0  ;;  %v4008_v52 = vand.u32 2147483647, %v11478_v30 }
 0x561   :  { %v11495_v45 = vadd.f32 %v11263_v28, %v2938_v21  ;;  %5961 = vrot.lane.b32.xlu1 %v5638_v55, %s7906_s10  ;;  %v3987_v3 = vmul.f32 %v7850_v35, %v3986_v8  ;;  %v4010_v21 = vand.u32 2147483648, %v11478_v30 }
 0x562   :  { %v11501_v27 = vpop.permute.xlu2 %4349  ;;  %v11503_v31 = vpop.permute.xlu0 %4726  ;;  %vm4009_vm5 = vcmp.eq.f32.partialorder %v4008_v52, 8.507059e+37 }
 0x563   :  { %12663 = vst [vmem:[#allocation36_spill] sm:$0xff] %v11495_v45  ;;  %v7852_v43 = vpop.eup %7851  ;;  %v7274_v37 = vmul.f32 -1.442695, %v11495_v45  ;;  %v3988_v8 = vadd.f32 %v7850_v35, %v3987_v3 }
 0x564   :  { %5820 = vst.msk [vmem:[%s12462_s7 + $0x1b0] sm:$0xff] %vm5765_vm1, %v11495_v45  ;;  %v7854_v55 = vpop.eup %7853  ;;  %v11513_v40 = vadd.f32 1.0, %v7852_v43 }
 0x565   :  { %7855 = vpow2.f32 %v7274_v37  ;;  %v3992_v54 = vsel %vm3991_vm14, %v7850_v35, %v3988_v8  ;;  %v4000_v49 = vmul.f32 %v7854_v55, %v11478_v30  ;;  %vm4005_vm2 = vweird.f32 %v7854_v55 }
 0x566   :  { %7857 = vrcp.f32 %v11513_v40  ;;  %v3997_v48 = vsel %vm3994_vm15, %v3996_v29, %v3992_v54  ;;  %vm4006_vm4 = vmor %vm4004_vm3, %vm4005_vm2  ;;  %v4011_v54 = vor.u32 1.1754944e-38, %v4010_v21  ;;  %v4025_v30 = vand.u32 2147483648, %v11513_v40 }
 0x567   :  { %v11519_v46 = vpop.f32.mrf.mxu0  ;;  %v4001_v53 = vsub.f32 1.0, %v4000_v49  ;;  %5882 = vst.msk [vmem:[%s12462_s7 + $0x198] sm:$0xff] %vm5830_vm7, %v3997_v48  ;;  %v11548_v49 = vpop.f32.mrf.mxu3  ;;  %vm4019_vm8 = vweird.f32 %v11513_v40 }
 0x568   :  { %v2940_v9 = vpop.f32.mrf.mxu2  ;;  %5963 = vrot.lane.b32.xlu2 %v5639_v57, %s7906_s10  ;;  %5965 = vrot.lane.b32.xlu0 %v5640_v60, %s7906_s10 }
 0x569   :  { %v11528_v35 = vadd.f32 %v11263_v28, %v2940_v9  ;;  %5415 = vrot.lane.b32.xlu1 %v11414_v26, %s7905_s12  ;;  %v4002_v0 = vmul.f32 %v7854_v55, %v4001_v53 }
 0x56a   :  { %v11533_v3 = vpop.permute.xlu2 %5014  ;;  %v4348_v34 = vpop.permute.xlu0 %4347 }
 0x56b   :  { %12664 = vst [vmem:[#allocation7_spill] sm:$0xff] %v11528_v35  ;;  %v7856_v20 = vpop.eup %7855  ;;  %v7275_v42 = vmul.f32 -1.442695, %v11528_v35  ;;  %7310 = vmatmul.msk.bf16.gmra.mxu3 %vm2697_vm0, %v4348_v34  ;;  %v4003_v26 = vadd.f32 %v7854_v55, %v4002_v0  ;;  %v4230_v34 = vmax.f32 %v11389_v18, 0.0 }
 0x56c   :  { %5821 = vst.msk [vmem:[%s12462_s7 + $0x1b8] sm:$0xff] %vm5765_vm1, %v11528_v35  ;;  %v7858_v43 = vpop.eup %7857  ;;  %v11543_v37 = vadd.f32 1.0, %v7856_v20 }
 0x56d   :  { %7859 = vpow2.f32 %v7275_v42  ;;  %v4015_v8 = vmul.f32 %v7858_v43, %v11513_v40  ;;  %v4007_v29 = vsel %vm4006_vm4, %v7854_v55, %v4003_v26  ;;  %v5392_v55 = vpop.permute.xlu1 %5391  ;;  %vm4020_vm6 = vweird.f32 %v7858_v43 }
 0x56e   :  { %7861 = vrcp.f32 %v11543_v37  ;;  %v4012_v48 = vsel %vm4009_vm5, %v4011_v54, %v4007_v29  ;;  %vm4021_vm9 = vmor %vm4019_vm8, %vm4020_vm6  ;;  %v4026_v54 = vor.u32 1.1754944e-38, %v4025_v30  ;;  %vm4034_vm12 = vweird.f32 %v11543_v37 }
 0x56f   :  { %v11550_v57 = vpop.f32.mrf.mxu0  ;;  %v4016_v60 = vsub.f32 1.0, %v4015_v8  ;;  %5883 = vst.msk [vmem:[%s12462_s7 + $0x1a0] sm:$0xff] %vm5830_vm7, %v4012_v48  ;;  %v4229_v8 = vmax.f32 %v11361_v50, 0.0  ;;  %v4913_v48 = vadd.f32 %v11503_v31, %v10052_v16  ;;  %v4912_v16 = vadd.f32 %v11394_v58, %v10001_v44  ;;  %v11596_v31 = vpop.f32.mrf.mxu3 }
 0x570   :  { %v2943_v53 = vpop.f32.mrf.mxu2  ;;  %5417 = vrot.lane.b32.xlu2 %v11444_v11, %s7905_s12  ;;  %5419 = vrot.lane.b32.xlu0 %v11484_v51, %s7905_s12  ;;  %v4023_v11 = vand.u32 2147483647, %v11513_v40  ;;  %v4038_v58 = vand.u32 2147483647, %v11543_v37 }
 0x571   :  { %v11562_v9 = vadd.f32 %v11263_v28, %v2943_v53  ;;  %4752 = vrot.lane.b32.xlu1 %v11420_v39, %s7905_s12  ;;  %v4017_v0 = vmul.f32 %v7858_v43, %v4016_v60  ;;  %v4268_v53 = vpack.c.bf16 %v4230_v34, %v4229_v8  ;;  %v5578_v34 = vadd.f32 %v5392_v55, %v4913_v48 }
 0x572   :  { %v11567_v21 = vpop.permute.xlu2 %5399  ;;  %v5013_v51 = vpop.permute.xlu0 %5012  ;;  %vm4024_vm10 = vcmp.eq.f32.partialorder %v4023_v11, 8.507059e+37  ;;  %v5577_v8 = vadd.f32 %v11465_v38, %v4912_v16  ;;  %vm4039_vm14 = vcmp.eq.f32.partialorder %v4038_v58, 8.507059e+37 }
 0x573   :  { %v7860_v52 = vpop.eup %7859  ;;  %v7276_v20 = vmul.f32 -1.442695, %v11562_v9  ;;  %5822 = vst.msk [vmem:[%s12462_s7 + $0x1c0] sm:$0xff] %vm5765_vm1, %v11562_v9  ;;  %7350 = vmatmul.msk.bf16.gmra.mxu0 %vm2697_vm0, %v5013_v51  ;;  %v4018_v39 = vadd.f32 %v7858_v43, %v4017_v0  ;;  %v5642_v48 = vmax.f32 %v5578_v34, 0.0 }
 0x574   :  { %v7862_v42 = vpop.eup %7861  ;;  %v11578_v26 = vadd.f32 1.0, %v7860_v52 }
 0x575   :  { %7863 = vpow2.f32 %v7276_v20  ;;  %v4022_v29 = vsel %vm4021_vm9, %v7858_v43, %v4018_v39  ;;  %v4030_v60 = vmul.f32 %v7862_v42, %v11543_v37  ;;  %vm4035_vm11 = vweird.f32 %v7862_v42 }
 0x576   :  { %7865 = vrcp.f32 %v11578_v26  ;;  %v4027_v0 = vsel %vm4024_vm10, %v4026_v54, %v4022_v29  ;;  %v4729_v54 = vpop.permute.xlu1 %4728  ;;  %vm4036_vm13 = vmor %vm4034_vm12, %vm4035_vm11  ;;  %vm4049_vm2 = vweird.f32 %v11578_v26 }
 0x577   :  { %v11585_v40 = vpop.f32.mrf.mxu0  ;;  %5884 = vst.msk [vmem:[%s12462_s7 + $0x1a8] sm:$0xff] %vm5830_vm7, %v4027_v0  ;;  %v4031_v30 = vsub.f32 1.0, %v4030_v60  ;;  %v4914_v38 = vadd.f32 %v4729_v54, %v10082_v10  ;;  %v5641_v0 = vmax.f32 %v5577_v8, 0.0 }
 0x578   :  { %v2945_v51 = vpop.f32.mrf.mxu2  ;;  %4754 = vrot.lane.b32.xlu2 %v11469_v59, %s7905_s12  ;;  %4361 = vrot.lane.b32.xlu0 %v4268_v53, %s7903_s28  ;;  %v4040_v59 = vand.u32 2147483648, %v11543_v37 }
 0x579   :  { %v11599_v43 = vadd.f32 %v11263_v28, %v2945_v51  ;;  %5026 = vrot.lane.b32.xlu1 %v4268_v53, %s7904_s15  ;;  %v4032_v11 = vmul.f32 %v7862_v42, %v4031_v30 }
 0x57a   :  { %v11602_v52 = vpop.permute.xlu2 %4734  ;;  %v11604_v20 = vpop.permute.xlu0 %5395  ;;  %v4041_v53 = vor.u32 1.1754944e-38, %v4040_v59 }
 0x57b   :  { %v7864_v39 = vpop.eup %7863  ;;  %v7277_v44 = vmul.f32 -1.442695, %v11599_v43  ;;  %5823 = vst.msk [vmem:[%s12462_s7 + $0x1c8] sm:$0xff] %vm5765_vm1, %v11599_v43  ;;  %7311 = vmatmul.msk.bf16.gmra.mxu3 %vm2697_vm0, %v11501_v27  ;;  %v4033_v60 = vadd.f32 %v7862_v42, %v4032_v11  ;;  %v5579_v11 = vadd.f32 %v11431_v12, %v4914_v38  ;;  %v4055_v12 = vand.u32 2147483648, %v11578_v26 }
 0x57c   :  { %v7866_v55 = vpop.eup %7865  ;;  %v11617_v29 = vadd.f32 1.0, %v7864_v39  ;;  %v11641_v39 = vpop.f32.mrf.mxu3 }
 0x57d   :  { %7867 = vpow2.f32 %v7277_v44  ;;  %v4037_v27 = vsel %vm4036_vm13, %v7862_v42, %v4033_v60  ;;  %v4045_v51 = vmul.f32 %v7866_v55, %v11578_v26  ;;  %vm4050_vm15 = vweird.f32 %v7866_v55 }
 0x57e   :  { %7869 = vrcp.f32 %v11617_v29  ;;  %v4042_v37 = vsel %vm4039_vm14, %v4041_v53, %v4037_v27  ;;  %v4053_v60 = vand.u32 2147483647, %v11578_v26  ;;  %vm4051_vm3 = vmor %vm4049_vm2, %vm4050_vm15  ;;  %v4056_v27 = vor.u32 1.1754944e-38, %v4055_v12  ;;  %v11677_v12 = vpop.permute.xlu1 %5397 }
 0x57f   :  { %v11622_v30 = vpop.f32.mrf.mxu0  ;;  %5885 = vst.msk [vmem:[%s12462_s7 + $0x1b0] sm:$0xff] %vm5830_vm7, %v4042_v37  ;;  %v4046_v42 = vsub.f32 1.0, %v4045_v51  ;;  %v4070_v37 = vand.u32 2147483648, %v11617_v29  ;;  %vm4064_vm6 = vweird.f32 %v11617_v29 }
 0x580   :  { %v2948_v16 = vpop.f32.mrf.mxu2  ;;  %4756 = vrot.lane.b32.xlu0 %v11515_v23, %s7905_s12  ;;  %5969 = vrot.lane.b32.xlu2 %v5642_v48, %s7906_s10  ;;  %v5643_v48 = vmax.f32 %v5579_v11, 0.0  ;;  %vm4054_vm4 = vcmp.eq.f32.partialorder %v4053_v60, 8.507059e+37 }
 0x581   :  { %v11629_v10 = vadd.f32 %v11263_v28, %v2948_v16  ;;  %5967 = vrot.lane.b32.xlu1 %v5641_v0, %s7906_s10  ;;  %v4047_v54 = vmul.f32 %v7866_v55, %v4046_v42  ;;  %v4068_v16 = vand.u32 2147483647, %v11617_v29 }
 0x582   :  { %v11637_v34 = vpop.permute.xlu2 %5016  ;;  %v11639_v59 = vpop.permute.xlu0 %4732 }
 0x583   :  { %v7868_v23 = vpop.eup %7867  ;;  %v7278_v8 = vmul.f32 -1.442695, %v11629_v10  ;;  %5824 = vst.msk [vmem:[%s12462_s7 + $0x1d0] sm:$0xff] %vm5765_vm1, %v11629_v10  ;;  %7351 = vmatmul.msk.bf16.gmra.mxu0 %vm2697_vm0, %v11533_v3  ;;  %v4048_v53 = vadd.f32 %v7866_v55, %v4047_v54  ;;  %vm4069_vm9 = vcmp.eq.f32.partialorder %v4068_v16, 8.507059e+37 }
 0x584   :  { %v7870_v44 = vpop.eup %7869  ;;  %v11652_v58 = vadd.f32 1.0, %v7868_v23 }
 0x585   :  { %7871 = vpow2.f32 %v7278_v8  ;;  %v4060_v38 = vmul.f32 %v7870_v44, %v11617_v29  ;;  %v4052_v42 = vsel %vm4051_vm3, %v7866_v55, %v4048_v53  ;;  %vm4065_vm5 = vweird.f32 %v7870_v44 }
 0x586   :  { %7873 = vrcp.f32 %v11652_v58  ;;  %v4057_v23 = vsel %vm4054_vm4, %v4056_v27, %v4052_v42  ;;  %v4231_v53 = vmax.f32 %v11423_v5, 0.0  ;;  %vm4066_vm8 = vmor %vm4064_vm6, %vm4065_vm5  ;;  %v11691_v27 = vpop.f32.mrf.mxu3  ;;  %vm4079_vm11 = vweird.f32 %v11652_v58 }
 0x587   :  { %v11658_v0 = vpop.f32.mrf.mxu0  ;;  %v4061_v3 = vsub.f32 1.0, %v4060_v38  ;;  %5886 = vst.msk [vmem:[%s12462_s7 + $0x1b8] sm:$0xff] %vm5830_vm7, %v4057_v23  ;;  %v4916_v5 = vadd.f32 %v11639_v59, %v10135_v4 }
 0x588   :  { %v2950_v51 = vpop.f32.mrf.mxu2  ;;  %5971 = vrot.lane.b32.xlu0 %v5643_v48, %s7906_s10  ;;  %5423 = vrot.lane.b32.xlu2 %v11550_v57, %s7905_s12  ;;  %v4232_v57 = vmax.f32 %v11456_v7, 0.0 }
 0x589   :  { %v11666_v11 = vadd.f32 %v11263_v28, %v2950_v51  ;;  %5421 = vrot.lane.b32.xlu1 %v11519_v46, %s7905_s12  ;;  %v4062_v26 = vmul.f32 %v7870_v44, %v4061_v3  ;;  %v4071_v3 = vor.u32 1.1754944e-38, %v4070_v37 }
 0x58a   :  { %v11670_v8 = vpop.permute.xlu2 %5405  ;;  %v4352_v54 = vpop.permute.xlu0 %4351 }
 0x58b   :  { %v7872_v55 = vpop.eup %7871  ;;  %v7279_v60 = vmul.f32 -1.442695, %v11666_v11  ;;  %5825 = vst.msk [vmem:[%s12462_s7 + $0x1d8] sm:$0xff] %vm5765_vm1, %v11666_v11  ;;  %7312 = vmatmul.msk.bf16.gmra.mxu3 %vm2697_vm0, %v4352_v54  ;;  %v4063_v46 = vadd.f32 %v7870_v44, %v4062_v26  ;;  %v4269_v26 = vpack.c.bf16 %v4232_v57, %v4231_v53  ;;  %v4085_v57 = vand.u32 2147483648, %v11652_v58 }
 0x58c   :  { %v7874_v38 = vpop.eup %7873  ;;  %v11687_v48 = vadd.f32 1.0, %v7872_v55 }
 0x58d   :  { %7875 = vpow2.f32 %v7279_v60  ;;  %v4067_v51 = vsel %vm4066_vm8, %v7870_v44, %v4063_v46  ;;  %v4075_v42 = vmul.f32 %v7874_v38, %v11652_v58  ;;  %vm4080_vm10 = vweird.f32 %v7874_v38 }
 0x58e   :  { %7877 = vrcp.f32 %v11687_v48  ;;  %v4072_v23 = vsel %vm4069_vm9, %v4071_v3, %v4067_v51  ;;  %v4234_v46 = vmax.f32 %v11528_v35, 0.0  ;;  %vm4081_vm12 = vmor %vm4079_vm11, %vm4080_vm10  ;;  %v4086_v35 = vor.u32 1.1754944e-38, %v4085_v57 }
 0x58f   :  { %v11695_v29 = vpop.f32.mrf.mxu0  ;;  %5887 = vst.msk [vmem:[%s12462_s7 + $0x1c0] sm:$0xff] %vm5830_vm7, %v4072_v23  ;;  %v4076_v54 = vsub.f32 1.0, %v4075_v42  ;;  %vm4094_vm15 = vweird.f32 %v11687_v48 }
 0x590   :  { %v2953_v37 = vpop.f32.mrf.mxu2  ;;  %5425 = vrot.lane.b32.xlu0 %v11585_v40, %s7905_s12  ;;  %5028 = vrot.lane.b32.xlu2 %v4269_v26, %s7904_s15  ;;  %v4083_v40 = vand.u32 2147483647, %v11652_v58  ;;  %v11735_v58 = vpop.f32.mrf.mxu3 }
 0x591   :  { %v11705_v44 = vadd.f32 %v11263_v28, %v2953_v37  ;;  %4758 = vrot.lane.b32.xlu1 %v11548_v49, %s7905_s12  ;;  %v4077_v16 = vmul.f32 %v7874_v38, %v4076_v54  ;;  %v4233_v54 = vmax.f32 %v11495_v45, 0.0  ;;  %v4915_v45 = vadd.f32 %v11462_v15, %v10104_v24 }
 0x592   :  { %v11710_v55 = vpop.permute.xlu2 %4740  ;;  %v11712_v60 = vpop.permute.xlu0 %5401  ;;  %vm4084_vm13 = vcmp.eq.f32.partialorder %v4083_v40, 8.507059e+37  ;;  %v5581_v15 = vadd.f32 %v11677_v12, %v4916_v5  ;;  %v4098_v5 = vand.u32 2147483647, %v11687_v48 }
 0x593   :  { %v7876_v53 = vpop.eup %7875  ;;  %v7280_v3 = vmul.f32 -1.442695, %v11705_v44  ;;  %5826 = vst.msk [vmem:[%s12462_s7 + $0x1e0] sm:$0xff] %vm5765_vm1, %v11705_v44  ;;  %v11722_v49 = vpop.permute.xlu1 %5403  ;;  %7352 = vmatmul.msk.bf16.gmra.mxu0 %vm2697_vm0, %v11637_v34  ;;  %v4078_v51 = vadd.f32 %v7874_v38, %v4077_v16  ;;  %v4270_v34 = vpack.c.bf16 %v4234_v46, %v4233_v54  ;;  %v5580_v24 = vadd.f32 %v11604_v20, %v4915_v45 }
 0x594   :  { %v7878_v42 = vpop.eup %7877  ;;  %v11727_v23 = vadd.f32 1.0, %v7876_v53  ;;  %v5645_v40 = vmax.f32 %v5581_v15, 0.0  ;;  %vm4099_vm3 = vcmp.eq.f32.partialorder %v4098_v5, 8.507059e+37 }
 0x595   :  { %7879 = vpow2.f32 %v7280_v3  ;;  %v4082_v37 = vsel %vm4081_vm12, %v7874_v38, %v4078_v51  ;;  %v4090_v7 = vmul.f32 %v7878_v42, %v11687_v48  ;;  %v4100_v38 = vand.u32 2147483648, %v11687_v48 }
 0x596   :  { %7881 = vrcp.f32 %v11727_v23  ;;  %v4087_v16 = vsel %vm4084_vm13, %v4086_v35, %v4082_v37  ;;  %vm4095_vm14 = vweird.f32 %v7878_v42  ;;  %v5644_v51 = vmax.f32 %v5580_v24, 0.0 }
 0x597   :  { %v4091_v53 = vsub.f32 1.0, %v4090_v7  ;;  %5888 = vst.msk [vmem:[%s12462_s7 + $0x1c8] sm:$0xff] %vm5830_vm7, %v4087_v16  ;;  %v11746_v4 = vpop.f32.mrf.mxu0  ;;  %vm4096_vm2 = vmor %vm4094_vm15, %vm4095_vm14  ;;  %v4101_v3 = vor.u32 1.1754944e-38, %v4100_v38  ;;  %v4113_v24 = vand.u32 2147483647, %v11727_v23  ;;  %vm4109_vm5 = vweird.f32 %v11727_v23 }
 0x598   :  { %v2955_v18 = vpop.f32.mrf.mxu2  ;;  %4760 = vrot.lane.b32.xlu0 %v11596_v31, %s7905_s12  ;;  %4365 = vrot.lane.b32.xlu2 %v4270_v34, %s7903_s28 }
 0x599   :  { %v11749_v59 = vadd.f32 %v11263_v28, %v2955_v18  ;;  %4363 = vrot.lane.b32.xlu1 %v4269_v26, %s7903_s28  ;;  %v4092_v7 = vmul.f32 %v7878_v42, %v4091_v53  ;;  %v4917_v26 = vadd.f32 %v11602_v52, %v10159_v62  ;;  %v4115_v53 = vand.u32 2147483648, %v11727_v23  ;;  %v7901_v62 = vld [vmem:[%s12461_s4] ss:$0 sm:$0xff] }
 0x59a   :  { %v11754_v35 = vpop.permute.xlu2 %4355  ;;  %v11756_v31 = vpop.permute.xlu0 %4736  ;;  %vm4114_vm8 = vcmp.eq.f32.partialorder %v4113_v24, 8.507059e+37 }
 0x59b   :  { %v7880_v57 = vpop.eup %7879  ;;  %v7281_v46 = vmul.f32 -1.442695, %v11749_v59  ;;  %5827 = vst.msk [vmem:[%s12462_s7 + $0x1e8] sm:$0xff] %vm5765_vm1, %v11749_v59  ;;  %v11765_v28 = vpop.permute.xlu1 %4738  ;;  %v4093_v18 = vadd.f32 %v7878_v42, %v4092_v7 }
 0x59c   :  { %v7882_v45 = vpop.eup %7881  ;;  %v11768_v20 = vadd.f32 1.0, %v7880_v57  ;;  %v11778_v7 = vpop.f32.mrf.mxu3 }
 0x59d   :  { %7883 = vpow2.f32 %v7281_v46  ;;  %v4105_v12 = vmul.f32 %v7882_v45, %v11727_v23  ;;  %v4097_v37 = vsel %vm4096_vm2, %v7878_v42, %v4093_v18  ;;  %vm4110_vm4 = vweird.f32 %v7882_v45 }
 0x59e   :  { %7885 = vrcp.f32 %v11768_v20  ;;  %v4102_v48 = vsel %vm4099_vm3, %v4101_v3, %v4097_v37  ;;  %vm4111_vm6 = vmor %vm4109_vm5, %vm4110_vm4  ;;  %vm4124_vm10 = vweird.f32 %v11768_v20  ;;  %vm6151_vm2 = vcmask 425120  }
 0x59f   :  { %v4106_v54 = vsub.f32 1.0, %v4105_v12  ;;  %5889 = vst.msk [vmem:[%s12462_s7 + $0x1d0] sm:$0xff] %vm5830_vm7, %v4102_v48  ;;  %v11794_v46 = vpop.f32.mrf.mxu0  ;;  %v4130_v48 = vand.u32 2147483648, %v11768_v20 }
 0x5a0   :  { %v2958_v16 = vpop.f32.mrf.mxu2  ;;  %5030 = vrot.lane.b32.xlu0 %v4270_v34, %s7904_s15  ;;  %5975 = vrot.lane.b32.xlu2 %v5645_v40, %s7906_s10  ;;  %v5582_v34 = vadd.f32 %v11567_v21, %v4917_v26  ;;  %v4116_v40 = vor.u32 1.1754944e-38, %v4115_v53 }
 0x5a1   :  { %v11783_v52 = vadd.f32 %v7901_v62, %v2958_v16  ;;  %5973 = vrot.lane.b32.xlu1 %v5644_v51, %s7906_s10  ;;  %v4107_v42 = vmul.f32 %v7882_v45, %v4106_v54 }
 0x5a2   :  { %v11792_v15 = vpop.permute.xlu2 %4744  ;;  %v5019_v38 = vpop.permute.xlu0 %5018  ;;  %v5646_v54 = vmax.f32 %v5582_v34, 0.0  ;;  %v4128_v34 = vand.u32 2147483647, %v11768_v20 }
 0x5a3   :  { %v7884_v57 = vpop.eup %7883  ;;  %v7282_v18 = vmul.f32 -1.442695, %v11783_v52  ;;  %5828 = vst.msk [vmem:[%s12462_s7 + $0x1f0] sm:$0xff] %vm5765_vm1, %v11783_v52  ;;  %v4354_v5 = vpop.permute.xlu1 %4353  ;;  %7353 = vmatmul.msk.bf16.gmra.mxu0 %vm2697_vm0, %v5019_v38  ;;  %v4108_v12 = vadd.f32 %v7882_v45, %v4107_v42 }
 0x5a4   :  { %v7886_v21 = vpop.eup %7885  ;;  %v11804_v26 = vadd.f32 1.0, %v7884_v57  ;;  %7313 = vmatmul.msk.bf16.gmra.mxu3 %vm2697_vm0, %v4354_v5  ;;  %v11827_v57 = vpop.f32.mrf.mxu3  ;;  %vm4129_vm12 = vcmp.eq.f32.partialorder %v4128_v34, 8.507059e+37 }
 0x5a5   :  { %7887 = vpow2.f32 %v7282_v18  ;;  %v4112_v3 = vsel %vm4111_vm6, %v7882_v45, %v4108_v12  ;;  %v4120_v51 = vmul.f32 %v7886_v21, %v11768_v20  ;;  %vm4125_vm9 = vweird.f32 %v7886_v21 }
 0x5a6   :  { %7889 = vrcp.f32 %v11804_v26  ;;  %v4117_v37 = vsel %vm4114_vm8, %v4116_v40, %v4112_v3  ;;  %vm4126_vm11 = vmor %vm4124_vm10, %vm4125_vm9  ;;  %v4131_v3 = vor.u32 1.1754944e-38, %v4130_v48  ;;  %v4236_v48 = vmax.f32 %v11599_v43, 0.0 }
 0x5a7   :  { %5890 = vst.msk [vmem:[%s12462_s7 + $0x1d8] sm:$0xff] %vm5830_vm7, %v4117_v37  ;;  %v4121_v23 = vsub.f32 1.0, %v4120_v51  ;;  %v11840_v12 = vpop.f32.mrf.mxu0  ;;  %vm4139_vm13 = vweird.f32 %v11804_v26 }
 0x5a8   :  { %v2960_v16 = vpop.f32.mrf.mxu2  ;;  %5977 = vrot.lane.b32.xlu0 %v5646_v54, %s7906_s10  ;;  %5429 = vrot.lane.b32.xlu2 %v11658_v0, %s7905_s12 }
 0x5a9   :  { %v11817_v45 = vadd.f32 %v7901_v62, %v2960_v16  ;;  %5427 = vrot.lane.b32.xlu1 %v11622_v30, %s7905_s12  ;;  %v4122_v53 = vmul.f32 %v7886_v21, %v4121_v23 }
 0x5aa   :  { %v11822_v42 = vpop.permute.xlu2 %5411  ;;  %v11824_v24 = vpop.permute.xlu0 %5407 }
 0x5ab   :  { %v7888_v38 = vpop.eup %7887  ;;  %v7283_v0 = vmul.f32 -1.442695, %v11817_v45  ;;  %5829 = vst.msk [vmem:[%s12462_s7 + $0x1f8] sm:$0xff] %vm5765_vm1, %v11817_v45  ;;  %v11835_v30 = vpop.permute.xlu1 %4742  ;;  %v4123_v62 = vadd.f32 %v7886_v21, %v4122_v53 }
 0x5ac   :  { %v7890_v18 = vpop.eup %7889  ;;  %v11838_v5 = vadd.f32 1.0, %v7888_v38 }
 0x5ad   :  { %7891 = vpow2.f32 %v7283_v0  ;;  %v4127_v40 = vsel %vm4126_vm11, %v7886_v21, %v4123_v62  ;;  %v4135_v51 = vmul.f32 %v7890_v18, %v11804_v26  ;;  %vm4140_vm1 = vweird.f32 %v7890_v18 }
 0x5ae   :  { %7893 = vrcp.f32 %v11838_v5  ;;  %v4132_v54 = vsel %vm4129_vm12, %v4131_v3, %v4127_v40  ;;  %v4145_v21 = vand.u32 2147483648, %v11804_v26  ;;  %vm4141_vm14 = vmor %vm4139_vm13, %vm4140_vm1  ;;  %v4235_v62 = vmax.f32 %v11562_v9, 0.0 }
 0x5af   :  { %v4136_v37 = vsub.f32 1.0, %v4135_v51  ;;  %5891 = vst.msk [vmem:[%s12462_s7 + $0x1e0] sm:$0xff] %vm5830_vm7, %v4132_v54  ;;  %v11874_v54 = vpop.f32.mrf.mxu0  ;;  %vm4154_vm4 = vweird.f32 %v11838_v5 }
 0x5b0   :  { %5431 = vrot.lane.b32.xlu0 %v11695_v29, %s7905_s12  ;;  %4764 = vrot.lane.b32.xlu2 %v11691_v27, %s7905_s12  ;;  %v4143_v29 = vand.u32 2147483647, %v11804_v26  ;;  %v4146_v51 = vor.u32 1.1754944e-38, %v4145_v21  ;;  %v4919_v26 = vadd.f32 %v11765_v28, %v10212_v32  ;;  %v4158_v28 = vand.u32 2147483647, %v11838_v5 }
 0x5b1   :  { %4762 = vrot.lane.b32.xlu1 %v11641_v39, %s7905_s12  ;;  %v4137_v20 = vmul.f32 %v7890_v18, %v4136_v37  ;;  %v11867_v39 = vpop.f32.mrf.mxu3 }
 0x5b2   :  { %v11855_v23 = vpop.permute.xlu2 %5022  ;;  %v11857_v16 = vpop.permute.xlu0 %4746  ;;  %vm4144_vm15 = vcmp.eq.f32.partialorder %v4143_v29, 8.507059e+37  ;;  %v5584_v21 = vadd.f32 %v11722_v49, %v4919_v26  ;;  %vm4159_vm6 = vcmp.eq.f32.partialorder %v4158_v28, 8.507059e+37 }
 0x5b3   :  { %v7892_v53 = vpop.eup %7891  ;;  %v5021_v27 = vpop.permute.xlu1 %5020  ;;  %v4138_v34 = vadd.f32 %v7890_v18, %v4137_v20 }
 0x5b4   :  { %v7894_v38 = vpop.eup %7893  ;;  %v11862_v0 = vadd.f32 1.0, %v7892_v53  ;;  %7314 = vmatmul.msk.bf16.gmra.mxu3 %vm2697_vm0, %v11754_v35  ;;  %7354 = vmatmul.msk.bf16.gmra.mxu0 %vm2697_vm0, %v5021_v27  ;;  %v4271_v35 = vpack.c.bf16 %v4236_v48, %v4235_v62  ;;  %v4920_v62 = vadd.f32 %v11710_v55, %v10242_v33 }
 0x5b5   :  { %v4150_v40 = vmul.f32 %v7894_v38, %v11838_v5  ;;  %v4142_v3 = vsel %vm4141_vm14, %v7890_v18, %v4138_v34  ;;  %v4160_v18 = vand.u32 2147483648, %v11838_v5  ;;  %vm4155_vm3 = vweird.f32 %v7894_v38 }
 0x5b6   :  { %7895 = vrcp.f32 %v11862_v0  ;;  %v4147_v20 = vsel %vm4144_vm15, %v4146_v51, %v4142_v3  ;;  %vm4156_vm5 = vmor %vm4154_vm4, %vm4155_vm3  ;;  %v4918_v51 = vadd.f32 %v11756_v31, %v10189_v2  ;;  %v4175_v33 = vand.u32 2147483648, %v11862_v0 }
 0x5b7   :  { %v4151_v37 = vsub.f32 1.0, %v4150_v40  ;;  %5892 = vst.msk [vmem:[%s12462_s7 + $0x1e8] sm:$0xff] %vm5830_vm7, %v4147_v20  ;;  %v4161_v48 = vor.u32 1.1754944e-38, %v4160_v18  ;;  %v5648_v40 = vmax.f32 %v5584_v21, 0.0  ;;  %v11912_v55 = vpop.f32.mrf.mxu0  ;;  %v4173_v31 = vand.u32 2147483647, %v11862_v0 }
 0x5b8   :  { %4766 = vrot.lane.b32.xlu0 %v11735_v58, %s7905_s12  ;;  %4768 = vrot.lane.b32.xlu2 %v11778_v7, %s7905_s12  ;;  %v5583_v18 = vadd.f32 %v11712_v60, %v4918_v51  ;;  %vm4169_vm9 = vweird.f32 %v11862_v0 }
 0x5b9   :  { %4367 = vrot.lane.b32.xlu1 %v4271_v35, %s7903_s28  ;;  %v4152_v32 = vmul.f32 %v7894_v38, %v4151_v37  ;;  %v11902_v26 = vpop.f32.mrf.mxu3  ;;  %vm4174_vm11 = vcmp.eq.f32.partialorder %v4173_v31, 8.507059e+37 }
 0x5ba   :  { %v11888_v58 = vpop.permute.xlu2 %4359  ;;  %v5960_v29 = vpop.permute.xlu0 %5959  ;;  %v5647_v21 = vmax.f32 %v5583_v18, 0.0 }
 0x5bb   :  { %v11890_v7 = vpop.permute.xlu1 %5409  ;;  %6152 = vst.msk [vmem:[%s12462_s7] sm:$0xff] %vm6151_vm2, %v5960_v29  ;;  %v4153_v53 = vadd.f32 %v7894_v38, %v4152_v32 }
 0x5bc   :  { %v7896_v27 = vpop.eup %7895 }
 0x5bd   :  { %v4157_v34 = vsel %vm4156_vm5, %v7894_v38, %v4153_v53  ;;  %v4165_v49 = vmul.f32 %v7896_v27, %v11862_v0  ;;  %vm4170_vm8 = vweird.f32 %v7896_v27  ;;  %v5585_v38 = vadd.f32 %v11670_v8, %v4920_v62 }
 0x5be   :  { %v4162_v3 = vsel %vm4159_vm6, %v4161_v48, %v4157_v34  ;;  %vm4171_vm10 = vmor %vm4169_vm9, %vm4170_vm8  ;;  %v4176_v8 = vor.u32 1.1754944e-38, %v4175_v33  ;;  %v4238_v53 = vmax.f32 %v11666_v11, 0.0  ;;  %v4237_v34 = vmax.f32 %v11629_v10, 0.0 }
 0x5bf   :  { %5893 = vst.msk [vmem:[%s12462_s7 + $0x1f0] sm:$0xff] %vm5830_vm7, %v4162_v3  ;;  %v4166_v5 = vsub.f32 1.0, %v4165_v49  ;;  %v5649_v28 = vmax.f32 %v5585_v38, 0.0  ;;  %v4921_v33 = vadd.f32 %v11835_v30, %v10264_v47  ;;  %v4923_v47 = vadd.f32 %v11857_v16, %v10319_v22 }
 0x5c0   :  { %4770 = vrot.lane.b32.xlu0 %v11827_v57, %s7905_s12  ;;  %5981 = vrot.lane.b32.xlu2 %v5648_v40, %s7906_s10  ;;  %v4272_v49 = vpack.c.bf16 %v4238_v53, %v4237_v34  ;;  %v4240_v40 = vmax.f32 %v11749_v59, 0.0  ;;  %v4242_v34 = vmax.f32 %v11817_v45, 0.0 }
 0x5c1   :  { %5032 = vrot.lane.b32.xlu1 %v4271_v35, %s7904_s15  ;;  %v4167_v2 = vmul.f32 %v7896_v27, %v4166_v5  ;;  %v4567_v0 = vpop.f32.mrf.mxu3  ;;  %v5588_v18 = vadd.f32 %v11822_v42, %v4923_v47 }
 0x5c2   :  { %v5964_v37 = vpop.permute.xlu2 %5963  ;;  %v11917_v20 = vpop.permute.xlu0 %5413 }
 0x5c3   :  { %v4358_v57 = vpop.permute.xlu1 %4357  ;;  %6154 = vst.msk [vmem:[%s12462_s7 + $0x10] sm:$0xff] %vm6151_vm2, %v5964_v37  ;;  %v4168_v32 = vadd.f32 %v7896_v27, %v4167_v2 }
 0x5c4   :  { %7315 = vmatmul.msk.bf16.gmra.mxu3 %vm2697_vm0, %v4358_v57  ;;  %7355 = vmatmul.msk.bf16.gmra.mxu0 %vm2697_vm0, %v11855_v23 }
 0x5c5   :  { %v4172_v35 = vsel %vm4171_vm10, %v7896_v27, %v4168_v32  ;;  %v5234_v27 = vpop.f32.mrf.mxu0 }
 0x5c6   :  { %v4177_v60 = vsel %vm4174_vm11, %v4176_v8, %v4172_v35 }
 0x5c7   :  { %5894 = vst.msk [vmem:[%s12462_s7 + $0x1f8] sm:$0xff] %vm5830_vm7, %v4177_v60 }
 0x5c8   :  { %5983 = vrot.lane.b32.xlu0 %v5649_v28, %s7906_s10  ;;  %5435 = vrot.lane.b32.xlu2 %v11794_v46, %s7905_s12  ;;  %v5652_v28 = vmax.f32 %v5588_v18, 0.0 }
 0x5c9   :  { %5979 = vrot.lane.b32.xlu1 %v5647_v21, %s7906_s10  ;;  %v4569_v3 = vpop.f32.mrf.mxu3 }
 0x5ca   :  { %v11936_v23 = vpop.permute.xlu2 %5417  ;;  %v11938_v29 = vpop.permute.xlu0 %4750 }
 0x5cb   :  { %v11941_v48 = vpop.permute.xlu1 %4748 }
 0x5d0   :  { %5437 = vrot.lane.b32.xlu0 %v11840_v12, %s7905_s12  ;;  %4369 = vrot.lane.b32.xlu2 %v4272_v49, %s7903_s28  ;;  %v4239_v12 = vmax.f32 %v11705_v44, 0.0 }
 0x5d1   :  { %5433 = vrot.lane.b32.xlu1 %v11746_v4, %s7905_s12  ;;  %v11960_v4 = vpop.f32.mrf.mxu0  ;;  %v4572_v38 = vpop.f32.mrf.mxu3 }
 0x5d2   :  { %v11949_v46 = vpop.permute.xlu2 %4754  ;;  %v5025_v62 = vpop.permute.xlu0 %5024  ;;  %v4273_v5 = vpack.c.bf16 %v4240_v40, %v4239_v12 }
 0x5d3   :  { %v5962_v51 = vpop.permute.xlu1 %5961 }
 0x5d4   :  { %6153 = vst.msk [vmem:[%s12462_s7 + $0x8] sm:$0xff] %vm6151_vm2, %v5962_v51  ;;  %7316 = vmatmul.msk.bf16.gmra.mxu3 %vm2697_vm0, %v11888_v58  ;;  %7356 = vmatmul.msk.bf16.gmra.mxu0 %vm2697_vm0, %v5025_v62  ;;  %v5586_v58 = vadd.f32 %v11824_v24, %v4921_v33  ;;  %v4922_v24 = vadd.f32 %v11792_v15, %v10296_v19 }
 0x5d6   :  { %v5650_v30 = vmax.f32 %v5586_v58, 0.0  ;;  %v5587_v57 = vadd.f32 %v11890_v7, %v4922_v24 }
 0x5d8   :  { %4371 = vrot.lane.b32.xlu0 %v4273_v5, %s7903_s28  ;;  %5034 = vrot.lane.b32.xlu2 %v4272_v49, %s7904_s15  ;;  %v5651_v35 = vmax.f32 %v5587_v57, 0.0  ;;  %v4241_v49 = vmax.f32 %v11783_v52, 0.0 }
 0x5d9   :  { %4772 = vrot.lane.b32.xlu1 %v11867_v39, %s7905_s12  ;;  %v11979_v39 = vpop.f32.mrf.mxu0  ;;  %v11991_v16 = vpop.f32.mrf.mxu3 }
 0x5da   :  { %v5970_v2 = vpop.permute.xlu2 %5969  ;;  %v5966_v31 = vpop.permute.xlu0 %5965 }
 0x5db   :  { %v5416_v37 = vpop.permute.xlu1 %5415  ;;  %6157 = vst.msk [vmem:[%s12462_s7 + $0x28] sm:$0xff] %vm6151_vm2, %v5970_v2 }
 0x5dc   :  { %6155 = vst.msk [vmem:[%s12462_s7 + $0x18] sm:$0xff] %vm6151_vm2, %v5966_v31 }
 0x5e0   :  { %5036 = vrot.lane.b32.xlu0 %v4273_v5, %s7904_s15  ;;  %4774 = vrot.lane.b32.xlu2 %v11902_v26, %s7905_s12 }
 0x5e1   :  { %5985 = vrot.lane.b32.xlu1 %v5650_v30, %s7906_s10  ;;  %v5242_v19 = vpop.f32.mrf.mxu0  ;;  %v4577_v7 = vpop.f32.mrf.mxu3 }
 0x5e2   :  { %v5424_v32 = vpop.permute.xlu2 %5423  ;;  %v11989_v8 = vpop.permute.xlu0 %5419 }
 0x5e3   :  { %v4753_v22 = vpop.permute.xlu1 %4752 }
 0x5e8   :  { %5987 = vrot.lane.b32.xlu2 %v5651_v35, %s7906_s10  ;;  %5989 = vrot.lane.b32.xlu0 %v5652_v28, %s7906_s10 }
 0x5e9   :  { %5439 = vrot.lane.b32.xlu1 %v11874_v54, %s7905_s12  ;;  %v12005_v53 = vpop.f32.mrf.mxu0  ;;  %v12018_v62 = vpop.f32.mrf.mxu3 }
 0x5ea   :  { %v5029_v15 = vpop.permute.xlu2 %5028  ;;  %v4362_v42 = vpop.permute.xlu0 %4361 }
 0x5eb   :  { %v5027_v26 = vpop.permute.xlu1 %5026  ;;  %7317 = vmatmul.msk.bf16.gmra.mxu3 %vm2697_vm0, %v4362_v42 }
 0x5ec   :  { %7357 = vmatmul.msk.bf16.gmra.mxu0 %vm2697_vm0, %v5027_v26 }
 0x5f0   :  { %5441 = vrot.lane.b32.xlu2 %v11912_v55, %s7905_s12  ;;  %5443 = vrot.lane.b32.xlu0 %v5234_v27, %s7905_s12  ;;  %v4926_v55 = vadd.f32 %v4753_v22, %v10408_v1  ;;  %v4274_v27 = vpack.c.bf16 %v4242_v34, %v4241_v49 }
 0x5f1   :  { %4776 = vrot.lane.b32.xlu1 %v4567_v0, %s7905_s12  ;;  %v4925_v0 = vadd.f32 %v11938_v29, %v10378_v17  ;;  %v5247_v33 = vpop.f32.mrf.mxu0  ;;  %v4582_v58 = vpop.f32.mrf.mxu3 }
 0x5f2   :  { %v12003_v60 = vpop.permute.xlu2 %4365  ;;  %v4757_v21 = vpop.permute.xlu0 %4756  ;;  %v5591_v51 = vadd.f32 %v11936_v23, %v4926_v55  ;;  %v4924_v23 = vadd.f32 %v11941_v48, %v10349_v36 }
 0x5f3   :  { %v5968_v54 = vpop.permute.xlu1 %5967  ;;  %v5590_v40 = vadd.f32 %v5416_v37, %v4925_v0 }
 0x5f4   :  { %6156 = vst.msk [vmem:[%s12462_s7 + $0x20] sm:$0xff] %vm6151_vm2, %v5968_v54  ;;  %v5655_v1 = vmax.f32 %v5591_v51, 0.0  ;;  %v5589_v31 = vadd.f32 %v11917_v20, %v4924_v23 }
 0x5f5   :  { %v5654_v17 = vmax.f32 %v5590_v40, 0.0 }
 0x5f6   :  { %v5653_v30 = vmax.f32 %v5589_v31, 0.0 }
 0x5f8   :  { %4778 = vrot.lane.b32.xlu2 %v4569_v3, %s7905_s12  ;;  %4780 = vrot.lane.b32.xlu0 %v4572_v38, %s7905_s12 }
 0x5f9   :  { %4373 = vrot.lane.b32.xlu1 %v4274_v27, %s7903_s28  ;;  %v5249_v37 = vpop.f32.mrf.mxu0  ;;  %v4584_v20 = vpop.f32.mrf.mxu3 }
 0x5fa   :  { %v5976_v12 = vpop.permute.xlu2 %5975  ;;  %v5972_v5 = vpop.permute.xlu0 %5971 }
 0x5fb   :  { %v5422_v2 = vpop.permute.xlu1 %5421  ;;  %6160 = vst.msk [vmem:[%s12462_s7 + $0x40] sm:$0xff] %vm6151_vm2, %v5976_v12 }
 0x5fc   :  { %6158 = vst.msk [vmem:[%s12462_s7 + $0x30] sm:$0xff] %vm6151_vm2, %v5972_v5  ;;  %7358 = vmatmul.msk.bf16.gmra.mxu0 %vm2697_vm0, %v5029_v15 }
 0x600   :  { %5995 = vrot.lane.b32.xlu0 %v5655_v1, %s7906_s10  ;;  %5993 = vrot.lane.b32.xlu2 %v5654_v17, %s7906_s10 }
 0x601   :  { %5038 = vrot.lane.b32.xlu1 %v4274_v27, %s7904_s15  ;;  %v12045_v22 = vpop.f32.mrf.mxu0 }
 0x602   :  { %v5430_v29 = vpop.permute.xlu2 %5429  ;;  %v12036_v3 = vpop.permute.xlu0 %5425 }
 0x603   :  { %v4759_v38 = vpop.permute.xlu1 %4758 }
 0x604   :  { %v4929_v47 = vadd.f32 %v4759_v38, %v10488_v6  ;;  %v4928_v6 = vadd.f32 %v4757_v21, %v10460_v61 }
 0x606   :  { %v5594_v36 = vadd.f32 %v5424_v32, %v4929_v47 }
 0x608   :  { %5449 = vrot.lane.b32.xlu0 %v5242_v19, %s7905_s12  ;;  %5447 = vrot.lane.b32.xlu2 %v11979_v39, %s7905_s12  ;;  %v5658_v57 = vmax.f32 %v5594_v36, 0.0  ;;  %v5593_v39 = vadd.f32 %v5422_v2, %v4928_v6  ;;  %v12059_v19 = vpop.f32.mrf.mxu3 }
 0x609   :  { %5991 = vrot.lane.b32.xlu1 %v5653_v30, %s7906_s10  ;;  %v5254_v15 = vpop.f32.mrf.mxu0 }
 0x60a   :  { %v4765_v48 = vpop.permute.xlu2 %4764  ;;  %v4761_v24 = vpop.permute.xlu0 %4760  ;;  %v5657_v61 = vmax.f32 %v5593_v39, 0.0 }
 0x60b   :  { %v4364_v18 = vpop.permute.xlu1 %4363  ;;  %v4932_v49 = vadd.f32 %v4765_v48, %v10581_v56 }
 0x60c   :  { %7318 = vmatmul.msk.bf16.gmra.mxu3 %vm2697_vm0, %v4364_v18 }
 0x610   :  { %6001 = vrot.lane.b32.xlu0 %v5658_v57, %s7906_s10  ;;  %4784 = vrot.lane.b32.xlu2 %v4577_v7, %s7905_s12 }
 0x611   :  { %5445 = vrot.lane.b32.xlu1 %v11960_v4, %s7905_s12  ;;  %v4927_v4 = vadd.f32 %v11949_v46, %v10430_v25  ;;  %v4589_v46 = vpop.f32.mrf.mxu3  ;;  %v5257_v54 = vpop.f32.mrf.mxu0 }
 0x612   :  { %v12052_v32 = vpop.permute.xlu2 %4768  ;;  %v5031_v35 = vpop.permute.xlu0 %5030 }
 0x613   :  { %v5974_v28 = vpop.permute.xlu1 %5973  ;;  %7359 = vmatmul.msk.bf16.gmra.mxu0 %vm2697_vm0, %v5031_v35  ;;  %v5592_v7 = vadd.f32 %v11989_v8, %v4927_v4  ;;  %v4934_v47 = vadd.f32 %v12052_v32, %v10635_v14  ;;  %v12665_v32 = vld [vmem:[#allocation22_spill] sm:$0xff] }
 0x614   :  { %6159 = vst.msk [vmem:[%s12462_s7 + $0x38] sm:$0xff] %vm6151_vm2, %v5974_v28 }
 0x615   :  { %v5656_v25 = vmax.f32 %v5592_v7, 0.0  ;;  %v12666_v7 = vld [vmem:[#allocation25_spill] sm:$0xff] }
 0x618   :  { %5455 = vrot.lane.b32.xlu0 %v5249_v37, %s7905_s12  ;;  %5999 = vrot.lane.b32.xlu2 %v5657_v61, %s7906_s10 }
 0x619   :  { %4782 = vrot.lane.b32.xlu1 %v11991_v16, %s7905_s12  ;;  %v4592_v51 = vpop.f32.mrf.mxu3  ;;  %v12090_v5 = vpop.f32.mrf.mxu0 }
 0x61a   :  { %v5982_v42 = vpop.permute.xlu2 %5981  ;;  %v5978_v26 = vpop.permute.xlu0 %5977 }
 0x61b   :  { %v5428_v21 = vpop.permute.xlu1 %5427  ;;  %6163 = vst.msk [vmem:[%s12462_s7 + $0x58] sm:$0xff] %vm6151_vm2, %v5982_v42 }
 0x61c   :  { %6161 = vst.msk [vmem:[%s12462_s7 + $0x48] sm:$0xff] %vm6151_vm2, %v5978_v26  ;;  %7319 = vmatmul.msk.bf16.gmra.mxu3 %vm2697_vm0, %v12003_v60  ;;  %v5597_v60 = vadd.f32 %v5430_v29, %v4932_v49 }
 0x61e   :  { %v5661_v56 = vmax.f32 %v5597_v60, 0.0 }
 0x620   :  { %4790 = vrot.lane.b32.xlu0 %v4584_v20, %s7905_s12  ;;  %5453 = vrot.lane.b32.xlu2 %v5247_v33, %s7905_s12 }
 0x621   :  { %5997 = vrot.lane.b32.xlu1 %v5656_v25, %s7906_s10  ;;  %v4594_v23 = vpop.f32.mrf.mxu3  ;;  %v5262_v31 = vpop.f32.mrf.mxu0 }
 0x622   :  { %v5436_v8 = vpop.permute.xlu2 %5435  ;;  %v12081_v16 = vpop.permute.xlu0 %5431 }
 0x623   :  { %v4763_v34 = vpop.permute.xlu1 %4762 }
 0x624   :  { %v4931_v55 = vadd.f32 %v4763_v34, %v10546_v63  ;;  %v4930_v63 = vadd.f32 %v4761_v24, %v10521_v13 }
 0x626   :  { %v5596_v27 = vadd.f32 %v5428_v21, %v4931_v55  ;;  %v5595_v17 = vadd.f32 %v12036_v3, %v4930_v63  ;;  %v12667_v55 = vld [vmem:[#allocation24_spill] sm:$0xff] }
 0x628   :  { %4794 = vrot.lane.b32.xlu0 %v4589_v46, %s7905_s12  ;;  %4788 = vrot.lane.b32.xlu2 %v4582_v58, %s7905_s12  ;;  %v5660_v33 = vmax.f32 %v5596_v27, 0.0  ;;  %v5659_v29 = vmax.f32 %v5595_v17, 0.0 }
 0x629   :  { %5451 = vrot.lane.b32.xlu1 %v12005_v53, %s7905_s12  ;;  %v5264_v37 = vpop.f32.mrf.mxu0 }
 0x62a   :  { %v4370_v0 = vpop.permute.xlu2 %4369  ;;  %v4767_v40 = vpop.permute.xlu0 %4766 }
 0x62b   :  { %v4368_v12 = vpop.permute.xlu1 %4367  ;;  %v4933_v35 = vadd.f32 %v4767_v40, %v12665_v32 }
 0x62c   :  { %7320 = vmatmul.msk.bf16.gmra.mxu3 %vm2697_vm0, %v4368_v12  ;;  %v12668_v12 = vld [vmem:[#allocation26_spill] sm:$0xff] }
 0x630   :  { %6007 = vrot.lane.b32.xlu0 %v5661_v56, %s7906_s10  ;;  %6005 = vrot.lane.b32.xlu2 %v5660_v33, %s7906_s10 }
 0x631   :  { %4786 = vrot.lane.b32.xlu1 %v12018_v62, %s7905_s12  ;;  %v4597_v62 = vpop.f32.mrf.mxu3  ;;  %v5267_v6 = vpop.f32.mrf.mxu0 }
 0x632   :  { %v5035_v53 = vpop.permute.xlu2 %5034  ;;  %v4771_v2 = vpop.permute.xlu0 %4770 }
 0x633   :  { %v5033_v1 = vpop.permute.xlu1 %5032  ;;  %v4935_v3 = vadd.f32 %v4771_v2, %v10662_v41 }
 0x634   :  { %7360 = vmatmul.msk.bf16.gmra.mxu0 %vm2697_vm0, %v5033_v1 }
 0x635   :  { %v5600_v30 = vadd.f32 %v5436_v8, %v4935_v3 }
 0x637   :  { %v5664_v18 = vmax.f32 %v5600_v30, 0.0 }
 0x638   :  { %5461 = vrot.lane.b32.xlu0 %v5257_v54, %s7905_s12  ;;  %5459 = vrot.lane.b32.xlu2 %v5254_v15, %s7905_s12  ;;  %v5598_v15 = vadd.f32 %v12081_v16, %v4933_v35 }
 0x639   :  { %6003 = vrot.lane.b32.xlu1 %v5659_v29, %s7906_s10  ;;  %v4599_v57 = vpop.f32.mrf.mxu3  ;;  %v5269_v42 = vpop.f32.mrf.mxu0 }
 0x63a   :  { %v4775_v13 = vpop.permute.xlu2 %4774  ;;  %v5984_v58 = vpop.permute.xlu0 %5983  ;;  %v5662_v26 = vmax.f32 %v5598_v15, 0.0 }
 0x63b   :  { %v5980_v38 = vpop.permute.xlu1 %5979  ;;  %6164 = vst.msk [vmem:[%s12462_s7 + $0x60] sm:$0xff] %vm6151_vm2, %v5984_v58  ;;  %v4937_v21 = vadd.f32 %v4775_v13, %v12666_v7  ;;  %v12672_v7 = vld [vmem:[#allocation11_spill] sm:$0xff] }
 0x63c   :  { %6162 = vst.msk [vmem:[%s12462_s7 + $0x50] sm:$0xff] %vm6151_vm2, %v5980_v38  ;;  %7321 = vmatmul.msk.bf16.gmra.mxu3 %vm2697_vm0, %v4370_v0 }
 0x640   :  { %4800 = vrot.lane.b32.xlu0 %v4597_v62, %s7905_s12  ;;  %4798 = vrot.lane.b32.xlu2 %v4594_v23, %s7905_s12  ;;  %v12669_v62 = vld [vmem:[#allocation28_spill] sm:$0xff] }
 0x641   :  { %5457 = vrot.lane.b32.xlu1 %v12045_v22, %s7905_s12  ;;  %v4602_v28 = vpop.f32.mrf.mxu3  ;;  %v5272_v49 = vpop.f32.mrf.mxu0 }
 0x642   :  { %v5988_v36 = vpop.permute.xlu2 %5987  ;;  %v5438_v48 = vpop.permute.xlu0 %5437 }
 0x643   :  { %6166 = vst.msk [vmem:[%s12462_s7 + $0x70] sm:$0xff] %vm6151_vm2, %v5988_v36  ;;  %v5434_v41 = vpop.permute.xlu1 %5433 }
 0x644   :  { %v5599_v24 = vadd.f32 %v5434_v41, %v4934_v47  ;;  %7361 = vmatmul.msk.bf16.gmra.mxu0 %vm2697_vm0, %v5035_v53 }
 0x646   :  { %v5663_v20 = vmax.f32 %v5599_v24, 0.0 }
 0x648   :  { %6011 = vrot.lane.b32.xlu2 %v5663_v20, %s7906_s10  ;;  %6013 = vrot.lane.b32.xlu0 %v5664_v18, %s7906_s10  ;;  %v12670_v18 = vld [vmem:[#allocation13_spill] sm:$0xff] }
 0x649   :  { %4792 = vrot.lane.b32.xlu1 %v12059_v19, %s7905_s12  ;;  %v4604_v8 = vpop.f32.mrf.mxu3  ;;  %v5274_v17 = vpop.f32.mrf.mxu0 }
 0x64a   :  { %v5442_v14 = vpop.permute.xlu2 %5441  ;;  %v4372_v22 = vpop.permute.xlu0 %4371 }
 0x64b   :  { %v4773_v39 = vpop.permute.xlu1 %4772 }
 0x64c   :  { %7322 = vmatmul.msk.bf16.gmra.mxu3 %vm2697_vm0, %v4372_v22  ;;  %v4936_v60 = vadd.f32 %v4773_v39, %v12667_v55 }
 0x64e   :  { %v5601_v40 = vadd.f32 %v5438_v48, %v4936_v60 }
 0x650   :  { %5465 = vrot.lane.b32.xlu2 %v5262_v31, %s7905_s12  ;;  %5467 = vrot.lane.b32.xlu0 %v5264_v37, %s7905_s12  ;;  %v5665_v53 = vmax.f32 %v5601_v40, 0.0 }
 0x651   :  { %4796 = vrot.lane.b32.xlu1 %v4592_v51, %s7905_s12  ;;  %v4607_v33 = vpop.f32.mrf.mxu3  ;;  %v5277_v58 = vpop.f32.mrf.mxu0 }
 0x652   :  { %v4779_v61 = vpop.permute.xlu2 %4778  ;;  %v5037_v4 = vpop.permute.xlu0 %5036 }
 0x653   :  { %v5986_v19 = vpop.permute.xlu1 %5985  ;;  %v4939_v3 = vadd.f32 %v4779_v61, %v12669_v62 }
 0x654   :  { %6165 = vst.msk [vmem:[%s12462_s7 + $0x68] sm:$0xff] %vm6151_vm2, %v5986_v19  ;;  %7362 = vmatmul.msk.bf16.gmra.mxu0 %vm2697_vm0, %v5037_v4 }
 0x658   :  { %4802 = vrot.lane.b32.xlu2 %v4599_v57, %s7905_s12  ;;  %4804 = vrot.lane.b32.xlu0 %v4602_v28, %s7905_s12  ;;  %v12671_v28 = vld [vmem:[#allocation27_spill] sm:$0xff] }
 0x659   :  { %6009 = vrot.lane.b32.xlu1 %v5662_v26, %s7906_s10  ;;  %v4609_v29 = vpop.f32.mrf.mxu3  ;;  %v5279_v41 = vpop.f32.mrf.mxu0 }
 0x65a   :  { %v5994_v25 = vpop.permute.xlu2 %5993  ;;  %v5990_v46 = vpop.permute.xlu0 %5989 }
 0x65b   :  { %v5440_v16 = vpop.permute.xlu1 %5439  ;;  %6169 = vst.msk [vmem:[%s12462_s7 + $0x88] sm:$0xff] %vm6151_vm2, %v5994_v25 }
 0x65c   :  { %v5602_v54 = vadd.f32 %v5440_v16, %v4937_v21  ;;  %6167 = vst.msk [vmem:[%s12462_s7 + $0x78] sm:$0xff] %vm6151_vm2, %v5990_v46 }
 0x65e   :  { %v5666_v34 = vmax.f32 %v5602_v54, 0.0 }
 0x660   :  { %6017 = vrot.lane.b32.xlu2 %v5666_v34, %s7906_s10 }
 0x661   :  { %5463 = vrot.lane.b32.xlu1 %v12090_v5, %s7905_s12  ;;  %v4612_v37 = vpop.f32.mrf.mxu3 }
 0x662   :  { %v5448_v27 = vpop.permute.xlu2 %5447  ;;  %v5444_v0 = vpop.permute.xlu0 %5443 }
 0x663   :  { %v4777_v51 = vpop.permute.xlu1 %4776  ;;  %v5604_v36 = vadd.f32 %v5444_v0, %v4939_v3 }
 0x664   :  { %v4938_v56 = vadd.f32 %v4777_v51, %v12668_v12  ;;  %v12673_v12 = vld [vmem:[#allocation31_spill] sm:$0xff] }
 0x665   :  { %v5668_v24 = vmax.f32 %v5604_v36, 0.0 }
 0x666   :  { %v5603_v63 = vadd.f32 %v5442_v14, %v4938_v56 }
 0x668   :  { %v5667_v2 = vmax.f32 %v5603_v63, 0.0  ;;  %5471 = vrot.lane.b32.xlu2 %v5269_v42, %s7905_s12 }
 0x669   :  { %6015 = vrot.lane.b32.xlu1 %v5665_v53, %s7906_s10  ;;  %v4614_v22 = vpop.f32.mrf.mxu3  ;;  %v5282_v32 = vpop.f32.mrf.mxu0 }
 0x66a   :  { %6019 = vrot.lane.b32.xlu0 %v5667_v2, %s7906_s10  ;;  %v4785_v1 = vpop.permute.xlu2 %4784  ;;  %v4781_v23 = vpop.permute.xlu0 %4780 }
 0x66b   :  { %v4374_v5 = vpop.permute.xlu1 %4373  ;;  %v4940_v20 = vadd.f32 %v4781_v23, %v12670_v18  ;;  %v4942_v61 = vadd.f32 %v4785_v1, %v12671_v28  ;;  %v12674_v1 = vld [vmem:[#allocation15_spill] sm:$0xff] }
 0x66c   :  { %7323 = vmatmul.msk.bf16.gmra.mxu3 %vm2697_vm0, %v4374_v5 }
 0x670   :  { %4808 = vrot.lane.b32.xlu2 %v4607_v33, %s7905_s12 }
 0x671   :  { %5469 = vrot.lane.b32.xlu1 %v5267_v6, %s7905_s12  ;;  %v4617_v19 = vpop.f32.mrf.mxu3  ;;  %v5284_v46 = vpop.f32.mrf.mxu0 }
 0x672   :  { %5473 = vrot.lane.b32.xlu0 %v5272_v49, %s7905_s12  ;;  %v6000_v31 = vpop.permute.xlu2 %5999  ;;  %v5996_v13 = vpop.permute.xlu0 %5995 }
 0x673   :  { %v5039_v38 = vpop.permute.xlu1 %5038  ;;  %6172 = vst.msk [vmem:[%s12462_s7 + $0xa0] sm:$0xff] %vm6151_vm2, %v6000_v31 }
 0x674   :  { %6170 = vst.msk [vmem:[%s12462_s7 + $0x90] sm:$0xff] %vm6151_vm2, %v5996_v13  ;;  %7363 = vmatmul.msk.bf16.gmra.mxu0 %vm2697_vm0, %v5039_v38 }
 0x679   :  { %4806 = vrot.lane.b32.xlu1 %v4604_v8, %s7905_s12  ;;  %v4619_v55 = vpop.f32.mrf.mxu3  ;;  %v5287_v60 = vpop.f32.mrf.mxu0 }
 0x67a   :  { %4810 = vrot.lane.b32.xlu0 %v4609_v29, %s7905_s12  ;;  %v5454_v47 = vpop.permute.xlu2 %5453  ;;  %v5450_v30 = vpop.permute.xlu0 %5449  ;;  %v12675_v29 = vld [vmem:[#allocation17_spill] sm:$0xff] }
 0x67b   :  { %v5992_v48 = vpop.permute.xlu1 %5991  ;;  %v5607_v42 = vadd.f32 %v5450_v30, %v4942_v61 }
 0x67c   :  { %6168 = vst.msk [vmem:[%s12462_s7 + $0x80] sm:$0xff] %vm6151_vm2, %v5992_v48 }
 0x67d   :  { %v5671_v8 = vmax.f32 %v5607_v42, 0.0 }
 0x681   :  { %6021 = vrot.lane.b32.xlu1 %v5668_v24, %s7906_s10  ;;  %v5289_v53 = vpop.f32.mrf.mxu0 }
 0x682   :  { %v4789_v57 = vpop.permute.xlu2 %4788  ;;  %v6002_v14 = vpop.permute.xlu0 %6001 }
 0x683   :  { %v5446_v6 = vpop.permute.xlu1 %5445  ;;  %6173 = vst.msk [vmem:[%s12462_s7 + $0xa8] sm:$0xff] %vm6151_vm2, %v6002_v14  ;;  %v4944_v56 = vadd.f32 %v4789_v57, %v12673_v12  ;;  %v12676_v57 = vld [vmem:[#allocation30_spill] sm:$0xff] }
 0x684   :  { %v5605_v39 = vadd.f32 %v5446_v6, %v4940_v20 }
 0x686   :  { %v5669_v35 = vmax.f32 %v5605_v39, 0.0 }
 0x688   :  { %6023 = vrot.lane.b32.xlu2 %v5669_v35, %s7906_s10 }
 0x689   :  { %5475 = vrot.lane.b32.xlu1 %v5274_v17, %s7905_s12  ;;  %v5609_v17 = vadd.f32 %v5454_v47, %v4944_v56 }
 0x68a   :  { %v6006_v4 = vpop.permute.xlu2 %6005  ;;  %v5456_v15 = vpop.permute.xlu0 %5455 }
 0x68b   :  { %v4783_v26 = vpop.permute.xlu1 %4782  ;;  %6175 = vst.msk [vmem:[%s12462_s7 + $0xb8] sm:$0xff] %vm6151_vm2, %v6006_v4  ;;  %v12677_v4 = vld [vmem:[#allocation29_spill] sm:$0xff] }
 0x68c   :  { %v4941_v21 = vadd.f32 %v4783_v26, %v12672_v7  ;;  %v12678_v26 = vld [vmem:[#allocation19_spill] sm:$0xff] }
 0x68e   :  { %v5606_v25 = vadd.f32 %v5448_v27, %v4941_v21 }
 0x68f   :  { %v4622_v51 = vpop.f32.mrf.mxu3 }
 0x690   :  { %v5670_v16 = vmax.f32 %v5606_v25, 0.0  ;;  %5477 = vrot.lane.b32.xlu2 %v5277_v58, %s7905_s12  ;;  %v5673_v58 = vmax.f32 %v5609_v17, 0.0 }
 0x691   :  { %6027 = vrot.lane.b32.xlu1 %v5671_v8, %s7906_s10 }
 0x692   :  { %6025 = vrot.lane.b32.xlu0 %v5670_v16, %s7906_s10  ;;  %v5460_v54 = vpop.permute.xlu2 %5459  ;;  %v4791_v34 = vpop.permute.xlu0 %4790 }
 0x693   :  { %v5998_v49 = vpop.permute.xlu1 %5997  ;;  %v4945_v31 = vadd.f32 %v4791_v34, %v12675_v29 }
 0x694   :  { %6171 = vst.msk [vmem:[%s12462_s7 + $0x98] sm:$0xff] %vm6151_vm2, %v5998_v49 }
 0x695   :  { %v5610_v47 = vadd.f32 %v5456_v15, %v4945_v31 }
 0x697   :  { %v4624_v13 = vpop.f32.mrf.mxu3  ;;  %v5674_v36 = vmax.f32 %v5610_v47, 0.0 }
 0x698   :  { %4812 = vrot.lane.b32.xlu2 %v4612_v37, %s7905_s12  ;;  %v5292_v37 = vpop.f32.mrf.mxu0 }
 0x699   :  { %5481 = vrot.lane.b32.xlu1 %v5282_v32, %s7905_s12 }
 0x69a   :  { %5479 = vrot.lane.b32.xlu0 %v5279_v41, %s7905_s12  ;;  %v12202_v27 = vpop.permute.xlu2 %4798  ;;  %v4795_v0 = vpop.permute.xlu0 %4794 }
 0x69b   :  { %v5452_v40 = vpop.permute.xlu1 %5451  ;;  %v4947_v14 = vadd.f32 %v4795_v0, %v12676_v57 }
 0x69d   :  { %v5612_v35 = vadd.f32 %v5460_v54, %v4947_v14 }
 0x69f   :  { %v4627_v48 = vpop.f32.mrf.mxu3  ;;  %v5676_v61 = vmax.f32 %v5612_v35, 0.0 }
 0x6a0   :  { %v5294_v20 = vpop.f32.mrf.mxu0 }
 0x6a1   :  { %4816 = vrot.lane.b32.xlu1 %v4617_v19, %s7905_s12 }
 0x6a2   :  { %4814 = vrot.lane.b32.xlu0 %v4614_v22, %s7905_s12  ;;  %v6012_v33 = vpop.permute.xlu2 %6011  ;;  %v6008_v63 = vpop.permute.xlu0 %6007 }
 0x6a3   :  { %v4787_v2 = vpop.permute.xlu1 %4786  ;;  %6178 = vst.msk [vmem:[%s12462_s7 + $0xd0] sm:$0xff] %vm6151_vm2, %v6012_v33 }
 0x6a4   :  { %v4943_v23 = vadd.f32 %v4787_v2, %v12674_v1  ;;  %6176 = vst.msk [vmem:[%s12462_s7 + $0xc0] sm:$0xff] %vm6151_vm2, %v6008_v63 }
 0x6a6   :  { %v5608_v5 = vadd.f32 %v5452_v40, %v4943_v23 }
 0x6a7   :  { %v4629_v39 = vpop.f32.mrf.mxu3 }
 0x6a8   :  { %v5672_v38 = vmax.f32 %v5608_v5, 0.0  ;;  %v12681_v5 = vld [vmem:[#allocation33_spill] sm:$0xff] }
 0x6a9   :  { %4820 = vrot.lane.b32.xlu1 %v4622_v51, %s7905_s12  ;;  %v12680_v51 = vld [vmem:[#allocation34_spill] sm:$0xff] }
 0x6aa   :  { %6031 = vrot.lane.b32.xlu0 %v5673_v58, %s7906_s10  ;;  %6029 = vrot.lane.b32.xlu2 %v5672_v38, %s7906_s10  ;;  %v5466_v62 = vpop.permute.xlu2 %5465  ;;  %v5462_v3 = vpop.permute.xlu0 %5461  ;;  %v4949_v12 = vadd.f32 %v12202_v27, %v12680_v51 }
 0x6ab   :  { %v6004_v30 = vpop.permute.xlu1 %6003 }
 0x6ac   :  { %6174 = vst.msk [vmem:[%s12462_s7 + $0xb0] sm:$0xff] %vm6151_vm2, %v6004_v30  ;;  %v12682_v30 = vld [vmem:[#allocation21_spill] sm:$0xff] }
 0x6af   :  { %v4632_v21 = vpop.f32.mrf.mxu3 }
 0x6b1   :  { %6033 = vrot.lane.b32.xlu1 %v5674_v36, %s7906_s10  ;;  %v5297_v28 = vpop.f32.mrf.mxu0 }
 0x6b2   :  { %5485 = vrot.lane.b32.xlu0 %v5287_v60, %s7905_s12  ;;  %5483 = vrot.lane.b32.xlu2 %v5284_v46, %s7905_s12  ;;  %v4803_v41 = vpop.permute.xlu2 %4802  ;;  %v4801_v24 = vpop.permute.xlu0 %4800 }
 0x6b3   :  { %v5458_v18 = vpop.permute.xlu1 %5457  ;;  %v4951_v27 = vadd.f32 %v4803_v41, %v12681_v5  ;;  %v12687_v5 = vld [vmem:[#allocation37_spill] sm:$0xff] }
 0x6b7   :  { %v4634_v49 = vpop.f32.mrf.mxu3 }
 0x6b9   :  { %5487 = vrot.lane.b32.xlu1 %v5289_v53, %s7905_s12  ;;  %v5299_v46 = vpop.f32.mrf.mxu0 }
 0x6ba   :  { %4824 = vrot.lane.b32.xlu0 %v4627_v48, %s7905_s12  ;;  %4818 = vrot.lane.b32.xlu2 %v4619_v55, %s7905_s12  ;;  %v6018_v22 = vpop.permute.xlu2 %6017  ;;  %v6014_v6 = vpop.permute.xlu0 %6013  ;;  %v12679_v55 = vld [vmem:[#allocation32_spill] sm:$0xff] }
 0x6bb   :  { %6181 = vst.msk [vmem:[%s12462_s7 + $0xe8] sm:$0xff] %vm6151_vm2, %v6018_v22  ;;  %v4793_v32 = vpop.permute.xlu1 %4792  ;;  %v4950_v60 = vadd.f32 %v4801_v24, %v12679_v55  ;;  %v12683_v24 = vld [vmem:[#allocation3_spill] sm:$0xff] }
 0x6bc   :  { %6179 = vst.msk [vmem:[%s12462_s7 + $0xd8] sm:$0xff] %vm6151_vm2, %v6014_v6  ;;  %v4946_v15 = vadd.f32 %v4793_v32, %v12677_v4 }
 0x6bd   :  { %v5615_v33 = vadd.f32 %v5466_v62, %v4950_v60 }
 0x6be   :  { %v5611_v42 = vadd.f32 %v5458_v18, %v4946_v15 }
 0x6bf   :  { %v5679_v2 = vmax.f32 %v5615_v33, 0.0  ;;  %v4637_v1 = vpop.f32.mrf.mxu3 }
 0x6c0   :  { %v5675_v8 = vmax.f32 %v5611_v42, 0.0 }
 0x6c1   :  { %4826 = vrot.lane.b32.xlu1 %v4629_v39, %s7905_s12  ;;  %v5302_v40 = vpop.f32.mrf.mxu0 }
 0x6c2   :  { %4822 = vrot.lane.b32.xlu2 %v4624_v13, %s7905_s12  ;;  %6037 = vrot.lane.b32.xlu0 %v5676_v61, %s7906_s10  ;;  %v5468_v54 = vpop.permute.xlu0 %5467  ;;  %v5472_v0 = vpop.permute.xlu2 %5471 }
 0x6c3   :  { %v4797_v19 = vpop.permute.xlu1 %4796  ;;  %v5616_v58 = vadd.f32 %v5468_v54, %v4951_v27 }
 0x6c4   :  { %v4948_v7 = vadd.f32 %v4797_v19, %v12678_v26  ;;  %v12684_v26 = vld [vmem:[#allocation2_spill] sm:$0xff] }
 0x6c5   :  { %v5680_v38 = vmax.f32 %v5616_v58, 0.0 }
 0x6c6   :  { %v5613_v25 = vadd.f32 %v5462_v3, %v4948_v7 }
 0x6c7   :  { %v4639_v3 = vpop.f32.mrf.mxu3 }
 0x6c8   :  { %v5677_v16 = vmax.f32 %v5613_v25, 0.0  ;;  %v12685_v25 = vld [vmem:[#allocation4_spill] sm:$0xff] }
 0x6c9   :  { %v5304_v29 = vpop.f32.mrf.mxu0 }
 0x6ca   :  { %6035 = vrot.lane.b32.xlu2 %v5675_v8, %s7906_s10  ;;  %5491 = vrot.lane.b32.xlu0 %v5294_v20, %s7905_s12  ;;  %v4805_v63 = vpop.permute.xlu0 %4804  ;;  %v4809_v23 = vpop.permute.xlu2 %4808 }
 0x6cb   :  { %6039 = vrot.lane.b32.xlu1 %v5677_v16, %s7906_s10  ;;  %v6010_v34 = vpop.permute.xlu1 %6009  ;;  %v4952_v36 = vadd.f32 %v4805_v63, %v12682_v30 }
 0x6cc   :  { %6177 = vst.msk [vmem:[%s12462_s7 + $0xc8] sm:$0xff] %vm6151_vm2, %v6010_v34 }
 0x6cf   :  { %v4642_v20 = vpop.f32.mrf.mxu3 }
 0x6d1   :  { %v5307_v47 = vpop.f32.mrf.mxu0 }
 0x6d2   :  { %5489 = vrot.lane.b32.xlu2 %v5292_v37, %s7905_s12  ;;  %4828 = vrot.lane.b32.xlu0 %v4632_v21, %s7905_s12 }
 0x6d3   :  { %5493 = vrot.lane.b32.xlu1 %v5297_v28, %s7905_s12  ;;  %v5464_v56 = vpop.permute.xlu1 %5463 }
 0x6d4   :  { %v5614_v53 = vadd.f32 %v5464_v56, %v4949_v12 }
 0x6d6   :  { %v5678_v17 = vmax.f32 %v5614_v53, 0.0 }
 0x6d7   :  { %v4644_v28 = vpop.f32.mrf.mxu3 }
 0x6d9   :  { %v5309_v14 = vpop.f32.mrf.mxu0 }
 0x6da   :  { %6041 = vrot.lane.b32.xlu2 %v5678_v17, %s7906_s10  ;;  %6043 = vrot.lane.b32.xlu0 %v5679_v2, %s7906_s10 }
 0x6db   :  { %4830 = vrot.lane.b32.xlu1 %v4634_v49, %s7905_s12  ;;  %v6016_v31 = vpop.permute.xlu1 %6015 }
 0x6dc   :  { %6180 = vst.msk [vmem:[%s12462_s7 + $0xe0] sm:$0xff] %vm6151_vm2, %v6016_v31  ;;  %v6020_v13 = vpop.permute.xlu0 %6019 }
 0x6dd   :  { %6182 = vst.msk [vmem:[%s12462_s7 + $0xf0] sm:$0xff] %vm6151_vm2, %v6020_v13 }
 0x6e2   :  { %5495 = vrot.lane.b32.xlu2 %v5299_v46, %s7905_s12  ;;  %v6024_v62 = vpop.permute.xlu2 %6023  ;;  %5497 = vrot.lane.b32.xlu0 %v5302_v40, %s7905_s12  ;;  %v4954_v46 = vadd.f32 %v4809_v23, %v12685_v25  ;;  %v12686_v40 = vld [vmem:[#allocation23_spill] sm:$0xff] }
 0x6e3   :  { %6184 = vst.msk [vmem:[%s12462_s7 + $0x100] sm:$0xff] %vm6151_vm2, %v6024_v62  ;;  %6045 = vrot.lane.b32.xlu1 %v5680_v38, %s7906_s10  ;;  %v5470_v37 = vpop.permute.xlu1 %5469 }
 0x6e4   :  { %v5617_v41 = vadd.f32 %v5470_v37, %v4952_v36  ;;  %v5474_v39 = vpop.permute.xlu0 %5473  ;;  %v12689_v36 = vld [vmem:[#allocation6_spill] sm:$0xff] }
 0x6e5   :  { %v5619_v49 = vadd.f32 %v5474_v39, %v4954_v46 }
 0x6e6   :  { %v5681_v22 = vmax.f32 %v5617_v41, 0.0 }
 0x6e7   :  { %v5683_v60 = vmax.f32 %v5619_v49, 0.0 }
 0x6ea   :  { %4832 = vrot.lane.b32.xlu2 %v4637_v1, %s7905_s12  ;;  %4834 = vrot.lane.b32.xlu0 %v4639_v3, %s7905_s12  ;;  %v5478_v32 = vpop.permute.xlu2 %5477 }
 0x6eb   :  { %5499 = vrot.lane.b32.xlu1 %v5304_v29, %s7905_s12  ;;  %v4807_v48 = vpop.permute.xlu1 %4806  ;;  %v12688_v29 = vld [vmem:[#allocation5_spill] sm:$0xff] }
 0x6ec   :  { %v4953_v18 = vadd.f32 %v4807_v48, %v12683_v24  ;;  %v4811_v15 = vpop.permute.xlu0 %4810 }
 0x6ed   :  { %v4955_v51 = vadd.f32 %v4811_v15, %v12686_v40 }
 0x6ee   :  { %v5618_v57 = vadd.f32 %v5472_v0, %v4953_v18 }
 0x6ef   :  { %v4647_v42 = vpop.f32.mrf.mxu3 }
 0x6f0   :  { %v5682_v6 = vmax.f32 %v5618_v57, 0.0 }
 0x6f1   :  { %v5312_v61 = vpop.f32.mrf.mxu0 }
 0x6f2   :  { %6049 = vrot.lane.b32.xlu0 %v5682_v6, %s7906_s10  ;;  %6047 = vrot.lane.b32.xlu2 %v5681_v22, %s7906_s10  ;;  %v4813_v19 = vpop.permute.xlu2 %4812 }
 0x6f3   :  { %4836 = vrot.lane.b32.xlu1 %v4642_v20, %s7905_s12  ;;  %v6022_v35 = vpop.permute.xlu1 %6021  ;;  %v4956_v7 = vadd.f32 %v4813_v19, %v12684_v26 }
 0x6f4   :  { %6183 = vst.msk [vmem:[%s12462_s7 + $0xf8] sm:$0xff] %vm6151_vm2, %v6022_v35 }
 0x6f5   :  { %v5621_v16 = vadd.f32 %v5478_v32, %v4956_v7 }
 0x6f7   :  { %v5685_v55 = vmax.f32 %v5621_v16, 0.0  ;;  %v4649_v0 = vpop.f32.mrf.mxu3 }
 0x6f9   :  { %v5314_v21 = vpop.f32.mrf.mxu0 }
 0x6fa   :  { %5503 = vrot.lane.b32.xlu0 %v5309_v14, %s7905_s12  ;;  %5501 = vrot.lane.b32.xlu2 %v5307_v47, %s7905_s12  ;;  %v12690_v14 = vld [vmem:[#allocation35_spill] sm:$0xff] }
 0x6fb   :  { %5505 = vrot.lane.b32.xlu1 %v5312_v61, %s7905_s12  ;;  %v5476_v4 = vpop.permute.xlu1 %5475 }
 0x6fc   :  { %v5620_v56 = vadd.f32 %v5476_v4, %v4955_v51 }
 0x6fe   :  { %v5684_v53 = vmax.f32 %v5620_v56, 0.0 }
 0x702   :  { %4838 = vrot.lane.b32.xlu0 %v4644_v28, %s7905_s12  ;;  %5507 = vrot.lane.b32.xlu2 %v5314_v21, %s7905_s12  ;;  %v12691_v28 = vld [vmem:[#allocation36_spill] sm:$0xff]  ;;  %v12692_v21 = vld [vmem:[#allocation7_spill] sm:$0xff] }
 0x703   :  { %4840 = vrot.lane.b32.xlu1 %v4647_v42, %s7905_s12  ;;  %v6028_v8 = vpop.permute.xlu1 %6027 }
 0x704   :  { %6186 = vst.msk [vmem:[%s12462_s7 + $0x110] sm:$0xff] %vm6151_vm2, %v6028_v8  ;;  %v6030_v54 = vpop.permute.xlu2 %6029  ;;  %v6026_v34 = vpop.permute.xlu0 %6025 }
 0x705   :  { %6187 = vst.msk [vmem:[%s12462_s7 + $0x118] sm:$0xff] %vm6151_vm2, %v6030_v54 }
 0x706   :  { %6185 = vst.msk [vmem:[%s12462_s7 + $0x108] sm:$0xff] %vm6151_vm2, %v6026_v34 }
 0x70a   :  { %6055 = vrot.lane.b32.xlu0 %v5685_v55, %s7906_s10  ;;  %4842 = vrot.lane.b32.xlu2 %v4649_v0, %s7905_s12 }
 0x70b   :  { %6051 = vrot.lane.b32.xlu1 %v5683_v60, %s7906_s10  ;;  %v5482_v12 = vpop.permute.xlu1 %5481 }
 0x70c   :  { %v5484_v33 = vpop.permute.xlu2 %5483  ;;  %v5480_v63 = vpop.permute.xlu0 %5479 }
 0x712   :  { %6053 = vrot.lane.b32.xlu2 %v5684_v53, %s7906_s10 }
 0x713   :  { %v4817_v2 = vpop.permute.xlu1 %4816 }
 0x714   :  { %v4958_v17 = vadd.f32 %v4817_v2, %v11361_v50  ;;  %v4819_v1 = vpop.permute.xlu2 %4818  ;;  %v4815_v23 = vpop.permute.xlu0 %4814 }
 0x715   :  { %v4959_v27 = vadd.f32 %v4819_v1, %v12687_v5  ;;  %v4957_v31 = vadd.f32 %v4815_v23, %v12688_v29 }
 0x716   :  { %v5623_v13 = vadd.f32 %v5482_v12, %v4958_v17 }
 0x717   :  { %v5624_v58 = vadd.f32 %v5484_v33, %v4959_v27  ;;  %v5622_v38 = vadd.f32 %v5480_v63, %v4957_v31 }
 0x718   :  { %v5687_v62 = vmax.f32 %v5623_v13, 0.0 }
 0x719   :  { %v5688_v3 = vmax.f32 %v5624_v58, 0.0  ;;  %v5686_v37 = vmax.f32 %v5622_v38, 0.0 }
 0x71a   :  { %6059 = vrot.lane.b32.xlu2 %v5687_v62, %s7906_s10 }
 0x71b   :  { %v4821_v47 = vpop.permute.xlu1 %4820  ;;  %6061 = vrot.lane.b32.xlu0 %v5688_v3, %s7906_s10  ;;  %6057 = vrot.lane.b32.xlu1 %v5686_v37, %s7906_s10 }
 0x71c   :  { %v4823_v50 = vpop.permute.xlu2 %4822  ;;  %v6032_v30 = vpop.permute.xlu0 %6031  ;;  %v4960_v48 = vadd.f32 %v4821_v47, %v12689_v36 }
 0x71d   :  { %6188 = vst.msk [vmem:[%s12462_s7 + $0x120] sm:$0xff] %vm6151_vm2, %v6032_v30  ;;  %v4961_v22 = vadd.f32 %v4823_v50, %v12690_v14 }
 0x723   :  { %v6034_v41 = vpop.permute.xlu1 %6033 }
 0x724   :  { %6189 = vst.msk [vmem:[%s12462_s7 + $0x128] sm:$0xff] %vm6151_vm2, %v6034_v41  ;;  %v6036_v24 = vpop.permute.xlu2 %6035  ;;  %v5486_v18 = vpop.permute.xlu0 %5485 }
 0x725   :  { %6190 = vst.msk [vmem:[%s12462_s7 + $0x130] sm:$0xff] %vm6151_vm2, %v6036_v24  ;;  %v5625_v20 = vadd.f32 %v5486_v18, %v4960_v48 }
 0x727   :  { %v5689_v57 = vmax.f32 %v5625_v20, 0.0 }
 0x729   :  { %6063 = vrot.lane.b32.xlu1 %v5689_v57, %s7906_s10 }
 0x72b   :  { %v5488_v6 = vpop.permute.xlu1 %5487 }
 0x72c   :  { %v5626_v39 = vadd.f32 %v5488_v6, %v4961_v22  ;;  %v5490_v32 = vpop.permute.xlu2 %5489  ;;  %v4825_v35 = vpop.permute.xlu0 %4824 }
 0x72d   :  { %v4962_v61 = vadd.f32 %v4825_v35, %v12691_v28 }
 0x72e   :  { %v5690_v4 = vmax.f32 %v5626_v39, 0.0 }
 0x72f   :  { %v5627_v15 = vadd.f32 %v5490_v32, %v4962_v61 }
 0x730   :  { %6065 = vrot.lane.b32.xlu2 %v5690_v4, %s7906_s10 }
 0x731   :  { %v5691_v19 = vmax.f32 %v5627_v15, 0.0 }
 0x733   :  { %v4827_v42 = vpop.permute.xlu1 %4826  ;;  %6067 = vrot.lane.b32.xlu0 %v5691_v19, %s7906_s10 }
 0x734   :  { %v6042_v26 = vpop.permute.xlu2 %6041  ;;  %v6038_v7 = vpop.permute.xlu0 %6037  ;;  %v4963_v25 = vadd.f32 %v4827_v42, %v12692_v21 }
 0x735   :  { %6193 = vst.msk [vmem:[%s12462_s7 + $0x148] sm:$0xff] %vm6151_vm2, %v6042_v26 }
 0x736   :  { %6191 = vst.msk [vmem:[%s12462_s7 + $0x138] sm:$0xff] %vm6151_vm2, %v6038_v7 }
 0x73c   :  { %v5496_v46 = vpop.permute.xlu2 %5495  ;;  %v5492_v8 = vpop.permute.xlu0 %5491 }
 0x73d   :  { %v6040_v16 = vpop.permute.xlu1 %6039  ;;  %v5628_v54 = vadd.f32 %v5492_v8, %v4963_v25 }
 0x73e   :  { %6192 = vst.msk [vmem:[%s12462_s7 + $0x140] sm:$0xff] %vm6151_vm2, %v6040_v16 }
 0x73f   :  { %v5692_v34 = vmax.f32 %v5628_v54, 0.0 }
 0x741   :  { %6069 = vrot.lane.b32.xlu1 %v5692_v34, %s7906_s10 }
 0x744   :  { %v4833_v49 = vpop.permute.xlu2 %4832  ;;  %v4829_v55 = vpop.permute.xlu0 %4828 }
 0x745   :  { %v5494_v60 = vpop.permute.xlu1 %5493  ;;  %v4964_v0 = vadd.f32 %v4829_v55, %v11562_v9  ;;  %v4966_v2 = vadd.f32 %v4833_v49, %v11629_v10 }
 0x747   :  { %v5629_v40 = vadd.f32 %v5494_v60, %v4964_v0 }
 0x749   :  { %v5693_v51 = vmax.f32 %v5629_v40, 0.0 }
 0x74b   :  { %6071 = vrot.lane.b32.xlu2 %v5693_v51, %s7906_s10 }
 0x74c   :  { %v6048_v12 = vpop.permute.xlu2 %6047  ;;  %v6044_v56 = vpop.permute.xlu0 %6043 }
 0x74d   :  { %v4831_v33 = vpop.permute.xlu1 %4830  ;;  %6196 = vst.msk [vmem:[%s12462_s7 + $0x160] sm:$0xff] %vm6151_vm2, %v6048_v12 }
 0x74e   :  { %v4965_v63 = vadd.f32 %v4831_v33, %v11599_v43  ;;  %6194 = vst.msk [vmem:[%s12462_s7 + $0x150] sm:$0xff] %vm6151_vm2, %v6044_v56 }
 0x750   :  { %v5630_v9 = vadd.f32 %v5496_v46, %v4965_v63 }
 0x752   :  { %v5694_v53 = vmax.f32 %v5630_v9, 0.0 }
 0x754   :  { %6073 = vrot.lane.b32.xlu0 %v5694_v53, %s7906_s10  ;;  %v5502_v17 = vpop.permute.xlu2 %5501  ;;  %v5498_v1 = vpop.permute.xlu0 %5497 }
 0x755   :  { %v6046_v23 = vpop.permute.xlu1 %6045  ;;  %v5631_v5 = vadd.f32 %v5498_v1, %v4966_v2 }
 0x756   :  { %6195 = vst.msk [vmem:[%s12462_s7 + $0x158] sm:$0xff] %vm6151_vm2, %v6046_v23 }
 0x757   :  { %v5695_v43 = vmax.f32 %v5631_v5, 0.0 }
 0x759   :  { %6075 = vrot.lane.b32.xlu1 %v5695_v43, %s7906_s10 }
 0x75c   :  { %v5508_v27 = vpop.permute.xlu2 %5507  ;;  %v4835_v29 = vpop.permute.xlu0 %4834 }
 0x75d   :  { %v5500_v31 = vpop.permute.xlu1 %5499  ;;  %v4967_v13 = vadd.f32 %v4835_v29, %v11666_v11 }
 0x75f   :  { %v5632_v10 = vadd.f32 %v5500_v31, %v4967_v13 }
 0x761   :  { %v5696_v58 = vmax.f32 %v5632_v10, 0.0 }
 0x763   :  { %6077 = vrot.lane.b32.xlu2 %v5696_v58, %s7906_s10 }
 0x764   :  { %v4843_v38 = vpop.permute.xlu2 %4842  ;;  %v6050_v62 = vpop.permute.xlu0 %6049 }
 0x765   :  { %v4837_v3 = vpop.permute.xlu1 %4836  ;;  %6197 = vst.msk [vmem:[%s12462_s7 + $0x168] sm:$0xff] %vm6151_vm2, %v6050_v62  ;;  %v4971_v30 = vadd.f32 %v4843_v38, %v11817_v45 }
 0x766   :  { %v4968_v37 = vadd.f32 %v4837_v3, %v11705_v44 }
 0x767   :  { %v5636_v41 = vadd.f32 %v5508_v27, %v4971_v30 }
 0x768   :  { %v5633_v47 = vadd.f32 %v5502_v17, %v4968_v37 }
 0x769   :  { %v5700_v24 = vmax.f32 %v5636_v41, 0.0 }
 0x76a   :  { %v5697_v50 = vmax.f32 %v5633_v47, 0.0 }
 0x76c   :  { %6079 = vrot.lane.b32.xlu0 %v5697_v50, %s7906_s10  ;;  %v6054_v11 = vpop.permute.xlu2 %6053  ;;  %v5504_v36 = vpop.permute.xlu0 %5503 }
 0x76d   :  { %v5506_v48 = vpop.permute.xlu1 %5505  ;;  %6199 = vst.msk [vmem:[%s12462_s7 + $0x178] sm:$0xff] %vm6151_vm2, %v6054_v11 }
 0x774   :  { %6085 = vrot.lane.b32.xlu0 %v5700_v24, %s7906_s10  ;;  %v6060_v18 = vpop.permute.xlu2 %6059  ;;  %v4839_v44 = vpop.permute.xlu0 %4838 }
 0x775   :  { %v4841_v20 = vpop.permute.xlu1 %4840  ;;  %6202 = vst.msk [vmem:[%s12462_s7 + $0x190] sm:$0xff] %vm6151_vm2, %v6060_v18  ;;  %v4969_v45 = vadd.f32 %v4839_v44, %v11749_v59 }
 0x776   :  { %v4970_v57 = vadd.f32 %v4841_v20, %v11783_v52 }
 0x777   :  { %v5634_v14 = vadd.f32 %v5504_v36, %v4969_v45 }
 0x778   :  { %v5635_v22 = vadd.f32 %v5506_v48, %v4970_v57 }
 0x779   :  { %v5698_v6 = vmax.f32 %v5634_v14, 0.0 }
 0x77a   :  { %v5699_v39 = vmax.f32 %v5635_v22, 0.0 }
 0x77b   :  { %6081 = vrot.lane.b32.xlu1 %v5698_v6, %s7906_s10 }
 0x77c   :  { %6083 = vrot.lane.b32.xlu2 %v5699_v39, %s7906_s10  ;;  %v6056_v32 = vpop.permute.xlu0 %6055 }
 0x77d   :  { %v6052_v35 = vpop.permute.xlu1 %6051  ;;  %6200 = vst.msk [vmem:[%s12462_s7 + $0x180] sm:$0xff] %vm6151_vm2, %v6056_v32 }
 0x77e   :  { %6198 = vst.msk [vmem:[%s12462_s7 + $0x170] sm:$0xff] %vm6151_vm2, %v6052_v35 }
 0x78a   :  { %v6066_v59 = vpop.permute.xlu2 %6065 }
 0x78b   :  { %6205 = vst.msk [vmem:[%s12462_s7 + $0x1a8] sm:$0xff] %vm6151_vm2, %v6066_v59 }
 0x78d   :  { %v6058_v52 = vpop.permute.xlu1 %6057  ;;  %v6062_v28 = vpop.permute.xlu0 %6061 }
 0x78e   :  { %6201 = vst.msk [vmem:[%s12462_s7 + $0x188] sm:$0xff] %vm6151_vm2, %v6058_v52 }
 0x78f   :  { %6203 = vst.msk [vmem:[%s12462_s7 + $0x198] sm:$0xff] %vm6151_vm2, %v6062_v28 }
 0x79b   :  { %v6064_v61 = vpop.permute.xlu1 %6063 }
 0x79c   :  { %6204 = vst.msk [vmem:[%s12462_s7 + $0x1a0] sm:$0xff] %vm6151_vm2, %v6064_v61 }
 0x7a5   :  { %v6072_v4 = vpop.permute.xlu2 %6071  ;;  %v6068_v15 = vpop.permute.xlu0 %6067 }
 0x7a6   :  { %6208 = vst.msk [vmem:[%s12462_s7 + $0x1c0] sm:$0xff] %vm6151_vm2, %v6072_v4 }
 0x7a7   :  { %6206 = vst.msk [vmem:[%s12462_s7 + $0x1b0] sm:$0xff] %vm6151_vm2, %v6068_v15 }
 0x7b3   :  { %v6070_v19 = vpop.permute.xlu1 %6069 }
 0x7b4   :  { %6207 = vst.msk [vmem:[%s12462_s7 + $0x1b8] sm:$0xff] %vm6151_vm2, %v6070_v19 }
 0x7bd   :  { %v6078_v42 = vpop.permute.xlu2 %6077 }
 0x7be   :  { %6211 = vst.msk [vmem:[%s12462_s7 + $0x1d8] sm:$0xff] %vm6151_vm2, %v6078_v42 }
 0x7c6   :  { %v6074_v26 = vpop.permute.xlu0 %6073 }
 0x7c7   :  { %6209 = vst.msk [vmem:[%s12462_s7 + $0x1c8] sm:$0xff] %vm6151_vm2, %v6074_v26 }
 0x7cb   :  { %v6076_v7 = vpop.permute.xlu1 %6075 }
 0x7cc   :  { %6210 = vst.msk [vmem:[%s12462_s7 + $0x1d0] sm:$0xff] %vm6151_vm2, %v6076_v7 }
 0x7d6   :  { %v6084_v21 = vpop.permute.xlu2 %6083 }
 0x7d7   :  { %6214 = vst.msk [vmem:[%s12462_s7 + $0x1f0] sm:$0xff] %vm6151_vm2, %v6084_v21 }
 0x7de   :  { %v6080_v25 = vpop.permute.xlu0 %6079 }
 0x7df   :  { %6212 = vst.msk [vmem:[%s12462_s7 + $0x1e0] sm:$0xff] %vm6151_vm2, %v6080_v25 }
 0x7e6   :  { %v6086_v46 = vpop.permute.xlu0 %6085 }
 0x7e7   :  { %6215 = vst.msk [vmem:[%s12462_s7 + $0x1f8] sm:$0xff] %vm6151_vm2, %v6086_v46 }
 0x7ed   :  { %v6082_v8 = vpop.permute.xlu1 %6081 }
 0x7ee   :  { %6213 = vst.msk [vmem:[%s12462_s7 + $0x1e8] sm:$0xff] %vm6151_vm2, %v6082_v8 }

</bundles_post_ra>
